<compile_context>
chip_gen: v5e
topology: v5e:2x2
jax: 0.10.0
libtpu: 0.0.40
codegen_flags: <defaults>
</compile_context>

<pallas_src>
import math

import jax
import jax.numpy as jnp
from jax.experimental import pallas as pl
from jax.experimental.pallas import tpu as pltpu

# ---- model hyperparameters (small, consistent with the module's __init__) ----
VOCAB = 16          # vocab_size
EMBED = 32          # embed_dim
HEADS = 4           # num_heads
HEAD_DIM = EMBED // HEADS
ENC_LAYERS = 2      # num_encoder_layers
DEC_LAYERS = 2      # num_decoder_layers
FFN = 64            # dim_feedforward
MAX_SEQ_LEN = 200
EPS = 1e-5
NEG_INF = -1e9      # stand-in for -inf in attention masks

# Matmul operand dtype.  jnp.bfloat16 gives native MXU throughput on v6e/v7x (accumulation
# stays f32 via preferred_element_type); f32 keeps exact parity with the PyTorch module and
# avoids slow bf16 elementwise paths on v5e.
MATMUL_DTYPE = jnp.float32

# Target number of folded rows per grid step (MXU M-dim fill).  128 feeds the v5e MXU;
# raise to 256 for full fill on v6e/v7x.
_TARGET_ROWS = 128


# --------------------------- the fused forward kernel ------------------------

def _seq2seq_kernel(src_ids_ref, tgt_ids_ref, emb_ref, pe_s_ref, pe_t_ref,
                    enc_mask_ref, dec_mask_ref, crs_mask_ref,
                    e_w_qkv, e_b_qkv, e_w_out, e_b_out,
                    e_w1, e_b1, e_w2, e_b2, e_ln, e_fn,
                    ds_w_qkv, ds_b_qkv, ds_w_out, ds_b_out,
                    dc_w_q, dc_b_q, dc_w_kv, dc_b_kv, dc_w_out, dc_b_out,
                    d_w1, d_b1, d_w2, d_b2, d_ln, d_fn,
                    fc_w, fc_b, out_ref, qkv_scr, head_scr):
    """One grid step = B_tile batch elements folded into the row dimension."""
    f32 = jnp.float32
    scale = 1.0 / math.sqrt(HEAD_DIM)

    def mm(a, b):
        return jnp.dot(a.astype(MATMUL_DTYPE), b.astype(MATMUL_DTYPE),
                       preferred_element_type=f32)

    def mm_nt(a, b):
        # (M, D) x (N, D) -> (M, N): contraction over the last dims of both operands,
        # i.e. a trans_b matmul with no explicit transpose (no XLU relayout).
        return jax.lax.dot_general(a.astype(MATMUL_DTYPE), b.astype(MATMUL_DTYPE),
                                   (((1,), (1,)), ((), ())),
                                   preferred_element_type=f32)

    def layer_norm(x, g, b):
        mu = jnp.mean(x, axis=-1, keepdims=True)
        var = jnp.mean(jnp.square(x - mu), axis=-1, keepdims=True)
        return (x - mu) * jax.lax.rsqrt(var + EPS) * g + b

    def softmax(s):
        m = jnp.max(s, axis=-1, keepdims=True)
        p = jnp.exp(s - m)
        return p * pl.reciprocal(jnp.sum(p, axis=-1, keepdims=True), approx=True)

    def mha(nq, nk, w_o, b_o, mask):
        """Multi-head attention.  qkv_scr[:, :E] holds q rows [0:nq]; [:, E:2E] / [:, 2E:3E]
        hold k / v rows [0:nk].  Per-head slices are read from the scratch ref (static ref
        slicing); head outputs are written back side-by-side so the output projection is a
        single (nq, E) @ (E, E) matmul."""
        for h in range(HEADS):
            q_h = qkv_scr[:nq, h * HEAD_DIM:(h + 1) * HEAD_DIM]
            k_h = qkv_scr[:nk, EMBED + h * HEAD_DIM:EMBED + (h + 1) * HEAD_DIM]
            v_h = qkv_scr[:nk, 2 * EMBED + h * HEAD_DIM:2 * EMBED + (h + 1) * HEAD_DIM]
            s = mm_nt(q_h, k_h) * scale + mask                  # (nq, nk)
            head_scr[:nq, h * HEAD_DIM:(h + 1) * HEAD_DIM] = mm(softmax(s), v_h)
        return mm(head_scr[:nq, :], w_o) + b_o                   # (nq, E)

    def self_attn(x, w_qkv, b_qkv, w_o, b_o, l, mask):
        n = x.shape[0]
        qkv_scr[:n, :] = mm(x, w_qkv[l]) + b_qkv[l]              # fused (E, 3E) projection
        return mha(n, n, w_o[l], b_o[l], mask)

    def cross_attn(y, mem, l, mask):
        nq, nk = y.shape[0], mem.shape[0]
        qkv_scr[:nq, :EMBED] = mm(y, dc_w_q[l]) + dc_b_q[l]      # q projection
        qkv_scr[:nk, EMBED:] = mm(mem, dc_w_kv[l]) + dc_b_kv[l]  # fused (E, 2E) k/v proj.
        return mha(nq, nk, dc_w_out[l], dc_b_out[l], mask)

    def embed(ids_ref, pe_ref):
        """Embedding lookup as an in-kernel one-hot matmul fused with the PE add."""
        ids = ids_ref[...]                                       # (M, 1) int32
        m = ids.shape[0]
        one_hot = (ids == jax.lax.broadcasted_iota(jnp.int32, (m, VOCAB), 1)).astype(f32)
        return mm(one_hot, emb_ref[...]) + pe_ref[...]

    enc_mask = enc_mask_ref[...]     # block-diagonal across the folded batch elements
    dec_mask = dec_mask_ref[...]     # block-diagonal + causal
    crs_mask = crs_mask_ref[...]     # block-diagonal (tgt rows x src rows)

    # ---------------- encoder stack ----------------
    x = embed(src_ids_ref, pe_s_ref)                             # (B_tile*Ss, E)
    for l in range(ENC_LAYERS):
        a = self_attn(x, e_w_qkv, e_b_qkv, e_w_out, e_b_out, l, enc_mask)
        x = layer_norm(x + a, e_ln[l, 0, 0], e_ln[l, 0, 1])
        ff = mm(jnp.maximum(mm(x, e_w1[l]) + e_b1[l], 0.0), e_w2[l]) + e_b2[l]
        x = layer_norm(x + ff, e_ln[l, 1, 0], e_ln[l, 1, 1])
    mem = layer_norm(x, e_fn[0], e_fn[1])                        # final encoder LayerNorm

    # ---------------- decoder stack ----------------
    y = embed(tgt_ids_ref, pe_t_ref)                             # (B_tile*St, E)
    for l in range(DEC_LAYERS):
        a = self_attn(y, ds_w_qkv, ds_b_qkv, ds_w_out, ds_b_out, l, dec_mask)
        y = layer_norm(y + a, d_ln[l, 0, 0], d_ln[l, 0, 1])
        c = cross_attn(y, mem, l, crs_mask)
        y = layer_norm(y + c, d_ln[l, 1, 0], d_ln[l, 1, 1])
        ff = mm(jnp.maximum(mm(y, d_w1[l]) + d_b1[l], 0.0), d_w2[l]) + d_b2[l]
        y = layer_norm(y + ff, d_ln[l, 2, 0], d_ln[l, 2, 1])
    y = layer_norm(y, d_fn[0], d_fn[1])                          # final decoder LayerNorm

    # output projection -> one (B_tile*St, VOCAB) store (block spans full array width,
    # so the HBM writeback is contiguous)
    out_ref[...] = (mm(y, fc_w[...]) + fc_b[...]).astype(out_ref.dtype)


# --------------------------- parameters / packing ----------------------------

def make_pos_encoding(max_len, d_model):
    pos = jnp.arange(max_len, dtype=jnp.float32)[:, None]
    i = jnp.arange(0, d_model, 2, dtype=jnp.float32)
    angle = 1.0 / (10000.0 ** (i / d_model))
    pe = jnp.zeros((max_len, d_model), jnp.float32)
    pe = pe.at[:, 0::2].set(jnp.sin(pos * angle))
    pe = pe.at[:, 1::2].set(jnp.cos(pos * angle))
    return pe


def init_params(key):
    """Logical (PyTorch-like) parameter layout."""
    keys = iter(jax.random.split(key, 256))
    scale = 0.05

    def w(shape):
        return jax.random.normal(next(keys), shape, jnp.float32) * scale

    def attn():
        return dict(wq=w((EMBED, EMBED)), bq=jnp.zeros((EMBED,), jnp.float32),
                    wk=w((EMBED, EMBED)), bk=jnp.zeros((EMBED,), jnp.float32),
                    wv=w((EMBED, EMBED)), bv=jnp.zeros((EMBED,), jnp.float32),
                    wo=w((EMBED, EMBED)), bo=jnp.zeros((EMBED,), jnp.float32))

    def enc_layer():
        return dict(self_attn=attn(),
                    w1=w((EMBED, FFN)), b1=jnp.zeros((FFN,), jnp.float32),
                    w2=w((FFN, EMBED)), b2=jnp.zeros((EMBED,), jnp.float32),
                    ln1_g=jnp.ones((EMBED,), jnp.float32), ln1_b=jnp.zeros((EMBED,), jnp.float32),
                    ln2_g=jnp.ones((EMBED,), jnp.float32), ln2_b=jnp.zeros((EMBED,), jnp.float32))

    def dec_layer():
        return dict(self_attn=attn(), cross_attn=attn(),
                    w1=w((EMBED, FFN)), b1=jnp.zeros((FFN,), jnp.float32),
                    w2=w((FFN, EMBED)), b2=jnp.zeros((EMBED,), jnp.float32),
                    ln1_g=jnp.ones((EMBED,), jnp.float32), ln1_b=jnp.zeros((EMBED,), jnp.float32),
                    ln2_g=jnp.ones((EMBED,), jnp.float32), ln2_b=jnp.zeros((EMBED,), jnp.float32),
                    ln3_g=jnp.ones((EMBED,), jnp.float32), ln3_b=jnp.zeros((EMBED,), jnp.float32))

    emb = w((VOCAB, EMBED)).at[0].set(0.0)      # padding_idx=0 -> zero row
    return dict(
        emb=emb,
        pe=make_pos_encoding(MAX_SEQ_LEN, EMBED),
        enc_layers=[enc_layer() for _ in range(ENC_LAYERS)],
        dec_layers=[dec_layer() for _ in range(DEC_LAYERS)],
        enc_norm_g=jnp.ones((EMBED,), jnp.float32), enc_norm_b=jnp.zeros((EMBED,), jnp.float32),
        dec_norm_g=jnp.ones((EMBED,), jnp.float32), dec_norm_b=jnp.zeros((EMBED,), jnp.float32),
        fc_w=w((EMBED, VOCAB)), fc_b=jnp.zeros((VOCAB,), jnp.float32),
    )


def pack_params(p):
    """Stack per-layer weights and fuse q/k/v into single (E, 3E) (or (E, 2E)) blocks so the
    kernel does one projection matmul per attention and one output projection."""
    def pack_self_attn(mods):
        w_qkv = jnp.stack([jnp.concatenate([m["wq"], m["wk"], m["wv"]], axis=1) for m in mods])
        b_qkv = jnp.stack([jnp.concatenate([m["bq"], m["bk"], m["bv"]]).reshape(1, 3 * EMBED)
                           for m in mods])
        w_out = jnp.stack([m["wo"] for m in mods])
        b_out = jnp.stack([m["bo"].reshape(1, EMBED) for m in mods])
        return w_qkv, b_qkv, w_out, b_out          # (L,E,3E), (L,1,3E), (L,E,E), (L,1,E)

    def pack_cross_attn(mods):
        w_q = jnp.stack([m["wq"] for m in mods])
        b_q = jnp.stack([m["bq"].reshape(1, EMBED) for m in mods])
        w_kv = jnp.stack([jnp.concatenate([m["wk"], m["wv"]], axis=1) for m in mods])
        b_kv = jnp.stack([jnp.concatenate([m["bk"], m["bv"]]).reshape(1, 2 * EMBED) for m in mods])
        w_out = jnp.stack([m["wo"] for m in mods])
        b_out = jnp.stack([m["bo"].reshape(1, EMBED) for m in mods])
        return w_q, b_q, w_kv, b_kv, w_out, b_out

    def pack_ffn(layers):
        return (jnp.stack([l["w1"] for l in layers]),
                jnp.stack([l["b1"].reshape(1, FFN) for l in layers]),
                jnp.stack([l["w2"] for l in layers]),
                jnp.stack([l["b2"].reshape(1, EMBED) for l in layers]))

    def pack_ln(layers, names):
        return jnp.stack([jnp.stack([jnp.stack([l[g].reshape(1, EMBED),
                                                l[b].reshape(1, EMBED)])
                                     for g, b in names]) for l in layers])    # (L,n,2,1,E)

    enc, dec = p["enc_layers"], p["dec_layers"]
    return dict(
        emb=p["emb"], pe=p["pe"],
        enc_attn=pack_self_attn([l["self_attn"] for l in enc]),
        enc_ffn=pack_ffn(enc),
        enc_ln=pack_ln(enc, [("ln1_g", "ln1_b"), ("ln2_g", "ln2_b")]),
        enc_fn=jnp.stack([p["enc_norm_g"].reshape(1, EMBED), p["enc_norm_b"].reshape(1, EMBED)]),
        dec_self=pack_self_attn([l["self_attn"] for l in dec]),
        dec_cross=pack_cross_attn([l["cross_attn"] for l in dec]),
        dec_ffn=pack_ffn(dec),
        dec_ln=pack_ln(dec, [("ln1_g", "ln1_b"), ("ln2_g", "ln2_b"), ("ln3_g", "ln3_b")]),
        dec_fn=jnp.stack([p["dec_norm_g"].reshape(1, EMBED), p["dec_norm_b"].reshape(1, EMBED)]),
        fc_w=p["fc_w"], fc_b=p["fc_b"].reshape(1, VOCAB),
    )


# --------------------------- masks / cost estimate ----------------------------

def _fold_masks(b_tile, s_src, s_tgt):
    """Additive masks for batch-folded attention: block-diagonal across the B_tile elements
    folded into the matmul M dimension, plus causal inside each decoder block.  Built once
    in the wrapper (plain XLA), VMEM-resident for every grid step."""
    def block(sq, sk, causal):
        r = jnp.arange(b_tile * sq, dtype=jnp.int32)[:, None]
        c = jnp.arange(b_tile * sk, dtype=jnp.int32)[None, :]
        bad = (r // sq) != (c // sk)
        if causal:
            bad = bad | ((c % sk) > (r % sq))
        return jnp.where(bad, NEG_INF, 0.0).astype(jnp.float32)
    return block(s_src, s_src, False), block(s_tgt, s_tgt, True), block(s_tgt, s_src, False)


def _cost_estimate(B, Ss, St):
    E, F, H, Dh = EMBED, FFN, HEADS, HEAD_DIM

    def attn(rq, rk):
        proj = 2 * rq * E * E + 2 * 2 * rk * E * E      # q + k/v in-projections
        scores = 2 * 2 * H * rq * rk * Dh               # qk^T and p@v
        return proj + scores + 2 * rq * E * E           # out-projection

    def ffn(r):
        return 2 * 2 * r * E * F

    per_batch = (2 * (Ss + St) * VOCAB * E              # embedding one-hot matmuls
                 + ENC_LAYERS * (attn(Ss, Ss) + ffn(Ss))
                 + DEC_LAYERS * (attn(St, St) + attn(St, Ss) + ffn(St))
                 + 2 * St * E * VOCAB)                  # fc_out
    trans = ENC_LAYERS * H * Ss * Ss + DEC_LAYERS * H * (St * St + St * Ss)  # exp() count
    return B * per_batch, B * trans


# --------------------------- wrapper ------------------------------------------

def forward(kp, src, tgt):
    """Full Seq2SeqTransformer forward: one fused pallas_call, B_tile elements per grid step."""
    B, Ss = src.shape
    St = tgt.shape[1]

    # Fold B_tile batch elements into the matmul M dimension (target ~_TARGET_ROWS rows).
    cap = max(1, _TARGET_ROWS // max(Ss, St))
    b_tile = 1
    for d in range(1, min(B, cap) + 1):
        if B % d == 0:
            b_tile = d
    n_tiles = B // b_tile
    if n_tiles > 1:
        assert (b_tile * Ss) % 8 == 0 and (b_tile * St) % 8 == 0, \
            "folded row counts must be sublane (8) aligned when the grid has >1 step"
    max_m = max(b_tile * Ss, b_tile * St)

    src_ids = src.reshape(B * Ss, 1).astype(jnp.int32)
    tgt_ids = tgt.reshape(B * St, 1).astype(jnp.int32)
    pe_s = jnp.tile(kp["pe"][:Ss], (b_tile, 1))          # (B_tile*Ss, E), same every step
    pe_t = jnp.tile(kp["pe"][:St], (b_tile, 1))
    enc_mask, dec_mask, crs_mask = _fold_masks(b_tile, Ss, St)

    args = (src_ids, tgt_ids, kp["emb"], pe_s, pe_t, enc_mask, dec_mask, crs_mask,
            *kp["enc_attn"], *kp["enc_ffn"], kp["enc_ln"], kp["enc_fn"],
            *kp["dec_self"], *kp["dec_cross"], *kp["dec_ffn"], kp["dec_ln"], kp["dec_fn"],
            kp["fc_w"], kp["fc_b"])

    # Weights / PE / masks: whole-array, VMEM-resident for every grid step (block index
    # never changes, so they are fetched exactly once).  Only token ids and logits are
    # blocked per batch tile.
    vmem = pl.BlockSpec(memory_space=pltpu.MemorySpace.VMEM)
    in_specs = [
        pl.BlockSpec((b_tile * Ss, 1), lambda i: (i, 0)),        # src token ids for tile i
        pl.BlockSpec((b_tile * St, 1), lambda i: (i, 0)),        # tgt token ids for tile i
    ] + [vmem] * (len(args) - 2)

    flops, trans = _cost_estimate(B, Ss, St)
    bytes_accessed = sum(int(a.size) * a.dtype.itemsize for a in args) + B * St * VOCAB * 4

    out = pl.pallas_call(
        _seq2seq_kernel,
        out_shape=jax.ShapeDtypeStruct((B * St, VOCAB), jnp.float32),
        grid=(n_tiles,),
        in_specs=in_specs,
        out_specs=pl.BlockSpec((b_tile * St, VOCAB), lambda i: (i, 0)),
        scratch_shapes=[
            pltpu.VMEM((max_m, 3 * EMBED), jnp.float32),         # fused q|k|v buffer
            pltpu.VMEM((max_m, EMBED), jnp.float32),             # merged head outputs
        ],
        compiler_params=pltpu.CompilerParams(
            dimension_semantics=("parallel",)),                  # batch tiles -> both TCs
        cost_estimate=pl.CostEstimate(flops=int(flops), transcendentals=int(trans),
                                      bytes_accessed=int(bytes_accessed)),
    )(*args)
    return out.reshape(B, St, VOCAB)


# --------------------------- pure-JAX reference --------------------------------

def reference_forward(p, src, tgt):
    """Non-Pallas reference mirroring nn.Transformer default (post-norm, ReLU) semantics."""
    Ss, St = src.shape[1], tgt.shape[1]
    emb, pe = p["emb"], p["pe"]

    def ln(x, g, b):
        mu = x.mean(-1, keepdims=True)
        var = ((x - mu) ** 2).mean(-1, keepdims=True)
        return (x - mu) / jnp.sqrt(var + EPS) * g + b

    def mha(q_in, kv_in, m, mask):
        q = q_in @ m["wq"] + m["bq"]
        k = kv_in @ m["wk"] + m["bk"]
        v = kv_in @ m["wv"] + m["bv"]

        def split(t):
            b, s, _ = t.shape
            return t.reshape(b, s, HEADS, HEAD_DIM).transpose(0, 2, 1, 3)

        qh, kh, vh = split(q), split(k), split(v)
        s = jnp.einsum("bhqd,bhkd->bhqk", qh, kh) / math.sqrt(HEAD_DIM)
        if mask is not None:
            s = s + mask
        a = jax.nn.softmax(s, axis=-1)
        o = jnp.einsum("bhqk,bhkd->bhqd", a, vh).transpose(0, 2, 1, 3).reshape(q.shape)
        return o @ m["wo"] + m["bo"]

    x = emb[src] + pe[:Ss]
    for lyr in p["enc_layers"]:
        x = ln(x + mha(x, x, lyr["self_attn"], None), lyr["ln1_g"], lyr["ln1_b"])
        ff = jnp.maximum(x @ lyr["w1"] + lyr["b1"], 0.0) @ lyr["w2"] + lyr["b2"]
        x = ln(x + ff, lyr["ln2_g"], lyr["ln2_b"])
    memv = ln(x, p["enc_norm_g"], p["enc_norm_b"])

    causal = jnp.where(jnp.arange(St)[None, :] > jnp.arange(St)[:, None],
                       NEG_INF, 0.0).astype(jnp.float32)
    y = emb[tgt] + pe[:St]
    for lyr in p["dec_layers"]:
        y = ln(y + mha(y, y, lyr["self_attn"], causal), lyr["ln1_g"], lyr["ln1_b"])
        y = ln(y + mha(y, memv, lyr["cross_attn"], None), lyr["ln2_g"], lyr["ln2_b"])
        ff = jnp.maximum(y @ lyr["w1"] + lyr["b1"], 0.0) @ lyr["w2"] + lyr["b2"]
        y = ln(y + ff, lyr["ln3_g"], lyr["ln3_b"])
    y = ln(y, p["dec_norm_g"], p["dec_norm_b"])
    return y @ p["fc_w"] + p["fc_b"]


# --------------------------------- demo ---------------------------------------

if __name__ == "__main__":
    key = jax.random.PRNGKey(0)
    kparams, ksrc, ktgt = jax.random.split(key, 3)
    logical = init_params(kparams)
    packed = pack_params(logical)

    B, Ss, St = 2, 8, 8
    src = jax.random.randint(ksrc, (B, Ss), 0, VOCAB, dtype=jnp.int32)
    tgt = jax.random.randint(ktgt, (B, St), 0, VOCAB, dtype=jnp.int32)

    fwd = jax.jit(forward)
    out = fwd(packed, src, tgt)
    jax.block_until_ready(out)

    assert out.shape == (B, St, VOCAB) and out.dtype == jnp.float32
    assert bool(jnp.all(jnp.isfinite(out)))

    ref = reference_forward(logical, src, tgt)
    max_diff = float(jnp.max(jnp.abs(out - ref)))
    assert bool(jnp.allclose(out, ref, atol=2e-2, rtol=2e-2)), f"max abs diff {max_diff}"

    print("KERNEL_OK")
</pallas_src>

<mosaic_0001>
module attributes {stable_mosaic.version = 11 : i64} {
  func.func @_seq2seq_kernel(%arg0: i32, %arg1: memref<16x1xi32, #tpu.memory_space<vmem>>, %arg2: memref<16x1xi32, #tpu.memory_space<vmem>>, %arg3: memref<16x32xf32, #tpu.memory_space<vmem>>, %arg4: memref<16x32xf32, #tpu.memory_space<vmem>>, %arg5: memref<16x32xf32, #tpu.memory_space<vmem>>, %arg6: memref<16x16xf32, #tpu.memory_space<vmem>>, %arg7: memref<16x16xf32, #tpu.memory_space<vmem>>, %arg8: memref<16x16xf32, #tpu.memory_space<vmem>>, %arg9: memref<2x32x96xf32, #tpu.memory_space<vmem>>, %arg10: memref<2x1x96xf32, #tpu.memory_space<vmem>>, %arg11: memref<2x32x32xf32, #tpu.memory_space<vmem>>, %arg12: memref<2x1x32xf32, #tpu.memory_space<vmem>>, %arg13: memref<2x32x64xf32, #tpu.memory_space<vmem>>, %arg14: memref<2x1x64xf32, #tpu.memory_space<vmem>>, %arg15: memref<2x64x32xf32, #tpu.memory_space<vmem>>, %arg16: memref<2x1x32xf32, #tpu.memory_space<vmem>>, %arg17: memref<2x2x2x1x32xf32, #tpu.memory_space<vmem>>, %arg18: memref<2x1x32xf32, #tpu.memory_space<vmem>>, %arg19: memref<2x32x96xf32, #tpu.memory_space<vmem>>, %arg20: memref<2x1x96xf32, #tpu.memory_space<vmem>>, %arg21: memref<2x32x32xf32, #tpu.memory_space<vmem>>, %arg22: memref<2x1x32xf32, #tpu.memory_space<vmem>>, %arg23: memref<2x32x32xf32, #tpu.memory_space<vmem>>, %arg24: memref<2x1x32xf32, #tpu.memory_space<vmem>>, %arg25: memref<2x32x64xf32, #tpu.memory_space<vmem>>, %arg26: memref<2x1x64xf32, #tpu.memory_space<vmem>>, %arg27: memref<2x32x32xf32, #tpu.memory_space<vmem>>, %arg28: memref<2x1x32xf32, #tpu.memory_space<vmem>>, %arg29: memref<2x32x64xf32, #tpu.memory_space<vmem>>, %arg30: memref<2x1x64xf32, #tpu.memory_space<vmem>>, %arg31: memref<2x64x32xf32, #tpu.memory_space<vmem>>, %arg32: memref<2x1x32xf32, #tpu.memory_space<vmem>>, %arg33: memref<2x3x2x1x32xf32, #tpu.memory_space<vmem>>, %arg34: memref<2x1x32xf32, #tpu.memory_space<vmem>>, %arg35: memref<32x16xf32, #tpu.memory_space<vmem>>, %arg36: memref<1x16xf32, #tpu.memory_space<vmem>>, %arg37: memref<16x16xf32, #tpu.memory_space<vmem>>, %arg38: memref<16x96xf32, #tpu.memory_space<vmem>>, %arg39: memref<16x32xf32, #tpu.memory_space<vmem>>) attributes {dimension_semantics = [#tpu.dimension_semantics<parallel>], iteration_bounds = array<i64: 1>, scalar_prefetch = 0 : i64, scratch_operands = 2 : i64, tpu.core_type = #tpu.core_type<tc>, window_params = [{transform_indices = @transform_0, window_bounds = array<i64: 16, 1>}, {transform_indices = @transform_1, window_bounds = array<i64: 16, 1>}, {pipeline_mode = #tpu.pipeline_mode<synchronous>, transform_indices = @transform_2, window_bounds = array<i64: 16, 32>}, {pipeline_mode = #tpu.pipeline_mode<synchronous>, transform_indices = @transform_3, window_bounds = array<i64: 16, 32>}, {pipeline_mode = #tpu.pipeline_mode<synchronous>, transform_indices = @transform_4, window_bounds = array<i64: 16, 32>}, {pipeline_mode = #tpu.pipeline_mode<synchronous>, transform_indices = @transform_5, window_bounds = array<i64: 16, 16>}, {pipeline_mode = #tpu.pipeline_mode<synchronous>, transform_indices = @transform_6, window_bounds = array<i64: 16, 16>}, {pipeline_mode = #tpu.pipeline_mode<synchronous>, transform_indices = @transform_7, window_bounds = array<i64: 16, 16>}, {pipeline_mode = #tpu.pipeline_mode<synchronous>, transform_indices = @transform_8, window_bounds = array<i64: 2, 32, 96>}, {pipeline_mode = #tpu.pipeline_mode<synchronous>, transform_indices = @transform_9, window_bounds = array<i64: 2, 1, 96>}, {pipeline_mode = #tpu.pipeline_mode<synchronous>, transform_indices = @transform_10, window_bounds = array<i64: 2, 32, 32>}, {pipeline_mode = #tpu.pipeline_mode<synchronous>, transform_indices = @transform_11, window_bounds = array<i64: 2, 1, 32>}, {pipeline_mode = #tpu.pipeline_mode<synchronous>, transform_indices = @transform_12, window_bounds = array<i64: 2, 32, 64>}, {pipeline_mode = #tpu.pipeline_mode<synchronous>, transform_indices = @transform_13, window_bounds = array<i64: 2, 1, 64>}, {pipeline_mode = #tpu.pipeline_mode<synchronous>, transform_indices = @transform_14, window_bounds = array<i64: 2, 64, 32>}, {pipeline_mode = #tpu.pipeline_mode<synchronous>, transform_indices = @transform_15, window_bounds = array<i64: 2, 1, 32>}, {pipeline_mode = #tpu.pipeline_mode<synchronous>, transform_indices = @transform_16, window_bounds = array<i64: 2, 2, 2, 1, 32>}, {pipeline_mode = #tpu.pipeline_mode<synchronous>, transform_indices = @transform_17, window_bounds = array<i64: 2, 1, 32>}, {pipeline_mode = #tpu.pipeline_mode<synchronous>, transform_indices = @transform_18, window_bounds = array<i64: 2, 32, 96>}, {pipeline_mode = #tpu.pipeline_mode<synchronous>, transform_indices = @transform_19, window_bounds = array<i64: 2, 1, 96>}, {pipeline_mode = #tpu.pipeline_mode<synchronous>, transform_indices = @transform_20, window_bounds = array<i64: 2, 32, 32>}, {pipeline_mode = #tpu.pipeline_mode<synchronous>, transform_indices = @transform_21, window_bounds = array<i64: 2, 1, 32>}, {pipeline_mode = #tpu.pipeline_mode<synchronous>, transform_indices = @transform_22, window_bounds = array<i64: 2, 32, 32>}, {pipeline_mode = #tpu.pipeline_mode<synchronous>, transform_indices = @transform_23, window_bounds = array<i64: 2, 1, 32>}, {pipeline_mode = #tpu.pipeline_mode<synchronous>, transform_indices = @transform_24, window_bounds = array<i64: 2, 32, 64>}, {pipeline_mode = #tpu.pipeline_mode<synchronous>, transform_indices = @transform_25, window_bounds = array<i64: 2, 1, 64>}, {pipeline_mode = #tpu.pipeline_mode<synchronous>, transform_indices = @transform_26, window_bounds = array<i64: 2, 32, 32>}, {pipeline_mode = #tpu.pipeline_mode<synchronous>, transform_indices = @transform_27, window_bounds = array<i64: 2, 1, 32>}, {pipeline_mode = #tpu.pipeline_mode<synchronous>, transform_indices = @transform_28, window_bounds = array<i64: 2, 32, 64>}, {pipeline_mode = #tpu.pipeline_mode<synchronous>, transform_indices = @transform_29, window_bounds = array<i64: 2, 1, 64>}, {pipeline_mode = #tpu.pipeline_mode<synchronous>, transform_indices = @transform_30, window_bounds = array<i64: 2, 64, 32>}, {pipeline_mode = #tpu.pipeline_mode<synchronous>, transform_indices = @transform_31, window_bounds = array<i64: 2, 1, 32>}, {pipeline_mode = #tpu.pipeline_mode<synchronous>, transform_indices = @transform_32, window_bounds = array<i64: 2, 3, 2, 1, 32>}, {pipeline_mode = #tpu.pipeline_mode<synchronous>, transform_indices = @transform_33, window_bounds = array<i64: 2, 1, 32>}, {pipeline_mode = #tpu.pipeline_mode<synchronous>, transform_indices = @transform_34, window_bounds = array<i64: 32, 16>}, {pipeline_mode = #tpu.pipeline_mode<synchronous>, transform_indices = @transform_35, window_bounds = array<i64: 1, 16>}, {transform_indices = @transform_36, window_bounds = array<i64: 16, 16>}]} {
    %c0 = arith.constant 0 : index
    %c0_0 = arith.constant 0 : index
    %0 = vector.load %arg6[%c0, %c0_0] : memref<16x16xf32, #tpu.memory_space<vmem>>, vector<16x16xf32>
    %c0_1 = arith.constant 0 : index
    %c0_2 = arith.constant 0 : index
    %1 = vector.load %arg7[%c0_1, %c0_2] : memref<16x16xf32, #tpu.memory_space<vmem>>, vector<16x16xf32>
    %c0_3 = arith.constant 0 : index
    %c0_4 = arith.constant 0 : index
    %2 = vector.load %arg8[%c0_3, %c0_4] : memref<16x16xf32, #tpu.memory_space<vmem>>, vector<16x16xf32>
    %c0_5 = arith.constant 0 : index
    %c0_6 = arith.constant 0 : index
    %3 = vector.load %arg1[%c0_5, %c0_6] : memref<16x1xi32, #tpu.memory_space<vmem>>, vector<16x1xi32>
    %4 = tpu.iota {dimensions = array<i32: 1>} : vector<16x16xi32>
    %5 = vector.broadcast %3 : vector<16x1xi32> to vector<16x16xi32>
    %6 = arith.cmpi eq, %5, %4 : vector<16x16xi32>
    %7 = arith.extui %6 : vector<16x16xi1> to vector<16x16xi32>
    %8 = arith.sitofp %7 : vector<16x16xi32> to vector<16x16xf32>
    %c0_7 = arith.constant 0 : index
    %c0_8 = arith.constant 0 : index
    %9 = vector.load %arg3[%c0_7, %c0_8] : memref<16x32xf32, #tpu.memory_space<vmem>>, vector<16x32xf32>
    %cst = arith.constant dense<0.000000e+00> : vector<16x32xf32>
    %10 = tpu.matmul %8, %9, %cst {dimension_numbers = #tpu.dot_dimension_numbers<[1], [0], [0], [1], [0, 0, 1, 1], [], []>} : vector<16x16xf32>, vector<16x32xf32>, vector<16x32xf32> -> vector<16x32xf32>
    %c0_9 = arith.constant 0 : index
    %c0_10 = arith.constant 0 : index
    %11 = vector.load %arg4[%c0_9, %c0_10] : memref<16x32xf32, #tpu.memory_space<vmem>>, vector<16x32xf32>
    %12 = arith.addf %10, %11 : vector<16x32xf32>
    %c0_11 = arith.constant 0 : index
    %c0_12 = arith.constant 0 : index
    %c0_13 = arith.constant 0 : index
    %13 = vector.load %arg9[%c0_11, %c0_12, %c0_13] : memref<2x32x96xf32, #tpu.memory_space<vmem>>, vector<1x32x96xf32>
    %14 = vector.shape_cast %13 : vector<1x32x96xf32> to vector<32x96xf32>
    %cst_14 = arith.constant dense<0.000000e+00> : vector<16x96xf32>
    %15 = tpu.matmul %12, %14, %cst_14 {dimension_numbers = #tpu.dot_dimension_numbers<[1], [0], [0], [1], [0, 0, 1, 1], [], []>} : vector<16x32xf32>, vector<32x96xf32>, vector<16x96xf32> -> vector<16x96xf32>
    %c0_15 = arith.constant 0 : index
    %c0_16 = arith.constant 0 : index
    %c0_17 = arith.constant 0 : index
    %16 = vector.load %arg10[%c0_15, %c0_16, %c0_17] : memref<2x1x96xf32, #tpu.memory_space<vmem>>, vector<1x1x96xf32>
    %17 = vector.shape_cast %16 : vector<1x1x96xf32> to vector<1x96xf32>
    %18 = vector.broadcast %17 : vector<1x96xf32> to vector<16x96xf32>
    %19 = arith.addf %15, %18 : vector<16x96xf32>
    %c0_18 = arith.constant 0 : index
    %c0_19 = arith.constant 0 : index
    %20 = vector.load %arg38[%c0_18, %c0_19] : memref<16x96xf32, #tpu.memory_space<vmem>>, vector<16x96xf32>
    tpu.vector_store %arg38[%c0_18, %c0_19], %19 {strides = array<i32>} : memref<16x96xf32, #tpu.memory_space<vmem>>, vector<16x96xf32>,
    %c0_20 = arith.constant 0 : index
    %c0_21 = arith.constant 0 : index
    %c0_22 = arith.constant 0 : index
    %21 = vector.load %arg11[%c0_20, %c0_21, %c0_22] : memref<2x32x32xf32, #tpu.memory_space<vmem>>, vector<1x32x32xf32>
    %22 = vector.shape_cast %21 : vector<1x32x32xf32> to vector<32x32xf32>
    %c0_23 = arith.constant 0 : index
    %c0_24 = arith.constant 0 : index
    %c0_25 = arith.constant 0 : index
    %23 = vector.load %arg12[%c0_23, %c0_24, %c0_25] : memref<2x1x32xf32, #tpu.memory_space<vmem>>, vector<1x1x32xf32>
    %24 = vector.shape_cast %23 : vector<1x1x32xf32> to vector<1x32xf32>
    %c0_26 = arith.constant 0 : index
    %c0_27 = arith.constant 0 : index
    %25 = vector.load %arg38[%c0_26, %c0_27] : memref<16x96xf32, #tpu.memory_space<vmem>>, vector<16x8xf32>
    %c0_28 = arith.constant 0 : index
    %c32 = arith.constant 32 : index
    %26 = vector.load %arg38[%c0_28, %c32] : memref<16x96xf32, #tpu.memory_space<vmem>>, vector<16x8xf32>
    %c0_29 = arith.constant 0 : index
    %c64 = arith.constant 64 : index
    %27 = vector.load %arg38[%c0_29, %c64] : memref<16x96xf32, #tpu.memory_space<vmem>>, vector<16x8xf32>
    %cst_30 = arith.constant dense<0.000000e+00> : vector<16x16xf32>
    %28 = tpu.matmul %25, %26, %cst_30 {dimension_numbers = #tpu.dot_dimension_numbers<[1], [1], [0], [0], [0, 0, 1, 0], [], []>} : vector<16x8xf32>, vector<16x8xf32>, vector<16x16xf32> -> vector<16x16xf32>
    %cst_31 = arith.constant 0.353553385 : f32
    %29 = vector.broadcast %cst_31 : f32 to vector<16x16xf32>
    %30 = arith.mulf %28, %29 : vector<16x16xf32>
    %31 = arith.addf %30, %0 : vector<16x16xf32>
    %cst_32 = arith.constant dense<0xFF800000> : vector<16xf32>
    %32 = vector.multi_reduction <maximumf>, %31, %cst_32 [1] : vector<16x16xf32> to vector<16xf32>
    %33 = vector.shape_cast %32 : vector<16xf32> to vector<16x1xf32>
    %34 = vector.broadcast %33 : vector<16x1xf32> to vector<16x16xf32>
    %35 = arith.subf %31, %34 : vector<16x16xf32>
    %36 = math.exp %35 : vector<16x16xf32>
    %cst_33 = arith.constant dense<0.000000e+00> : vector<16xf32>
    %37 = vector.multi_reduction <add>, %36, %cst_33 [1] : vector<16x16xf32> to vector<16xf32>
    %38 = vector.shape_cast %37 : vector<16xf32> to vector<16x1xf32>
    %39 = tpu.reciprocal %38 {approx = true} : vector<16x1xf32> -> vector<16x1xf32>
    %40 = vector.broadcast %39 : vector<16x1xf32> to vector<16x16xf32>
    %41 = arith.mulf %36, %40 : vector<16x16xf32>
    %cst_34 = arith.constant dense<0.000000e+00> : vector<16x8xf32>
    %42 = tpu.matmul %41, %27, %cst_34 {dimension_numbers = #tpu.dot_dimension_numbers<[1], [0], [0], [1], [0, 0, 1, 1], [], []>} : vector<16x16xf32>, vector<16x8xf32>, vector<16x8xf32> -> vector<16x8xf32>
    %c0_35 = arith.constant 0 : index
    %c0_36 = arith.constant 0 : index
    %43 = vector.load %arg39[%c0_35, %c0_36] : memref<16x32xf32, #tpu.memory_space<vmem>>, vector<16x8xf32>
    tpu.vector_store %arg39[%c0_35, %c0_36], %42 {strides = array<i32>} : memref<16x32xf32, #tpu.memory_space<vmem>>, vector<16x8xf32>,
    %c0_37 = arith.constant 0 : index
    %c8 = arith.constant 8 : index
    %44 = vector.load %arg38[%c0_37, %c8] : memref<16x96xf32, #tpu.memory_space<vmem>>, vector<16x8xf32>
    %c0_38 = arith.constant 0 : index
    %c40 = arith.constant 40 : index
    %45 = vector.load %arg38[%c0_38, %c40] : memref<16x96xf32, #tpu.memory_space<vmem>>, vector<16x8xf32>
    %c0_39 = arith.constant 0 : index
    %c72 = arith.constant 72 : index
    %46 = vector.load %arg38[%c0_39, %c72] : memref<16x96xf32, #tpu.memory_space<vmem>>, vector<16x8xf32>
    %cst_40 = arith.constant dense<0.000000e+00> : vector<16x16xf32>
    %47 = tpu.matmul %44, %45, %cst_40 {dimension_numbers = #tpu.dot_dimension_numbers<[1], [1], [0], [0], [0, 0, 1, 0], [], []>} : vector<16x8xf32>, vector<16x8xf32>, vector<16x16xf32> -> vector<16x16xf32>
    %cst_41 = arith.constant 0.353553385 : f32
    %48 = vector.broadcast %cst_41 : f32 to vector<16x16xf32>
    %49 = arith.mulf %47, %48 : vector<16x16xf32>
    %50 = arith.addf %49, %0 : vector<16x16xf32>
    %cst_42 = arith.constant dense<0xFF800000> : vector<16xf32>
    %51 = vector.multi_reduction <maximumf>, %50, %cst_42 [1] : vector<16x16xf32> to vector<16xf32>
    %52 = vector.shape_cast %51 : vector<16xf32> to vector<16x1xf32>
    %53 = vector.broadcast %52 : vector<16x1xf32> to vector<16x16xf32>
    %54 = arith.subf %50, %53 : vector<16x16xf32>
    %55 = math.exp %54 : vector<16x16xf32>
    %cst_43 = arith.constant dense<0.000000e+00> : vector<16xf32>
    %56 = vector.multi_reduction <add>, %55, %cst_43 [1] : vector<16x16xf32> to vector<16xf32>
    %57 = vector.shape_cast %56 : vector<16xf32> to vector<16x1xf32>
    %58 = tpu.reciprocal %57 {approx = true} : vector<16x1xf32> -> vector<16x1xf32>
    %59 = vector.broadcast %58 : vector<16x1xf32> to vector<16x16xf32>
    %60 = arith.mulf %55, %59 : vector<16x16xf32>
    %cst_44 = arith.constant dense<0.000000e+00> : vector<16x8xf32>
    %61 = tpu.matmul %60, %46, %cst_44 {dimension_numbers = #tpu.dot_dimension_numbers<[1], [0], [0], [1], [0, 0, 1, 1], [], []>} : vector<16x16xf32>, vector<16x8xf32>, vector<16x8xf32> -> vector<16x8xf32>
    %c0_45 = arith.constant 0 : index
    %c8_46 = arith.constant 8 : index
    %62 = vector.load %arg39[%c0_45, %c8_46] : memref<16x32xf32, #tpu.memory_space<vmem>>, vector<16x8xf32>
    tpu.vector_store %arg39[%c0_45, %c8_46], %61 {strides = array<i32>} : memref<16x32xf32, #tpu.memory_space<vmem>>, vector<16x8xf32>,
    %c0_47 = arith.constant 0 : index
    %c16 = arith.constant 16 : index
    %63 = vector.load %arg38[%c0_47, %c16] : memref<16x96xf32, #tpu.memory_space<vmem>>, vector<16x8xf32>
    %c0_48 = arith.constant 0 : index
    %c48 = arith.constant 48 : index
    %64 = vector.load %arg38[%c0_48, %c48] : memref<16x96xf32, #tpu.memory_space<vmem>>, vector<16x8xf32>
    %c0_49 = arith.constant 0 : index
    %c80 = arith.constant 80 : index
    %65 = vector.load %arg38[%c0_49, %c80] : memref<16x96xf32, #tpu.memory_space<vmem>>, vector<16x8xf32>
    %cst_50 = arith.constant dense<0.000000e+00> : vector<16x16xf32>
    %66 = tpu.matmul %63, %64, %cst_50 {dimension_numbers = #tpu.dot_dimension_numbers<[1], [1], [0], [0], [0, 0, 1, 0], [], []>} : vector<16x8xf32>, vector<16x8xf32>, vector<16x16xf32> -> vector<16x16xf32>
    %cst_51 = arith.constant 0.353553385 : f32
    %67 = vector.broadcast %cst_51 : f32 to vector<16x16xf32>
    %68 = arith.mulf %66, %67 : vector<16x16xf32>
    %69 = arith.addf %68, %0 : vector<16x16xf32>
    %cst_52 = arith.constant dense<0xFF800000> : vector<16xf32>
    %70 = vector.multi_reduction <maximumf>, %69, %cst_52 [1] : vector<16x16xf32> to vector<16xf32>
    %71 = vector.shape_cast %70 : vector<16xf32> to vector<16x1xf32>
    %72 = vector.broadcast %71 : vector<16x1xf32> to vector<16x16xf32>
    %73 = arith.subf %69, %72 : vector<16x16xf32>
    %74 = math.exp %73 : vector<16x16xf32>
    %cst_53 = arith.constant dense<0.000000e+00> : vector<16xf32>
    %75 = vector.multi_reduction <add>, %74, %cst_53 [1] : vector<16x16xf32> to vector<16xf32>
    %76 = vector.shape_cast %75 : vector<16xf32> to vector<16x1xf32>
    %77 = tpu.reciprocal %76 {approx = true} : vector<16x1xf32> -> vector<16x1xf32>
    %78 = vector.broadcast %77 : vector<16x1xf32> to vector<16x16xf32>
    %79 = arith.mulf %74, %78 : vector<16x16xf32>
    %cst_54 = arith.constant dense<0.000000e+00> : vector<16x8xf32>
    %80 = tpu.matmul %79, %65, %cst_54 {dimension_numbers = #tpu.dot_dimension_numbers<[1], [0], [0], [1], [0, 0, 1, 1], [], []>} : vector<16x16xf32>, vector<16x8xf32>, vector<16x8xf32> -> vector<16x8xf32>
    %c0_55 = arith.constant 0 : index
    %c16_56 = arith.constant 16 : index
    %81 = vector.load %arg39[%c0_55, %c16_56] : memref<16x32xf32, #tpu.memory_space<vmem>>, vector<16x8xf32>
    tpu.vector_store %arg39[%c0_55, %c16_56], %80 {strides = array<i32>} : memref<16x32xf32, #tpu.memory_space<vmem>>, vector<16x8xf32>,
    %c0_57 = arith.constant 0 : index
    %c24 = arith.constant 24 : index
    %82 = vector.load %arg38[%c0_57, %c24] : memref<16x96xf32, #tpu.memory_space<vmem>>, vector<16x8xf32>
    %c0_58 = arith.constant 0 : index
    %c56 = arith.constant 56 : index
    %83 = vector.load %arg38[%c0_58, %c56] : memref<16x96xf32, #tpu.memory_space<vmem>>, vector<16x8xf32>
    %c0_59 = arith.constant 0 : index
    %c88 = arith.constant 88 : index
    %84 = vector.load %arg38[%c0_59, %c88] : memref<16x96xf32, #tpu.memory_space<vmem>>, vector<16x8xf32>
    %cst_60 = arith.constant dense<0.000000e+00> : vector<16x16xf32>
    %85 = tpu.matmul %82, %83, %cst_60 {dimension_numbers = #tpu.dot_dimension_numbers<[1], [1], [0], [0], [0, 0, 1, 0], [], []>} : vector<16x8xf32>, vector<16x8xf32>, vector<16x16xf32> -> vector<16x16xf32>
    %cst_61 = arith.constant 0.353553385 : f32
    %86 = vector.broadcast %cst_61 : f32 to vector<16x16xf32>
    %87 = arith.mulf %85, %86 : vector<16x16xf32>
    %88 = arith.addf %87, %0 : vector<16x16xf32>
    %cst_62 = arith.constant dense<0xFF800000> : vector<16xf32>
    %89 = vector.multi_reduction <maximumf>, %88, %cst_62 [1] : vector<16x16xf32> to vector<16xf32>
    %90 = vector.shape_cast %89 : vector<16xf32> to vector<16x1xf32>
    %91 = vector.broadcast %90 : vector<16x1xf32> to vector<16x16xf32>
    %92 = arith.subf %88, %91 : vector<16x16xf32>
    %93 = math.exp %92 : vector<16x16xf32>
    %cst_63 = arith.constant dense<0.000000e+00> : vector<16xf32>
    %94 = vector.multi_reduction <add>, %93, %cst_63 [1] : vector<16x16xf32> to vector<16xf32>
    %95 = vector.shape_cast %94 : vector<16xf32> to vector<16x1xf32>
    %96 = tpu.reciprocal %95 {approx = true} : vector<16x1xf32> -> vector<16x1xf32>
    %97 = vector.broadcast %96 : vector<16x1xf32> to vector<16x16xf32>
    %98 = arith.mulf %93, %97 : vector<16x16xf32>
    %cst_64 = arith.constant dense<0.000000e+00> : vector<16x8xf32>
    %99 = tpu.matmul %98, %84, %cst_64 {dimension_numbers = #tpu.dot_dimension_numbers<[1], [0], [0], [1], [0, 0, 1, 1], [], []>} : vector<16x16xf32>, vector<16x8xf32>, vector<16x8xf32> -> vector<16x8xf32>
    %c0_65 = arith.constant 0 : index
    %c24_66 = arith.constant 24 : index
    %100 = vector.load %arg39[%c0_65, %c24_66] : memref<16x32xf32, #tpu.memory_space<vmem>>, vector<16x8xf32>
    tpu.vector_store %arg39[%c0_65, %c24_66], %99 {strides = array<i32>} : memref<16x32xf32, #tpu.memory_space<vmem>>, vector<16x8xf32>,
    %c0_67 = arith.constant 0 : index
    %c0_68 = arith.constant 0 : index
    %101 = vector.load %arg39[%c0_67, %c0_68] : memref<16x32xf32, #tpu.memory_space<vmem>>, vector<16x32xf32>
    %cst_69 = arith.constant dense<0.000000e+00> : vector<16x32xf32>
    %102 = tpu.matmul %101, %22, %cst_69 {dimension_numbers = #tpu.dot_dimension_numbers<[1], [0], [0], [1], [0, 0, 1, 1], [], []>} : vector<16x32xf32>, vector<32x32xf32>, vector<16x32xf32> -> vector<16x32xf32>
    %103 = vector.broadcast %24 : vector<1x32xf32> to vector<16x32xf32>
    %104 = arith.addf %102, %103 : vector<16x32xf32>
    %105 = arith.addf %12, %104 : vector<16x32xf32>
    %c0_70 = arith.constant 0 : index
    %c0_71 = arith.constant 0 : index
    %c0_72 = arith.constant 0 : index
    %c0_73 = arith.constant 0 : index
    %c0_74 = arith.constant 0 : index
    %106 = vector.load %arg17[%c0_70, %c0_71, %c0_72, %c0_73, %c0_74] : memref<2x2x2x1x32xf32, #tpu.memory_space<vmem>>, vector<1x1x1x1x32xf32>
    %107 = vector.shape_cast %106 : vector<1x1x1x1x32xf32> to vector<1x32xf32>
    %c0_75 = arith.constant 0 : index
    %c0_76 = arith.constant 0 : index
    %c1 = arith.constant 1 : index
    %c0_77 = arith.constant 0 : index
    %c0_78 = arith.constant 0 : index
    %108 = vector.load %arg17[%c0_75, %c0_76, %c1, %c0_77, %c0_78] : memref<2x2x2x1x32xf32, #tpu.memory_space<vmem>>, vector<1x1x1x1x32xf32>
    %109 = vector.shape_cast %108 : vector<1x1x1x1x32xf32> to vector<1x32xf32>
    %cst_79 = arith.constant dense<0.000000e+00> : vector<16xf32>
    %110 = vector.multi_reduction <add>, %105, %cst_79 [1] : vector<16x32xf32> to vector<16xf32>
    %111 = vector.shape_cast %110 : vector<16xf32> to vector<16x1xf32>
    %cst_80 = arith.constant 3.200000e+01 : f32
    %112 = vector.broadcast %cst_80 : f32 to vector<16x1xf32>
    %113 = arith.divf %111, %112 : vector<16x1xf32>
    %114 = vector.broadcast %113 : vector<16x1xf32> to vector<16x32xf32>
    %115 = arith.subf %105, %114 : vector<16x32xf32>
    %116 = arith.mulf %115, %115 : vector<16x32xf32>
    %cst_81 = arith.constant dense<0.000000e+00> : vector<16xf32>
    %117 = vector.multi_reduction <add>, %116, %cst_81 [1] : vector<16x32xf32> to vector<16xf32>
    %118 = vector.shape_cast %117 : vector<16xf32> to vector<16x1xf32>
    %cst_82 = arith.constant 3.200000e+01 : f32
    %119 = vector.broadcast %cst_82 : f32 to vector<16x1xf32>
    %120 = arith.divf %118, %119 : vector<16x1xf32>
    %121 = vector.broadcast %113 : vector<16x1xf32> to vector<16x32xf32>
    %122 = arith.subf %105, %121 : vector<16x32xf32>
    %cst_83 = arith.constant 9.99999974E-6 : f32
    %123 = vector.broadcast %cst_83 : f32 to vector<16x1xf32>
    %124 = arith.addf %120, %123 : vector<16x1xf32>
    %125 = math.rsqrt %124 : vector<16x1xf32>
    %126 = vector.broadcast %125 : vector<16x1xf32> to vector<16x32xf32>
    %127 = arith.mulf %122, %126 : vector<16x32xf32>
    %128 = vector.broadcast %107 : vector<1x32xf32> to vector<16x32xf32>
    %129 = arith.mulf %127, %128 : vector<16x32xf32>
    %130 = vector.broadcast %109 : vector<1x32xf32> to vector<16x32xf32>
    %131 = arith.addf %129, %130 : vector<16x32xf32>
    %c0_84 = arith.constant 0 : index
    %c0_85 = arith.constant 0 : index
    %c0_86 = arith.constant 0 : index
    %132 = vector.load %arg13[%c0_84, %c0_85, %c0_86] : memref<2x32x64xf32, #tpu.memory_space<vmem>>, vector<1x32x64xf32>
    %133 = vector.shape_cast %132 : vector<1x32x64xf32> to vector<32x64xf32>
    %cst_87 = arith.constant dense<0.000000e+00> : vector<16x64xf32>
    %134 = tpu.matmul %131, %133, %cst_87 {dimension_numbers = #tpu.dot_dimension_numbers<[1], [0], [0], [1], [0, 0, 1, 1], [], []>} : vector<16x32xf32>, vector<32x64xf32>, vector<16x64xf32> -> vector<16x64xf32>
    %c0_88 = arith.constant 0 : index
    %c0_89 = arith.constant 0 : index
    %c0_90 = arith.constant 0 : index
    %135 = vector.load %arg14[%c0_88, %c0_89, %c0_90] : memref<2x1x64xf32, #tpu.memory_space<vmem>>, vector<1x1x64xf32>
    %136 = vector.shape_cast %135 : vector<1x1x64xf32> to vector<1x64xf32>
    %137 = vector.broadcast %136 : vector<1x64xf32> to vector<16x64xf32>
    %138 = arith.addf %134, %137 : vector<16x64xf32>
    %cst_91 = arith.constant 0.000000e+00 : f32
    %139 = vector.broadcast %cst_91 : f32 to vector<16x64xf32>
    %140 = arith.maximumf %138, %139 : vector<16x64xf32>
    %c0_92 = arith.constant 0 : index
    %c0_93 = arith.constant 0 : index
    %c0_94 = arith.constant 0 : index
    %141 = vector.load %arg15[%c0_92, %c0_93, %c0_94] : memref<2x64x32xf32, #tpu.memory_space<vmem>>, vector<1x64x32xf32>
    %142 = vector.shape_cast %141 : vector<1x64x32xf32> to vector<64x32xf32>
    %cst_95 = arith.constant dense<0.000000e+00> : vector<16x32xf32>
    %143 = tpu.matmul %140, %142, %cst_95 {dimension_numbers = #tpu.dot_dimension_numbers<[1], [0], [0], [1], [0, 0, 1, 1], [], []>} : vector<16x64xf32>, vector<64x32xf32>, vector<16x32xf32> -> vector<16x32xf32>
    %c0_96 = arith.constant 0 : index
    %c0_97 = arith.constant 0 : index
    %c0_98 = arith.constant 0 : index
    %144 = vector.load %arg16[%c0_96, %c0_97, %c0_98] : memref<2x1x32xf32, #tpu.memory_space<vmem>>, vector<1x1x32xf32>
    %145 = vector.shape_cast %144 : vector<1x1x32xf32> to vector<1x32xf32>
    %146 = vector.broadcast %145 : vector<1x32xf32> to vector<16x32xf32>
    %147 = arith.addf %143, %146 : vector<16x32xf32>
    %148 = arith.addf %131, %147 : vector<16x32xf32>
    %c0_99 = arith.constant 0 : index
    %c1_100 = arith.constant 1 : index
    %c0_101 = arith.constant 0 : index
    %c0_102 = arith.constant 0 : index
    %c0_103 = arith.constant 0 : index
    %149 = vector.load %arg17[%c0_99, %c1_100, %c0_101, %c0_102, %c0_103] : memref<2x2x2x1x32xf32, #tpu.memory_space<vmem>>, vector<1x1x1x1x32xf32>
    %150 = vector.shape_cast %149 : vector<1x1x1x1x32xf32> to vector<1x32xf32>
    %c0_104 = arith.constant 0 : index
    %c1_105 = arith.constant 1 : index
    %c1_106 = arith.constant 1 : index
    %c0_107 = arith.constant 0 : index
    %c0_108 = arith.constant 0 : index
    %151 = vector.load %arg17[%c0_104, %c1_105, %c1_106, %c0_107, %c0_108] : memref<2x2x2x1x32xf32, #tpu.memory_space<vmem>>, vector<1x1x1x1x32xf32>
    %152 = vector.shape_cast %151 : vector<1x1x1x1x32xf32> to vector<1x32xf32>
    %cst_109 = arith.constant dense<0.000000e+00> : vector<16xf32>
    %153 = vector.multi_reduction <add>, %148, %cst_109 [1] : vector<16x32xf32> to vector<16xf32>
    %154 = vector.shape_cast %153 : vector<16xf32> to vector<16x1xf32>
    %cst_110 = arith.constant 3.200000e+01 : f32
    %155 = vector.broadcast %cst_110 : f32 to vector<16x1xf32>
    %156 = arith.divf %154, %155 : vector<16x1xf32>
    %157 = vector.broadcast %156 : vector<16x1xf32> to vector<16x32xf32>
    %158 = arith.subf %148, %157 : vector<16x32xf32>
    %159 = arith.mulf %158, %158 : vector<16x32xf32>
    %cst_111 = arith.constant dense<0.000000e+00> : vector<16xf32>
    %160 = vector.multi_reduction <add>, %159, %cst_111 [1] : vector<16x32xf32> to vector<16xf32>
    %161 = vector.shape_cast %160 : vector<16xf32> to vector<16x1xf32>
    %cst_112 = arith.constant 3.200000e+01 : f32
    %162 = vector.broadcast %cst_112 : f32 to vector<16x1xf32>
    %163 = arith.divf %161, %162 : vector<16x1xf32>
    %164 = vector.broadcast %156 : vector<16x1xf32> to vector<16x32xf32>
    %165 = arith.subf %148, %164 : vector<16x32xf32>
    %cst_113 = arith.constant 9.99999974E-6 : f32
    %166 = vector.broadcast %cst_113 : f32 to vector<16x1xf32>
    %167 = arith.addf %163, %166 : vector<16x1xf32>
    %168 = math.rsqrt %167 : vector<16x1xf32>
    %169 = vector.broadcast %168 : vector<16x1xf32> to vector<16x32xf32>
    %170 = arith.mulf %165, %169 : vector<16x32xf32>
    %171 = vector.broadcast %150 : vector<1x32xf32> to vector<16x32xf32>
    %172 = arith.mulf %170, %171 : vector<16x32xf32>
    %173 = vector.broadcast %152 : vector<1x32xf32> to vector<16x32xf32>
    %174 = arith.addf %172, %173 : vector<16x32xf32>
    %c1_114 = arith.constant 1 : index
    %c0_115 = arith.constant 0 : index
    %c0_116 = arith.constant 0 : index
    %175 = vector.load %arg9[%c1_114, %c0_115, %c0_116] : memref<2x32x96xf32, #tpu.memory_space<vmem>>, vector<1x32x96xf32>
    %176 = vector.shape_cast %175 : vector<1x32x96xf32> to vector<32x96xf32>
    %cst_117 = arith.constant dense<0.000000e+00> : vector<16x96xf32>
    %177 = tpu.matmul %174, %176, %cst_117 {dimension_numbers = #tpu.dot_dimension_numbers<[1], [0], [0], [1], [0, 0, 1, 1], [], []>} : vector<16x32xf32>, vector<32x96xf32>, vector<16x96xf32> -> vector<16x96xf32>
    %c1_118 = arith.constant 1 : index
    %c0_119 = arith.constant 0 : index
    %c0_120 = arith.constant 0 : index
    %178 = vector.load %arg10[%c1_118, %c0_119, %c0_120] : memref<2x1x96xf32, #tpu.memory_space<vmem>>, vector<1x1x96xf32>
    %179 = vector.shape_cast %178 : vector<1x1x96xf32> to vector<1x96xf32>
    %180 = vector.broadcast %179 : vector<1x96xf32> to vector<16x96xf32>
    %181 = arith.addf %177, %180 : vector<16x96xf32>
    %c0_121 = arith.constant 0 : index
    %c0_122 = arith.constant 0 : index
    %182 = vector.load %arg38[%c0_121, %c0_122] : memref<16x96xf32, #tpu.memory_space<vmem>>, vector<16x96xf32>
    tpu.vector_store %arg38[%c0_121, %c0_122], %181 {strides = array<i32>} : memref<16x96xf32, #tpu.memory_space<vmem>>, vector<16x96xf32>,
    %c1_123 = arith.constant 1 : index
    %c0_124 = arith.constant 0 : index
    %c0_125 = arith.constant 0 : index
    %183 = vector.load %arg11[%c1_123, %c0_124, %c0_125] : memref<2x32x32xf32, #tpu.memory_space<vmem>>, vector<1x32x32xf32>
    %184 = vector.shape_cast %183 : vector<1x32x32xf32> to vector<32x32xf32>
    %c1_126 = arith.constant 1 : index
    %c0_127 = arith.constant 0 : index
    %c0_128 = arith.constant 0 : index
    %185 = vector.load %arg12[%c1_126, %c0_127, %c0_128] : memref<2x1x32xf32, #tpu.memory_space<vmem>>, vector<1x1x32xf32>
    %186 = vector.shape_cast %185 : vector<1x1x32xf32> to vector<1x32xf32>
    %c0_129 = arith.constant 0 : index
    %c0_130 = arith.constant 0 : index
    %187 = vector.load %arg38[%c0_129, %c0_130] : memref<16x96xf32, #tpu.memory_space<vmem>>, vector<16x8xf32>
    %c0_131 = arith.constant 0 : index
    %c32_132 = arith.constant 32 : index
    %188 = vector.load %arg38[%c0_131, %c32_132] : memref<16x96xf32, #tpu.memory_space<vmem>>, vector<16x8xf32>
    %c0_133 = arith.constant 0 : index
    %c64_134 = arith.constant 64 : index
    %189 = vector.load %arg38[%c0_133, %c64_134] : memref<16x96xf32, #tpu.memory_space<vmem>>, vector<16x8xf32>
    %cst_135 = arith.constant dense<0.000000e+00> : vector<16x16xf32>
    %190 = tpu.matmul %187, %188, %cst_135 {dimension_numbers = #tpu.dot_dimension_numbers<[1], [1], [0], [0], [0, 0, 1, 0], [], []>} : vector<16x8xf32>, vector<16x8xf32>, vector<16x16xf32> -> vector<16x16xf32>
    %cst_136 = arith.constant 0.353553385 : f32
    %191 = vector.broadcast %cst_136 : f32 to vector<16x16xf32>
    %192 = arith.mulf %190, %191 : vector<16x16xf32>
    %193 = arith.addf %192, %0 : vector<16x16xf32>
    %cst_137 = arith.constant dense<0xFF800000> : vector<16xf32>
    %194 = vector.multi_reduction <maximumf>, %193, %cst_137 [1] : vector<16x16xf32> to vector<16xf32>
    %195 = vector.shape_cast %194 : vector<16xf32> to vector<16x1xf32>
    %196 = vector.broadcast %195 : vector<16x1xf32> to vector<16x16xf32>
    %197 = arith.subf %193, %196 : vector<16x16xf32>
    %198 = math.exp %197 : vector<16x16xf32>
    %cst_138 = arith.constant dense<0.000000e+00> : vector<16xf32>
    %199 = vector.multi_reduction <add>, %198, %cst_138 [1] : vector<16x16xf32> to vector<16xf32>
    %200 = vector.shape_cast %199 : vector<16xf32> to vector<16x1xf32>
    %201 = tpu.reciprocal %200 {approx = true} : vector<16x1xf32> -> vector<16x1xf32>
    %202 = vector.broadcast %201 : vector<16x1xf32> to vector<16x16xf32>
    %203 = arith.mulf %198, %202 : vector<16x16xf32>
    %cst_139 = arith.constant dense<0.000000e+00> : vector<16x8xf32>
    %204 = tpu.matmul %203, %189, %cst_139 {dimension_numbers = #tpu.dot_dimension_numbers<[1], [0], [0], [1], [0, 0, 1, 1], [], []>} : vector<16x16xf32>, vector<16x8xf32>, vector<16x8xf32> -> vector<16x8xf32>
    %c0_140 = arith.constant 0 : index
    %c0_141 = arith.constant 0 : index
    %205 = vector.load %arg39[%c0_140, %c0_141] : memref<16x32xf32, #tpu.memory_space<vmem>>, vector<16x8xf32>
    tpu.vector_store %arg39[%c0_140, %c0_141], %204 {strides = array<i32>} : memref<16x32xf32, #tpu.memory_space<vmem>>, vector<16x8xf32>,
    %c0_142 = arith.constant 0 : index
    %c8_143 = arith.constant 8 : index
    %206 = vector.load %arg38[%c0_142, %c8_143] : memref<16x96xf32, #tpu.memory_space<vmem>>, vector<16x8xf32>
    %c0_144 = arith.constant 0 : index
    %c40_145 = arith.constant 40 : index
    %207 = vector.load %arg38[%c0_144, %c40_145] : memref<16x96xf32, #tpu.memory_space<vmem>>, vector<16x8xf32>
    %c0_146 = arith.constant 0 : index
    %c72_147 = arith.constant 72 : index
    %208 = vector.load %arg38[%c0_146, %c72_147] : memref<16x96xf32, #tpu.memory_space<vmem>>, vector<16x8xf32>
    %cst_148 = arith.constant dense<0.000000e+00> : vector<16x16xf32>
    %209 = tpu.matmul %206, %207, %cst_148 {dimension_numbers = #tpu.dot_dimension_numbers<[1], [1], [0], [0], [0, 0, 1, 0], [], []>} : vector<16x8xf32>, vector<16x8xf32>, vector<16x16xf32> -> vector<16x16xf32>
    %cst_149 = arith.constant 0.353553385 : f32
    %210 = vector.broadcast %cst_149 : f32 to vector<16x16xf32>
    %211 = arith.mulf %209, %210 : vector<16x16xf32>
    %212 = arith.addf %211, %0 : vector<16x16xf32>
    %cst_150 = arith.constant dense<0xFF800000> : vector<16xf32>
    %213 = vector.multi_reduction <maximumf>, %212, %cst_150 [1] : vector<16x16xf32> to vector<16xf32>
    %214 = vector.shape_cast %213 : vector<16xf32> to vector<16x1xf32>
    %215 = vector.broadcast %214 : vector<16x1xf32> to vector<16x16xf32>
    %216 = arith.subf %212, %215 : vector<16x16xf32>
    %217 = math.exp %216 : vector<16x16xf32>
    %cst_151 = arith.constant dense<0.000000e+00> : vector<16xf32>
    %218 = vector.multi_reduction <add>, %217, %cst_151 [1] : vector<16x16xf32> to vector<16xf32>
    %219 = vector.shape_cast %218 : vector<16xf32> to vector<16x1xf32>
    %220 = tpu.reciprocal %219 {approx = true} : vector<16x1xf32> -> vector<16x1xf32>
    %221 = vector.broadcast %220 : vector<16x1xf32> to vector<16x16xf32>
    %222 = arith.mulf %217, %221 : vector<16x16xf32>
    %cst_152 = arith.constant dense<0.000000e+00> : vector<16x8xf32>
    %223 = tpu.matmul %222, %208, %cst_152 {dimension_numbers = #tpu.dot_dimension_numbers<[1], [0], [0], [1], [0, 0, 1, 1], [], []>} : vector<16x16xf32>, vector<16x8xf32>, vector<16x8xf32> -> vector<16x8xf32>
    %c0_153 = arith.constant 0 : index
    %c8_154 = arith.constant 8 : index
    %224 = vector.load %arg39[%c0_153, %c8_154] : memref<16x32xf32, #tpu.memory_space<vmem>>, vector<16x8xf32>
    tpu.vector_store %arg39[%c0_153, %c8_154], %223 {strides = array<i32>} : memref<16x32xf32, #tpu.memory_space<vmem>>, vector<16x8xf32>,
    %c0_155 = arith.constant 0 : index
    %c16_156 = arith.constant 16 : index
    %225 = vector.load %arg38[%c0_155, %c16_156] : memref<16x96xf32, #tpu.memory_space<vmem>>, vector<16x8xf32>
    %c0_157 = arith.constant 0 : index
    %c48_158 = arith.constant 48 : index
    %226 = vector.load %arg38[%c0_157, %c48_158] : memref<16x96xf32, #tpu.memory_space<vmem>>, vector<16x8xf32>
    %c0_159 = arith.constant 0 : index
    %c80_160 = arith.constant 80 : index
    %227 = vector.load %arg38[%c0_159, %c80_160] : memref<16x96xf32, #tpu.memory_space<vmem>>, vector<16x8xf32>
    %cst_161 = arith.constant dense<0.000000e+00> : vector<16x16xf32>
    %228 = tpu.matmul %225, %226, %cst_161 {dimension_numbers = #tpu.dot_dimension_numbers<[1], [1], [0], [0], [0, 0, 1, 0], [], []>} : vector<16x8xf32>, vector<16x8xf32>, vector<16x16xf32> -> vector<16x16xf32>
    %cst_162 = arith.constant 0.353553385 : f32
    %229 = vector.broadcast %cst_162 : f32 to vector<16x16xf32>
    %230 = arith.mulf %228, %229 : vector<16x16xf32>
    %231 = arith.addf %230, %0 : vector<16x16xf32>
    %cst_163 = arith.constant dense<0xFF800000> : vector<16xf32>
    %232 = vector.multi_reduction <maximumf>, %231, %cst_163 [1] : vector<16x16xf32> to vector<16xf32>
    %233 = vector.shape_cast %232 : vector<16xf32> to vector<16x1xf32>
    %234 = vector.broadcast %233 : vector<16x1xf32> to vector<16x16xf32>
    %235 = arith.subf %231, %234 : vector<16x16xf32>
    %236 = math.exp %235 : vector<16x16xf32>
    %cst_164 = arith.constant dense<0.000000e+00> : vector<16xf32>
    %237 = vector.multi_reduction <add>, %236, %cst_164 [1] : vector<16x16xf32> to vector<16xf32>
    %238 = vector.shape_cast %237 : vector<16xf32> to vector<16x1xf32>
    %239 = tpu.reciprocal %238 {approx = true} : vector<16x1xf32> -> vector<16x1xf32>
    %240 = vector.broadcast %239 : vector<16x1xf32> to vector<16x16xf32>
    %241 = arith.mulf %236, %240 : vector<16x16xf32>
    %cst_165 = arith.constant dense<0.000000e+00> : vector<16x8xf32>
    %242 = tpu.matmul %241, %227, %cst_165 {dimension_numbers = #tpu.dot_dimension_numbers<[1], [0], [0], [1], [0, 0, 1, 1], [], []>} : vector<16x16xf32>, vector<16x8xf32>, vector<16x8xf32> -> vector<16x8xf32>
    %c0_166 = arith.constant 0 : index
    %c16_167 = arith.constant 16 : index
    %243 = vector.load %arg39[%c0_166, %c16_167] : memref<16x32xf32, #tpu.memory_space<vmem>>, vector<16x8xf32>
    tpu.vector_store %arg39[%c0_166, %c16_167], %242 {strides = array<i32>} : memref<16x32xf32, #tpu.memory_space<vmem>>, vector<16x8xf32>,
    %c0_168 = arith.constant 0 : index
    %c24_169 = arith.constant 24 : index
    %244 = vector.load %arg38[%c0_168, %c24_169] : memref<16x96xf32, #tpu.memory_space<vmem>>, vector<16x8xf32>
    %c0_170 = arith.constant 0 : index
    %c56_171 = arith.constant 56 : index
    %245 = vector.load %arg38[%c0_170, %c56_171] : memref<16x96xf32, #tpu.memory_space<vmem>>, vector<16x8xf32>
    %c0_172 = arith.constant 0 : index
    %c88_173 = arith.constant 88 : index
    %246 = vector.load %arg38[%c0_172, %c88_173] : memref<16x96xf32, #tpu.memory_space<vmem>>, vector<16x8xf32>
    %cst_174 = arith.constant dense<0.000000e+00> : vector<16x16xf32>
    %247 = tpu.matmul %244, %245, %cst_174 {dimension_numbers = #tpu.dot_dimension_numbers<[1], [1], [0], [0], [0, 0, 1, 0], [], []>} : vector<16x8xf32>, vector<16x8xf32>, vector<16x16xf32> -> vector<16x16xf32>
    %cst_175 = arith.constant 0.353553385 : f32
    %248 = vector.broadcast %cst_175 : f32 to vector<16x16xf32>
    %249 = arith.mulf %247, %248 : vector<16x16xf32>
    %250 = arith.addf %249, %0 : vector<16x16xf32>
    %cst_176 = arith.constant dense<0xFF800000> : vector<16xf32>
    %251 = vector.multi_reduction <maximumf>, %250, %cst_176 [1] : vector<16x16xf32> to vector<16xf32>
    %252 = vector.shape_cast %251 : vector<16xf32> to vector<16x1xf32>
    %253 = vector.broadcast %252 : vector<16x1xf32> to vector<16x16xf32>
    %254 = arith.subf %250, %253 : vector<16x16xf32>
    %255 = math.exp %254 : vector<16x16xf32>
    %cst_177 = arith.constant dense<0.000000e+00> : vector<16xf32>
    %256 = vector.multi_reduction <add>, %255, %cst_177 [1] : vector<16x16xf32> to vector<16xf32>
    %257 = vector.shape_cast %256 : vector<16xf32> to vector<16x1xf32>
    %258 = tpu.reciprocal %257 {approx = true} : vector<16x1xf32> -> vector<16x1xf32>
    %259 = vector.broadcast %258 : vector<16x1xf32> to vector<16x16xf32>
    %260 = arith.mulf %255, %259 : vector<16x16xf32>
    %cst_178 = arith.constant dense<0.000000e+00> : vector<16x8xf32>
    %261 = tpu.matmul %260, %246, %cst_178 {dimension_numbers = #tpu.dot_dimension_numbers<[1], [0], [0], [1], [0, 0, 1, 1], [], []>} : vector<16x16xf32>, vector<16x8xf32>, vector<16x8xf32> -> vector<16x8xf32>
    %c0_179 = arith.constant 0 : index
    %c24_180 = arith.constant 24 : index
    %262 = vector.load %arg39[%c0_179, %c24_180] : memref<16x32xf32, #tpu.memory_space<vmem>>, vector<16x8xf32>
    tpu.vector_store %arg39[%c0_179, %c24_180], %261 {strides = array<i32>} : memref<16x32xf32, #tpu.memory_space<vmem>>, vector<16x8xf32>,
    %c0_181 = arith.constant 0 : index
    %c0_182 = arith.constant 0 : index
    %263 = vector.load %arg39[%c0_181, %c0_182] : memref<16x32xf32, #tpu.memory_space<vmem>>, vector<16x32xf32>
    %cst_183 = arith.constant dense<0.000000e+00> : vector<16x32xf32>
    %264 = tpu.matmul %263, %184, %cst_183 {dimension_numbers = #tpu.dot_dimension_numbers<[1], [0], [0], [1], [0, 0, 1, 1], [], []>} : vector<16x32xf32>, vector<32x32xf32>, vector<16x32xf32> -> vector<16x32xf32>
    %265 = vector.broadcast %186 : vector<1x32xf32> to vector<16x32xf32>
    %266 = arith.addf %264, %265 : vector<16x32xf32>
    %267 = arith.addf %174, %266 : vector<16x32xf32>
    %c1_184 = arith.constant 1 : index
    %c0_185 = arith.constant 0 : index
    %c0_186 = arith.constant 0 : index
    %c0_187 = arith.constant 0 : index
    %c0_188 = arith.constant 0 : index
    %268 = vector.load %arg17[%c1_184, %c0_185, %c0_186, %c0_187, %c0_188] : memref<2x2x2x1x32xf32, #tpu.memory_space<vmem>>, vector<1x1x1x1x32xf32>
    %269 = vector.shape_cast %268 : vector<1x1x1x1x32xf32> to vector<1x32xf32>
    %c1_189 = arith.constant 1 : index
    %c0_190 = arith.constant 0 : index
    %c1_191 = arith.constant 1 : index
    %c0_192 = arith.constant 0 : index
    %c0_193 = arith.constant 0 : index
    %270 = vector.load %arg17[%c1_189, %c0_190, %c1_191, %c0_192, %c0_193] : memref<2x2x2x1x32xf32, #tpu.memory_space<vmem>>, vector<1x1x1x1x32xf32>
    %271 = vector.shape_cast %270 : vector<1x1x1x1x32xf32> to vector<1x32xf32>
    %cst_194 = arith.constant dense<0.000000e+00> : vector<16xf32>
    %272 = vector.multi_reduction <add>, %267, %cst_194 [1] : vector<16x32xf32> to vector<16xf32>
    %273 = vector.shape_cast %272 : vector<16xf32> to vector<16x1xf32>
    %cst_195 = arith.constant 3.200000e+01 : f32
    %274 = vector.broadcast %cst_195 : f32 to vector<16x1xf32>
    %275 = arith.divf %273, %274 : vector<16x1xf32>
    %276 = vector.broadcast %275 : vector<16x1xf32> to vector<16x32xf32>
    %277 = arith.subf %267, %276 : vector<16x32xf32>
    %278 = arith.mulf %277, %277 : vector<16x32xf32>
    %cst_196 = arith.constant dense<0.000000e+00> : vector<16xf32>
    %279 = vector.multi_reduction <add>, %278, %cst_196 [1] : vector<16x32xf32> to vector<16xf32>
    %280 = vector.shape_cast %279 : vector<16xf32> to vector<16x1xf32>
    %cst_197 = arith.constant 3.200000e+01 : f32
    %281 = vector.broadcast %cst_197 : f32 to vector<16x1xf32>
    %282 = arith.divf %280, %281 : vector<16x1xf32>
    %283 = vector.broadcast %275 : vector<16x1xf32> to vector<16x32xf32>
    %284 = arith.subf %267, %283 : vector<16x32xf32>
    %cst_198 = arith.constant 9.99999974E-6 : f32
    %285 = vector.broadcast %cst_198 : f32 to vector<16x1xf32>
    %286 = arith.addf %282, %285 : vector<16x1xf32>
    %287 = math.rsqrt %286 : vector<16x1xf32>
    %288 = vector.broadcast %287 : vector<16x1xf32> to vector<16x32xf32>
    %289 = arith.mulf %284, %288 : vector<16x32xf32>
    %290 = vector.broadcast %269 : vector<1x32xf32> to vector<16x32xf32>
    %291 = arith.mulf %289, %290 : vector<16x32xf32>
    %292 = vector.broadcast %271 : vector<1x32xf32> to vector<16x32xf32>
    %293 = arith.addf %291, %292 : vector<16x32xf32>
    %c1_199 = arith.constant 1 : index
    %c0_200 = arith.constant 0 : index
    %c0_201 = arith.constant 0 : index
    %294 = vector.load %arg13[%c1_199, %c0_200, %c0_201] : memref<2x32x64xf32, #tpu.memory_space<vmem>>, vector<1x32x64xf32>
    %295 = vector.shape_cast %294 : vector<1x32x64xf32> to vector<32x64xf32>
    %cst_202 = arith.constant dense<0.000000e+00> : vector<16x64xf32>
    %296 = tpu.matmul %293, %295, %cst_202 {dimension_numbers = #tpu.dot_dimension_numbers<[1], [0], [0], [1], [0, 0, 1, 1], [], []>} : vector<16x32xf32>, vector<32x64xf32>, vector<16x64xf32> -> vector<16x64xf32>
    %c1_203 = arith.constant 1 : index
    %c0_204 = arith.constant 0 : index
    %c0_205 = arith.constant 0 : index
    %297 = vector.load %arg14[%c1_203, %c0_204, %c0_205] : memref<2x1x64xf32, #tpu.memory_space<vmem>>, vector<1x1x64xf32>
    %298 = vector.shape_cast %297 : vector<1x1x64xf32> to vector<1x64xf32>
    %299 = vector.broadcast %298 : vector<1x64xf32> to vector<16x64xf32>
    %300 = arith.addf %296, %299 : vector<16x64xf32>
    %cst_206 = arith.constant 0.000000e+00 : f32
    %301 = vector.broadcast %cst_206 : f32 to vector<16x64xf32>
    %302 = arith.maximumf %300, %301 : vector<16x64xf32>
    %c1_207 = arith.constant 1 : index
    %c0_208 = arith.constant 0 : index
    %c0_209 = arith.constant 0 : index
    %303 = vector.load %arg15[%c1_207, %c0_208, %c0_209] : memref<2x64x32xf32, #tpu.memory_space<vmem>>, vector<1x64x32xf32>
    %304 = vector.shape_cast %303 : vector<1x64x32xf32> to vector<64x32xf32>
    %cst_210 = arith.constant dense<0.000000e+00> : vector<16x32xf32>
    %305 = tpu.matmul %302, %304, %cst_210 {dimension_numbers = #tpu.dot_dimension_numbers<[1], [0], [0], [1], [0, 0, 1, 1], [], []>} : vector<16x64xf32>, vector<64x32xf32>, vector<16x32xf32> -> vector<16x32xf32>
    %c1_211 = arith.constant 1 : index
    %c0_212 = arith.constant 0 : index
    %c0_213 = arith.constant 0 : index
    %306 = vector.load %arg16[%c1_211, %c0_212, %c0_213] : memref<2x1x32xf32, #tpu.memory_space<vmem>>, vector<1x1x32xf32>
    %307 = vector.shape_cast %306 : vector<1x1x32xf32> to vector<1x32xf32>
    %308 = vector.broadcast %307 : vector<1x32xf32> to vector<16x32xf32>
    %309 = arith.addf %305, %308 : vector<16x32xf32>
    %310 = arith.addf %293, %309 : vector<16x32xf32>
    %c1_214 = arith.constant 1 : index
    %c1_215 = arith.constant 1 : index
    %c0_216 = arith.constant 0 : index
    %c0_217 = arith.constant 0 : index
    %c0_218 = arith.constant 0 : index
    %311 = vector.load %arg17[%c1_214, %c1_215, %c0_216, %c0_217, %c0_218] : memref<2x2x2x1x32xf32, #tpu.memory_space<vmem>>, vector<1x1x1x1x32xf32>
    %312 = vector.shape_cast %311 : vector<1x1x1x1x32xf32> to vector<1x32xf32>
    %c1_219 = arith.constant 1 : index
    %c1_220 = arith.constant 1 : index
    %c1_221 = arith.constant 1 : index
    %c0_222 = arith.constant 0 : index
    %c0_223 = arith.constant 0 : index
    %313 = vector.load %arg17[%c1_219, %c1_220, %c1_221, %c0_222, %c0_223] : memref<2x2x2x1x32xf32, #tpu.memory_space<vmem>>, vector<1x1x1x1x32xf32>
    %314 = vector.shape_cast %313 : vector<1x1x1x1x32xf32> to vector<1x32xf32>
    %cst_224 = arith.constant dense<0.000000e+00> : vector<16xf32>
    %315 = vector.multi_reduction <add>, %310, %cst_224 [1] : vector<16x32xf32> to vector<16xf32>
    %316 = vector.shape_cast %315 : vector<16xf32> to vector<16x1xf32>
    %cst_225 = arith.constant 3.200000e+01 : f32
    %317 = vector.broadcast %cst_225 : f32 to vector<16x1xf32>
    %318 = arith.divf %316, %317 : vector<16x1xf32>
    %319 = vector.broadcast %318 : vector<16x1xf32> to vector<16x32xf32>
    %320 = arith.subf %310, %319 : vector<16x32xf32>
    %321 = arith.mulf %320, %320 : vector<16x32xf32>
    %cst_226 = arith.constant dense<0.000000e+00> : vector<16xf32>
    %322 = vector.multi_reduction <add>, %321, %cst_226 [1] : vector<16x32xf32> to vector<16xf32>
    %323 = vector.shape_cast %322 : vector<16xf32> to vector<16x1xf32>
    %cst_227 = arith.constant 3.200000e+01 : f32
    %324 = vector.broadcast %cst_227 : f32 to vector<16x1xf32>
    %325 = arith.divf %323, %324 : vector<16x1xf32>
    %326 = vector.broadcast %318 : vector<16x1xf32> to vector<16x32xf32>
    %327 = arith.subf %310, %326 : vector<16x32xf32>
    %cst_228 = arith.constant 9.99999974E-6 : f32
    %328 = vector.broadcast %cst_228 : f32 to vector<16x1xf32>
    %329 = arith.addf %325, %328 : vector<16x1xf32>
    %330 = math.rsqrt %329 : vector<16x1xf32>
    %331 = vector.broadcast %330 : vector<16x1xf32> to vector<16x32xf32>
    %332 = arith.mulf %327, %331 : vector<16x32xf32>
    %333 = vector.broadcast %312 : vector<1x32xf32> to vector<16x32xf32>
    %334 = arith.mulf %332, %333 : vector<16x32xf32>
    %335 = vector.broadcast %314 : vector<1x32xf32> to vector<16x32xf32>
    %336 = arith.addf %334, %335 : vector<16x32xf32>
    %c0_229 = arith.constant 0 : index
    %c0_230 = arith.constant 0 : index
    %c0_231 = arith.constant 0 : index
    %337 = vector.load %arg18[%c0_229, %c0_230, %c0_231] : memref<2x1x32xf32, #tpu.memory_space<vmem>>, vector<1x1x32xf32>
    %338 = vector.shape_cast %337 : vector<1x1x32xf32> to vector<1x32xf32>
    %c1_232 = arith.constant 1 : index
    %c0_233 = arith.constant 0 : index
    %c0_234 = arith.constant 0 : index
    %339 = vector.load %arg18[%c1_232, %c0_233, %c0_234] : memref<2x1x32xf32, #tpu.memory_space<vmem>>, vector<1x1x32xf32>
    %340 = vector.shape_cast %339 : vector<1x1x32xf32> to vector<1x32xf32>
    %cst_235 = arith.constant dense<0.000000e+00> : vector<16xf32>
    %341 = vector.multi_reduction <add>, %336, %cst_235 [1] : vector<16x32xf32> to vector<16xf32>
    %342 = vector.shape_cast %341 : vector<16xf32> to vector<16x1xf32>
    %cst_236 = arith.constant 3.200000e+01 : f32
    %343 = vector.broadcast %cst_236 : f32 to vector<16x1xf32>
    %344 = arith.divf %342, %343 : vector<16x1xf32>
    %345 = vector.broadcast %344 : vector<16x1xf32> to vector<16x32xf32>
    %346 = arith.subf %336, %345 : vector<16x32xf32>
    %347 = arith.mulf %346, %346 : vector<16x32xf32>
    %cst_237 = arith.constant dense<0.000000e+00> : vector<16xf32>
    %348 = vector.multi_reduction <add>, %347, %cst_237 [1] : vector<16x32xf32> to vector<16xf32>
    %349 = vector.shape_cast %348 : vector<16xf32> to vector<16x1xf32>
    %cst_238 = arith.constant 3.200000e+01 : f32
    %350 = vector.broadcast %cst_238 : f32 to vector<16x1xf32>
    %351 = arith.divf %349, %350 : vector<16x1xf32>
    %352 = vector.broadcast %344 : vector<16x1xf32> to vector<16x32xf32>
    %353 = arith.subf %336, %352 : vector<16x32xf32>
    %cst_239 = arith.constant 9.99999974E-6 : f32
    %354 = vector.broadcast %cst_239 : f32 to vector<16x1xf32>
    %355 = arith.addf %351, %354 : vector<16x1xf32>
    %356 = math.rsqrt %355 : vector<16x1xf32>
    %357 = vector.broadcast %356 : vector<16x1xf32> to vector<16x32xf32>
    %358 = arith.mulf %353, %357 : vector<16x32xf32>
    %359 = vector.broadcast %338 : vector<1x32xf32> to vector<16x32xf32>
    %360 = arith.mulf %358, %359 : vector<16x32xf32>
    %361 = vector.broadcast %340 : vector<1x32xf32> to vector<16x32xf32>
    %362 = arith.addf %360, %361 : vector<16x32xf32>
    %c0_240 = arith.constant 0 : index
    %c0_241 = arith.constant 0 : index
    %363 = vector.load %arg2[%c0_240, %c0_241] : memref<16x1xi32, #tpu.memory_space<vmem>>, vector<16x1xi32>
    %364 = tpu.iota {dimensions = array<i32: 1>} : vector<16x16xi32>
    %365 = vector.broadcast %363 : vector<16x1xi32> to vector<16x16xi32>
    %366 = arith.cmpi eq, %365, %364 : vector<16x16xi32>
    %367 = arith.extui %366 : vector<16x16xi1> to vector<16x16xi32>
    %368 = arith.sitofp %367 : vector<16x16xi32> to vector<16x16xf32>
    %c0_242 = arith.constant 0 : index
    %c0_243 = arith.constant 0 : index
    %369 = vector.load %arg3[%c0_242, %c0_243] : memref<16x32xf32, #tpu.memory_space<vmem>>, vector<16x32xf32>
    %cst_244 = arith.constant dense<0.000000e+00> : vector<16x32xf32>
    %370 = tpu.matmul %368, %369, %cst_244 {dimension_numbers = #tpu.dot_dimension_numbers<[1], [0], [0], [1], [0, 0, 1, 1], [], []>} : vector<16x16xf32>, vector<16x32xf32>, vector<16x32xf32> -> vector<16x32xf32>
    %c0_245 = arith.constant 0 : index
    %c0_246 = arith.constant 0 : index
    %371 = vector.load %arg5[%c0_245, %c0_246] : memref<16x32xf32, #tpu.memory_space<vmem>>, vector<16x32xf32>
    %372 = arith.addf %370, %371 : vector<16x32xf32>
    %c0_247 = arith.constant 0 : index
    %c0_248 = arith.constant 0 : index
    %c0_249 = arith.constant 0 : index
    %373 = vector.load %arg19[%c0_247, %c0_248, %c0_249] : memref<2x32x96xf32, #tpu.memory_space<vmem>>, vector<1x32x96xf32>
    %374 = vector.shape_cast %373 : vector<1x32x96xf32> to vector<32x96xf32>
    %cst_250 = arith.constant dense<0.000000e+00> : vector<16x96xf32>
    %375 = tpu.matmul %372, %374, %cst_250 {dimension_numbers = #tpu.dot_dimension_numbers<[1], [0], [0], [1], [0, 0, 1, 1], [], []>} : vector<16x32xf32>, vector<32x96xf32>, vector<16x96xf32> -> vector<16x96xf32>
    %c0_251 = arith.constant 0 : index
    %c0_252 = arith.constant 0 : index
    %c0_253 = arith.constant 0 : index
    %376 = vector.load %arg20[%c0_251, %c0_252, %c0_253] : memref<2x1x96xf32, #tpu.memory_space<vmem>>, vector<1x1x96xf32>
    %377 = vector.shape_cast %376 : vector<1x1x96xf32> to vector<1x96xf32>
    %378 = vector.broadcast %377 : vector<1x96xf32> to vector<16x96xf32>
    %379 = arith.addf %375, %378 : vector<16x96xf32>
    %c0_254 = arith.constant 0 : index
    %c0_255 = arith.constant 0 : index
    %380 = vector.load %arg38[%c0_254, %c0_255] : memref<16x96xf32, #tpu.memory_space<vmem>>, vector<16x96xf32>
    tpu.vector_store %arg38[%c0_254, %c0_255], %379 {strides = array<i32>} : memref<16x96xf32, #tpu.memory_space<vmem>>, vector<16x96xf32>,
    %c0_256 = arith.constant 0 : index
    %c0_257 = arith.constant 0 : index
    %c0_258 = arith.constant 0 : index
    %381 = vector.load %arg21[%c0_256, %c0_257, %c0_258] : memref<2x32x32xf32, #tpu.memory_space<vmem>>, vector<1x32x32xf32>
    %382 = vector.shape_cast %381 : vector<1x32x32xf32> to vector<32x32xf32>
    %c0_259 = arith.constant 0 : index
    %c0_260 = arith.constant 0 : index
    %c0_261 = arith.constant 0 : index
    %383 = vector.load %arg22[%c0_259, %c0_260, %c0_261] : memref<2x1x32xf32, #tpu.memory_space<vmem>>, vector<1x1x32xf32>
    %384 = vector.shape_cast %383 : vector<1x1x32xf32> to vector<1x32xf32>
    %c0_262 = arith.constant 0 : index
    %c0_263 = arith.constant 0 : index
    %385 = vector.load %arg38[%c0_262, %c0_263] : memref<16x96xf32, #tpu.memory_space<vmem>>, vector<16x8xf32>
    %c0_264 = arith.constant 0 : index
    %c32_265 = arith.constant 32 : index
    %386 = vector.load %arg38[%c0_264, %c32_265] : memref<16x96xf32, #tpu.memory_space<vmem>>, vector<16x8xf32>
    %c0_266 = arith.constant 0 : index
    %c64_267 = arith.constant 64 : index
    %387 = vector.load %arg38[%c0_266, %c64_267] : memref<16x96xf32, #tpu.memory_space<vmem>>, vector<16x8xf32>
    %cst_268 = arith.constant dense<0.000000e+00> : vector<16x16xf32>
    %388 = tpu.matmul %385, %386, %cst_268 {dimension_numbers = #tpu.dot_dimension_numbers<[1], [1], [0], [0], [0, 0, 1, 0], [], []>} : vector<16x8xf32>, vector<16x8xf32>, vector<16x16xf32> -> vector<16x16xf32>
    %cst_269 = arith.constant 0.353553385 : f32
    %389 = vector.broadcast %cst_269 : f32 to vector<16x16xf32>
    %390 = arith.mulf %388, %389 : vector<16x16xf32>
    %391 = arith.addf %390, %1 : vector<16x16xf32>
    %cst_270 = arith.constant dense<0xFF800000> : vector<16xf32>
    %392 = vector.multi_reduction <maximumf>, %391, %cst_270 [1] : vector<16x16xf32> to vector<16xf32>
    %393 = vector.shape_cast %392 : vector<16xf32> to vector<16x1xf32>
    %394 = vector.broadcast %393 : vector<16x1xf32> to vector<16x16xf32>
    %395 = arith.subf %391, %394 : vector<16x16xf32>
    %396 = math.exp %395 : vector<16x16xf32>
    %cst_271 = arith.constant dense<0.000000e+00> : vector<16xf32>
    %397 = vector.multi_reduction <add>, %396, %cst_271 [1] : vector<16x16xf32> to vector<16xf32>
    %398 = vector.shape_cast %397 : vector<16xf32> to vector<16x1xf32>
    %399 = tpu.reciprocal %398 {approx = true} : vector<16x1xf32> -> vector<16x1xf32>
    %400 = vector.broadcast %399 : vector<16x1xf32> to vector<16x16xf32>
    %401 = arith.mulf %396, %400 : vector<16x16xf32>
    %cst_272 = arith.constant dense<0.000000e+00> : vector<16x8xf32>
    %402 = tpu.matmul %401, %387, %cst_272 {dimension_numbers = #tpu.dot_dimension_numbers<[1], [0], [0], [1], [0, 0, 1, 1], [], []>} : vector<16x16xf32>, vector<16x8xf32>, vector<16x8xf32> -> vector<16x8xf32>
    %c0_273 = arith.constant 0 : index
    %c0_274 = arith.constant 0 : index
    %403 = vector.load %arg39[%c0_273, %c0_274] : memref<16x32xf32, #tpu.memory_space<vmem>>, vector<16x8xf32>
    tpu.vector_store %arg39[%c0_273, %c0_274], %402 {strides = array<i32>} : memref<16x32xf32, #tpu.memory_space<vmem>>, vector<16x8xf32>,
    %c0_275 = arith.constant 0 : index
    %c8_276 = arith.constant 8 : index
    %404 = vector.load %arg38[%c0_275, %c8_276] : memref<16x96xf32, #tpu.memory_space<vmem>>, vector<16x8xf32>
    %c0_277 = arith.constant 0 : index
    %c40_278 = arith.constant 40 : index
    %405 = vector.load %arg38[%c0_277, %c40_278] : memref<16x96xf32, #tpu.memory_space<vmem>>, vector<16x8xf32>
    %c0_279 = arith.constant 0 : index
    %c72_280 = arith.constant 72 : index
    %406 = vector.load %arg38[%c0_279, %c72_280] : memref<16x96xf32, #tpu.memory_space<vmem>>, vector<16x8xf32>
    %cst_281 = arith.constant dense<0.000000e+00> : vector<16x16xf32>
    %407 = tpu.matmul %404, %405, %cst_281 {dimension_numbers = #tpu.dot_dimension_numbers<[1], [1], [0], [0], [0, 0, 1, 0], [], []>} : vector<16x8xf32>, vector<16x8xf32>, vector<16x16xf32> -> vector<16x16xf32>
    %cst_282 = arith.constant 0.353553385 : f32
    %408 = vector.broadcast %cst_282 : f32 to vector<16x16xf32>
    %409 = arith.mulf %407, %408 : vector<16x16xf32>
    %410 = arith.addf %409, %1 : vector<16x16xf32>
    %cst_283 = arith.constant dense<0xFF800000> : vector<16xf32>
    %411 = vector.multi_reduction <maximumf>, %410, %cst_283 [1] : vector<16x16xf32> to vector<16xf32>
    %412 = vector.shape_cast %411 : vector<16xf32> to vector<16x1xf32>
    %413 = vector.broadcast %412 : vector<16x1xf32> to vector<16x16xf32>
    %414 = arith.subf %410, %413 : vector<16x16xf32>
    %415 = math.exp %414 : vector<16x16xf32>
    %cst_284 = arith.constant dense<0.000000e+00> : vector<16xf32>
    %416 = vector.multi_reduction <add>, %415, %cst_284 [1] : vector<16x16xf32> to vector<16xf32>
    %417 = vector.shape_cast %416 : vector<16xf32> to vector<16x1xf32>
    %418 = tpu.reciprocal %417 {approx = true} : vector<16x1xf32> -> vector<16x1xf32>
    %419 = vector.broadcast %418 : vector<16x1xf32> to vector<16x16xf32>
    %420 = arith.mulf %415, %419 : vector<16x16xf32>
    %cst_285 = arith.constant dense<0.000000e+00> : vector<16x8xf32>
    %421 = tpu.matmul %420, %406, %cst_285 {dimension_numbers = #tpu.dot_dimension_numbers<[1], [0], [0], [1], [0, 0, 1, 1], [], []>} : vector<16x16xf32>, vector<16x8xf32>, vector<16x8xf32> -> vector<16x8xf32>
    %c0_286 = arith.constant 0 : index
    %c8_287 = arith.constant 8 : index
    %422 = vector.load %arg39[%c0_286, %c8_287] : memref<16x32xf32, #tpu.memory_space<vmem>>, vector<16x8xf32>
    tpu.vector_store %arg39[%c0_286, %c8_287], %421 {strides = array<i32>} : memref<16x32xf32, #tpu.memory_space<vmem>>, vector<16x8xf32>,
    %c0_288 = arith.constant 0 : index
    %c16_289 = arith.constant 16 : index
    %423 = vector.load %arg38[%c0_288, %c16_289] : memref<16x96xf32, #tpu.memory_space<vmem>>, vector<16x8xf32>
    %c0_290 = arith.constant 0 : index
    %c48_291 = arith.constant 48 : index
    %424 = vector.load %arg38[%c0_290, %c48_291] : memref<16x96xf32, #tpu.memory_space<vmem>>, vector<16x8xf32>
    %c0_292 = arith.constant 0 : index
    %c80_293 = arith.constant 80 : index
    %425 = vector.load %arg38[%c0_292, %c80_293] : memref<16x96xf32, #tpu.memory_space<vmem>>, vector<16x8xf32>
    %cst_294 = arith.constant dense<0.000000e+00> : vector<16x16xf32>
    %426 = tpu.matmul %423, %424, %cst_294 {dimension_numbers = #tpu.dot_dimension_numbers<[1], [1], [0], [0], [0, 0, 1, 0], [], []>} : vector<16x8xf32>, vector<16x8xf32>, vector<16x16xf32> -> vector<16x16xf32>
    %cst_295 = arith.constant 0.353553385 : f32
    %427 = vector.broadcast %cst_295 : f32 to vector<16x16xf32>
    %428 = arith.mulf %426, %427 : vector<16x16xf32>
    %429 = arith.addf %428, %1 : vector<16x16xf32>
    %cst_296 = arith.constant dense<0xFF800000> : vector<16xf32>
    %430 = vector.multi_reduction <maximumf>, %429, %cst_296 [1] : vector<16x16xf32> to vector<16xf32>
    %431 = vector.shape_cast %430 : vector<16xf32> to vector<16x1xf32>
    %432 = vector.broadcast %431 : vector<16x1xf32> to vector<16x16xf32>
    %433 = arith.subf %429, %432 : vector<16x16xf32>
    %434 = math.exp %433 : vector<16x16xf32>
    %cst_297 = arith.constant dense<0.000000e+00> : vector<16xf32>
    %435 = vector.multi_reduction <add>, %434, %cst_297 [1] : vector<16x16xf32> to vector<16xf32>
    %436 = vector.shape_cast %435 : vector<16xf32> to vector<16x1xf32>
    %437 = tpu.reciprocal %436 {approx = true} : vector<16x1xf32> -> vector<16x1xf32>
    %438 = vector.broadcast %437 : vector<16x1xf32> to vector<16x16xf32>
    %439 = arith.mulf %434, %438 : vector<16x16xf32>
    %cst_298 = arith.constant dense<0.000000e+00> : vector<16x8xf32>
    %440 = tpu.matmul %439, %425, %cst_298 {dimension_numbers = #tpu.dot_dimension_numbers<[1], [0], [0], [1], [0, 0, 1, 1], [], []>} : vector<16x16xf32>, vector<16x8xf32>, vector<16x8xf32> -> vector<16x8xf32>
    %c0_299 = arith.constant 0 : index
    %c16_300 = arith.constant 16 : index
    %441 = vector.load %arg39[%c0_299, %c16_300] : memref<16x32xf32, #tpu.memory_space<vmem>>, vector<16x8xf32>
    tpu.vector_store %arg39[%c0_299, %c16_300], %440 {strides = array<i32>} : memref<16x32xf32, #tpu.memory_space<vmem>>, vector<16x8xf32>,
    %c0_301 = arith.constant 0 : index
    %c24_302 = arith.constant 24 : index
    %442 = vector.load %arg38[%c0_301, %c24_302] : memref<16x96xf32, #tpu.memory_space<vmem>>, vector<16x8xf32>
    %c0_303 = arith.constant 0 : index
    %c56_304 = arith.constant 56 : index
    %443 = vector.load %arg38[%c0_303, %c56_304] : memref<16x96xf32, #tpu.memory_space<vmem>>, vector<16x8xf32>
    %c0_305 = arith.constant 0 : index
    %c88_306 = arith.constant 88 : index
    %444 = vector.load %arg38[%c0_305, %c88_306] : memref<16x96xf32, #tpu.memory_space<vmem>>, vector<16x8xf32>
    %cst_307 = arith.constant dense<0.000000e+00> : vector<16x16xf32>
    %445 = tpu.matmul %442, %443, %cst_307 {dimension_numbers = #tpu.dot_dimension_numbers<[1], [1], [0], [0], [0, 0, 1, 0], [], []>} : vector<16x8xf32>, vector<16x8xf32>, vector<16x16xf32> -> vector<16x16xf32>
    %cst_308 = arith.constant 0.353553385 : f32
    %446 = vector.broadcast %cst_308 : f32 to vector<16x16xf32>
    %447 = arith.mulf %445, %446 : vector<16x16xf32>
    %448 = arith.addf %447, %1 : vector<16x16xf32>
    %cst_309 = arith.constant dense<0xFF800000> : vector<16xf32>
    %449 = vector.multi_reduction <maximumf>, %448, %cst_309 [1] : vector<16x16xf32> to vector<16xf32>
    %450 = vector.shape_cast %449 : vector<16xf32> to vector<16x1xf32>
    %451 = vector.broadcast %450 : vector<16x1xf32> to vector<16x16xf32>
    %452 = arith.subf %448, %451 : vector<16x16xf32>
    %453 = math.exp %452 : vector<16x16xf32>
    %cst_310 = arith.constant dense<0.000000e+00> : vector<16xf32>
    %454 = vector.multi_reduction <add>, %453, %cst_310 [1] : vector<16x16xf32> to vector<16xf32>
    %455 = vector.shape_cast %454 : vector<16xf32> to vector<16x1xf32>
    %456 = tpu.reciprocal %455 {approx = true} : vector<16x1xf32> -> vector<16x1xf32>
    %457 = vector.broadcast %456 : vector<16x1xf32> to vector<16x16xf32>
    %458 = arith.mulf %453, %457 : vector<16x16xf32>
    %cst_311 = arith.constant dense<0.000000e+00> : vector<16x8xf32>
    %459 = tpu.matmul %458, %444, %cst_311 {dimension_numbers = #tpu.dot_dimension_numbers<[1], [0], [0], [1], [0, 0, 1, 1], [], []>} : vector<16x16xf32>, vector<16x8xf32>, vector<16x8xf32> -> vector<16x8xf32>
    %c0_312 = arith.constant 0 : index
    %c24_313 = arith.constant 24 : index
    %460 = vector.load %arg39[%c0_312, %c24_313] : memref<16x32xf32, #tpu.memory_space<vmem>>, vector<16x8xf32>
    tpu.vector_store %arg39[%c0_312, %c24_313], %459 {strides = array<i32>} : memref<16x32xf32, #tpu.memory_space<vmem>>, vector<16x8xf32>,
    %c0_314 = arith.constant 0 : index
    %c0_315 = arith.constant 0 : index
    %461 = vector.load %arg39[%c0_314, %c0_315] : memref<16x32xf32, #tpu.memory_space<vmem>>, vector<16x32xf32>
    %cst_316 = arith.constant dense<0.000000e+00> : vector<16x32xf32>
    %462 = tpu.matmul %461, %382, %cst_316 {dimension_numbers = #tpu.dot_dimension_numbers<[1], [0], [0], [1], [0, 0, 1, 1], [], []>} : vector<16x32xf32>, vector<32x32xf32>, vector<16x32xf32> -> vector<16x32xf32>
    %463 = vector.broadcast %384 : vector<1x32xf32> to vector<16x32xf32>
    %464 = arith.addf %462, %463 : vector<16x32xf32>
    %465 = arith.addf %372, %464 : vector<16x32xf32>
    %c0_317 = arith.constant 0 : index
    %c0_318 = arith.constant 0 : index
    %c0_319 = arith.constant 0 : index
    %c0_320 = arith.constant 0 : index
    %c0_321 = arith.constant 0 : index
    %466 = vector.load %arg33[%c0_317, %c0_318, %c0_319, %c0_320, %c0_321] : memref<2x3x2x1x32xf32, #tpu.memory_space<vmem>>, vector<1x1x1x1x32xf32>
    %467 = vector.shape_cast %466 : vector<1x1x1x1x32xf32> to vector<1x32xf32>
    %c0_322 = arith.constant 0 : index
    %c0_323 = arith.constant 0 : index
    %c1_324 = arith.constant 1 : index
    %c0_325 = arith.constant 0 : index
    %c0_326 = arith.constant 0 : index
    %468 = vector.load %arg33[%c0_322, %c0_323, %c1_324, %c0_325, %c0_326] : memref<2x3x2x1x32xf32, #tpu.memory_space<vmem>>, vector<1x1x1x1x32xf32>
    %469 = vector.shape_cast %468 : vector<1x1x1x1x32xf32> to vector<1x32xf32>
    %cst_327 = arith.constant dense<0.000000e+00> : vector<16xf32>
    %470 = vector.multi_reduction <add>, %465, %cst_327 [1] : vector<16x32xf32> to vector<16xf32>
    %471 = vector.shape_cast %470 : vector<16xf32> to vector<16x1xf32>
    %cst_328 = arith.constant 3.200000e+01 : f32
    %472 = vector.broadcast %cst_328 : f32 to vector<16x1xf32>
    %473 = arith.divf %471, %472 : vector<16x1xf32>
    %474 = vector.broadcast %473 : vector<16x1xf32> to vector<16x32xf32>
    %475 = arith.subf %465, %474 : vector<16x32xf32>
    %476 = arith.mulf %475, %475 : vector<16x32xf32>
    %cst_329 = arith.constant dense<0.000000e+00> : vector<16xf32>
    %477 = vector.multi_reduction <add>, %476, %cst_329 [1] : vector<16x32xf32> to vector<16xf32>
    %478 = vector.shape_cast %477 : vector<16xf32> to vector<16x1xf32>
    %cst_330 = arith.constant 3.200000e+01 : f32
    %479 = vector.broadcast %cst_330 : f32 to vector<16x1xf32>
    %480 = arith.divf %478, %479 : vector<16x1xf32>
    %481 = vector.broadcast %473 : vector<16x1xf32> to vector<16x32xf32>
    %482 = arith.subf %465, %481 : vector<16x32xf32>
    %cst_331 = arith.constant 9.99999974E-6 : f32
    %483 = vector.broadcast %cst_331 : f32 to vector<16x1xf32>
    %484 = arith.addf %480, %483 : vector<16x1xf32>
    %485 = math.rsqrt %484 : vector<16x1xf32>
    %486 = vector.broadcast %485 : vector<16x1xf32> to vector<16x32xf32>
    %487 = arith.mulf %482, %486 : vector<16x32xf32>
    %488 = vector.broadcast %467 : vector<1x32xf32> to vector<16x32xf32>
    %489 = arith.mulf %487, %488 : vector<16x32xf32>
    %490 = vector.broadcast %469 : vector<1x32xf32> to vector<16x32xf32>
    %491 = arith.addf %489, %490 : vector<16x32xf32>
    %c0_332 = arith.constant 0 : index
    %c0_333 = arith.constant 0 : index
    %c0_334 = arith.constant 0 : index
    %492 = vector.load %arg23[%c0_332, %c0_333, %c0_334] : memref<2x32x32xf32, #tpu.memory_space<vmem>>, vector<1x32x32xf32>
    %493 = vector.shape_cast %492 : vector<1x32x32xf32> to vector<32x32xf32>
    %cst_335 = arith.constant dense<0.000000e+00> : vector<16x32xf32>
    %494 = tpu.matmul %491, %493, %cst_335 {dimension_numbers = #tpu.dot_dimension_numbers<[1], [0], [0], [1], [0, 0, 1, 1], [], []>} : vector<16x32xf32>, vector<32x32xf32>, vector<16x32xf32> -> vector<16x32xf32>
    %c0_336 = arith.constant 0 : index
    %c0_337 = arith.constant 0 : index
    %c0_338 = arith.constant 0 : index
    %495 = vector.load %arg24[%c0_336, %c0_337, %c0_338] : memref<2x1x32xf32, #tpu.memory_space<vmem>>, vector<1x1x32xf32>
    %496 = vector.shape_cast %495 : vector<1x1x32xf32> to vector<1x32xf32>
    %497 = vector.broadcast %496 : vector<1x32xf32> to vector<16x32xf32>
    %498 = arith.addf %494, %497 : vector<16x32xf32>
    %c0_339 = arith.constant 0 : index
    %c0_340 = arith.constant 0 : index
    %499 = vector.load %arg38[%c0_339, %c0_340] : memref<16x96xf32, #tpu.memory_space<vmem>>, vector<16x32xf32>
    tpu.vector_store %arg38[%c0_339, %c0_340], %498 {strides = array<i32>} : memref<16x96xf32, #tpu.memory_space<vmem>>, vector<16x32xf32>,
    %c0_341 = arith.constant 0 : index
    %c0_342 = arith.constant 0 : index
    %c0_343 = arith.constant 0 : index
    %500 = vector.load %arg25[%c0_341, %c0_342, %c0_343] : memref<2x32x64xf32, #tpu.memory_space<vmem>>, vector<1x32x64xf32>
    %501 = vector.shape_cast %500 : vector<1x32x64xf32> to vector<32x64xf32>
    %cst_344 = arith.constant dense<0.000000e+00> : vector<16x64xf32>
    %502 = tpu.matmul %362, %501, %cst_344 {dimension_numbers = #tpu.dot_dimension_numbers<[1], [0], [0], [1], [0, 0, 1, 1], [], []>} : vector<16x32xf32>, vector<32x64xf32>, vector<16x64xf32> -> vector<16x64xf32>
    %c0_345 = arith.constant 0 : index
    %c0_346 = arith.constant 0 : index
    %c0_347 = arith.constant 0 : index
    %503 = vector.load %arg26[%c0_345, %c0_346, %c0_347] : memref<2x1x64xf32, #tpu.memory_space<vmem>>, vector<1x1x64xf32>
    %504 = vector.shape_cast %503 : vector<1x1x64xf32> to vector<1x64xf32>
    %505 = vector.broadcast %504 : vector<1x64xf32> to vector<16x64xf32>
    %506 = arith.addf %502, %505 : vector<16x64xf32>
    %c0_348 = arith.constant 0 : index
    %c32_349 = arith.constant 32 : index
    %507 = vector.load %arg38[%c0_348, %c32_349] : memref<16x96xf32, #tpu.memory_space<vmem>>, vector<16x64xf32>
    tpu.vector_store %arg38[%c0_348, %c32_349], %506 {strides = array<i32>} : memref<16x96xf32, #tpu.memory_space<vmem>>, vector<16x64xf32>,
    %c0_350 = arith.constant 0 : index
    %c0_351 = arith.constant 0 : index
    %c0_352 = arith.constant 0 : index
    %508 = vector.load %arg27[%c0_350, %c0_351, %c0_352] : memref<2x32x32xf32, #tpu.memory_space<vmem>>, vector<1x32x32xf32>
    %509 = vector.shape_cast %508 : vector<1x32x32xf32> to vector<32x32xf32>
    %c0_353 = arith.constant 0 : index
    %c0_354 = arith.constant 0 : index
    %c0_355 = arith.constant 0 : index
    %510 = vector.load %arg28[%c0_353, %c0_354, %c0_355] : memref<2x1x32xf32, #tpu.memory_space<vmem>>, vector<1x1x32xf32>
    %511 = vector.shape_cast %510 : vector<1x1x32xf32> to vector<1x32xf32>
    %c0_356 = arith.constant 0 : index
    %c0_357 = arith.constant 0 : index
    %512 = vector.load %arg38[%c0_356, %c0_357] : memref<16x96xf32, #tpu.memory_space<vmem>>, vector<16x8xf32>
    %c0_358 = arith.constant 0 : index
    %c32_359 = arith.constant 32 : index
    %513 = vector.load %arg38[%c0_358, %c32_359] : memref<16x96xf32, #tpu.memory_space<vmem>>, vector<16x8xf32>
    %c0_360 = arith.constant 0 : index
    %c64_361 = arith.constant 64 : index
    %514 = vector.load %arg38[%c0_360, %c64_361] : memref<16x96xf32, #tpu.memory_space<vmem>>, vector<16x8xf32>
    %cst_362 = arith.constant dense<0.000000e+00> : vector<16x16xf32>
    %515 = tpu.matmul %512, %513, %cst_362 {dimension_numbers = #tpu.dot_dimension_numbers<[1], [1], [0], [0], [0, 0, 1, 0], [], []>} : vector<16x8xf32>, vector<16x8xf32>, vector<16x16xf32> -> vector<16x16xf32>
    %cst_363 = arith.constant 0.353553385 : f32
    %516 = vector.broadcast %cst_363 : f32 to vector<16x16xf32>
    %517 = arith.mulf %515, %516 : vector<16x16xf32>
    %518 = arith.addf %517, %2 : vector<16x16xf32>
    %cst_364 = arith.constant dense<0xFF800000> : vector<16xf32>
    %519 = vector.multi_reduction <maximumf>, %518, %cst_364 [1] : vector<16x16xf32> to vector<16xf32>
    %520 = vector.shape_cast %519 : vector<16xf32> to vector<16x1xf32>
    %521 = vector.broadcast %520 : vector<16x1xf32> to vector<16x16xf32>
    %522 = arith.subf %518, %521 : vector<16x16xf32>
    %523 = math.exp %522 : vector<16x16xf32>
    %cst_365 = arith.constant dense<0.000000e+00> : vector<16xf32>
    %524 = vector.multi_reduction <add>, %523, %cst_365 [1] : vector<16x16xf32> to vector<16xf32>
    %525 = vector.shape_cast %524 : vector<16xf32> to vector<16x1xf32>
    %526 = tpu.reciprocal %525 {approx = true} : vector<16x1xf32> -> vector<16x1xf32>
    %527 = vector.broadcast %526 : vector<16x1xf32> to vector<16x16xf32>
    %528 = arith.mulf %523, %527 : vector<16x16xf32>
    %cst_366 = arith.constant dense<0.000000e+00> : vector<16x8xf32>
    %529 = tpu.matmul %528, %514, %cst_366 {dimension_numbers = #tpu.dot_dimension_numbers<[1], [0], [0], [1], [0, 0, 1, 1], [], []>} : vector<16x16xf32>, vector<16x8xf32>, vector<16x8xf32> -> vector<16x8xf32>
    %c0_367 = arith.constant 0 : index
    %c0_368 = arith.constant 0 : index
    %530 = vector.load %arg39[%c0_367, %c0_368] : memref<16x32xf32, #tpu.memory_space<vmem>>, vector<16x8xf32>
    tpu.vector_store %arg39[%c0_367, %c0_368], %529 {strides = array<i32>} : memref<16x32xf32, #tpu.memory_space<vmem>>, vector<16x8xf32>,
    %c0_369 = arith.constant 0 : index
    %c8_370 = arith.constant 8 : index
    %531 = vector.load %arg38[%c0_369, %c8_370] : memref<16x96xf32, #tpu.memory_space<vmem>>, vector<16x8xf32>
    %c0_371 = arith.constant 0 : index
    %c40_372 = arith.constant 40 : index
    %532 = vector.load %arg38[%c0_371, %c40_372] : memref<16x96xf32, #tpu.memory_space<vmem>>, vector<16x8xf32>
    %c0_373 = arith.constant 0 : index
    %c72_374 = arith.constant 72 : index
    %533 = vector.load %arg38[%c0_373, %c72_374] : memref<16x96xf32, #tpu.memory_space<vmem>>, vector<16x8xf32>
    %cst_375 = arith.constant dense<0.000000e+00> : vector<16x16xf32>
    %534 = tpu.matmul %531, %532, %cst_375 {dimension_numbers = #tpu.dot_dimension_numbers<[1], [1], [0], [0], [0, 0, 1, 0], [], []>} : vector<16x8xf32>, vector<16x8xf32>, vector<16x16xf32> -> vector<16x16xf32>
    %cst_376 = arith.constant 0.353553385 : f32
    %535 = vector.broadcast %cst_376 : f32 to vector<16x16xf32>
    %536 = arith.mulf %534, %535 : vector<16x16xf32>
    %537 = arith.addf %536, %2 : vector<16x16xf32>
    %cst_377 = arith.constant dense<0xFF800000> : vector<16xf32>
    %538 = vector.multi_reduction <maximumf>, %537, %cst_377 [1] : vector<16x16xf32> to vector<16xf32>
    %539 = vector.shape_cast %538 : vector<16xf32> to vector<16x1xf32>
    %540 = vector.broadcast %539 : vector<16x1xf32> to vector<16x16xf32>
    %541 = arith.subf %537, %540 : vector<16x16xf32>
    %542 = math.exp %541 : vector<16x16xf32>
    %cst_378 = arith.constant dense<0.000000e+00> : vector<16xf32>
    %543 = vector.multi_reduction <add>, %542, %cst_378 [1] : vector<16x16xf32> to vector<16xf32>
    %544 = vector.shape_cast %543 : vector<16xf32> to vector<16x1xf32>
    %545 = tpu.reciprocal %544 {approx = true} : vector<16x1xf32> -> vector<16x1xf32>
    %546 = vector.broadcast %545 : vector<16x1xf32> to vector<16x16xf32>
    %547 = arith.mulf %542, %546 : vector<16x16xf32>
    %cst_379 = arith.constant dense<0.000000e+00> : vector<16x8xf32>
    %548 = tpu.matmul %547, %533, %cst_379 {dimension_numbers = #tpu.dot_dimension_numbers<[1], [0], [0], [1], [0, 0, 1, 1], [], []>} : vector<16x16xf32>, vector<16x8xf32>, vector<16x8xf32> -> vector<16x8xf32>
    %c0_380 = arith.constant 0 : index
    %c8_381 = arith.constant 8 : index
    %549 = vector.load %arg39[%c0_380, %c8_381] : memref<16x32xf32, #tpu.memory_space<vmem>>, vector<16x8xf32>
    tpu.vector_store %arg39[%c0_380, %c8_381], %548 {strides = array<i32>} : memref<16x32xf32, #tpu.memory_space<vmem>>, vector<16x8xf32>,
    %c0_382 = arith.constant 0 : index
    %c16_383 = arith.constant 16 : index
    %550 = vector.load %arg38[%c0_382, %c16_383] : memref<16x96xf32, #tpu.memory_space<vmem>>, vector<16x8xf32>
    %c0_384 = arith.constant 0 : index
    %c48_385 = arith.constant 48 : index
    %551 = vector.load %arg38[%c0_384, %c48_385] : memref<16x96xf32, #tpu.memory_space<vmem>>, vector<16x8xf32>
    %c0_386 = arith.constant 0 : index
    %c80_387 = arith.constant 80 : index
    %552 = vector.load %arg38[%c0_386, %c80_387] : memref<16x96xf32, #tpu.memory_space<vmem>>, vector<16x8xf32>
    %cst_388 = arith.constant dense<0.000000e+00> : vector<16x16xf32>
    %553 = tpu.matmul %550, %551, %cst_388 {dimension_numbers = #tpu.dot_dimension_numbers<[1], [1], [0], [0], [0, 0, 1, 0], [], []>} : vector<16x8xf32>, vector<16x8xf32>, vector<16x16xf32> -> vector<16x16xf32>
    %cst_389 = arith.constant 0.353553385 : f32
    %554 = vector.broadcast %cst_389 : f32 to vector<16x16xf32>
    %555 = arith.mulf %553, %554 : vector<16x16xf32>
    %556 = arith.addf %555, %2 : vector<16x16xf32>
    %cst_390 = arith.constant dense<0xFF800000> : vector<16xf32>
    %557 = vector.multi_reduction <maximumf>, %556, %cst_390 [1] : vector<16x16xf32> to vector<16xf32>
    %558 = vector.shape_cast %557 : vector<16xf32> to vector<16x1xf32>
    %559 = vector.broadcast %558 : vector<16x1xf32> to vector<16x16xf32>
    %560 = arith.subf %556, %559 : vector<16x16xf32>
    %561 = math.exp %560 : vector<16x16xf32>
    %cst_391 = arith.constant dense<0.000000e+00> : vector<16xf32>
    %562 = vector.multi_reduction <add>, %561, %cst_391 [1] : vector<16x16xf32> to vector<16xf32>
    %563 = vector.shape_cast %562 : vector<16xf32> to vector<16x1xf32>
    %564 = tpu.reciprocal %563 {approx = true} : vector<16x1xf32> -> vector<16x1xf32>
    %565 = vector.broadcast %564 : vector<16x1xf32> to vector<16x16xf32>
    %566 = arith.mulf %561, %565 : vector<16x16xf32>
    %cst_392 = arith.constant dense<0.000000e+00> : vector<16x8xf32>
    %567 = tpu.matmul %566, %552, %cst_392 {dimension_numbers = #tpu.dot_dimension_numbers<[1], [0], [0], [1], [0, 0, 1, 1], [], []>} : vector<16x16xf32>, vector<16x8xf32>, vector<16x8xf32> -> vector<16x8xf32>
    %c0_393 = arith.constant 0 : index
    %c16_394 = arith.constant 16 : index
    %568 = vector.load %arg39[%c0_393, %c16_394] : memref<16x32xf32, #tpu.memory_space<vmem>>, vector<16x8xf32>
    tpu.vector_store %arg39[%c0_393, %c16_394], %567 {strides = array<i32>} : memref<16x32xf32, #tpu.memory_space<vmem>>, vector<16x8xf32>,
    %c0_395 = arith.constant 0 : index
    %c24_396 = arith.constant 24 : index
    %569 = vector.load %arg38[%c0_395, %c24_396] : memref<16x96xf32, #tpu.memory_space<vmem>>, vector<16x8xf32>
    %c0_397 = arith.constant 0 : index
    %c56_398 = arith.constant 56 : index
    %570 = vector.load %arg38[%c0_397, %c56_398] : memref<16x96xf32, #tpu.memory_space<vmem>>, vector<16x8xf32>
    %c0_399 = arith.constant 0 : index
    %c88_400 = arith.constant 88 : index
    %571 = vector.load %arg38[%c0_399, %c88_400] : memref<16x96xf32, #tpu.memory_space<vmem>>, vector<16x8xf32>
    %cst_401 = arith.constant dense<0.000000e+00> : vector<16x16xf32>
    %572 = tpu.matmul %569, %570, %cst_401 {dimension_numbers = #tpu.dot_dimension_numbers<[1], [1], [0], [0], [0, 0, 1, 0], [], []>} : vector<16x8xf32>, vector<16x8xf32>, vector<16x16xf32> -> vector<16x16xf32>
    %cst_402 = arith.constant 0.353553385 : f32
    %573 = vector.broadcast %cst_402 : f32 to vector<16x16xf32>
    %574 = arith.mulf %572, %573 : vector<16x16xf32>
    %575 = arith.addf %574, %2 : vector<16x16xf32>
    %cst_403 = arith.constant dense<0xFF800000> : vector<16xf32>
    %576 = vector.multi_reduction <maximumf>, %575, %cst_403 [1] : vector<16x16xf32> to vector<16xf32>
    %577 = vector.shape_cast %576 : vector<16xf32> to vector<16x1xf32>
    %578 = vector.broadcast %577 : vector<16x1xf32> to vector<16x16xf32>
    %579 = arith.subf %575, %578 : vector<16x16xf32>
    %580 = math.exp %579 : vector<16x16xf32>
    %cst_404 = arith.constant dense<0.000000e+00> : vector<16xf32>
    %581 = vector.multi_reduction <add>, %580, %cst_404 [1] : vector<16x16xf32> to vector<16xf32>
    %582 = vector.shape_cast %581 : vector<16xf32> to vector<16x1xf32>
    %583 = tpu.reciprocal %582 {approx = true} : vector<16x1xf32> -> vector<16x1xf32>
    %584 = vector.broadcast %583 : vector<16x1xf32> to vector<16x16xf32>
    %585 = arith.mulf %580, %584 : vector<16x16xf32>
    %cst_405 = arith.constant dense<0.000000e+00> : vector<16x8xf32>
    %586 = tpu.matmul %585, %571, %cst_405 {dimension_numbers = #tpu.dot_dimension_numbers<[1], [0], [0], [1], [0, 0, 1, 1], [], []>} : vector<16x16xf32>, vector<16x8xf32>, vector<16x8xf32> -> vector<16x8xf32>
    %c0_406 = arith.constant 0 : index
    %c24_407 = arith.constant 24 : index
    %587 = vector.load %arg39[%c0_406, %c24_407] : memref<16x32xf32, #tpu.memory_space<vmem>>, vector<16x8xf32>
    tpu.vector_store %arg39[%c0_406, %c24_407], %586 {strides = array<i32>} : memref<16x32xf32, #tpu.memory_space<vmem>>, vector<16x8xf32>,
    %c0_408 = arith.constant 0 : index
    %c0_409 = arith.constant 0 : index
    %588 = vector.load %arg39[%c0_408, %c0_409] : memref<16x32xf32, #tpu.memory_space<vmem>>, vector<16x32xf32>
    %cst_410 = arith.constant dense<0.000000e+00> : vector<16x32xf32>
    %589 = tpu.matmul %588, %509, %cst_410 {dimension_numbers = #tpu.dot_dimension_numbers<[1], [0], [0], [1], [0, 0, 1, 1], [], []>} : vector<16x32xf32>, vector<32x32xf32>, vector<16x32xf32> -> vector<16x32xf32>
    %590 = vector.broadcast %511 : vector<1x32xf32> to vector<16x32xf32>
    %591 = arith.addf %589, %590 : vector<16x32xf32>
    %592 = arith.addf %491, %591 : vector<16x32xf32>
    %c0_411 = arith.constant 0 : index
    %c1_412 = arith.constant 1 : index
    %c0_413 = arith.constant 0 : index
    %c0_414 = arith.constant 0 : index
    %c0_415 = arith.constant 0 : index
    %593 = vector.load %arg33[%c0_411, %c1_412, %c0_413, %c0_414, %c0_415] : memref<2x3x2x1x32xf32, #tpu.memory_space<vmem>>, vector<1x1x1x1x32xf32>
    %594 = vector.shape_cast %593 : vector<1x1x1x1x32xf32> to vector<1x32xf32>
    %c0_416 = arith.constant 0 : index
    %c1_417 = arith.constant 1 : index
    %c1_418 = arith.constant 1 : index
    %c0_419 = arith.constant 0 : index
    %c0_420 = arith.constant 0 : index
    %595 = vector.load %arg33[%c0_416, %c1_417, %c1_418, %c0_419, %c0_420] : memref<2x3x2x1x32xf32, #tpu.memory_space<vmem>>, vector<1x1x1x1x32xf32>
    %596 = vector.shape_cast %595 : vector<1x1x1x1x32xf32> to vector<1x32xf32>
    %cst_421 = arith.constant dense<0.000000e+00> : vector<16xf32>
    %597 = vector.multi_reduction <add>, %592, %cst_421 [1] : vector<16x32xf32> to vector<16xf32>
    %598 = vector.shape_cast %597 : vector<16xf32> to vector<16x1xf32>
    %cst_422 = arith.constant 3.200000e+01 : f32
    %599 = vector.broadcast %cst_422 : f32 to vector<16x1xf32>
    %600 = arith.divf %598, %599 : vector<16x1xf32>
    %601 = vector.broadcast %600 : vector<16x1xf32> to vector<16x32xf32>
    %602 = arith.subf %592, %601 : vector<16x32xf32>
    %603 = arith.mulf %602, %602 : vector<16x32xf32>
    %cst_423 = arith.constant dense<0.000000e+00> : vector<16xf32>
    %604 = vector.multi_reduction <add>, %603, %cst_423 [1] : vector<16x32xf32> to vector<16xf32>
    %605 = vector.shape_cast %604 : vector<16xf32> to vector<16x1xf32>
    %cst_424 = arith.constant 3.200000e+01 : f32
    %606 = vector.broadcast %cst_424 : f32 to vector<16x1xf32>
    %607 = arith.divf %605, %606 : vector<16x1xf32>
    %608 = vector.broadcast %600 : vector<16x1xf32> to vector<16x32xf32>
    %609 = arith.subf %592, %608 : vector<16x32xf32>
    %cst_425 = arith.constant 9.99999974E-6 : f32
    %610 = vector.broadcast %cst_425 : f32 to vector<16x1xf32>
    %611 = arith.addf %607, %610 : vector<16x1xf32>
    %612 = math.rsqrt %611 : vector<16x1xf32>
    %613 = vector.broadcast %612 : vector<16x1xf32> to vector<16x32xf32>
    %614 = arith.mulf %609, %613 : vector<16x32xf32>
    %615 = vector.broadcast %594 : vector<1x32xf32> to vector<16x32xf32>
    %616 = arith.mulf %614, %615 : vector<16x32xf32>
    %617 = vector.broadcast %596 : vector<1x32xf32> to vector<16x32xf32>
    %618 = arith.addf %616, %617 : vector<16x32xf32>
    %c0_426 = arith.constant 0 : index
    %c0_427 = arith.constant 0 : index
    %c0_428 = arith.constant 0 : index
    %619 = vector.load %arg29[%c0_426, %c0_427, %c0_428] : memref<2x32x64xf32, #tpu.memory_space<vmem>>, vector<1x32x64xf32>
    %620 = vector.shape_cast %619 : vector<1x32x64xf32> to vector<32x64xf32>
    %cst_429 = arith.constant dense<0.000000e+00> : vector<16x64xf32>
    %621 = tpu.matmul %618, %620, %cst_429 {dimension_numbers = #tpu.dot_dimension_numbers<[1], [0], [0], [1], [0, 0, 1, 1], [], []>} : vector<16x32xf32>, vector<32x64xf32>, vector<16x64xf32> -> vector<16x64xf32>
    %c0_430 = arith.constant 0 : index
    %c0_431 = arith.constant 0 : index
    %c0_432 = arith.constant 0 : index
    %622 = vector.load %arg30[%c0_430, %c0_431, %c0_432] : memref<2x1x64xf32, #tpu.memory_space<vmem>>, vector<1x1x64xf32>
    %623 = vector.shape_cast %622 : vector<1x1x64xf32> to vector<1x64xf32>
    %624 = vector.broadcast %623 : vector<1x64xf32> to vector<16x64xf32>
    %625 = arith.addf %621, %624 : vector<16x64xf32>
    %cst_433 = arith.constant 0.000000e+00 : f32
    %626 = vector.broadcast %cst_433 : f32 to vector<16x64xf32>
    %627 = arith.maximumf %625, %626 : vector<16x64xf32>
    %c0_434 = arith.constant 0 : index
    %c0_435 = arith.constant 0 : index
    %c0_436 = arith.constant 0 : index
    %628 = vector.load %arg31[%c0_434, %c0_435, %c0_436] : memref<2x64x32xf32, #tpu.memory_space<vmem>>, vector<1x64x32xf32>
    %629 = vector.shape_cast %628 : vector<1x64x32xf32> to vector<64x32xf32>
    %cst_437 = arith.constant dense<0.000000e+00> : vector<16x32xf32>
    %630 = tpu.matmul %627, %629, %cst_437 {dimension_numbers = #tpu.dot_dimension_numbers<[1], [0], [0], [1], [0, 0, 1, 1], [], []>} : vector<16x64xf32>, vector<64x32xf32>, vector<16x32xf32> -> vector<16x32xf32>
    %c0_438 = arith.constant 0 : index
    %c0_439 = arith.constant 0 : index
    %c0_440 = arith.constant 0 : index
    %631 = vector.load %arg32[%c0_438, %c0_439, %c0_440] : memref<2x1x32xf32, #tpu.memory_space<vmem>>, vector<1x1x32xf32>
    %632 = vector.shape_cast %631 : vector<1x1x32xf32> to vector<1x32xf32>
    %633 = vector.broadcast %632 : vector<1x32xf32> to vector<16x32xf32>
    %634 = arith.addf %630, %633 : vector<16x32xf32>
    %635 = arith.addf %618, %634 : vector<16x32xf32>
    %c0_441 = arith.constant 0 : index
    %c2 = arith.constant 2 : index
    %c0_442 = arith.constant 0 : index
    %c0_443 = arith.constant 0 : index
    %c0_444 = arith.constant 0 : index
    %636 = vector.load %arg33[%c0_441, %c2, %c0_442, %c0_443, %c0_444] : memref<2x3x2x1x32xf32, #tpu.memory_space<vmem>>, vector<1x1x1x1x32xf32>
    %637 = vector.shape_cast %636 : vector<1x1x1x1x32xf32> to vector<1x32xf32>
    %c0_445 = arith.constant 0 : index
    %c2_446 = arith.constant 2 : index
    %c1_447 = arith.constant 1 : index
    %c0_448 = arith.constant 0 : index
    %c0_449 = arith.constant 0 : index
    %638 = vector.load %arg33[%c0_445, %c2_446, %c1_447, %c0_448, %c0_449] : memref<2x3x2x1x32xf32, #tpu.memory_space<vmem>>, vector<1x1x1x1x32xf32>
    %639 = vector.shape_cast %638 : vector<1x1x1x1x32xf32> to vector<1x32xf32>
    %cst_450 = arith.constant dense<0.000000e+00> : vector<16xf32>
    %640 = vector.multi_reduction <add>, %635, %cst_450 [1] : vector<16x32xf32> to vector<16xf32>
    %641 = vector.shape_cast %640 : vector<16xf32> to vector<16x1xf32>
    %cst_451 = arith.constant 3.200000e+01 : f32
    %642 = vector.broadcast %cst_451 : f32 to vector<16x1xf32>
    %643 = arith.divf %641, %642 : vector<16x1xf32>
    %644 = vector.broadcast %643 : vector<16x1xf32> to vector<16x32xf32>
    %645 = arith.subf %635, %644 : vector<16x32xf32>
    %646 = arith.mulf %645, %645 : vector<16x32xf32>
    %cst_452 = arith.constant dense<0.000000e+00> : vector<16xf32>
    %647 = vector.multi_reduction <add>, %646, %cst_452 [1] : vector<16x32xf32> to vector<16xf32>
    %648 = vector.shape_cast %647 : vector<16xf32> to vector<16x1xf32>
    %cst_453 = arith.constant 3.200000e+01 : f32
    %649 = vector.broadcast %cst_453 : f32 to vector<16x1xf32>
    %650 = arith.divf %648, %649 : vector<16x1xf32>
    %651 = vector.broadcast %643 : vector<16x1xf32> to vector<16x32xf32>
    %652 = arith.subf %635, %651 : vector<16x32xf32>
    %cst_454 = arith.constant 9.99999974E-6 : f32
    %653 = vector.broadcast %cst_454 : f32 to vector<16x1xf32>
    %654 = arith.addf %650, %653 : vector<16x1xf32>
    %655 = math.rsqrt %654 : vector<16x1xf32>
    %656 = vector.broadcast %655 : vector<16x1xf32> to vector<16x32xf32>
    %657 = arith.mulf %652, %656 : vector<16x32xf32>
    %658 = vector.broadcast %637 : vector<1x32xf32> to vector<16x32xf32>
    %659 = arith.mulf %657, %658 : vector<16x32xf32>
    %660 = vector.broadcast %639 : vector<1x32xf32> to vector<16x32xf32>
    %661 = arith.addf %659, %660 : vector<16x32xf32>
    %c1_455 = arith.constant 1 : index
    %c0_456 = arith.constant 0 : index
    %c0_457 = arith.constant 0 : index
    %662 = vector.load %arg19[%c1_455, %c0_456, %c0_457] : memref<2x32x96xf32, #tpu.memory_space<vmem>>, vector<1x32x96xf32>
    %663 = vector.shape_cast %662 : vector<1x32x96xf32> to vector<32x96xf32>
    %cst_458 = arith.constant dense<0.000000e+00> : vector<16x96xf32>
    %664 = tpu.matmul %661, %663, %cst_458 {dimension_numbers = #tpu.dot_dimension_numbers<[1], [0], [0], [1], [0, 0, 1, 1], [], []>} : vector<16x32xf32>, vector<32x96xf32>, vector<16x96xf32> -> vector<16x96xf32>
    %c1_459 = arith.constant 1 : index
    %c0_460 = arith.constant 0 : index
    %c0_461 = arith.constant 0 : index
    %665 = vector.load %arg20[%c1_459, %c0_460, %c0_461] : memref<2x1x96xf32, #tpu.memory_space<vmem>>, vector<1x1x96xf32>
    %666 = vector.shape_cast %665 : vector<1x1x96xf32> to vector<1x96xf32>
    %667 = vector.broadcast %666 : vector<1x96xf32> to vector<16x96xf32>
    %668 = arith.addf %664, %667 : vector<16x96xf32>
    %c0_462 = arith.constant 0 : index
    %c0_463 = arith.constant 0 : index
    %669 = vector.load %arg38[%c0_462, %c0_463] : memref<16x96xf32, #tpu.memory_space<vmem>>, vector<16x96xf32>
    tpu.vector_store %arg38[%c0_462, %c0_463], %668 {strides = array<i32>} : memref<16x96xf32, #tpu.memory_space<vmem>>, vector<16x96xf32>,
    %c1_464 = arith.constant 1 : index
    %c0_465 = arith.constant 0 : index
    %c0_466 = arith.constant 0 : index
    %670 = vector.load %arg21[%c1_464, %c0_465, %c0_466] : memref<2x32x32xf32, #tpu.memory_space<vmem>>, vector<1x32x32xf32>
    %671 = vector.shape_cast %670 : vector<1x32x32xf32> to vector<32x32xf32>
    %c1_467 = arith.constant 1 : index
    %c0_468 = arith.constant 0 : index
    %c0_469 = arith.constant 0 : index
    %672 = vector.load %arg22[%c1_467, %c0_468, %c0_469] : memref<2x1x32xf32, #tpu.memory_space<vmem>>, vector<1x1x32xf32>
    %673 = vector.shape_cast %672 : vector<1x1x32xf32> to vector<1x32xf32>
    %c0_470 = arith.constant 0 : index
    %c0_471 = arith.constant 0 : index
    %674 = vector.load %arg38[%c0_470, %c0_471] : memref<16x96xf32, #tpu.memory_space<vmem>>, vector<16x8xf32>
    %c0_472 = arith.constant 0 : index
    %c32_473 = arith.constant 32 : index
    %675 = vector.load %arg38[%c0_472, %c32_473] : memref<16x96xf32, #tpu.memory_space<vmem>>, vector<16x8xf32>
    %c0_474 = arith.constant 0 : index
    %c64_475 = arith.constant 64 : index
    %676 = vector.load %arg38[%c0_474, %c64_475] : memref<16x96xf32, #tpu.memory_space<vmem>>, vector<16x8xf32>
    %cst_476 = arith.constant dense<0.000000e+00> : vector<16x16xf32>
    %677 = tpu.matmul %674, %675, %cst_476 {dimension_numbers = #tpu.dot_dimension_numbers<[1], [1], [0], [0], [0, 0, 1, 0], [], []>} : vector<16x8xf32>, vector<16x8xf32>, vector<16x16xf32> -> vector<16x16xf32>
    %cst_477 = arith.constant 0.353553385 : f32
    %678 = vector.broadcast %cst_477 : f32 to vector<16x16xf32>
    %679 = arith.mulf %677, %678 : vector<16x16xf32>
    %680 = arith.addf %679, %1 : vector<16x16xf32>
    %cst_478 = arith.constant dense<0xFF800000> : vector<16xf32>
    %681 = vector.multi_reduction <maximumf>, %680, %cst_478 [1] : vector<16x16xf32> to vector<16xf32>
    %682 = vector.shape_cast %681 : vector<16xf32> to vector<16x1xf32>
    %683 = vector.broadcast %682 : vector<16x1xf32> to vector<16x16xf32>
    %684 = arith.subf %680, %683 : vector<16x16xf32>
    %685 = math.exp %684 : vector<16x16xf32>
    %cst_479 = arith.constant dense<0.000000e+00> : vector<16xf32>
    %686 = vector.multi_reduction <add>, %685, %cst_479 [1] : vector<16x16xf32> to vector<16xf32>
    %687 = vector.shape_cast %686 : vector<16xf32> to vector<16x1xf32>
    %688 = tpu.reciprocal %687 {approx = true} : vector<16x1xf32> -> vector<16x1xf32>
    %689 = vector.broadcast %688 : vector<16x1xf32> to vector<16x16xf32>
    %690 = arith.mulf %685, %689 : vector<16x16xf32>
    %cst_480 = arith.constant dense<0.000000e+00> : vector<16x8xf32>
    %691 = tpu.matmul %690, %676, %cst_480 {dimension_numbers = #tpu.dot_dimension_numbers<[1], [0], [0], [1], [0, 0, 1, 1], [], []>} : vector<16x16xf32>, vector<16x8xf32>, vector<16x8xf32> -> vector<16x8xf32>
    %c0_481 = arith.constant 0 : index
    %c0_482 = arith.constant 0 : index
    %692 = vector.load %arg39[%c0_481, %c0_482] : memref<16x32xf32, #tpu.memory_space<vmem>>, vector<16x8xf32>
    tpu.vector_store %arg39[%c0_481, %c0_482], %691 {strides = array<i32>} : memref<16x32xf32, #tpu.memory_space<vmem>>, vector<16x8xf32>,
    %c0_483 = arith.constant 0 : index
    %c8_484 = arith.constant 8 : index
    %693 = vector.load %arg38[%c0_483, %c8_484] : memref<16x96xf32, #tpu.memory_space<vmem>>, vector<16x8xf32>
    %c0_485 = arith.constant 0 : index
    %c40_486 = arith.constant 40 : index
    %694 = vector.load %arg38[%c0_485, %c40_486] : memref<16x96xf32, #tpu.memory_space<vmem>>, vector<16x8xf32>
    %c0_487 = arith.constant 0 : index
    %c72_488 = arith.constant 72 : index
    %695 = vector.load %arg38[%c0_487, %c72_488] : memref<16x96xf32, #tpu.memory_space<vmem>>, vector<16x8xf32>
    %cst_489 = arith.constant dense<0.000000e+00> : vector<16x16xf32>
    %696 = tpu.matmul %693, %694, %cst_489 {dimension_numbers = #tpu.dot_dimension_numbers<[1], [1], [0], [0], [0, 0, 1, 0], [], []>} : vector<16x8xf32>, vector<16x8xf32>, vector<16x16xf32> -> vector<16x16xf32>
    %cst_490 = arith.constant 0.353553385 : f32
    %697 = vector.broadcast %cst_490 : f32 to vector<16x16xf32>
    %698 = arith.mulf %696, %697 : vector<16x16xf32>
    %699 = arith.addf %698, %1 : vector<16x16xf32>
    %cst_491 = arith.constant dense<0xFF800000> : vector<16xf32>
    %700 = vector.multi_reduction <maximumf>, %699, %cst_491 [1] : vector<16x16xf32> to vector<16xf32>
    %701 = vector.shape_cast %700 : vector<16xf32> to vector<16x1xf32>
    %702 = vector.broadcast %701 : vector<16x1xf32> to vector<16x16xf32>
    %703 = arith.subf %699, %702 : vector<16x16xf32>
    %704 = math.exp %703 : vector<16x16xf32>
    %cst_492 = arith.constant dense<0.000000e+00> : vector<16xf32>
    %705 = vector.multi_reduction <add>, %704, %cst_492 [1] : vector<16x16xf32> to vector<16xf32>
    %706 = vector.shape_cast %705 : vector<16xf32> to vector<16x1xf32>
    %707 = tpu.reciprocal %706 {approx = true} : vector<16x1xf32> -> vector<16x1xf32>
    %708 = vector.broadcast %707 : vector<16x1xf32> to vector<16x16xf32>
    %709 = arith.mulf %704, %708 : vector<16x16xf32>
    %cst_493 = arith.constant dense<0.000000e+00> : vector<16x8xf32>
    %710 = tpu.matmul %709, %695, %cst_493 {dimension_numbers = #tpu.dot_dimension_numbers<[1], [0], [0], [1], [0, 0, 1, 1], [], []>} : vector<16x16xf32>, vector<16x8xf32>, vector<16x8xf32> -> vector<16x8xf32>
    %c0_494 = arith.constant 0 : index
    %c8_495 = arith.constant 8 : index
    %711 = vector.load %arg39[%c0_494, %c8_495] : memref<16x32xf32, #tpu.memory_space<vmem>>, vector<16x8xf32>
    tpu.vector_store %arg39[%c0_494, %c8_495], %710 {strides = array<i32>} : memref<16x32xf32, #tpu.memory_space<vmem>>, vector<16x8xf32>,
    %c0_496 = arith.constant 0 : index
    %c16_497 = arith.constant 16 : index
    %712 = vector.load %arg38[%c0_496, %c16_497] : memref<16x96xf32, #tpu.memory_space<vmem>>, vector<16x8xf32>
    %c0_498 = arith.constant 0 : index
    %c48_499 = arith.constant 48 : index
    %713 = vector.load %arg38[%c0_498, %c48_499] : memref<16x96xf32, #tpu.memory_space<vmem>>, vector<16x8xf32>
    %c0_500 = arith.constant 0 : index
    %c80_501 = arith.constant 80 : index
    %714 = vector.load %arg38[%c0_500, %c80_501] : memref<16x96xf32, #tpu.memory_space<vmem>>, vector<16x8xf32>
    %cst_502 = arith.constant dense<0.000000e+00> : vector<16x16xf32>
    %715 = tpu.matmul %712, %713, %cst_502 {dimension_numbers = #tpu.dot_dimension_numbers<[1], [1], [0], [0], [0, 0, 1, 0], [], []>} : vector<16x8xf32>, vector<16x8xf32>, vector<16x16xf32> -> vector<16x16xf32>
    %cst_503 = arith.constant 0.353553385 : f32
    %716 = vector.broadcast %cst_503 : f32 to vector<16x16xf32>
    %717 = arith.mulf %715, %716 : vector<16x16xf32>
    %718 = arith.addf %717, %1 : vector<16x16xf32>
    %cst_504 = arith.constant dense<0xFF800000> : vector<16xf32>
    %719 = vector.multi_reduction <maximumf>, %718, %cst_504 [1] : vector<16x16xf32> to vector<16xf32>
    %720 = vector.shape_cast %719 : vector<16xf32> to vector<16x1xf32>
    %721 = vector.broadcast %720 : vector<16x1xf32> to vector<16x16xf32>
    %722 = arith.subf %718, %721 : vector<16x16xf32>
    %723 = math.exp %722 : vector<16x16xf32>
    %cst_505 = arith.constant dense<0.000000e+00> : vector<16xf32>
    %724 = vector.multi_reduction <add>, %723, %cst_505 [1] : vector<16x16xf32> to vector<16xf32>
    %725 = vector.shape_cast %724 : vector<16xf32> to vector<16x1xf32>
    %726 = tpu.reciprocal %725 {approx = true} : vector<16x1xf32> -> vector<16x1xf32>
    %727 = vector.broadcast %726 : vector<16x1xf32> to vector<16x16xf32>
    %728 = arith.mulf %723, %727 : vector<16x16xf32>
    %cst_506 = arith.constant dense<0.000000e+00> : vector<16x8xf32>
    %729 = tpu.matmul %728, %714, %cst_506 {dimension_numbers = #tpu.dot_dimension_numbers<[1], [0], [0], [1], [0, 0, 1, 1], [], []>} : vector<16x16xf32>, vector<16x8xf32>, vector<16x8xf32> -> vector<16x8xf32>
    %c0_507 = arith.constant 0 : index
    %c16_508 = arith.constant 16 : index
    %730 = vector.load %arg39[%c0_507, %c16_508] : memref<16x32xf32, #tpu.memory_space<vmem>>, vector<16x8xf32>
    tpu.vector_store %arg39[%c0_507, %c16_508], %729 {strides = array<i32>} : memref<16x32xf32, #tpu.memory_space<vmem>>, vector<16x8xf32>,
    %c0_509 = arith.constant 0 : index
    %c24_510 = arith.constant 24 : index
    %731 = vector.load %arg38[%c0_509, %c24_510] : memref<16x96xf32, #tpu.memory_space<vmem>>, vector<16x8xf32>
    %c0_511 = arith.constant 0 : index
    %c56_512 = arith.constant 56 : index
    %732 = vector.load %arg38[%c0_511, %c56_512] : memref<16x96xf32, #tpu.memory_space<vmem>>, vector<16x8xf32>
    %c0_513 = arith.constant 0 : index
    %c88_514 = arith.constant 88 : index
    %733 = vector.load %arg38[%c0_513, %c88_514] : memref<16x96xf32, #tpu.memory_space<vmem>>, vector<16x8xf32>
    %cst_515 = arith.constant dense<0.000000e+00> : vector<16x16xf32>
    %734 = tpu.matmul %731, %732, %cst_515 {dimension_numbers = #tpu.dot_dimension_numbers<[1], [1], [0], [0], [0, 0, 1, 0], [], []>} : vector<16x8xf32>, vector<16x8xf32>, vector<16x16xf32> -> vector<16x16xf32>
    %cst_516 = arith.constant 0.353553385 : f32
    %735 = vector.broadcast %cst_516 : f32 to vector<16x16xf32>
    %736 = arith.mulf %734, %735 : vector<16x16xf32>
    %737 = arith.addf %736, %1 : vector<16x16xf32>
    %cst_517 = arith.constant dense<0xFF800000> : vector<16xf32>
    %738 = vector.multi_reduction <maximumf>, %737, %cst_517 [1] : vector<16x16xf32> to vector<16xf32>
    %739 = vector.shape_cast %738 : vector<16xf32> to vector<16x1xf32>
    %740 = vector.broadcast %739 : vector<16x1xf32> to vector<16x16xf32>
    %741 = arith.subf %737, %740 : vector<16x16xf32>
    %742 = math.exp %741 : vector<16x16xf32>
    %cst_518 = arith.constant dense<0.000000e+00> : vector<16xf32>
    %743 = vector.multi_reduction <add>, %742, %cst_518 [1] : vector<16x16xf32> to vector<16xf32>
    %744 = vector.shape_cast %743 : vector<16xf32> to vector<16x1xf32>
    %745 = tpu.reciprocal %744 {approx = true} : vector<16x1xf32> -> vector<16x1xf32>
    %746 = vector.broadcast %745 : vector<16x1xf32> to vector<16x16xf32>
    %747 = arith.mulf %742, %746 : vector<16x16xf32>
    %cst_519 = arith.constant dense<0.000000e+00> : vector<16x8xf32>
    %748 = tpu.matmul %747, %733, %cst_519 {dimension_numbers = #tpu.dot_dimension_numbers<[1], [0], [0], [1], [0, 0, 1, 1], [], []>} : vector<16x16xf32>, vector<16x8xf32>, vector<16x8xf32> -> vector<16x8xf32>
    %c0_520 = arith.constant 0 : index
    %c24_521 = arith.constant 24 : index
    %749 = vector.load %arg39[%c0_520, %c24_521] : memref<16x32xf32, #tpu.memory_space<vmem>>, vector<16x8xf32>
    tpu.vector_store %arg39[%c0_520, %c24_521], %748 {strides = array<i32>} : memref<16x32xf32, #tpu.memory_space<vmem>>, vector<16x8xf32>,
    %c0_522 = arith.constant 0 : index
    %c0_523 = arith.constant 0 : index
    %750 = vector.load %arg39[%c0_522, %c0_523] : memref<16x32xf32, #tpu.memory_space<vmem>>, vector<16x32xf32>
    %cst_524 = arith.constant dense<0.000000e+00> : vector<16x32xf32>
    %751 = tpu.matmul %750, %671, %cst_524 {dimension_numbers = #tpu.dot_dimension_numbers<[1], [0], [0], [1], [0, 0, 1, 1], [], []>} : vector<16x32xf32>, vector<32x32xf32>, vector<16x32xf32> -> vector<16x32xf32>
    %752 = vector.broadcast %673 : vector<1x32xf32> to vector<16x32xf32>
    %753 = arith.addf %751, %752 : vector<16x32xf32>
    %754 = arith.addf %661, %753 : vector<16x32xf32>
    %c1_525 = arith.constant 1 : index
    %c0_526 = arith.constant 0 : index
    %c0_527 = arith.constant 0 : index
    %c0_528 = arith.constant 0 : index
    %c0_529 = arith.constant 0 : index
    %755 = vector.load %arg33[%c1_525, %c0_526, %c0_527, %c0_528, %c0_529] : memref<2x3x2x1x32xf32, #tpu.memory_space<vmem>>, vector<1x1x1x1x32xf32>
    %756 = vector.shape_cast %755 : vector<1x1x1x1x32xf32> to vector<1x32xf32>
    %c1_530 = arith.constant 1 : index
    %c0_531 = arith.constant 0 : index
    %c1_532 = arith.constant 1 : index
    %c0_533 = arith.constant 0 : index
    %c0_534 = arith.constant 0 : index
    %757 = vector.load %arg33[%c1_530, %c0_531, %c1_532, %c0_533, %c0_534] : memref<2x3x2x1x32xf32, #tpu.memory_space<vmem>>, vector<1x1x1x1x32xf32>
    %758 = vector.shape_cast %757 : vector<1x1x1x1x32xf32> to vector<1x32xf32>
    %cst_535 = arith.constant dense<0.000000e+00> : vector<16xf32>
    %759 = vector.multi_reduction <add>, %754, %cst_535 [1] : vector<16x32xf32> to vector<16xf32>
    %760 = vector.shape_cast %759 : vector<16xf32> to vector<16x1xf32>
    %cst_536 = arith.constant 3.200000e+01 : f32
    %761 = vector.broadcast %cst_536 : f32 to vector<16x1xf32>
    %762 = arith.divf %760, %761 : vector<16x1xf32>
    %763 = vector.broadcast %762 : vector<16x1xf32> to vector<16x32xf32>
    %764 = arith.subf %754, %763 : vector<16x32xf32>
    %765 = arith.mulf %764, %764 : vector<16x32xf32>
    %cst_537 = arith.constant dense<0.000000e+00> : vector<16xf32>
    %766 = vector.multi_reduction <add>, %765, %cst_537 [1] : vector<16x32xf32> to vector<16xf32>
    %767 = vector.shape_cast %766 : vector<16xf32> to vector<16x1xf32>
    %cst_538 = arith.constant 3.200000e+01 : f32
    %768 = vector.broadcast %cst_538 : f32 to vector<16x1xf32>
    %769 = arith.divf %767, %768 : vector<16x1xf32>
    %770 = vector.broadcast %762 : vector<16x1xf32> to vector<16x32xf32>
    %771 = arith.subf %754, %770 : vector<16x32xf32>
    %cst_539 = arith.constant 9.99999974E-6 : f32
    %772 = vector.broadcast %cst_539 : f32 to vector<16x1xf32>
    %773 = arith.addf %769, %772 : vector<16x1xf32>
    %774 = math.rsqrt %773 : vector<16x1xf32>
    %775 = vector.broadcast %774 : vector<16x1xf32> to vector<16x32xf32>
    %776 = arith.mulf %771, %775 : vector<16x32xf32>
    %777 = vector.broadcast %756 : vector<1x32xf32> to vector<16x32xf32>
    %778 = arith.mulf %776, %777 : vector<16x32xf32>
    %779 = vector.broadcast %758 : vector<1x32xf32> to vector<16x32xf32>
    %780 = arith.addf %778, %779 : vector<16x32xf32>
    %c1_540 = arith.constant 1 : index
    %c0_541 = arith.constant 0 : index
    %c0_542 = arith.constant 0 : index
    %781 = vector.load %arg23[%c1_540, %c0_541, %c0_542] : memref<2x32x32xf32, #tpu.memory_space<vmem>>, vector<1x32x32xf32>
    %782 = vector.shape_cast %781 : vector<1x32x32xf32> to vector<32x32xf32>
    %cst_543 = arith.constant dense<0.000000e+00> : vector<16x32xf32>
    %783 = tpu.matmul %780, %782, %cst_543 {dimension_numbers = #tpu.dot_dimension_numbers<[1], [0], [0], [1], [0, 0, 1, 1], [], []>} : vector<16x32xf32>, vector<32x32xf32>, vector<16x32xf32> -> vector<16x32xf32>
    %c1_544 = arith.constant 1 : index
    %c0_545 = arith.constant 0 : index
    %c0_546 = arith.constant 0 : index
    %784 = vector.load %arg24[%c1_544, %c0_545, %c0_546] : memref<2x1x32xf32, #tpu.memory_space<vmem>>, vector<1x1x32xf32>
    %785 = vector.shape_cast %784 : vector<1x1x32xf32> to vector<1x32xf32>
    %786 = vector.broadcast %785 : vector<1x32xf32> to vector<16x32xf32>
    %787 = arith.addf %783, %786 : vector<16x32xf32>
    %c0_547 = arith.constant 0 : index
    %c0_548 = arith.constant 0 : index
    %788 = vector.load %arg38[%c0_547, %c0_548] : memref<16x96xf32, #tpu.memory_space<vmem>>, vector<16x32xf32>
    tpu.vector_store %arg38[%c0_547, %c0_548], %787 {strides = array<i32>} : memref<16x96xf32, #tpu.memory_space<vmem>>, vector<16x32xf32>,
    %c1_549 = arith.constant 1 : index
    %c0_550 = arith.constant 0 : index
    %c0_551 = arith.constant 0 : index
    %789 = vector.load %arg25[%c1_549, %c0_550, %c0_551] : memref<2x32x64xf32, #tpu.memory_space<vmem>>, vector<1x32x64xf32>
    %790 = vector.shape_cast %789 : vector<1x32x64xf32> to vector<32x64xf32>
    %cst_552 = arith.constant dense<0.000000e+00> : vector<16x64xf32>
    %791 = tpu.matmul %362, %790, %cst_552 {dimension_numbers = #tpu.dot_dimension_numbers<[1], [0], [0], [1], [0, 0, 1, 1], [], []>} : vector<16x32xf32>, vector<32x64xf32>, vector<16x64xf32> -> vector<16x64xf32>
    %c1_553 = arith.constant 1 : index
    %c0_554 = arith.constant 0 : index
    %c0_555 = arith.constant 0 : index
    %792 = vector.load %arg26[%c1_553, %c0_554, %c0_555] : memref<2x1x64xf32, #tpu.memory_space<vmem>>, vector<1x1x64xf32>
    %793 = vector.shape_cast %792 : vector<1x1x64xf32> to vector<1x64xf32>
    %794 = vector.broadcast %793 : vector<1x64xf32> to vector<16x64xf32>
    %795 = arith.addf %791, %794 : vector<16x64xf32>
    %c0_556 = arith.constant 0 : index
    %c32_557 = arith.constant 32 : index
    %796 = vector.load %arg38[%c0_556, %c32_557] : memref<16x96xf32, #tpu.memory_space<vmem>>, vector<16x64xf32>
    tpu.vector_store %arg38[%c0_556, %c32_557], %795 {strides = array<i32>} : memref<16x96xf32, #tpu.memory_space<vmem>>, vector<16x64xf32>,
    %c1_558 = arith.constant 1 : index
    %c0_559 = arith.constant 0 : index
    %c0_560 = arith.constant 0 : index
    %797 = vector.load %arg27[%c1_558, %c0_559, %c0_560] : memref<2x32x32xf32, #tpu.memory_space<vmem>>, vector<1x32x32xf32>
    %798 = vector.shape_cast %797 : vector<1x32x32xf32> to vector<32x32xf32>
    %c1_561 = arith.constant 1 : index
    %c0_562 = arith.constant 0 : index
    %c0_563 = arith.constant 0 : index
    %799 = vector.load %arg28[%c1_561, %c0_562, %c0_563] : memref<2x1x32xf32, #tpu.memory_space<vmem>>, vector<1x1x32xf32>
    %800 = vector.shape_cast %799 : vector<1x1x32xf32> to vector<1x32xf32>
    %c0_564 = arith.constant 0 : index
    %c0_565 = arith.constant 0 : index
    %801 = vector.load %arg38[%c0_564, %c0_565] : memref<16x96xf32, #tpu.memory_space<vmem>>, vector<16x8xf32>
    %c0_566 = arith.constant 0 : index
    %c32_567 = arith.constant 32 : index
    %802 = vector.load %arg38[%c0_566, %c32_567] : memref<16x96xf32, #tpu.memory_space<vmem>>, vector<16x8xf32>
    %c0_568 = arith.constant 0 : index
    %c64_569 = arith.constant 64 : index
    %803 = vector.load %arg38[%c0_568, %c64_569] : memref<16x96xf32, #tpu.memory_space<vmem>>, vector<16x8xf32>
    %cst_570 = arith.constant dense<0.000000e+00> : vector<16x16xf32>
    %804 = tpu.matmul %801, %802, %cst_570 {dimension_numbers = #tpu.dot_dimension_numbers<[1], [1], [0], [0], [0, 0, 1, 0], [], []>} : vector<16x8xf32>, vector<16x8xf32>, vector<16x16xf32> -> vector<16x16xf32>
    %cst_571 = arith.constant 0.353553385 : f32
    %805 = vector.broadcast %cst_571 : f32 to vector<16x16xf32>
    %806 = arith.mulf %804, %805 : vector<16x16xf32>
    %807 = arith.addf %806, %2 : vector<16x16xf32>
    %cst_572 = arith.constant dense<0xFF800000> : vector<16xf32>
    %808 = vector.multi_reduction <maximumf>, %807, %cst_572 [1] : vector<16x16xf32> to vector<16xf32>
    %809 = vector.shape_cast %808 : vector<16xf32> to vector<16x1xf32>
    %810 = vector.broadcast %809 : vector<16x1xf32> to vector<16x16xf32>
    %811 = arith.subf %807, %810 : vector<16x16xf32>
    %812 = math.exp %811 : vector<16x16xf32>
    %cst_573 = arith.constant dense<0.000000e+00> : vector<16xf32>
    %813 = vector.multi_reduction <add>, %812, %cst_573 [1] : vector<16x16xf32> to vector<16xf32>
    %814 = vector.shape_cast %813 : vector<16xf32> to vector<16x1xf32>
    %815 = tpu.reciprocal %814 {approx = true} : vector<16x1xf32> -> vector<16x1xf32>
    %816 = vector.broadcast %815 : vector<16x1xf32> to vector<16x16xf32>
    %817 = arith.mulf %812, %816 : vector<16x16xf32>
    %cst_574 = arith.constant dense<0.000000e+00> : vector<16x8xf32>
    %818 = tpu.matmul %817, %803, %cst_574 {dimension_numbers = #tpu.dot_dimension_numbers<[1], [0], [0], [1], [0, 0, 1, 1], [], []>} : vector<16x16xf32>, vector<16x8xf32>, vector<16x8xf32> -> vector<16x8xf32>
    %c0_575 = arith.constant 0 : index
    %c0_576 = arith.constant 0 : index
    %819 = vector.load %arg39[%c0_575, %c0_576] : memref<16x32xf32, #tpu.memory_space<vmem>>, vector<16x8xf32>
    tpu.vector_store %arg39[%c0_575, %c0_576], %818 {strides = array<i32>} : memref<16x32xf32, #tpu.memory_space<vmem>>, vector<16x8xf32>,
    %c0_577 = arith.constant 0 : index
    %c8_578 = arith.constant 8 : index
    %820 = vector.load %arg38[%c0_577, %c8_578] : memref<16x96xf32, #tpu.memory_space<vmem>>, vector<16x8xf32>
    %c0_579 = arith.constant 0 : index
    %c40_580 = arith.constant 40 : index
    %821 = vector.load %arg38[%c0_579, %c40_580] : memref<16x96xf32, #tpu.memory_space<vmem>>, vector<16x8xf32>
    %c0_581 = arith.constant 0 : index
    %c72_582 = arith.constant 72 : index
    %822 = vector.load %arg38[%c0_581, %c72_582] : memref<16x96xf32, #tpu.memory_space<vmem>>, vector<16x8xf32>
    %cst_583 = arith.constant dense<0.000000e+00> : vector<16x16xf32>
    %823 = tpu.matmul %820, %821, %cst_583 {dimension_numbers = #tpu.dot_dimension_numbers<[1], [1], [0], [0], [0, 0, 1, 0], [], []>} : vector<16x8xf32>, vector<16x8xf32>, vector<16x16xf32> -> vector<16x16xf32>
    %cst_584 = arith.constant 0.353553385 : f32
    %824 = vector.broadcast %cst_584 : f32 to vector<16x16xf32>
    %825 = arith.mulf %823, %824 : vector<16x16xf32>
    %826 = arith.addf %825, %2 : vector<16x16xf32>
    %cst_585 = arith.constant dense<0xFF800000> : vector<16xf32>
    %827 = vector.multi_reduction <maximumf>, %826, %cst_585 [1] : vector<16x16xf32> to vector<16xf32>
    %828 = vector.shape_cast %827 : vector<16xf32> to vector<16x1xf32>
    %829 = vector.broadcast %828 : vector<16x1xf32> to vector<16x16xf32>
    %830 = arith.subf %826, %829 : vector<16x16xf32>
    %831 = math.exp %830 : vector<16x16xf32>
    %cst_586 = arith.constant dense<0.000000e+00> : vector<16xf32>
    %832 = vector.multi_reduction <add>, %831, %cst_586 [1] : vector<16x16xf32> to vector<16xf32>
    %833 = vector.shape_cast %832 : vector<16xf32> to vector<16x1xf32>
    %834 = tpu.reciprocal %833 {approx = true} : vector<16x1xf32> -> vector<16x1xf32>
    %835 = vector.broadcast %834 : vector<16x1xf32> to vector<16x16xf32>
    %836 = arith.mulf %831, %835 : vector<16x16xf32>
    %cst_587 = arith.constant dense<0.000000e+00> : vector<16x8xf32>
    %837 = tpu.matmul %836, %822, %cst_587 {dimension_numbers = #tpu.dot_dimension_numbers<[1], [0], [0], [1], [0, 0, 1, 1], [], []>} : vector<16x16xf32>, vector<16x8xf32>, vector<16x8xf32> -> vector<16x8xf32>
    %c0_588 = arith.constant 0 : index
    %c8_589 = arith.constant 8 : index
    %838 = vector.load %arg39[%c0_588, %c8_589] : memref<16x32xf32, #tpu.memory_space<vmem>>, vector<16x8xf32>
    tpu.vector_store %arg39[%c0_588, %c8_589], %837 {strides = array<i32>} : memref<16x32xf32, #tpu.memory_space<vmem>>, vector<16x8xf32>,
    %c0_590 = arith.constant 0 : index
    %c16_591 = arith.constant 16 : index
    %839 = vector.load %arg38[%c0_590, %c16_591] : memref<16x96xf32, #tpu.memory_space<vmem>>, vector<16x8xf32>
    %c0_592 = arith.constant 0 : index
    %c48_593 = arith.constant 48 : index
    %840 = vector.load %arg38[%c0_592, %c48_593] : memref<16x96xf32, #tpu.memory_space<vmem>>, vector<16x8xf32>
    %c0_594 = arith.constant 0 : index
    %c80_595 = arith.constant 80 : index
    %841 = vector.load %arg38[%c0_594, %c80_595] : memref<16x96xf32, #tpu.memory_space<vmem>>, vector<16x8xf32>
    %cst_596 = arith.constant dense<0.000000e+00> : vector<16x16xf32>
    %842 = tpu.matmul %839, %840, %cst_596 {dimension_numbers = #tpu.dot_dimension_numbers<[1], [1], [0], [0], [0, 0, 1, 0], [], []>} : vector<16x8xf32>, vector<16x8xf32>, vector<16x16xf32> -> vector<16x16xf32>
    %cst_597 = arith.constant 0.353553385 : f32
    %843 = vector.broadcast %cst_597 : f32 to vector<16x16xf32>
    %844 = arith.mulf %842, %843 : vector<16x16xf32>
    %845 = arith.addf %844, %2 : vector<16x16xf32>
    %cst_598 = arith.constant dense<0xFF800000> : vector<16xf32>
    %846 = vector.multi_reduction <maximumf>, %845, %cst_598 [1] : vector<16x16xf32> to vector<16xf32>
    %847 = vector.shape_cast %846 : vector<16xf32> to vector<16x1xf32>
    %848 = vector.broadcast %847 : vector<16x1xf32> to vector<16x16xf32>
    %849 = arith.subf %845, %848 : vector<16x16xf32>
    %850 = math.exp %849 : vector<16x16xf32>
    %cst_599 = arith.constant dense<0.000000e+00> : vector<16xf32>
    %851 = vector.multi_reduction <add>, %850, %cst_599 [1] : vector<16x16xf32> to vector<16xf32>
    %852 = vector.shape_cast %851 : vector<16xf32> to vector<16x1xf32>
    %853 = tpu.reciprocal %852 {approx = true} : vector<16x1xf32> -> vector<16x1xf32>
    %854 = vector.broadcast %853 : vector<16x1xf32> to vector<16x16xf32>
    %855 = arith.mulf %850, %854 : vector<16x16xf32>
    %cst_600 = arith.constant dense<0.000000e+00> : vector<16x8xf32>
    %856 = tpu.matmul %855, %841, %cst_600 {dimension_numbers = #tpu.dot_dimension_numbers<[1], [0], [0], [1], [0, 0, 1, 1], [], []>} : vector<16x16xf32>, vector<16x8xf32>, vector<16x8xf32> -> vector<16x8xf32>
    %c0_601 = arith.constant 0 : index
    %c16_602 = arith.constant 16 : index
    %857 = vector.load %arg39[%c0_601, %c16_602] : memref<16x32xf32, #tpu.memory_space<vmem>>, vector<16x8xf32>
    tpu.vector_store %arg39[%c0_601, %c16_602], %856 {strides = array<i32>} : memref<16x32xf32, #tpu.memory_space<vmem>>, vector<16x8xf32>,
    %c0_603 = arith.constant 0 : index
    %c24_604 = arith.constant 24 : index
    %858 = vector.load %arg38[%c0_603, %c24_604] : memref<16x96xf32, #tpu.memory_space<vmem>>, vector<16x8xf32>
    %c0_605 = arith.constant 0 : index
    %c56_606 = arith.constant 56 : index
    %859 = vector.load %arg38[%c0_605, %c56_606] : memref<16x96xf32, #tpu.memory_space<vmem>>, vector<16x8xf32>
    %c0_607 = arith.constant 0 : index
    %c88_608 = arith.constant 88 : index
    %860 = vector.load %arg38[%c0_607, %c88_608] : memref<16x96xf32, #tpu.memory_space<vmem>>, vector<16x8xf32>
    %cst_609 = arith.constant dense<0.000000e+00> : vector<16x16xf32>
    %861 = tpu.matmul %858, %859, %cst_609 {dimension_numbers = #tpu.dot_dimension_numbers<[1], [1], [0], [0], [0, 0, 1, 0], [], []>} : vector<16x8xf32>, vector<16x8xf32>, vector<16x16xf32> -> vector<16x16xf32>
    %cst_610 = arith.constant 0.353553385 : f32
    %862 = vector.broadcast %cst_610 : f32 to vector<16x16xf32>
    %863 = arith.mulf %861, %862 : vector<16x16xf32>
    %864 = arith.addf %863, %2 : vector<16x16xf32>
    %cst_611 = arith.constant dense<0xFF800000> : vector<16xf32>
    %865 = vector.multi_reduction <maximumf>, %864, %cst_611 [1] : vector<16x16xf32> to vector<16xf32>
    %866 = vector.shape_cast %865 : vector<16xf32> to vector<16x1xf32>
    %867 = vector.broadcast %866 : vector<16x1xf32> to vector<16x16xf32>
    %868 = arith.subf %864, %867 : vector<16x16xf32>
    %869 = math.exp %868 : vector<16x16xf32>
    %cst_612 = arith.constant dense<0.000000e+00> : vector<16xf32>
    %870 = vector.multi_reduction <add>, %869, %cst_612 [1] : vector<16x16xf32> to vector<16xf32>
    %871 = vector.shape_cast %870 : vector<16xf32> to vector<16x1xf32>
    %872 = tpu.reciprocal %871 {approx = true} : vector<16x1xf32> -> vector<16x1xf32>
    %873 = vector.broadcast %872 : vector<16x1xf32> to vector<16x16xf32>
    %874 = arith.mulf %869, %873 : vector<16x16xf32>
    %cst_613 = arith.constant dense<0.000000e+00> : vector<16x8xf32>
    %875 = tpu.matmul %874, %860, %cst_613 {dimension_numbers = #tpu.dot_dimension_numbers<[1], [0], [0], [1], [0, 0, 1, 1], [], []>} : vector<16x16xf32>, vector<16x8xf32>, vector<16x8xf32> -> vector<16x8xf32>
    %c0_614 = arith.constant 0 : index
    %c24_615 = arith.constant 24 : index
    %876 = vector.load %arg39[%c0_614, %c24_615] : memref<16x32xf32, #tpu.memory_space<vmem>>, vector<16x8xf32>
    tpu.vector_store %arg39[%c0_614, %c24_615], %875 {strides = array<i32>} : memref<16x32xf32, #tpu.memory_space<vmem>>, vector<16x8xf32>,
    %c0_616 = arith.constant 0 : index
    %c0_617 = arith.constant 0 : index
    %877 = vector.load %arg39[%c0_616, %c0_617] : memref<16x32xf32, #tpu.memory_space<vmem>>, vector<16x32xf32>
    %cst_618 = arith.constant dense<0.000000e+00> : vector<16x32xf32>
    %878 = tpu.matmul %877, %798, %cst_618 {dimension_numbers = #tpu.dot_dimension_numbers<[1], [0], [0], [1], [0, 0, 1, 1], [], []>} : vector<16x32xf32>, vector<32x32xf32>, vector<16x32xf32> -> vector<16x32xf32>
    %879 = vector.broadcast %800 : vector<1x32xf32> to vector<16x32xf32>
    %880 = arith.addf %878, %879 : vector<16x32xf32>
    %881 = arith.addf %780, %880 : vector<16x32xf32>
    %c1_619 = arith.constant 1 : index
    %c1_620 = arith.constant 1 : index
    %c0_621 = arith.constant 0 : index
    %c0_622 = arith.constant 0 : index
    %c0_623 = arith.constant 0 : index
    %882 = vector.load %arg33[%c1_619, %c1_620, %c0_621, %c0_622, %c0_623] : memref<2x3x2x1x32xf32, #tpu.memory_space<vmem>>, vector<1x1x1x1x32xf32>
    %883 = vector.shape_cast %882 : vector<1x1x1x1x32xf32> to vector<1x32xf32>
    %c1_624 = arith.constant 1 : index
    %c1_625 = arith.constant 1 : index
    %c1_626 = arith.constant 1 : index
    %c0_627 = arith.constant 0 : index
    %c0_628 = arith.constant 0 : index
    %884 = vector.load %arg33[%c1_624, %c1_625, %c1_626, %c0_627, %c0_628] : memref<2x3x2x1x32xf32, #tpu.memory_space<vmem>>, vector<1x1x1x1x32xf32>
    %885 = vector.shape_cast %884 : vector<1x1x1x1x32xf32> to vector<1x32xf32>
    %cst_629 = arith.constant dense<0.000000e+00> : vector<16xf32>
    %886 = vector.multi_reduction <add>, %881, %cst_629 [1] : vector<16x32xf32> to vector<16xf32>
    %887 = vector.shape_cast %886 : vector<16xf32> to vector<16x1xf32>
    %cst_630 = arith.constant 3.200000e+01 : f32
    %888 = vector.broadcast %cst_630 : f32 to vector<16x1xf32>
    %889 = arith.divf %887, %888 : vector<16x1xf32>
    %890 = vector.broadcast %889 : vector<16x1xf32> to vector<16x32xf32>
    %891 = arith.subf %881, %890 : vector<16x32xf32>
    %892 = arith.mulf %891, %891 : vector<16x32xf32>
    %cst_631 = arith.constant dense<0.000000e+00> : vector<16xf32>
    %893 = vector.multi_reduction <add>, %892, %cst_631 [1] : vector<16x32xf32> to vector<16xf32>
    %894 = vector.shape_cast %893 : vector<16xf32> to vector<16x1xf32>
    %cst_632 = arith.constant 3.200000e+01 : f32
    %895 = vector.broadcast %cst_632 : f32 to vector<16x1xf32>
    %896 = arith.divf %894, %895 : vector<16x1xf32>
    %897 = vector.broadcast %889 : vector<16x1xf32> to vector<16x32xf32>
    %898 = arith.subf %881, %897 : vector<16x32xf32>
    %cst_633 = arith.constant 9.99999974E-6 : f32
    %899 = vector.broadcast %cst_633 : f32 to vector<16x1xf32>
    %900 = arith.addf %896, %899 : vector<16x1xf32>
    %901 = math.rsqrt %900 : vector<16x1xf32>
    %902 = vector.broadcast %901 : vector<16x1xf32> to vector<16x32xf32>
    %903 = arith.mulf %898, %902 : vector<16x32xf32>
    %904 = vector.broadcast %883 : vector<1x32xf32> to vector<16x32xf32>
    %905 = arith.mulf %903, %904 : vector<16x32xf32>
    %906 = vector.broadcast %885 : vector<1x32xf32> to vector<16x32xf32>
    %907 = arith.addf %905, %906 : vector<16x32xf32>
    %c1_634 = arith.constant 1 : index
    %c0_635 = arith.constant 0 : index
    %c0_636 = arith.constant 0 : index
    %908 = vector.load %arg29[%c1_634, %c0_635, %c0_636] : memref<2x32x64xf32, #tpu.memory_space<vmem>>, vector<1x32x64xf32>
    %909 = vector.shape_cast %908 : vector<1x32x64xf32> to vector<32x64xf32>
    %cst_637 = arith.constant dense<0.000000e+00> : vector<16x64xf32>
    %910 = tpu.matmul %907, %909, %cst_637 {dimension_numbers = #tpu.dot_dimension_numbers<[1], [0], [0], [1], [0, 0, 1, 1], [], []>} : vector<16x32xf32>, vector<32x64xf32>, vector<16x64xf32> -> vector<16x64xf32>
    %c1_638 = arith.constant 1 : index
    %c0_639 = arith.constant 0 : index
    %c0_640 = arith.constant 0 : index
    %911 = vector.load %arg30[%c1_638, %c0_639, %c0_640] : memref<2x1x64xf32, #tpu.memory_space<vmem>>, vector<1x1x64xf32>
    %912 = vector.shape_cast %911 : vector<1x1x64xf32> to vector<1x64xf32>
    %913 = vector.broadcast %912 : vector<1x64xf32> to vector<16x64xf32>
    %914 = arith.addf %910, %913 : vector<16x64xf32>
    %cst_641 = arith.constant 0.000000e+00 : f32
    %915 = vector.broadcast %cst_641 : f32 to vector<16x64xf32>
    %916 = arith.maximumf %914, %915 : vector<16x64xf32>
    %c1_642 = arith.constant 1 : index
    %c0_643 = arith.constant 0 : index
    %c0_644 = arith.constant 0 : index
    %917 = vector.load %arg31[%c1_642, %c0_643, %c0_644] : memref<2x64x32xf32, #tpu.memory_space<vmem>>, vector<1x64x32xf32>
    %918 = vector.shape_cast %917 : vector<1x64x32xf32> to vector<64x32xf32>
    %cst_645 = arith.constant dense<0.000000e+00> : vector<16x32xf32>
    %919 = tpu.matmul %916, %918, %cst_645 {dimension_numbers = #tpu.dot_dimension_numbers<[1], [0], [0], [1], [0, 0, 1, 1], [], []>} : vector<16x64xf32>, vector<64x32xf32>, vector<16x32xf32> -> vector<16x32xf32>
    %c1_646 = arith.constant 1 : index
    %c0_647 = arith.constant 0 : index
    %c0_648 = arith.constant 0 : index
    %920 = vector.load %arg32[%c1_646, %c0_647, %c0_648] : memref<2x1x32xf32, #tpu.memory_space<vmem>>, vector<1x1x32xf32>
    %921 = vector.shape_cast %920 : vector<1x1x32xf32> to vector<1x32xf32>
    %922 = vector.broadcast %921 : vector<1x32xf32> to vector<16x32xf32>
    %923 = arith.addf %919, %922 : vector<16x32xf32>
    %924 = arith.addf %907, %923 : vector<16x32xf32>
    %c1_649 = arith.constant 1 : index
    %c2_650 = arith.constant 2 : index
    %c0_651 = arith.constant 0 : index
    %c0_652 = arith.constant 0 : index
    %c0_653 = arith.constant 0 : index
    %925 = vector.load %arg33[%c1_649, %c2_650, %c0_651, %c0_652, %c0_653] : memref<2x3x2x1x32xf32, #tpu.memory_space<vmem>>, vector<1x1x1x1x32xf32>
    %926 = vector.shape_cast %925 : vector<1x1x1x1x32xf32> to vector<1x32xf32>
    %c1_654 = arith.constant 1 : index
    %c2_655 = arith.constant 2 : index
    %c1_656 = arith.constant 1 : index
    %c0_657 = arith.constant 0 : index
    %c0_658 = arith.constant 0 : index
    %927 = vector.load %arg33[%c1_654, %c2_655, %c1_656, %c0_657, %c0_658] : memref<2x3x2x1x32xf32, #tpu.memory_space<vmem>>, vector<1x1x1x1x32xf32>
    %928 = vector.shape_cast %927 : vector<1x1x1x1x32xf32> to vector<1x32xf32>
    %cst_659 = arith.constant dense<0.000000e+00> : vector<16xf32>
    %929 = vector.multi_reduction <add>, %924, %cst_659 [1] : vector<16x32xf32> to vector<16xf32>
    %930 = vector.shape_cast %929 : vector<16xf32> to vector<16x1xf32>
    %cst_660 = arith.constant 3.200000e+01 : f32
    %931 = vector.broadcast %cst_660 : f32 to vector<16x1xf32>
    %932 = arith.divf %930, %931 : vector<16x1xf32>
    %933 = vector.broadcast %932 : vector<16x1xf32> to vector<16x32xf32>
    %934 = arith.subf %924, %933 : vector<16x32xf32>
    %935 = arith.mulf %934, %934 : vector<16x32xf32>
    %cst_661 = arith.constant dense<0.000000e+00> : vector<16xf32>
    %936 = vector.multi_reduction <add>, %935, %cst_661 [1] : vector<16x32xf32> to vector<16xf32>
    %937 = vector.shape_cast %936 : vector<16xf32> to vector<16x1xf32>
    %cst_662 = arith.constant 3.200000e+01 : f32
    %938 = vector.broadcast %cst_662 : f32 to vector<16x1xf32>
    %939 = arith.divf %937, %938 : vector<16x1xf32>
    %940 = vector.broadcast %932 : vector<16x1xf32> to vector<16x32xf32>
    %941 = arith.subf %924, %940 : vector<16x32xf32>
    %cst_663 = arith.constant 9.99999974E-6 : f32
    %942 = vector.broadcast %cst_663 : f32 to vector<16x1xf32>
    %943 = arith.addf %939, %942 : vector<16x1xf32>
    %944 = math.rsqrt %943 : vector<16x1xf32>
    %945 = vector.broadcast %944 : vector<16x1xf32> to vector<16x32xf32>
    %946 = arith.mulf %941, %945 : vector<16x32xf32>
    %947 = vector.broadcast %926 : vector<1x32xf32> to vector<16x32xf32>
    %948 = arith.mulf %946, %947 : vector<16x32xf32>
    %949 = vector.broadcast %928 : vector<1x32xf32> to vector<16x32xf32>
    %950 = arith.addf %948, %949 : vector<16x32xf32>
    %c0_664 = arith.constant 0 : index
    %c0_665 = arith.constant 0 : index
    %c0_666 = arith.constant 0 : index
    %951 = vector.load %arg34[%c0_664, %c0_665, %c0_666] : memref<2x1x32xf32, #tpu.memory_space<vmem>>, vector<1x1x32xf32>
    %952 = vector.shape_cast %951 : vector<1x1x32xf32> to vector<1x32xf32>
    %c1_667 = arith.constant 1 : index
    %c0_668 = arith.constant 0 : index
    %c0_669 = arith.constant 0 : index
    %953 = vector.load %arg34[%c1_667, %c0_668, %c0_669] : memref<2x1x32xf32, #tpu.memory_space<vmem>>, vector<1x1x32xf32>
    %954 = vector.shape_cast %953 : vector<1x1x32xf32> to vector<1x32xf32>
    %cst_670 = arith.constant dense<0.000000e+00> : vector<16xf32>
    %955 = vector.multi_reduction <add>, %950, %cst_670 [1] : vector<16x32xf32> to vector<16xf32>
    %956 = vector.shape_cast %955 : vector<16xf32> to vector<16x1xf32>
    %cst_671 = arith.constant 3.200000e+01 : f32
    %957 = vector.broadcast %cst_671 : f32 to vector<16x1xf32>
    %958 = arith.divf %956, %957 : vector<16x1xf32>
    %959 = vector.broadcast %958 : vector<16x1xf32> to vector<16x32xf32>
    %960 = arith.subf %950, %959 : vector<16x32xf32>
    %961 = arith.mulf %960, %960 : vector<16x32xf32>
    %cst_672 = arith.constant dense<0.000000e+00> : vector<16xf32>
    %962 = vector.multi_reduction <add>, %961, %cst_672 [1] : vector<16x32xf32> to vector<16xf32>
    %963 = vector.shape_cast %962 : vector<16xf32> to vector<16x1xf32>
    %cst_673 = arith.constant 3.200000e+01 : f32
    %964 = vector.broadcast %cst_673 : f32 to vector<16x1xf32>
    %965 = arith.divf %963, %964 : vector<16x1xf32>
    %966 = vector.broadcast %958 : vector<16x1xf32> to vector<16x32xf32>
    %967 = arith.subf %950, %966 : vector<16x32xf32>
    %cst_674 = arith.constant 9.99999974E-6 : f32
    %968 = vector.broadcast %cst_674 : f32 to vector<16x1xf32>
    %969 = arith.addf %965, %968 : vector<16x1xf32>
    %970 = math.rsqrt %969 : vector<16x1xf32>
    %971 = vector.broadcast %970 : vector<16x1xf32> to vector<16x32xf32>
    %972 = arith.mulf %967, %971 : vector<16x32xf32>
    %973 = vector.broadcast %952 : vector<1x32xf32> to vector<16x32xf32>
    %974 = arith.mulf %972, %973 : vector<16x32xf32>
    %975 = vector.broadcast %954 : vector<1x32xf32> to vector<16x32xf32>
    %976 = arith.addf %974, %975 : vector<16x32xf32>
    %c0_675 = arith.constant 0 : index
    %c0_676 = arith.constant 0 : index
    %977 = vector.load %arg35[%c0_675, %c0_676] : memref<32x16xf32, #tpu.memory_space<vmem>>, vector<32x16xf32>
    %cst_677 = arith.constant dense<0.000000e+00> : vector<16x16xf32>
    %978 = tpu.matmul %976, %977, %cst_677 {dimension_numbers = #tpu.dot_dimension_numbers<[1], [0], [0], [1], [0, 0, 1, 1], [], []>} : vector<16x32xf32>, vector<32x16xf32>, vector<16x16xf32> -> vector<16x16xf32>
    %c0_678 = arith.constant 0 : index
    %c0_679 = arith.constant 0 : index
    %979 = vector.load %arg36[%c0_678, %c0_679] : memref<1x16xf32, #tpu.memory_space<vmem>>, vector<1x16xf32>
    %980 = vector.broadcast %979 : vector<1x16xf32> to vector<16x16xf32>
    %981 = arith.addf %978, %980 : vector<16x16xf32>
    %c0_680 = arith.constant 0 : index
    %c0_681 = arith.constant 0 : index
    %982 = vector.load %arg37[%c0_680, %c0_681] : memref<16x16xf32, #tpu.memory_space<vmem>>, vector<16x16xf32>
    tpu.vector_store %arg37[%c0_680, %c0_681], %981 {strides = array<i32>} : memref<16x16xf32, #tpu.memory_space<vmem>>, vector<16x16xf32>,
    return
  }
  func.func @transform_0(%arg0: i32) -> (i32, i32) {
    %c0_i32 = arith.constant 0 : i32
    %c0_i32_0 = arith.constant 0 : i32
    return %arg0, %c0_i32 : i32, i32
  }
  func.func @transform_1(%arg0: i32) -> (i32, i32) {
    %c0_i32 = arith.constant 0 : i32
    %c0_i32_0 = arith.constant 0 : i32
    return %arg0, %c0_i32 : i32, i32
  }
  func.func @transform_2(%arg0: i32) -> (i32, i32) {
    %c0_i32 = arith.constant 0 : i32
    %c0_i32_0 = arith.constant 0 : i32
    %c0_i32_1 = arith.constant 0 : i32
    return %c0_i32, %c0_i32_0 : i32, i32
  }
  func.func @transform_3(%arg0: i32) -> (i32, i32) {
    %c0_i32 = arith.constant 0 : i32
    %c0_i32_0 = arith.constant 0 : i32
    %c0_i32_1 = arith.constant 0 : i32
    return %c0_i32, %c0_i32_0 : i32, i32
  }
  func.func @transform_4(%arg0: i32) -> (i32, i32) {
    %c0_i32 = arith.constant 0 : i32
    %c0_i32_0 = arith.constant 0 : i32
    %c0_i32_1 = arith.constant 0 : i32
    return %c0_i32, %c0_i32_0 : i32, i32
  }
  func.func @transform_5(%arg0: i32) -> (i32, i32) {
    %c0_i32 = arith.constant 0 : i32
    %c0_i32_0 = arith.constant 0 : i32
    %c0_i32_1 = arith.constant 0 : i32
    return %c0_i32, %c0_i32_0 : i32, i32
  }
  func.func @transform_6(%arg0: i32) -> (i32, i32) {
    %c0_i32 = arith.constant 0 : i32
    %c0_i32_0 = arith.constant 0 : i32
    %c0_i32_1 = arith.constant 0 : i32
    return %c0_i32, %c0_i32_0 : i32, i32
  }
  func.func @transform_7(%arg0: i32) -> (i32, i32) {
    %c0_i32 = arith.constant 0 : i32
    %c0_i32_0 = arith.constant 0 : i32
    %c0_i32_1 = arith.constant 0 : i32
    return %c0_i32, %c0_i32_0 : i32, i32
  }
  func.func @transform_8(%arg0: i32) -> (i32, i32, i32) {
    %c0_i32 = arith.constant 0 : i32
    %c0_i32_0 = arith.constant 0 : i32
    %c0_i32_1 = arith.constant 0 : i32
    %c0_i32_2 = arith.constant 0 : i32
    return %c0_i32, %c0_i32_0, %c0_i32_1 : i32, i32, i32
  }
  func.func @transform_9(%arg0: i32) -> (i32, i32, i32) {
    %c0_i32 = arith.constant 0 : i32
    %c0_i32_0 = arith.constant 0 : i32
    %c0_i32_1 = arith.constant 0 : i32
    %c0_i32_2 = arith.constant 0 : i32
    return %c0_i32, %c0_i32_0, %c0_i32_1 : i32, i32, i32
  }
  func.func @transform_10(%arg0: i32) -> (i32, i32, i32) {
    %c0_i32 = arith.constant 0 : i32
    %c0_i32_0 = arith.constant 0 : i32
    %c0_i32_1 = arith.constant 0 : i32
    %c0_i32_2 = arith.constant 0 : i32
    return %c0_i32, %c0_i32_0, %c0_i32_1 : i32, i32, i32
  }
  func.func @transform_11(%arg0: i32) -> (i32, i32, i32) {
    %c0_i32 = arith.constant 0 : i32
    %c0_i32_0 = arith.constant 0 : i32
    %c0_i32_1 = arith.constant 0 : i32
    %c0_i32_2 = arith.constant 0 : i32
    return %c0_i32, %c0_i32_0, %c0_i32_1 : i32, i32, i32
  }
  func.func @transform_12(%arg0: i32) -> (i32, i32, i32) {
    %c0_i32 = arith.constant 0 : i32
    %c0_i32_0 = arith.constant 0 : i32
    %c0_i32_1 = arith.constant 0 : i32
    %c0_i32_2 = arith.constant 0 : i32
    return %c0_i32, %c0_i32_0, %c0_i32_1 : i32, i32, i32
  }
  func.func @transform_13(%arg0: i32) -> (i32, i32, i32) {
    %c0_i32 = arith.constant 0 : i32
    %c0_i32_0 = arith.constant 0 : i32
    %c0_i32_1 = arith.constant 0 : i32
    %c0_i32_2 = arith.constant 0 : i32
    return %c0_i32, %c0_i32_0, %c0_i32_1 : i32, i32, i32
  }
  func.func @transform_14(%arg0: i32) -> (i32, i32, i32) {
    %c0_i32 = arith.constant 0 : i32
    %c0_i32_0 = arith.constant 0 : i32
    %c0_i32_1 = arith.constant 0 : i32
    %c0_i32_2 = arith.constant 0 : i32
    return %c0_i32, %c0_i32_0, %c0_i32_1 : i32, i32, i32
  }
  func.func @transform_15(%arg0: i32) -> (i32, i32, i32) {
    %c0_i32 = arith.constant 0 : i32
    %c0_i32_0 = arith.constant 0 : i32
    %c0_i32_1 = arith.constant 0 : i32
    %c0_i32_2 = arith.constant 0 : i32
    return %c0_i32, %c0_i32_0, %c0_i32_1 : i32, i32, i32
  }
  func.func @transform_16(%arg0: i32) -> (i32, i32, i32, i32, i32) {
    %c0_i32 = arith.constant 0 : i32
    %c0_i32_0 = arith.constant 0 : i32
    %c0_i32_1 = arith.constant 0 : i32
    %c0_i32_2 = arith.constant 0 : i32
    %c0_i32_3 = arith.constant 0 : i32
    %c0_i32_4 = arith.constant 0 : i32
    return %c0_i32, %c0_i32_0, %c0_i32_1, %c0_i32_2, %c0_i32_3 : i32, i32, i32, i32, i32
  }
  func.func @transform_17(%arg0: i32) -> (i32, i32, i32) {
    %c0_i32 = arith.constant 0 : i32
    %c0_i32_0 = arith.constant 0 : i32
    %c0_i32_1 = arith.constant 0 : i32
    %c0_i32_2 = arith.constant 0 : i32
    return %c0_i32, %c0_i32_0, %c0_i32_1 : i32, i32, i32
  }
  func.func @transform_18(%arg0: i32) -> (i32, i32, i32) {
    %c0_i32 = arith.constant 0 : i32
    %c0_i32_0 = arith.constant 0 : i32
    %c0_i32_1 = arith.constant 0 : i32
    %c0_i32_2 = arith.constant 0 : i32
    return %c0_i32, %c0_i32_0, %c0_i32_1 : i32, i32, i32
  }
  func.func @transform_19(%arg0: i32) -> (i32, i32, i32) {
    %c0_i32 = arith.constant 0 : i32
    %c0_i32_0 = arith.constant 0 : i32
    %c0_i32_1 = arith.constant 0 : i32
    %c0_i32_2 = arith.constant 0 : i32
    return %c0_i32, %c0_i32_0, %c0_i32_1 : i32, i32, i32
  }
  func.func @transform_20(%arg0: i32) -> (i32, i32, i32) {
    %c0_i32 = arith.constant 0 : i32
    %c0_i32_0 = arith.constant 0 : i32
    %c0_i32_1 = arith.constant 0 : i32
    %c0_i32_2 = arith.constant 0 : i32
    return %c0_i32, %c0_i32_0, %c0_i32_1 : i32, i32, i32
  }
  func.func @transform_21(%arg0: i32) -> (i32, i32, i32) {
    %c0_i32 = arith.constant 0 : i32
    %c0_i32_0 = arith.constant 0 : i32
    %c0_i32_1 = arith.constant 0 : i32
    %c0_i32_2 = arith.constant 0 : i32
    return %c0_i32, %c0_i32_0, %c0_i32_1 : i32, i32, i32
  }
  func.func @transform_22(%arg0: i32) -> (i32, i32, i32) {
    %c0_i32 = arith.constant 0 : i32
    %c0_i32_0 = arith.constant 0 : i32
    %c0_i32_1 = arith.constant 0 : i32
    %c0_i32_2 = arith.constant 0 : i32
    return %c0_i32, %c0_i32_0, %c0_i32_1 : i32, i32, i32
  }
  func.func @transform_23(%arg0: i32) -> (i32, i32, i32) {
    %c0_i32 = arith.constant 0 : i32
    %c0_i32_0 = arith.constant 0 : i32
    %c0_i32_1 = arith.constant 0 : i32
    %c0_i32_2 = arith.constant 0 : i32
    return %c0_i32, %c0_i32_0, %c0_i32_1 : i32, i32, i32
  }
  func.func @transform_24(%arg0: i32) -> (i32, i32, i32) {
    %c0_i32 = arith.constant 0 : i32
    %c0_i32_0 = arith.constant 0 : i32
    %c0_i32_1 = arith.constant 0 : i32
    %c0_i32_2 = arith.constant 0 : i32
    return %c0_i32, %c0_i32_0, %c0_i32_1 : i32, i32, i32
  }
  func.func @transform_25(%arg0: i32) -> (i32, i32, i32) {
    %c0_i32 = arith.constant 0 : i32
    %c0_i32_0 = arith.constant 0 : i32
    %c0_i32_1 = arith.constant 0 : i32
    %c0_i32_2 = arith.constant 0 : i32
    return %c0_i32, %c0_i32_0, %c0_i32_1 : i32, i32, i32
  }
  func.func @transform_26(%arg0: i32) -> (i32, i32, i32) {
    %c0_i32 = arith.constant 0 : i32
    %c0_i32_0 = arith.constant 0 : i32
    %c0_i32_1 = arith.constant 0 : i32
    %c0_i32_2 = arith.constant 0 : i32
    return %c0_i32, %c0_i32_0, %c0_i32_1 : i32, i32, i32
  }
  func.func @transform_27(%arg0: i32) -> (i32, i32, i32) {
    %c0_i32 = arith.constant 0 : i32
    %c0_i32_0 = arith.constant 0 : i32
    %c0_i32_1 = arith.constant 0 : i32
    %c0_i32_2 = arith.constant 0 : i32
    return %c0_i32, %c0_i32_0, %c0_i32_1 : i32, i32, i32
  }
  func.func @transform_28(%arg0: i32) -> (i32, i32, i32) {
    %c0_i32 = arith.constant 0 : i32
    %c0_i32_0 = arith.constant 0 : i32
    %c0_i32_1 = arith.constant 0 : i32
    %c0_i32_2 = arith.constant 0 : i32
    return %c0_i32, %c0_i32_0, %c0_i32_1 : i32, i32, i32
  }
  func.func @transform_29(%arg0: i32) -> (i32, i32, i32) {
    %c0_i32 = arith.constant 0 : i32
    %c0_i32_0 = arith.constant 0 : i32
    %c0_i32_1 = arith.constant 0 : i32
    %c0_i32_2 = arith.constant 0 : i32
    return %c0_i32, %c0_i32_0, %c0_i32_1 : i32, i32, i32
  }
  func.func @transform_30(%arg0: i32) -> (i32, i32, i32) {
    %c0_i32 = arith.constant 0 : i32
    %c0_i32_0 = arith.constant 0 : i32
    %c0_i32_1 = arith.constant 0 : i32
    %c0_i32_2 = arith.constant 0 : i32
    return %c0_i32, %c0_i32_0, %c0_i32_1 : i32, i32, i32
  }
  func.func @transform_31(%arg0: i32) -> (i32, i32, i32) {
    %c0_i32 = arith.constant 0 : i32
    %c0_i32_0 = arith.constant 0 : i32
    %c0_i32_1 = arith.constant 0 : i32
    %c0_i32_2 = arith.constant 0 : i32
    return %c0_i32, %c0_i32_0, %c0_i32_1 : i32, i32, i32
  }
  func.func @transform_32(%arg0: i32) -> (i32, i32, i32, i32, i32) {
    %c0_i32 = arith.constant 0 : i32
    %c0_i32_0 = arith.constant 0 : i32
    %c0_i32_1 = arith.constant 0 : i32
    %c0_i32_2 = arith.constant 0 : i32
    %c0_i32_3 = arith.constant 0 : i32
    %c0_i32_4 = arith.constant 0 : i32
    return %c0_i32, %c0_i32_0, %c0_i32_1, %c0_i32_2, %c0_i32_3 : i32, i32, i32, i32, i32
  }
  func.func @transform_33(%arg0: i32) -> (i32, i32, i32) {
    %c0_i32 = arith.constant 0 : i32
    %c0_i32_0 = arith.constant 0 : i32
    %c0_i32_1 = arith.constant 0 : i32
    %c0_i32_2 = arith.constant 0 : i32
    return %c0_i32, %c0_i32_0, %c0_i32_1 : i32, i32, i32
  }
  func.func @transform_34(%arg0: i32) -> (i32, i32) {
    %c0_i32 = arith.constant 0 : i32
    %c0_i32_0 = arith.constant 0 : i32
    %c0_i32_1 = arith.constant 0 : i32
    return %c0_i32, %c0_i32_0 : i32, i32
  }
  func.func @transform_35(%arg0: i32) -> (i32, i32) {
    %c0_i32 = arith.constant 0 : i32
    %c0_i32_0 = arith.constant 0 : i32
    %c0_i32_1 = arith.constant 0 : i32
    return %c0_i32, %c0_i32_0 : i32, i32
  }
  func.func @transform_36(%arg0: i32) -> (i32, i32) {
    %c0_i32 = arith.constant 0 : i32
    %c0_i32_0 = arith.constant 0 : i32
    return %arg0, %c0_i32 : i32, i32
  }
}

</mosaic_0001>

<bundles_post_ra>
// kernel: forward.1
= control target key start
LH: loop header
LB: loop body
LE: loop exit
PB: predicated region body
PF: predicated region fallthrough
CT: control target
= control target key end

     0   :  { %s5942_s6 = smov 1   ;;  %s5943_s10 = smov 2   ;;  %s7426_s0 = inlined_call_operand.smem [shape: u32[37], index: -1, kind: input, shape index: {}] }
   0x1   :  { %s6020_s5 = sld [smem:[%s7426_s0]]   ;;  %s5944_s14 = smov 3  }
   0x2   :  { %s6025_s9 = sld [smem:[%s7426_s0 + %s5942_s6]]   ;;  %s5945_s18 = smov 4  }
   0x3   :  { %s6030_s13 = sld [smem:[%s7426_s0 + %s5943_s10]]   ;;  %s5946_s22 = smov 5  }
   0x4   :  { %s6035_s17 = sld [smem:[%s7426_s0 + %s5944_s14]]   ;;  %s5947_s26 = smov 6  }
   0x5   :  { %s6040_s21 = sld [smem:[%s7426_s0 + %s5945_s18]]   ;;  %s5948_s30 = smov 7  }
   0x6   :  { %s6045_s25 = sld [smem:[%s7426_s0 + %s5946_s22]]   ;;  %s5949_s4 = smov 8  }
   0x7   :  { %s6050_s29 = sld [smem:[%s7426_s0 + %s5947_s26]]   ;;  %s5950_s10 = smov 9  }
   0x8   :  { %7446 = sst [smem:[#allocation34_spill]] %s6025_s9  ;;  %s5951_s15 = smov 10  }
   0x9   :  { %s6055_s3 = sld [smem:[%s7426_s0 + %s5948_s30]]   ;;  %s5952_s20 = smov 11  }
   0xa   :  { %7447 = sst [smem:[#allocation35_spill]] %s6035_s17  ;;  %s5953_s26 = smov 12  }
   0xb   :  { %7448 = sst [smem:[#allocation36_spill]] %s6040_s21  ;;  %s5954_s1 = smov 13  }
   0xc   :  { %7449 = sst [smem:[#allocation37_spill]] %s6045_s25  ;;  %s5955_s7 = smov 14  }
   0xd   :  { %7450 = sst [smem:[#allocation38_spill]] %s6050_s29  ;;  %s5957_s22 = smov 16  }
   0xe   :  { %s6060_s8 = sld [smem:[%s7426_s0 + %s5949_s4]]   ;;  %s5958_s28 = smov 17  }
   0xf   :  { %7451 = sst [smem:[#allocation39_spill]] %s6055_s3 }
  0x10   :  { %s6065_s14 = sld [smem:[%s7426_s0 + %s5950_s10]]  }
  0x11   :  { %s6070_s19 = sld [smem:[%s7426_s0 + %s5951_s15]]   ;;  %s5956_s15 = smov 15  }
  0x12   :  { %s6075_s24 = sld [smem:[%s7426_s0 + %s5952_s20]]  }
  0x13   :  { %s6080_s30 = sld [smem:[%s7426_s0 + %s5953_s26]]  }
  0x14   :  { %7452 = sst [smem:[#allocation40_spill]] %s6060_s8 }
  0x15   :  { %s6085_s6 = sld [smem:[%s7426_s0 + %s5954_s1]]  }
  0x16   :  { %7453 = sst [smem:[#allocation41_spill]] %s6065_s14 }
  0x17   :  { %7454 = sst [smem:[#allocation42_spill]] %s6070_s19 }
  0x18   :  { %s6090_s12 = sld [smem:[%s7426_s0 + %s5955_s7]]   ;;  %s5959_s7 = smov 18  }
  0x19   :  { %7455 = sst [smem:[#allocation43_spill]] %s6080_s30 }
  0x1a   :  { %s6095_s20 = sld [smem:[%s7426_s0 + %s5956_s15]]   ;;  %s5960_s15 = smov 19  }
  0x1b   :  { %s6100_s27 = sld [smem:[%s7426_s0 + %s5957_s22]]   ;;  %s5961_s22 = smov 20  }
  0x1c   :  { %s6105_s4 = sld [smem:[%s7426_s0 + %s5958_s28]]   ;;  %s5962_s28 = smov 21  }
  0x1d   :  { %s6110_s3 = sld [smem:[%s7426_s0 + %s5959_s7]]   ;;  %s5963_s7 = smov 22  }
  0x1e   :  { %7456 = sst [smem:[#allocation44_spill]] %s6090_s12 }
  0x1f   :  { %s6115_s29 = sld [smem:[%s7426_s0 + %s5960_s15]]   ;;  %s5964_s15 = smov 23  }
  0x20   :  { %s6120_s21 = sld [smem:[%s7426_s0 + %s5961_s22]]   ;;  %s5965_s22 = smov 24  }
  0x21   :  { %7457 = sst [smem:[#allocation45_spill]] %s6100_s27 }
  0x22   :  { %s6125_s9 = sld [smem:[%s7426_s0 + %s5962_s28]]   ;;  %s5966_s28 = smov 25  }
  0x23   :  { %7458 = sst [smem:[#allocation46_spill]] %s6110_s3 }
  0x24   :  { %s6130_s3 = sld [smem:[%s7426_s0 + %s5963_s7]]   ;;  %s5967_s7 = smov 26  }
  0x25   :  { %s6135_s27 = sld [smem:[%s7426_s0 + %s5964_s15]]   ;;  %s5968_s15 = smov 27  }
  0x26   :  { %7459 = sst [smem:[#allocation47_spill]] %s6120_s21 }
  0x27   :  { %s6140_s21 = sld [smem:[%s7426_s0 + %s5965_s22]]   ;;  %s5969_s22 = smov 28  }
  0x28   :  { %s6145_s12 = sld [smem:[%s7426_s0 + %s5966_s28]]   ;;  %s5970_s28 = smov 29  }
  0x29   :  { %s6155_s30 = sld [smem:[%s7426_s0 + %s5968_s15]]   ;;  %s5972_s15 = smov 31  }
  0x2a   :  { %7460 = sst [smem:[#allocation48_spill]] %s6130_s3 }
  0x2b   :  { %s6150_s3 = sld [smem:[%s7426_s0 + %s5967_s7]]   ;;  %s5971_s7 = smov 30  }
  0x2c   :  { %s6165_s19 = sld [smem:[%s7426_s0 + %s5970_s28]]   ;;  %s5974_s28 = smov 33  }
  0x2d   :  { %7461 = sst [smem:[#allocation49_spill]] %s6140_s21 }
  0x2e   :  { %s6160_s21 = sld [smem:[%s7426_s0 + %s5969_s22]]   ;;  %s5973_s22 = smov 32  }
  0x2f   :  { %s6175_s25 = sld [smem:[%s7426_s0 + %s5972_s15]]   ;;  %s5976_s15 = smov 35  }
  0x30   :  { %s6185_s14 = sld [smem:[%s7426_s0 + %s5974_s28]]  }
  0x31   :  { %7462 = sst [smem:[#allocation50_spill]] %s6150_s3 }
  0x32   :  { %s6170_s3 = sld [smem:[%s7426_s0 + %s5971_s7]]   ;;  %s5975_s7 = smov 34  }
  0x33   :  { %s6195_s17 = sld [smem:[%s7426_s0 + %s5976_s15]]  }
  0x34   :  { %7463 = sst [smem:[#allocation51_spill]] %s6160_s21 }
  0x35   :  { %s6180_s21 = sld [smem:[%s7426_s0 + %s5973_s22]]   ;;  %s5977_s22 = smov 36  }
  0x36   :  { %s6200_s8 = sld [smem:[%s7426_s0 + %s5977_s22]]  }
  0x38   :  { %7464 = sst [smem:[#allocation52_spill]] %s6170_s3 }
  0x39   :  { %s6190_s3 = sld [smem:[%s7426_s0 + %s5975_s7]]  }
  0x3a   :  { %78 = vsyncpa [#allocation5], 0 }
  0x3b   :  { %79 = vsyncpa [#allocation8], 0 }
  0x3c   :  { %80 = vsyncpa [#allocation11], 0 }
  0x3d   :  { %81 = vsyncpa [#allocation14], 0 }
  0x3e   :  { %82 = vsyncpa [#allocation17], 0 }
  0x3f   :  { %83 = vsyncpa [#allocation20], 0 }
  0x40   :  { %84 = vsyncpa [#allocation23], 0 }
  0x41   :  { %85 = vsyncpa [#allocation6], 0  ;;  %s127_s28 = sshll.u32 %s6085_s6, 4  ;;  %s5978_s1 = smov [#allocation7]   ;;  %s128_s28 = int_to_ptr.hbm [resolvable:$true] %s127_s28 }
  0x42   :  { %s129_s2 = sshll.u32 %s5978_s1, 4  ;;  %s157_s7 = sshll.u32 %s6105_s4, 4  ;;  %s130_s2 = int_to_ptr.vmem [resolvable:$true] %s129_s2  ;;  %s158_s7 = int_to_ptr.hbm [resolvable:$true] %s157_s7 }
  0x43   :  { %s5590_s0 = sshra.s32 %s128_s28, 4  ;;  %s5594_s11 = scalar_lea.hbm %s6085_s6, 2  ;;  %s5591_s0 = int_to_ptr.hbm [resolvable:$true] %s5590_s0 }
  0x44   :  { %s5592_s10 = scalar_lea.hbm %s5591_s0, 2  ;;  %p5595_p1 = scmp.lt.s32.totalorder %s5591_s0, %s6085_s6 }
  0x45   :  { %p5593_p0 = scmp.ne.s32.totalorder %s5591_s0, %s5592_s10  ;;  %p5596_p2 = scmp.lt.s32.totalorder %s5594_s11, %s5592_s10 }
  0x47   :  { %p5597_p3 = por %p5596_p2, %p5595_p1 }
  0x49   :  { %p5598_p4 = pnand %p5597_p3, %p5593_p0 }
  0x4b   :  { %5601 = shalt.err (!%p5598_p4)
}
  0x4c   :  { %s5979_s15 = smov 16   ;;  %s5980_s16 = smov 1  }
  0x4d   :  { %135 = dma.hbm_to_vmem [thread:$0]  %s128_s28, 32, %s130_s2, [#allocation8], %s5979_s15, %s5979_s15, %s5980_s16  }
  0x4e   :  { %s5981_s18 = smov [#allocation10]   ;;  %s187_s23 = sshll.u32 %s6125_s9, 4  ;;  %s6210_s23 = int_to_ptr.hbm [resolvable:$true] %s187_s23 }
  0x4f   :  { %s159_s22 = sshll.u32 %s5981_s18, 4  ;;  %s5614_s6 = sshra.s32 %s158_s7, 4  ;;  %s160_s22 = int_to_ptr.vmem [resolvable:$true] %s159_s22  ;;  %s5615_s6 = int_to_ptr.hbm [resolvable:$true] %s5614_s6 }
  0x50   :  { %s5616_s26 = scalar_lea.hbm %s5615_s6, 2  ;;  %s5618_s1 = scalar_lea.hbm %s6105_s4, 2 }
  0x51   :  { %p5617_p5 = scmp.ne.s32.totalorder %s5615_s6, %s5616_s26  ;;  %p5619_p6 = scmp.lt.s32.totalorder %s5615_s6, %s6105_s4 }
  0x52   :  { %p5620_p7 = scmp.lt.s32.totalorder %s5618_s1, %s5616_s26 }
  0x54   :  { %p5621_p8 = por %p5620_p7, %p5619_p6 }
  0x56   :  { %p5622_p9 = pnand %p5621_p8, %p5617_p5 }
  0x58   :  { %5625 = shalt.err (!%p5622_p9)
}
  0x59   :  { %165 = dma.hbm_to_vmem [thread:$0]  %s158_s7, 32, %s160_s22, [#allocation11], %s5979_s15, %s5979_s15, %s5980_s16  }
  0x5a   :  { %s217_s28 = sshll.u32 %s6145_s12, 4  ;;  %s5982_s2 = smov [#allocation13]   ;;  %s6218_s28 = int_to_ptr.hbm [resolvable:$true] %s217_s28 }
  0x5b   :  { %s189_s0 = sshll.u32 %s5982_s2, 4  ;;  %s5638_s10 = sshra.s32 %s6210_s23, 4  ;;  %s190_s0 = int_to_ptr.vmem [resolvable:$true] %s189_s0  ;;  %s5639_s10 = int_to_ptr.hbm [resolvable:$true] %s5638_s10 }
  0x5c   :  { %s5640_s4 = scalar_lea.hbm %s5639_s10, 2  ;;  %s5642_s11 = scalar_lea.hbm %s6125_s9, 2 }
  0x5d   :  { %p5641_p10 = scmp.ne.s32.totalorder %s5639_s10, %s5640_s4  ;;  %p5643_p11 = scmp.lt.s32.totalorder %s5639_s10, %s6125_s9 }
  0x5e   :  { %p5644_p12 = scmp.lt.s32.totalorder %s5642_s11, %s5640_s4 }
  0x60   :  { %p5645_p13 = por %p5644_p12, %p5643_p11 }
  0x62   :  { %p5646_p0 = pnand %p5645_p13, %p5641_p10 }
  0x64   :  { %5649 = shalt.err (!%p5646_p0)
}
  0x65   :  { %195 = dma.hbm_to_vmem [thread:$0]  %s6210_s23, 32, %s190_s0, [#allocation14], %s5979_s15, %s5979_s15, %s5980_s16  }
  0x66   :  { %s5983_s7 = smov [#allocation16]   ;;  %s247_s22 = sshll.u32 %s6165_s19, 4  ;;  %s6228_s22 = int_to_ptr.hbm [resolvable:$true] %s247_s22 }
  0x67   :  { %s219_s18 = sshll.u32 %s5983_s7, 4  ;;  %s5662_s9 = sshra.s32 %s6218_s28, 4  ;;  %s220_s18 = int_to_ptr.vmem [resolvable:$true] %s219_s18  ;;  %s5663_s9 = int_to_ptr.hbm [resolvable:$true] %s5662_s9 }
  0x68   :  { %s5664_s6 = scalar_lea.hbm %s5663_s9, 2  ;;  %s5666_s26 = scalar_lea.hbm %s6145_s12, 2 }
  0x69   :  { %p5665_p1 = scmp.ne.s32.totalorder %s5663_s9, %s5664_s6  ;;  %p5667_p2 = scmp.lt.s32.totalorder %s5663_s9, %s6145_s12 }
  0x6a   :  { %p5668_p3 = scmp.lt.s32.totalorder %s5666_s26, %s5664_s6 }
  0x6c   :  { %p5669_p4 = por %p5668_p3, %p5667_p2 }
  0x6e   :  { %p5670_p5 = pnand %p5669_p4, %p5665_p1 }
  0x70   :  { %5673 = shalt.err (!%p5670_p5)
}
  0x71   :  { %225 = dma.hbm_to_vmem [thread:$0]  %s6218_s28, 32, %s220_s18, [#allocation17], %s5979_s15, %s5979_s15, %s5980_s16  }
  0x72   :  { %s275_s23 = sshll.u32 %s6180_s21, 4  ;;  %s5984_s1 = smov [#allocation19]   ;;  %s6238_s23 = int_to_ptr.hbm [resolvable:$true] %s275_s23 }
  0x73   :  { %s249_s2 = sshll.u32 %s5984_s1, 4  ;;  %s5686_s12 = sshra.s32 %s6228_s22, 4  ;;  %s250_s2 = int_to_ptr.vmem [resolvable:$true] %s249_s2  ;;  %s5687_s12 = int_to_ptr.hbm [resolvable:$true] %s5686_s12 }
  0x74   :  { %s5688_s0 = scalar_lea.hbm %s5687_s12, 2  ;;  %s5690_s10 = scalar_lea.hbm %s6165_s19, 2 }
  0x75   :  { %p5689_p6 = scmp.ne.s32.totalorder %s5687_s12, %s5688_s0  ;;  %p5691_p7 = scmp.lt.s32.totalorder %s5687_s12, %s6165_s19 }
  0x76   :  { %p5692_p8 = scmp.lt.s32.totalorder %s5690_s10, %s5688_s0 }
  0x78   :  { %p5693_p9 = por %p5692_p8, %p5691_p7 }
  0x7a   :  { %p5694_p10 = pnand %p5693_p9, %p5689_p6 }
  0x7c   :  { %5697 = shalt.err (!%p5694_p10)
}
  0x7d   :  { %255 = dma.hbm_to_vmem [thread:$0]  %s6228_s22, 32, %s250_s2, [#allocation20], %s5979_s15, %s5979_s15, %s5980_s16  }
  0x7e   :  { %s5985_s28 = smov [#allocation22]   ;;  %s112_s11 = sshll.u32 %s6075_s24, 4  ;;  %s6248_s11 = int_to_ptr.hbm [resolvable:$true] %s112_s11 }
  0x7f   :  { %s277_s4 = sshll.u32 %s5985_s28, 4  ;;  %s5710_s19 = sshra.s32 %s6238_s23, 4  ;;  %s278_s4 = int_to_ptr.vmem [resolvable:$true] %s277_s4  ;;  %s5711_s19 = int_to_ptr.hbm [resolvable:$true] %s5710_s19 }
  0x80   :  { %s5712_s7 = scalar_lea.hbm %s5711_s19, 12  ;;  %s5714_s18 = scalar_lea.hbm %s6180_s21, 12 }
  0x81   :  { %p5713_p11 = scmp.ne.s32.totalorder %s5711_s19, %s5712_s7  ;;  %p5715_p12 = scmp.lt.s32.totalorder %s5711_s19, %s6180_s21 }
  0x82   :  { %p5716_p13 = scmp.lt.s32.totalorder %s5714_s18, %s5712_s7 }
  0x84   :  { %p5717_p0 = por %p5716_p13, %p5715_p12 }
  0x86   :  { %p5718_p1 = pnand %p5717_p0, %p5713_p11 }
  0x88   :  { %5721 = shalt.err (!%p5718_p1)
}
  0x89   :  { %283 = dma.hbm_to_vmem [thread:$0]  %s6238_s23, 192, %s278_s4, [#allocation23], %s5979_s15, %s5979_s15, %s5980_s16  }
  0x8a   :  { %s142_s22 = sshll.u32 %s6095_s20, 4  ;;  %s5986_s9 = smov [#allocation4]   ;;  %s6258_s22 = int_to_ptr.hbm [resolvable:$true] %s142_s22 }
  0x8b   :  { %s114_s6 = sshll.u32 %s5986_s9, 4  ;;  %s5734_s21 = sshra.s32 %s6248_s11, 4  ;;  %s115_s6 = int_to_ptr.vmem [resolvable:$true] %s114_s6  ;;  %s5735_s21 = int_to_ptr.hbm [resolvable:$true] %s5734_s21 }
  0x8c   :  { %s5736_s26 = scalar_lea.hbm %s5735_s21, 2  ;;  %s5738_s1 = scalar_lea.hbm %s6075_s24, 2 }
  0x8d   :  { %p5737_p2 = scmp.ne.s32.totalorder %s5735_s21, %s5736_s26  ;;  %p5739_p3 = scmp.lt.s32.totalorder %s5735_s21, %s6075_s24 }
  0x8e   :  { %p5740_p4 = scmp.lt.s32.totalorder %s5738_s1, %s5736_s26 }
  0x90   :  { %p5741_p5 = por %p5740_p4, %p5739_p3 }
  0x92   :  { %p5742_p6 = pnand %p5741_p5, %p5737_p2 }
  0x94   :  { %5745 = shalt.err (!%p5742_p6)
}
  0x95   :  { %120 = dma.hbm_to_vmem [thread:$0]  %s6248_s11, 32, %s115_s6, [#allocation5], %s5979_s15, %s5979_s15, %s5980_s16  }
  0x96   :  { %s5987_s23 = smov [#allocation9]   ;;  %s172_s12 = sshll.u32 %s6115_s29, 4  ;;  %s6268_s12 = int_to_ptr.hbm [resolvable:$true] %s172_s12 }
  0x97   :  { %s144_s2 = sshll.u32 %s5987_s23, 4  ;;  %s5758_s24 = sshra.s32 %s6258_s22, 4  ;;  %s145_s2 = int_to_ptr.vmem [resolvable:$true] %s144_s2  ;;  %s5759_s24 = int_to_ptr.hbm [resolvable:$true] %s5758_s24 }
  0x98   :  { %s5760_s0 = scalar_lea.hbm %s5759_s24, 2  ;;  %s5762_s10 = scalar_lea.hbm %s6095_s20, 2 }
  0x99   :  { %p5761_p7 = scmp.ne.s32.totalorder %s5759_s24, %s5760_s0  ;;  %p5763_p8 = scmp.lt.s32.totalorder %s5759_s24, %s6095_s20 }
  0x9a   :  { %p5764_p9 = scmp.lt.s32.totalorder %s5762_s10, %s5760_s0 }
  0x9c   :  { %p5765_p10 = por %p5764_p9, %p5763_p8 }
  0x9e   :  { %p5766_p11 = pnand %p5765_p10, %p5761_p7 }
  0xa0   :  { %5769 = shalt.err (!%p5766_p11)
}
  0xa1   :  { %150 = dma.hbm_to_vmem [thread:$0]  %s6258_s22, 32, %s145_s2, [#allocation8], %s5979_s15, %s5979_s15, %s5980_s16  }
  0xa2   :  { %s202_s28 = sshll.u32 %s6135_s27, 4  ;;  %s5988_s4 = smov [#allocation12]   ;;  %s6278_s28 = int_to_ptr.hbm [resolvable:$true] %s202_s28 }
  0xa3   :  { %s174_s11 = sshll.u32 %s5988_s4, 4  ;;  %s5782_s20 = sshra.s32 %s6268_s12, 4  ;;  %s175_s11 = int_to_ptr.vmem [resolvable:$true] %s174_s11  ;;  %s5783_s20 = int_to_ptr.hbm [resolvable:$true] %s5782_s20 }
  0xa4   :  { %s5784_s19 = scalar_lea.hbm %s5783_s20, 2  ;;  %s5786_s7 = scalar_lea.hbm %s6115_s29, 2 }
  0xa5   :  { %p5785_p12 = scmp.ne.s32.totalorder %s5783_s20, %s5784_s19  ;;  %p5787_p13 = scmp.lt.s32.totalorder %s5783_s20, %s6115_s29 }
  0xa6   :  { %p5788_p0 = scmp.lt.s32.totalorder %s5786_s7, %s5784_s19 }
  0xa8   :  { %p5789_p1 = por %p5788_p0, %p5787_p13 }
  0xaa   :  { %p5790_p2 = pnand %p5789_p1, %p5785_p12 }
  0xac   :  { %5793 = shalt.err (!%p5790_p2)
}
  0xad   :  { %180 = dma.hbm_to_vmem [thread:$0]  %s6268_s12, 32, %s175_s11, [#allocation11], %s5979_s15, %s5979_s15, %s5980_s16  }
  0xae   :  { %s5989_s18 = smov [#allocation15]   ;;  %s232_s9 = sshll.u32 %s6155_s30, 4  ;;  %s6288_s9 = int_to_ptr.hbm [resolvable:$true] %s232_s9 }
  0xaf   :  { %s204_s22 = sshll.u32 %s5989_s18, 4  ;;  %s5806_s29 = sshra.s32 %s6278_s28, 4  ;;  %s205_s22 = int_to_ptr.vmem [resolvable:$true] %s204_s22  ;;  %s5807_s29 = int_to_ptr.hbm [resolvable:$true] %s5806_s29 }
  0xb0   :  { %s5808_s6 = scalar_lea.hbm %s5807_s29, 2  ;;  %s5810_s21 = scalar_lea.hbm %s6135_s27, 2 }
  0xb1   :  { %p5809_p3 = scmp.ne.s32.totalorder %s5807_s29, %s5808_s6  ;;  %p5811_p4 = scmp.lt.s32.totalorder %s5807_s29, %s6135_s27 }
  0xb2   :  { %p5812_p5 = scmp.lt.s32.totalorder %s5810_s21, %s5808_s6 }
  0xb4   :  { %p5813_p6 = por %p5812_p5, %p5811_p4 }
  0xb6   :  { %p5814_p7 = pnand %p5813_p6, %p5809_p3 }
  0xb8   :  { %5817 = shalt.err (!%p5814_p7)
}
  0xb9   :  { %210 = dma.hbm_to_vmem [thread:$0]  %s6278_s28, 32, %s205_s22, [#allocation14], %s5979_s15, %s5979_s15, %s5980_s16  }
  0xba   :  { %s262_s26 = sshll.u32 %s6175_s25, 4  ;;  %s5990_s1 = smov [#allocation18]   ;;  %s6298_s26 = int_to_ptr.hbm [resolvable:$true] %s262_s26 }
  0xbb   :  { %s234_s23 = sshll.u32 %s5990_s1, 4  ;;  %s5830_s27 = sshra.s32 %s6288_s9, 4  ;;  %s235_s23 = int_to_ptr.vmem [resolvable:$true] %s234_s23  ;;  %s5831_s27 = int_to_ptr.hbm [resolvable:$true] %s5830_s27 }
  0xbc   :  { %s5832_s2 = scalar_lea.hbm %s5831_s27, 2  ;;  %s5834_s12 = scalar_lea.hbm %s6155_s30, 2 }
  0xbd   :  { %p5833_p8 = scmp.ne.s32.totalorder %s5831_s27, %s5832_s2  ;;  %p5835_p9 = scmp.lt.s32.totalorder %s5831_s27, %s6155_s30 }
  0xbe   :  { %p5836_p10 = scmp.lt.s32.totalorder %s5834_s12, %s5832_s2 }
  0xc0   :  { %p5837_p11 = por %p5836_p10, %p5835_p9 }
  0xc2   :  { %p5838_p12 = pnand %p5837_p11, %p5833_p8 }
  0xc4   :  { %5841 = shalt.err (!%p5838_p12)
}
  0xc5   :  { %240 = dma.hbm_to_vmem [thread:$0]  %s6288_s9, 32, %s235_s23, [#allocation17], %s5979_s15, %s5979_s15, %s5980_s16  }
  0xc6   :  { %s5991_s24 = smov [#allocation21]   ;;  %s288_s10 = sshll.u32 %s6185_s14, 4  ;;  %s289_s10 = int_to_ptr.hbm [resolvable:$true] %s288_s10 }
  0xc7   :  { %s264_s0 = sshll.u32 %s5991_s24, 4  ;;  %s5854_s28 = sshra.s32 %s6298_s26, 4  ;;  %s265_s0 = int_to_ptr.vmem [resolvable:$true] %s264_s0  ;;  %s5855_s28 = int_to_ptr.hbm [resolvable:$true] %s5854_s28 }
  0xc8   :  { %s5856_s30 = scalar_lea.hbm %s5855_s28, 2  ;;  %s5858_s4 = scalar_lea.hbm %s6175_s25, 2 }
  0xc9   :  { %p5857_p13 = scmp.ne.s32.totalorder %s5855_s28, %s5856_s30  ;;  %p5859_p0 = scmp.lt.s32.totalorder %s5855_s28, %s6175_s25 }
  0xca   :  { %p5860_p1 = scmp.lt.s32.totalorder %s5858_s4, %s5856_s30 }
  0xcc   :  { %p5861_p2 = por %p5860_p1, %p5859_p0 }
  0xce   :  { %p5862_p3 = pnand %p5861_p2, %p5857_p13 }
  0xd0   :  { %5865 = shalt.err (!%p5862_p3)
}
  0xd1   :  { %270 = dma.hbm_to_vmem [thread:$0]  %s6298_s26, 32, %s265_s0, [#allocation20], %s5979_s15, %s5979_s15, %s5980_s16  }
  0xd2   :  { %s5992_s11 = smov [#allocation24]   ;;  %s5878_s19 = sshra.s32 %s289_s10, 4  ;;  %s5879_s19 = int_to_ptr.hbm [resolvable:$true] %s5878_s19 }
  0xd3   :  { %s290_s20 = sshll.u32 %s5992_s11, 4  ;;  %s5880_s7 = scalar_lea.hbm %s5879_s19, 2  ;;  %s291_s20 = int_to_ptr.vmem [resolvable:$true] %s290_s20 }
  0xd4   :  { %p5881_p4 = scmp.ne.s32.totalorder %s5879_s19, %s5880_s7  ;;  %s5882_s25 = scalar_lea.hbm %s6185_s14, 2 }
  0xd5   :  { %p5883_p5 = scmp.lt.s32.totalorder %s5879_s19, %s6185_s14  ;;  %p5884_p6 = scmp.lt.s32.totalorder %s5882_s25, %s5880_s7 }
  0xd7   :  { %p5885_p7 = por %p5884_p6, %p5883_p5 }
  0xd9   :  { %p5886_p8 = pnand %p5885_p7, %p5881_p4 }
  0xdb   :  { %5889 = shalt.err (!%p5886_p8)
}
  0xdc   :  { %296 = dma.hbm_to_vmem [thread:$0]  %s289_s10, 32, %s291_s20, [#allocation23], %s5979_s15, %s5979_s15, %s5980_s16  }
  0xdd   :  { %5926 = dma.done.wait [#allocation5], 32  }
  0xde   :  { %5927 = vsyncadd [#allocation5], 4294967264 }
  0xdf   :  { %5928 = dma.done.wait [#allocation8], 64  }
  0xe0   :  { %5929 = vsyncadd [#allocation8], 4294967232 }
  0xe1   :  { %5930 = dma.done.wait [#allocation11], 64  }
  0xe2   :  { %5931 = vsyncadd [#allocation11], 4294967232 }
  0xe3   :  { %5932 = dma.done.wait [#allocation14], 64  }
  0xe4   :  { %5933 = vsyncadd [#allocation14], 4294967232 }
  0xe5   :  { %5934 = dma.done.wait [#allocation17], 64  }
  0xe6   :  { %5935 = vsyncadd [#allocation17], 4294967232 }
  0xe7   :  { %5936 = dma.done.wait [#allocation20], 64  }
  0xe8   :  { %5937 = vsyncadd [#allocation20], 4294967232 }
  0xe9   :  { %5938 = dma.done.wait [#allocation23], 224  }
  0xea   :  { %5939 = vsyncadd [#allocation23], 4294967072  ;;  %s7465_s14 = sld [smem:[#allocation40_spill]]  ;;  %v5993_v0 = vmov 0   ;;  %v359_v1 = vld [vmem:[%s6020_s5] sm:$0xff]  ;;  %v376_v2 = vld [vmem:[%s6030_s13 + $0x8] sm:$0xff]  ;;  %v361_v7 = vlaneseq }
  0xeb   :  { %5175 = vset.pattern.permute.xlu0 %v5993_v0  ;;  %5216 = vset.pattern.permute.xlu1 %v5993_v0  ;;  %v360_v3 = vld [vmem:[%s6020_s5 + $0x8] sm:$0xff]  ;;  %v375_v4 = vld [vmem:[%s6030_s13] sm:$0xff]  ;;  %s7466_s16 = sld [smem:[#allocation35_spill]]  ;;  %vm379_vm0 = vcmask 130048   ;;  %v5994_v10 = vmov 0.0   ;;  %vm417_vm3 = vcmask 261120  }
  0xec   :  { %364 = vperm.xlu0 %5175, %v359_v1   ;;  %400 = vmatpush.msra.mxu0 %v376_v2  ;;  %v6326_v8 = vand.u32 127, %v361_v7  ;;  %s7467_s5 = sld [smem:[#allocation41_spill]]  ;;  %vm447_vm4 = vcmask 785408   ;;  %s5995_s18 = smov 120   ;;  %vm463_vm5 = vcmask 64512   ;;  %vm670_vm6 = vcmask 130112  }
  0xed   :  { %5103 = vmatpush.msra.mxu3 %v376_v2  ;;  %s5996_s22 = smov 72   ;;  %s5997_s9 = smov 88   ;;  %vm785_vm7 = vcmask 195712   ;;  %vm900_vm8 = vcmask 261312  }
  0xee   :  { %401 = vmatpush.msra.mxu0 %v375_v4  ;;  %s5998_s29 = smov 96   ;;  %s5999_s6 = smov 112  }
  0xef   :  { %5104 = vmatpush.msra.mxu3 %v375_v4  ;;  %s6000_s21 = smov 104   ;;  %s6001_s26 = smov 80  }
  0xf0   :  { %v412_v5 = vld [vmem:[%s7465_s14 + $0x18] sm:$0xff]  ;;  %v411_v6 = vld [vmem:[%s7465_s14 + $0x10] sm:$0xff]  ;;  %v410_v14 = vld [vmem:[%s7465_s14 + $0x8] sm:$0xff]  ;;  %s7468_s1 = sld [smem:[#allocation37_spill]]  ;;  %s6002_s23 = smov 64  }
  0xf1   :  { %436 = vmatpush.msra.mxu1 %v412_v5  ;;  %v409_v15 = vld [vmem:[%s7465_s14] sm:$0xff]  ;;  %v378_v19 = vld [vmem:[%s7466_s16 + $0x8] sm:$0xff]  ;;  %s6003_s27 = smov 48   ;;  %s6004_s2 = smov 56  }
  0xf2   :  { %v377_v16 = vld [vmem:[%s7466_s16] sm:$0xff]  ;;  %s6005_s12 = smov 40   ;;  %s6006_s24 = smov 8  }
  0xf3   :  { %437 = vmatpush.msra.mxu1 %v411_v6  ;;  %v5297_v22 = vld [vmem:[%s7467_s5] ss:$0 sm:$0xff]  ;;  %s7469_s0 = sld [smem:[#allocation42_spill]]  ;;  %s6007_s10 = smov 24  }
  0xf4   :  { %367 = vperm.xlu0 %5175, %v360_v3   ;;  %s7470_s28 = sld [smem:[#allocation43_spill]]  ;;  %s6009_s16 = smov 32  }
  0xf5   :  { %438 = vmatpush.msra.mxu1 %v410_v14  ;;  %s7471_s30 = sld [smem:[#allocation44_spill]] }
  0xf6   :  { %v6400_v44 = vld [vmem:[%s7468_s1] sm:$0xff]  ;;  %v6407_v55 = vld [vmem:[%s7468_s1 + $0x8] sm:$0xff]  ;;  %s7472_s4 = sld [smem:[#allocation45_spill]] }
  0xf7   :  { %439 = vmatpush.msra.mxu1 %v409_v15  ;;  %s7473_s11 = sld [smem:[#allocation34_spill]] }
  0xf8   :  { %s7475_s20 = sld [smem:[#allocation36_spill]] }
  0xf9   :  { %s7476_s19 = sld [smem:[#allocation38_spill]] }
  0xfa   :  { %s7477_s7 = sld [smem:[#allocation47_spill]] }
  0xfb   :  { %s7478_s25 = sld [smem:[#allocation49_spill]] }
  0xfc   :  { %s7481_s1 = sld [smem:[#allocation50_spill]] }
 0x15e   :  { %v365_v9 = vpop.permute.xlu0 %364 }
 0x15f   :  { %vm369_vm1 = vcmp.eq.s32.totalorder %v365_v9, %v6326_v8 }
 0x160   :  { %v4845_v11 = vsel %vm369_vm1, 1.0, %v5994_v10  ;;  %vm1054_vm1 = vcmask 523264  }
 0x161   :  { %4847 = vmatmul.msk.f32.vlgmr.msra.gmra.mxu0 %vm379_vm0, %v4845_v11 }
 0x166   :  { %v368_v12 = vpop.permute.xlu0 %367 }
 0x167   :  { %vm370_vm2 = vcmp.eq.s32.totalorder %v368_v12, %v6326_v8 }
 0x168   :  { %v4846_v13 = vsel %vm370_vm2, 1.0, %v5994_v10 }
 0x169   :  { %4848 = vmatmul.msk.f32.vlgmr.msra.gmra.mxu3 %vm379_vm0, %v4846_v13 }
 0x1de   :  { %v403_v17 = vpop.f32.mrf.mxu0 }
 0x1df   :  { %v6337_v18 = vadd.f32 %v403_v17, %v377_v16 }
 0x1e1   :  { %4849 = vmatmul.msk.f32.vlgmr.msra.gmra.mxu1 %vm417_vm3, %v6337_v18 }
 0x1ec   :  { %v406_v20 = vpop.f32.mrf.mxu3 }
 0x1ed   :  { %v6342_v21 = vadd.f32 %v406_v20, %v378_v19 }
 0x1ef   :  { %4850 = vmatmul.msk.f32.gmra.mxu1 %vm417_vm3, %v6342_v21 }
 0x25e   :  { %v441_v23 = vpop.f32.mrf.mxu1 }
 0x25f   :  { %v442_v24 = vadd.f32 %v5297_v22, %v441_v23 }
 0x261   :  { %448 = vst.msk [vmem:[#allocation2] sm:$0xff] %vm447_vm4, %v442_v24 }
 0x268   :  { %v6348_v25 = vld [vmem:[#allocation2] sm:$0xff] }
 0x269   :  { %562 = vrot.lane.b32.xlu0 %v6348_v25, %s5995_s18 }
 0x26c   :  { %v444_v26 = vpop.f32.mrf.mxu1 }
 0x26d   :  { %v445_v27 = vadd.f32 %v5297_v22, %v444_v26 }
 0x26f   :  { %449 = vst.msk [vmem:[#allocation2 + $0x8] sm:$0xff] %vm447_vm4, %v445_v27 }
 0x276   :  { %v6353_v28 = vld [vmem:[#allocation2 + $0x8] sm:$0xff] }
 0x277   :  { %798 = vrot.lane.b32.xlu0 %v6353_v28, %s5996_s22  ;;  %568 = vrot.lane.b32.xlu2 %v6353_v28, %s5997_s9  ;;  %v6429_v15 = vpack.i.bf16 %v6348_v25, %v6353_v28 }
 0x278   :  { %461 = vrot.lane.b32.xlu1 %v6353_v28, %s5998_s29 }
 0x27f   :  { %677 = vrot.lane.b32.xlu0 %v6348_v25, %s5999_s6  ;;  %566 = vrot.lane.b32.xlu2 %v6348_v25, %s5997_s9 }
 0x280   :  { %459 = vrot.lane.b32.xlu1 %v6348_v25, %s5998_s29 }
 0x287   :  { %794 = vrot.lane.b32.xlu0 %v6353_v28, %s6000_s21  ;;  %683 = vrot.lane.b32.xlu2 %v6353_v28, %s6001_s26 }
 0x288   :  { %681 = vrot.lane.b32.xlu1 %v6348_v25, %s6001_s26 }
 0x28f   :  { %796 = vrot.lane.b32.xlu2 %v6348_v25, %s5996_s22 }
 0x290   :  { %564 = vrot.lane.b32.xlu1 %v6353_v28, %s5995_s18 }
 0x297   :  { %679 = vrot.lane.b32.xlu2 %v6353_v28, %s5999_s6 }
 0x298   :  { %792 = vrot.lane.b32.xlu1 %v6348_v25, %s6000_s21 }
 0x2d1   :  { %v569_v29 = vpop.permute.xlu2 %568 }
 0x2d2   :  { %4857 = vmatpush.xpose.msk.msrb.mxu0 %vm463_vm5, %v569_v29 }
 0x2d9   :  { %v567_v30 = vpop.permute.xlu2 %566 }
 0x2da   :  { %4858 = vmatpush.xpose.msk.msrb.mxu0 %vm463_vm5, %v567_v30 }
 0x2db   :  { %v563_v31 = vpop.permute.xlu0 %562 }
 0x2dd   :  { %4859 = vmatmul.msk.f32.vlgmr.msrb.gmra.mxu0 %vm463_vm5, %v563_v31 }
 0x2e1   :  { %v684_v32 = vpop.permute.xlu2 %683 }
 0x2e2   :  { %4863 = vmatpush.xpose.msk.msrb.mxu1 %vm463_vm5, %v684_v32 }
 0x2e9   :  { %v799_v33 = vpop.permute.xlu0 %798  ;;  %v797_v35 = vpop.permute.xlu2 %796 }
 0x2ea   :  { %v462_v34 = vpop.permute.xlu1 %461  ;;  %4869 = vmatpush.xpose.msk.msra.mxu0 %vm463_vm5, %v799_v33 }
 0x2eb   :  { %4851 = vmatpush.xpose.msk.msra.mxu2 %vm463_vm5, %v462_v34 }
 0x2ee   :  { %4870 = vmatpush.xpose.msk.msra.mxu0 %vm463_vm5, %v797_v35 }
 0x2f1   :  { %v678_v38 = vpop.permute.xlu0 %677  ;;  %v680_v40 = vpop.permute.xlu2 %679 }
 0x2f2   :  { %v460_v36 = vpop.permute.xlu1 %459 }
 0x2f3   :  { %4852 = vmatpush.xpose.msk.msra.mxu2 %vm463_vm5, %v460_v36 }
 0x2f6   :  { %4853 = vmatmul.msk.f32.vlgmr.msra.gmra.mxu2 %vm463_vm5, %v6348_v25 }
 0x2f9   :  { %v795_v42 = vpop.permute.xlu0 %794 }
 0x2fa   :  { %v682_v37 = vpop.permute.xlu1 %681 }
 0x2fb   :  { %4864 = vmatpush.xpose.msk.msrb.mxu1 %vm463_vm5, %v682_v37 }
 0x2fe   :  { %4854 = vmatmul.msk.f32.gmra.mxu2 %vm463_vm5, %v6353_v28  ;;  %4865 = vmatmul.msk.f32.vlgmr.msrb.gmra.mxu1 %vm463_vm5, %v678_v38 }
 0x302   :  { %v565_v39 = vpop.permute.xlu1 %564 }
 0x303   :  { %4860 = vmatmul.msk.f32.gmra.mxu0 %vm463_vm5, %v565_v39 }
 0x306   :  { %4866 = vmatmul.msk.f32.gmra.mxu1 %vm463_vm5, %v680_v40 }
 0x30a   :  { %v793_v41 = vpop.permute.xlu1 %792 }
 0x30b   :  { %4871 = vmatmul.msk.f32.vlgmr.msra.gmra.mxu0 %vm463_vm5, %v793_v41 }
 0x313   :  { %4872 = vmatmul.msk.f32.gmra.mxu0 %vm463_vm5, %v795_v42 }
 0x35a   :  { %v595_v43 = vpop.f32.mrf.mxu0 }
 0x35b   :  { %v601_v45 = vmul.f32 0.35355338, %v595_v43 }
 0x35d   :  { %v603_v46 = vadd.f32 %v601_v45, %v6400_v44 }
 0x35f   :  { %v605_v47 = vsel %vm379_vm0, %v603_v46, -inf }
 0x360   :  { %606 = vmax.xlane.f32.xlu0 %v605_v47 }
 0x379   :  { %v489_v48 = vpop.f32.mrf.mxu2 }
 0x37a   :  { %v495_v49 = vmul.f32 0.35355338, %v489_v48 }
 0x37b   :  { %v710_v50 = vpop.f32.mrf.mxu1 }
 0x37c   :  { %v497_v51 = vadd.f32 %v495_v49, %v6400_v44  ;;  %v716_v52 = vmul.f32 0.35355338, %v710_v50 }
 0x37e   :  { %v499_v53 = vsel %vm379_vm0, %v497_v51, -inf  ;;  %v718_v58 = vadd.f32 %v716_v52, %v6400_v44 }
 0x37f   :  { %500 = vmax.xlane.f32.xlu1 %v499_v53 }
 0x380   :  { %v598_v54 = vpop.f32.mrf.mxu0  ;;  %v720_v0 = vsel %vm379_vm0, %v718_v58, -inf }
 0x381   :  { %v602_v56 = vmul.f32 0.35355338, %v598_v54  ;;  %v492_v57 = vpop.f32.mrf.mxu2 }
 0x382   :  { %v496_v62 = vmul.f32 0.35355338, %v492_v57 }
 0x383   :  { %v713_v59 = vpop.f32.mrf.mxu1  ;;  %v604_v60 = vadd.f32 %v602_v56, %v6407_v55 }
 0x384   :  { %v717_v61 = vmul.f32 0.35355338, %v713_v59  ;;  %v498_v4 = vadd.f32 %v496_v62, %v6407_v55 }
 0x385   :  { %v608_v63 = vsel %vm379_vm0, %v604_v60, -inf }
 0x386   :  { %609 = vmax.xlane.f32.xlu2 %v608_v63  ;;  %v6414_v1 = vadd.f32 %v717_v61, %v6407_v55  ;;  %v502_v6 = vsel %vm379_vm0, %v498_v4, -inf }
 0x387   :  { %721 = vmax.xlane.f32.xlu1 %v720_v0 }
 0x388   :  { %v825_v2 = vpop.f32.mrf.mxu0  ;;  %v723_v3 = vsel %vm379_vm0, %v6414_v1, -inf }
 0x389   :  { %724 = vmax.xlane.f32.xlu0 %v723_v3  ;;  %v831_v5 = vmul.f32 0.35355338, %v825_v2 }
 0x38b   :  { %v6421_v11 = vadd.f32 %v831_v5, %v6400_v44 }
 0x38d   :  { %v835_v13 = vsel %vm379_vm0, %v6421_v11, -inf }
 0x38e   :  { %503 = vmax.xlane.f32.xlu2 %v502_v6 }
 0x390   :  { %v828_v7 = vpop.f32.mrf.mxu0 }
 0x391   :  { %v832_v9 = vmul.f32 0.35355338, %v828_v7 }
 0x393   :  { %v834_v12 = vadd.f32 %v832_v9, %v6407_v55 }
 0x395   :  { %v838_v14 = vsel %vm379_vm0, %v834_v12, -inf }
 0x396   :  { %836 = vmax.xlane.f32.xlu2 %v835_v13  ;;  %839 = vmax.xlane.f32.xlu1 %v838_v14 }
 0x39d   :  { %5177 = vrot.lane.b32.xlu0 %v6429_v15, %s6002_s23 }
 0x3d3   :  { %v607_v16 = vpop.xlane.xlu0 %606 }
 0x3d4   :  { %v611_v17 = vsub.f32 %v603_v46, %v607_v16 }
 0x3d6   :  { %v613_v19 = vmul.f32 1.442695, %v611_v17 }
 0x3d8   :  { %5344 = vpow2.f32 %v613_v19 }
 0x3de   :  { %v6433_v20 = vpop.eup %5344 }
 0x3df   :  { %v617_v22 = vsel %vm379_vm0, %v6433_v20, 0.0 }
 0x3e0   :  { %618 = vadd.xlane.f32.xlu2 %v617_v22 }
 0x3f2   :  { %v501_v23 = vpop.xlane.xlu1 %500 }
 0x3f3   :  { %v505_v24 = vsub.f32 %v497_v51, %v501_v23 }
 0x3f5   :  { %v507_v26 = vmul.f32 1.442695, %v505_v24 }
 0x3f7   :  { %5346 = vpow2.f32 %v507_v26 }
 0x3f9   :  { %v610_v25 = vpop.xlane.xlu2 %609 }
 0x3fa   :  { %v612_v27 = vsub.f32 %v604_v60, %v610_v25  ;;  %v722_v28 = vpop.xlane.xlu1 %721 }
 0x3fb   :  { %v726_v29 = vsub.f32 %v718_v58, %v722_v28 }
 0x3fc   :  { %v615_v30 = vmul.f32 1.442695, %v612_v27  ;;  %v725_v41 = vpop.xlane.xlu0 %724 }
 0x3fd   :  { %v5347_v31 = vpop.eup %5346  ;;  %v728_v32 = vmul.f32 1.442695, %v726_v29  ;;  %v727_v57 = vsub.f32 %v6414_v1, %v725_v41 }
 0x3fe   :  { %5348 = vpow2.f32 %v615_v30  ;;  %v511_v33 = vsel %vm379_vm0, %v5347_v31, 0.0 }
 0x3ff   :  { %5350 = vpow2.f32 %v728_v32  ;;  %512 = vadd.xlane.f32.xlu2 %v511_v33  ;;  %v730_v58 = vmul.f32 1.442695, %v727_v57 }
 0x401   :  { %v504_v34 = vpop.xlane.xlu2 %503 }
 0x402   :  { %v506_v35 = vsub.f32 %v498_v4, %v504_v34 }
 0x404   :  { %v6438_v36 = vpop.eup %5348  ;;  %v509_v37 = vmul.f32 1.442695, %v506_v35 }
 0x405   :  { %v5351_v38 = vpop.eup %5350  ;;  %v620_v39 = vsel %vm379_vm0, %v6438_v36, 0.0 }
 0x406   :  { %5352 = vpow2.f32 %v509_v37  ;;  %v732_v40 = vsel %vm379_vm0, %v5351_v38, 0.0 }
 0x407   :  { %621 = vadd.xlane.f32.xlu2 %v620_v39  ;;  %733 = vadd.xlane.f32.xlu0 %v732_v40 }
 0x409   :  { %v840_v42 = vpop.xlane.xlu1 %839  ;;  %v837_v53 = vpop.xlane.xlu2 %836 }
 0x40a   :  { %v842_v43 = vsub.f32 %v834_v12, %v840_v42  ;;  %v841_v54 = vsub.f32 %v6421_v11, %v837_v53 }
 0x40c   :  { %v5353_v45 = vpop.eup %5352  ;;  %v845_v46 = vmul.f32 1.442695, %v842_v43  ;;  %v843_v56 = vmul.f32 1.442695, %v841_v54 }
 0x40d   :  { %v514_v47 = vsel %vm379_vm0, %v5353_v45, 0.0 }
 0x40e   :  { %515 = vadd.xlane.f32.xlu1 %v514_v47  ;;  %5354 = vpow2.f32 %v845_v46  ;;  %v453_v47 = vld [vmem:[%s7469_s0 + $0x18] sm:$0xff] }
 0x40f   :  { %v5178_v48 = vpop.permute.xlu0 %5177  ;;  %5356 = vpow2.f32 %v843_v56  ;;  %926 = vmatpush.msra.mxu1 %v453_v47 }
 0x410   :  { %v5179_v49 = vunpack.i.l.bf16 %v5178_v48  ;;  %v5180_v50 = vunpack.i.h.bf16 %v5178_v48  ;;  %5358 = vpow2.f32 %v730_v58  ;;  %v452_v48 = vld [vmem:[%s7469_s0 + $0x10] sm:$0xff]  ;;  %v5298_v58 = vld [vmem:[#allocation4] ss:$0 sm:$0xff] }
 0x411   :  { %927 = vmatpush.msra.mxu1 %v452_v48 }
 0x412   :  { %547 = vmatpush.msrb.mxu3 %v5179_v49  ;;  %v451_v49 = vld [vmem:[%s7469_s0 + $0x8] sm:$0xff] }
 0x413   :  { %928 = vmatpush.msra.mxu1 %v451_v49 }
 0x414   :  { %548 = vmatpush.msrb.mxu3 %v5180_v50  ;;  %v6444_v51 = vpop.eup %5354  ;;  %v450_v50 = vld [vmem:[%s7469_s0] sm:$0xff] }
 0x415   :  { %v850_v52 = vsel %vm379_vm0, %v6444_v51, 0.0  ;;  %v5357_v59 = vpop.eup %5356  ;;  %929 = vmatpush.msra.mxu1 %v450_v50  ;;  %v5300_v50 = vld [vmem:[%s7472_s4 + $0x1] ss:$0 sm:$0xff] }
 0x416   :  { %851 = vadd.xlane.f32.xlu0 %v850_v52  ;;  %v847_v60 = vsel %vm379_vm0, %v5357_v59, 0.0  ;;  %v5359_v61 = vpop.eup %5358 }
 0x417   :  { %v735_v62 = vsel %vm379_vm0, %v5359_v61, 0.0 }
 0x41f   :  { %5187 = vrot.lane.b32.xlu2 %v6429_v15, %s6003_s27 }
 0x427   :  { %5182 = vrot.lane.b32.xlu1 %v6429_v15, %s6004_s2 }
 0x448   :  { %848 = vadd.xlane.f32.xlu2 %v847_v60 }
 0x451   :  { %736 = vadd.xlane.f32.xlu1 %v735_v62 }
 0x453   :  { %v619_v63 = vpop.xlane.xlu2 %618 }
 0x460   :  { %5192 = vrot.lane.b32.xlu2 %v6429_v15, %s6005_s12 }
 0x472   :  { %v513_v0 = vpop.xlane.xlu2 %512 }
 0x473   :  { %5360 = vrcp.f32 %v513_v0 }
 0x479   :  { %v5361_v2 = vpop.eup %5360 }
 0x47a   :  { %v622_v3 = vpop.xlane.xlu2 %621  ;;  %v734_v1 = vpop.xlane.xlu0 %733  ;;  %v519_v4 = vmul.f32 %v5361_v2, %v5347_v31 }
 0x47b   :  { %5362 = vrcp.f32 %v734_v1  ;;  %v6008_v1 = vmov 32.0  }
 0x47c   :  { %4855 = vmatmul.msk.f32.vlgmr.msrb.gmra.mxu3 %vm379_vm0, %v519_v4 }
 0x481   :  { %v516_v5 = vpop.xlane.xlu1 %515  ;;  %v5363_v7 = vpop.eup %5362 }
 0x482   :  { %5364 = vrcp.f32 %v516_v5  ;;  %v5188_v6 = vpop.permute.xlu2 %5187  ;;  %v740_v12 = vmul.f32 %v5363_v7, %v5351_v38 }
 0x483   :  { %v5189_v9 = vunpack.i.l.bf16 %v5188_v6  ;;  %v5190_v11 = vunpack.i.h.bf16 %v5188_v6  ;;  %5366 = vrcp.f32 %v619_v63 }
 0x484   :  { %5368 = vrcp.f32 %v622_v3 }
 0x485   :  { %768 = vmatpush.msrb.mxu2 %v5189_v9 }
 0x487   :  { %769 = vmatpush.msrb.mxu2 %v5190_v11 }
 0x488   :  { %v5365_v13 = vpop.eup %5364  ;;  %4867 = vmatmul.msk.f32.vlgmr.msrb.gmra.mxu2 %vm379_vm0, %v740_v12 }
 0x489   :  { %v520_v14 = vmul.f32 %v5365_v13, %v5353_v45  ;;  %v5367_v16 = vpop.eup %5366  ;;  %v852_v25 = vpop.xlane.xlu0 %851 }
 0x48a   :  { %v625_v22 = vmul.f32 %v5367_v16, %v6433_v20  ;;  %v5369_v23 = vpop.eup %5368 }
 0x48b   :  { %4856 = vmatmul.msk.f32.gmra.mxu3 %vm379_vm0, %v520_v14  ;;  %v626_v24 = vmul.f32 %v5369_v23, %v6438_v36  ;;  %v1006_v23 = vld [vmem:[%s7470_s28 + $0x18] sm:$0xff] }
 0x48c   :  { %1029 = vmatpush.msra.mxu2 %v1006_v23 }
 0x499   :  { %v5183_v15 = vpop.permute.xlu1 %5182 }
 0x49a   :  { %v5184_v17 = vunpack.i.l.bf16 %v5183_v15  ;;  %v5185_v19 = vunpack.i.h.bf16 %v5183_v15 }
 0x49c   :  { %653 = vmatpush.msra.mxu3 %v5184_v17 }
 0x49e   :  { %654 = vmatpush.msra.mxu3 %v5185_v19 }
 0x49f   :  { %4861 = vmatmul.msk.f32.vlgmr.msra.gmra.mxu3 %vm379_vm0, %v625_v22 }
 0x4a7   :  { %4862 = vmatmul.msk.f32.gmra.mxu3 %vm379_vm0, %v626_v24  ;;  %v1005_v24 = vld [vmem:[%s7470_s28 + $0x10] sm:$0xff] }
 0x4a8   :  { %1030 = vmatpush.msra.mxu2 %v1005_v24 }
 0x4bb   :  { %v849_v26 = vpop.xlane.xlu2 %848 }
 0x4bc   :  { %5370 = vrcp.f32 %v849_v26  ;;  %v1004_v26 = vld [vmem:[%s7470_s28 + $0x8] sm:$0xff] }
 0x4bd   :  { %1031 = vmatpush.msra.mxu2 %v1004_v26 }
 0x4c2   :  { %v5371_v28 = vpop.eup %5370 }
 0x4c3   :  { %v5193_v27 = vpop.permute.xlu2 %5192  ;;  %v855_v20 = vmul.f32 %v5371_v28, %v5357_v59 }
 0x4c4   :  { %v5194_v29 = vunpack.i.l.bf16 %v5193_v27  ;;  %v737_v30 = vpop.xlane.xlu1 %736  ;;  %v5195_v31 = vunpack.i.h.bf16 %v5193_v27 }
 0x4c5   :  { %5372 = vrcp.f32 %v737_v30  ;;  %v1049_v30 = vld [vmem:[%s7471_s30 + $0x38] sm:$0xff] }
 0x4c6   :  { %5374 = vrcp.f32 %v852_v25  ;;  %883 = vmatpush.msrb.mxu3 %v5194_v29  ;;  %v1003_v25 = vld [vmem:[%s7470_s28] sm:$0xff]  ;;  %1069 = vmatpush.msrb.mxu0 %v1049_v30  ;;  %v4887_v30 = vld [vmem:[%s7465_s14 + $0x38] sm:$0xff] }
 0x4c7   :  { %5376 = vrcp.f32 %v6008_v1  ;;  %1032 = vmatpush.msra.mxu2 %v1003_v25 }
 0x4c8   :  { %884 = vmatpush.msrb.mxu3 %v5195_v31  ;;  %v1048_v31 = vld [vmem:[%s7471_s30 + $0x30] sm:$0xff] }
 0x4c9   :  { %4873 = vmatmul.msk.f32.vlgmr.msrb.gmra.mxu3 %vm379_vm0, %v855_v20  ;;  %v1047_v20 = vld [vmem:[%s7471_s30 + $0x28] sm:$0xff]  ;;  %1070 = vmatpush.msrb.mxu0 %v1048_v31  ;;  %v4886_v31 = vld [vmem:[%s7465_s14 + $0x30] sm:$0xff] }
 0x4ca   :  { %1172 = vmatpush.msra.mxu3 %v4887_v30 }
 0x4cb   :  { %v5373_v32 = vpop.eup %5372  ;;  %1071 = vmatpush.msrb.mxu0 %v1047_v20  ;;  %v4885_v20 = vld [vmem:[%s7465_s14 + $0x28] sm:$0xff] }
 0x4cc   :  { %v5375_v33 = vpop.eup %5374  ;;  %v741_v34 = vmul.f32 %v5373_v32, %v5359_v61  ;;  %1173 = vmatpush.msra.mxu3 %v4886_v31 }
 0x4cd   :  { %v856_v35 = vmul.f32 %v5375_v33, %v6444_v51  ;;  %v5377_v4 = vpop.eup %5376 }
 0x4ce   :  { %4868 = vmatmul.msk.f32.gmra.mxu2 %vm379_vm0, %v741_v34  ;;  %v949_v5 = vmul.f32 32.0, %v5377_v4  ;;  %vm953_vm9 = vweird.f32 %v5377_v4  ;;  %v1046_v34 = vld [vmem:[%s7471_s30 + $0x20] sm:$0xff]  ;;  %1174 = vmatpush.msra.mxu3 %v4885_v20 }
 0x4cf   :  { %1072 = vmatpush.msrb.mxu0 %v1046_v34 }
 0x4d0   :  { %v950_v6 = vsub.f32 1.0, %v949_v5 }
 0x4d1   :  { %4874 = vmatmul.msk.f32.gmra.mxu3 %vm379_vm0, %v856_v35 }
 0x4d2   :  { %v951_v7 = vmul.f32 %v5377_v4, %v950_v6 }
 0x4d4   :  { %v952_v9 = vadd.f32 %v5377_v4, %v951_v7  ;;  %v5302_v7 = vld [vmem:[#allocation9] ss:$0 sm:$0xff] }
 0x4ff   :  { %v550_v36 = vpop.f32.mrf.mxu3 }
 0x500   :  { %556 = vst.msk [vmem:[#allocation3] sm:$0xff] %vm463_vm5, %v550_v36 }
 0x50b   :  { %v771_v37 = vpop.f32.mrf.mxu2 }
 0x50c   :  { %779 = vrot.lane.b32.xlu0 %v771_v37, %s5979_s15  ;;  %v1045_v37 = vld [vmem:[%s7471_s30 + $0x18] sm:$0xff] }
 0x50d   :  { %1073 = vmatpush.msrb.mxu0 %v1045_v37 }
 0x50e   :  { %v553_v38 = vpop.f32.mrf.mxu3 }
 0x50f   :  { %557 = vst.msk [vmem:[#allocation3 + $0x8] sm:$0xff] %vm463_vm5, %v553_v38 }
 0x522   :  { %v656_v39 = vpop.f32.mrf.mxu3 }
 0x523   :  { %664 = vrot.lane.b32.xlu2 %v656_v39, %s6006_s24 }
 0x52a   :  { %v659_v40 = vpop.f32.mrf.mxu3 }
 0x52b   :  { %666 = vrot.lane.b32.xlu1 %v659_v40, %s6006_s24 }
 0x54c   :  { %v886_v42 = vpop.f32.mrf.mxu3 }
 0x551   :  { %v774_v41 = vpop.f32.mrf.mxu2 }
 0x552   :  { %781 = vrot.lane.b32.xlu2 %v774_v41, %s5979_s15 }
 0x554   :  { %v889_v43 = vpop.f32.mrf.mxu3 }
 0x55a   :  { %894 = vrot.lane.b32.xlu2 %v886_v42, %s6007_s10 }
 0x562   :  { %896 = vrot.lane.b32.xlu2 %v889_v43, %s6007_s10 }
 0x57d   :  { %v665_v45 = vpop.permute.xlu2 %664 }
 0x57e   :  { %671 = vst.msk [vmem:[#allocation3] sm:$0xff] %vm670_vm6, %v665_v45  ;;  %v780_v46 = vpop.permute.xlu0 %779 }
 0x57f   :  { %786 = vst.msk [vmem:[#allocation3] sm:$0xff] %vm785_vm7, %v780_v46  ;;  %v5299_v46 = vld [vmem:[%s7472_s4] ss:$0 sm:$0xff] }
 0x59d   :  { %v667_v51 = vpop.permute.xlu1 %666 }
 0x59e   :  { %672 = vst.msk [vmem:[#allocation3 + $0x8] sm:$0xff] %vm670_vm6, %v667_v51 }
 0x5ac   :  { %v782_v52 = vpop.permute.xlu2 %781 }
 0x5ad   :  { %787 = vst.msk [vmem:[#allocation3 + $0x8] sm:$0xff] %vm785_vm7, %v782_v52 }
 0x5b4   :  { %v895_v53 = vpop.permute.xlu2 %894 }
 0x5b5   :  { %901 = vst.msk [vmem:[#allocation3] sm:$0xff] %vm900_vm8, %v895_v53 }
 0x5bc   :  { %v897_v54 = vpop.permute.xlu2 %896  ;;  %v903_v56 = vld [vmem:[#allocation3] sm:$0xff] }
 0x5bd   :  { %902 = vst.msk [vmem:[#allocation3 + $0x8] sm:$0xff] %vm900_vm8, %v897_v54  ;;  %4875 = vmatmul.msk.f32.vlgmr.msra.gmra.mxu1 %vm417_vm3, %v903_v56 }
 0x5c4   :  { %v904_v57 = vld [vmem:[#allocation3 + $0x8] sm:$0xff] }
 0x5c5   :  { %4876 = vmatmul.msk.f32.gmra.mxu1 %vm417_vm3, %v904_v57 }
 0x63a   :  { %v931_v59 = vpop.f32.mrf.mxu1 }
 0x63b   :  { %v932_v60 = vadd.f32 %v5298_v58, %v931_v59 }
 0x63d   :  { %v937_v61 = vadd.f32 %v932_v60, %v6337_v18  ;;  %v6493_v18 = vsel %vm953_vm9, %v5377_v4, %v952_v9 }
 0x63f   :  { %v942_v62 = vsel %vm417_vm3, %v937_v61, 0.0 }
 0x640   :  { %943 = vadd.xlane.f32.xlu0 %v942_v62  ;;  %v1043_v62 = vld [vmem:[%s7471_s30 + $0x8] sm:$0xff] }
 0x642   :  { %v934_v63 = vpop.f32.mrf.mxu1 }
 0x643   :  { %v935_v0 = vadd.f32 %v5298_v58, %v934_v63  ;;  %v1042_v63 = vld [vmem:[%s7471_s30] sm:$0xff] }
 0x645   :  { %v938_v2 = vadd.f32 %v935_v0, %v6342_v21  ;;  %v5301_v0 = vld [vmem:[#allocation7] ss:$0 sm:$0xff] }
 0x647   :  { %v945_v3 = vsel %vm417_vm3, %v938_v2, 0.0 }
 0x648   :  { %946 = vadd.xlane.f32.xlu2 %v945_v3 }
 0x6b3   :  { %v944_v11 = vpop.xlane.xlu0 %943 }
 0x6b4   :  { %v955_v12 = vmul.f32 %v6493_v18, %v944_v11 }
 0x6b6   :  { %v957_v21 = vsub.f32 %v937_v61, %v955_v12  ;;  %v1044_v61 = vld [vmem:[%s7471_s30 + $0x10] sm:$0xff] }
 0x6b7   :  { %1074 = vmatpush.msrb.mxu0 %v1044_v61 }
 0x6b8   :  { %v959_v13 = vmul.f32 %v957_v21, %v957_v21 }
 0x6b9   :  { %1075 = vmatpush.msrb.mxu0 %v1043_v62 }
 0x6ba   :  { %v961_v14 = vsel %vm417_vm3, %v959_v13, 0.0 }
 0x6bb   :  { %962 = vadd.xlane.f32.xlu1 %v961_v14  ;;  %v947_v15 = vpop.xlane.xlu2 %946  ;;  %1076 = vmatpush.msrb.mxu0 %v1042_v63  ;;  %v5305_v63 = vld [vmem:[%s7467_s5 + $0x1] ss:$0 sm:$0xff]  ;;  %s7480_s5 = sld [smem:[#allocation39_spill]] }
 0x6bc   :  { %v956_v16 = vmul.f32 %v6493_v18, %v947_v15 }
 0x6be   :  { %v958_v17 = vsub.f32 %v938_v2, %v956_v16 }
 0x6c0   :  { %v960_v19 = vmul.f32 %v958_v17, %v958_v17 }
 0x6c2   :  { %v964_v22 = vsel %vm417_vm3, %v960_v19, 0.0 }
 0x6c3   :  { %965 = vadd.xlane.f32.xlu0 %v964_v22 }
 0x72e   :  { %v963_v27 = vpop.xlane.xlu1 %962 }
 0x72f   :  { %v967_v28 = vmul.f32 %v963_v27, %v6493_v18 }
 0x731   :  { %v969_v29 = vadd.f32 1e-05, %v967_v28 }
 0x733   :  { %5378 = vrsqrt.f32 %v969_v29  ;;  %vm977_vm11 = vweird.f32 %v969_v29 }
 0x736   :  { %v966_v32 = vpop.xlane.xlu0 %965 }
 0x737   :  { %v968_v33 = vmul.f32 %v966_v32, %v6493_v18  ;;  %v4884_v32 = vld [vmem:[%s7465_s14 + $0x20] sm:$0xff]  ;;  %s7479_s14 = sld [smem:[#allocation48_spill]] }
 0x738   :  { %1175 = vmatpush.msra.mxu3 %v4884_v32 }
 0x739   :  { %v5379_v35 = vpop.eup %5378  ;;  %v970_v36 = vadd.f32 1e-05, %v968_v33 }
 0x73a   :  { %v972_v38 = vmul.f32 %v5379_v35, %v969_v29  ;;  %vm978_vm10 = vweird.f32 %v5379_v35 }
 0x73b   :  { %5380 = vrsqrt.f32 %v970_v36  ;;  %vm979_vm12 = vmor %vm977_vm11, %vm978_vm10  ;;  %vm987_vm14 = vweird.f32 %v970_v36 }
 0x73c   :  { %v973_v39 = vmul.f32 %v5379_v35, %v972_v38 }
 0x73e   :  { %v974_v40 = vmul.f32 0.5, %v973_v39 }
 0x740   :  { %v975_v41 = vsub.f32 1.5, %v974_v40 }
 0x741   :  { %v5381_v42 = vpop.eup %5380 }
 0x742   :  { %v976_v43 = vmul.f32 %v5379_v35, %v975_v41  ;;  %v982_v45 = vmul.f32 %v5381_v42, %v970_v36  ;;  %vm988_vm13 = vweird.f32 %v5381_v42 }
 0x743   :  { %vm989_vm15 = vmor %vm987_vm14, %vm988_vm13 }
 0x744   :  { %v980_v47 = vsel %vm979_vm12, %v5379_v35, %v976_v43  ;;  %v983_v48 = vmul.f32 %v5381_v42, %v982_v45 }
 0x745   :  { %v991_v49 = vmul.f32 %v980_v47, %v957_v21 }
 0x746   :  { %v984_v51 = vmul.f32 0.5, %v983_v48  ;;  %v5303_v48 = vld [vmem:[%s7472_s4 + $0x2] ss:$0 sm:$0xff] }
 0x747   :  { %v996_v52 = vmul.f32 %v5299_v46, %v991_v49 }
 0x748   :  { %v985_v53 = vsub.f32 1.5, %v984_v51 }
 0x749   :  { %v1001_v54 = vadd.f32 %v5300_v50, %v996_v52  ;;  %v5304_v52 = vld [vmem:[%s7472_s4 + $0x3] ss:$0 sm:$0xff] }
 0x74a   :  { %v986_v56 = vmul.f32 %v5381_v42, %v985_v53 }
 0x74b   :  { %4878 = vmatmul.msk.f32.vlgmr.msra.gmra.mxu2 %vm417_vm3, %v1001_v54 }
 0x74c   :  { %v990_v57 = vsel %vm989_vm15, %v5381_v42, %v986_v56 }
 0x74d   :  { %v992_v58 = vmul.f32 %v990_v57, %v958_v17 }
 0x74f   :  { %v997_v59 = vmul.f32 %v5299_v46, %v992_v58 }
 0x751   :  { %v1002_v60 = vadd.f32 %v5300_v50, %v997_v59 }
 0x753   :  { %4879 = vmatmul.msk.f32.gmra.mxu2 %vm417_vm3, %v1002_v60 }
 0x7ce   :  { %v1034_v2 = vpop.f32.mrf.mxu2 }
 0x7cf   :  { %v1035_v3 = vadd.f32 %v5301_v0, %v1034_v2 }
 0x7d1   :  { %v1040_v1 = vmax.f32 %v1035_v3, 0.0 }
 0x7d3   :  { %4880 = vmatmul.msk.f32.vlgmr.msrb.gmra.mxu0 %vm1054_vm1, %v1040_v1 }
 0x7d6   :  { %v1037_v4 = vpop.f32.mrf.mxu2 }
 0x7d7   :  { %v1038_v5 = vadd.f32 %v5301_v0, %v1037_v4 }
 0x7d9   :  { %v1041_v6 = vmax.f32 %v1038_v5, 0.0 }
 0x7db   :  { %4881 = vmatmul.msk.f32.gmra.mxu0 %vm1054_vm1, %v1041_v6 }
 0x850   :  { %v1078_v9 = vpop.f32.mrf.mxu0 }
 0x851   :  { %v1079_v11 = vadd.f32 %v5302_v7, %v1078_v9 }
 0x853   :  { %v1084_v12 = vadd.f32 %v1079_v11, %v1001_v54 }
 0x855   :  { %v1090_v21 = vsel %vm417_vm3, %v1084_v12, 0.0 }
 0x856   :  { %1091 = vadd.xlane.f32.xlu2 %v1090_v21 }
 0x858   :  { %v1081_v13 = vpop.f32.mrf.mxu0 }
 0x859   :  { %v1082_v14 = vadd.f32 %v5302_v7, %v1081_v13 }
 0x85b   :  { %v1085_v15 = vadd.f32 %v1082_v14, %v1002_v60 }
 0x85d   :  { %v1093_v16 = vsel %vm417_vm3, %v1085_v15, 0.0 }
 0x85e   :  { %1094 = vadd.xlane.f32.xlu0 %v1093_v16 }
 0x8c9   :  { %v1092_v17 = vpop.xlane.xlu2 %1091 }
 0x8ca   :  { %v1096_v19 = vmul.f32 %v1092_v17, %v6493_v18 }
 0x8cc   :  { %v1098_v22 = vsub.f32 %v1084_v12, %v1096_v19 }
 0x8ce   :  { %v1100_v23 = vmul.f32 %v1098_v22, %v1098_v22 }
 0x8d0   :  { %v1102_v24 = vsel %vm417_vm3, %v1100_v23, 0.0 }
 0x8d1   :  { %v1095_v26 = vpop.xlane.xlu0 %1094  ;;  %1103 = vadd.xlane.f32.xlu1 %v1102_v24 }
 0x8d2   :  { %v1097_v25 = vmul.f32 %v1095_v26, %v6493_v18 }
 0x8d4   :  { %v1099_v27 = vsub.f32 %v1085_v15, %v1097_v25 }
 0x8d6   :  { %v1101_v28 = vmul.f32 %v1099_v27, %v1099_v27 }
 0x8d8   :  { %v1105_v29 = vsel %vm417_vm3, %v1101_v28, 0.0 }
 0x8d9   :  { %1106 = vadd.xlane.f32.xlu2 %v1105_v29 }
 0x944   :  { %v1104_v33 = vpop.xlane.xlu1 %1103 }
 0x945   :  { %v1108_v34 = vmul.f32 %v1104_v33, %v6493_v18 }
 0x947   :  { %v1110_v35 = vadd.f32 1e-05, %v1108_v34 }
 0x949   :  { %5382 = vrsqrt.f32 %v1110_v35  ;;  %vm1118_vm9 = vweird.f32 %v1110_v35 }
 0x94c   :  { %v1107_v36 = vpop.xlane.xlu2 %1106 }
 0x94d   :  { %v1109_v37 = vmul.f32 %v1107_v36, %v6493_v18 }
 0x94f   :  { %v5383_v38 = vpop.eup %5382  ;;  %v1111_v39 = vadd.f32 1e-05, %v1109_v37 }
 0x950   :  { %v1113_v40 = vmul.f32 %v5383_v38, %v1110_v35  ;;  %vm1119_vm2 = vweird.f32 %v5383_v38 }
 0x951   :  { %5384 = vrsqrt.f32 %v1111_v39  ;;  %vm1120_vm10 = vmor %vm1118_vm9, %vm1119_vm2  ;;  %vm1128_vm12 = vweird.f32 %v1111_v39 }
 0x952   :  { %v1114_v41 = vmul.f32 %v5383_v38, %v1113_v40 }
 0x954   :  { %v1115_v42 = vmul.f32 0.5, %v1114_v41 }
 0x956   :  { %v1116_v43 = vsub.f32 1.5, %v1115_v42 }
 0x957   :  { %v5385_v45 = vpop.eup %5384 }
 0x958   :  { %v1117_v46 = vmul.f32 %v5383_v38, %v1116_v43  ;;  %v1123_v47 = vmul.f32 %v5385_v45, %v1111_v39  ;;  %vm1129_vm11 = vweird.f32 %v5385_v45 }
 0x959   :  { %vm1130_vm13 = vmor %vm1128_vm12, %vm1129_vm11 }
 0x95a   :  { %v1121_v49 = vsel %vm1120_vm10, %v5383_v38, %v1117_v46  ;;  %v1124_v50 = vmul.f32 %v5385_v45, %v1123_v47 }
 0x95b   :  { %v1132_v51 = vmul.f32 %v1121_v49, %v1098_v22 }
 0x95c   :  { %v1125_v53 = vmul.f32 0.5, %v1124_v50 }
 0x95d   :  { %v1137_v54 = vmul.f32 %v5303_v48, %v1132_v51 }
 0x95e   :  { %v1126_v56 = vsub.f32 1.5, %v1125_v53 }
 0x95f   :  { %v6533_v57 = vadd.f32 %v5304_v52, %v1137_v54 }
 0x960   :  { %v1127_v58 = vmul.f32 %v5385_v45, %v1126_v56 }
 0x961   :  { %4889 = vmatmul.msk.f32.vlgmr.msra.gmra.mxu3 %vm417_vm3, %v6533_v57 }
 0x962   :  { %v1131_v59 = vsel %vm1130_vm13, %v5385_v45, %v1127_v58 }
 0x963   :  { %v1133_v60 = vmul.f32 %v1131_v59, %v1099_v27 }
 0x965   :  { %v1138_v61 = vmul.f32 %v5303_v48, %v1133_v60 }
 0x967   :  { %v6537_v62 = vadd.f32 %v5304_v52, %v1138_v61 }
 0x969   :  { %4890 = vmatmul.msk.f32.gmra.mxu3 %vm417_vm3, %v6537_v62 }
 0x9e4   :  { %v1177_v0 = vpop.f32.mrf.mxu3 }
 0x9e5   :  { %v1178_v2 = vadd.f32 %v5305_v63, %v1177_v0 }
 0x9e7   :  { %1183 = vst.msk [vmem:[#allocation2] sm:$0xff] %vm447_vm4, %v1178_v2 }
 0x9ec   :  { %v1180_v3 = vpop.f32.mrf.mxu3 }
 0x9ed   :  { %v1181_v1 = vadd.f32 %v5305_v63, %v1180_v3 }
 0x9ee   :  { %v6543_v4 = vld [vmem:[#allocation2] sm:$0xff] }
 0x9ef   :  { %1184 = vst.msk [vmem:[#allocation2 + $0x8] sm:$0xff] %vm447_vm4, %v1181_v1  ;;  %1302 = vrot.lane.b32.xlu0 %v6543_v4, %s5997_s9  ;;  %1196 = vrot.lane.b32.xlu2 %v6543_v4, %s5998_s29 }
 0x9f6   :  { %v6550_v5 = vld [vmem:[#allocation2 + $0x8] sm:$0xff] }
 0x9f7   :  { %1418 = vrot.lane.b32.xlu2 %v6550_v5, %s6001_s26  ;;  %1304 = vrot.lane.b32.xlu1 %v6550_v5, %s5997_s9  ;;  %v6615_v56 = vpack.i.bf16 %v6543_v4, %v6550_v5 }
 0x9f8   :  { %1198 = vrot.lane.b32.xlu0 %v6550_v5, %s5998_s29 }
 0x9ff   :  { %1530 = vrot.lane.b32.xlu2 %v6543_v4, %s5996_s22  ;;  %1298 = vrot.lane.b32.xlu1 %v6543_v4, %s5995_s18 }
 0xa00   :  { %1416 = vrot.lane.b32.xlu0 %v6543_v4, %s6001_s26 }
 0xa07   :  { %1414 = vrot.lane.b32.xlu2 %v6550_v5, %s5999_s6  ;;  %1532 = vrot.lane.b32.xlu1 %v6550_v5, %s5996_s22 }
 0xa08   :  { %1300 = vrot.lane.b32.xlu0 %v6550_v5, %s5995_s18 }
 0xa0f   :  { %1412 = vrot.lane.b32.xlu1 %v6543_v4, %s5999_s6 }
 0xa10   :  { %1526 = vrot.lane.b32.xlu0 %v6543_v4, %s6000_s21 }
 0xa17   :  { %1528 = vrot.lane.b32.xlu1 %v6550_v5, %s6000_s21 }
 0xa49   :  { %v1197_v7 = vpop.permute.xlu2 %1196 }
 0xa51   :  { %v1419_v12 = vpop.permute.xlu2 %1418 }
 0xa59   :  { %v1531_v16 = vpop.permute.xlu2 %1530 }
 0xa61   :  { %v1303_v6 = vpop.permute.xlu0 %1302  ;;  %v1415_v22 = vpop.permute.xlu2 %1414 }
 0xa69   :  { %v1305_v9 = vpop.permute.xlu1 %1304 }
 0xa6a   :  { %v1199_v11 = vpop.permute.xlu0 %1198  ;;  %4901 = vmatpush.xpose.msk.msra.mxu0 %vm463_vm5, %v1305_v9 }
 0xa6b   :  { %4895 = vmatpush.xpose.msk.msrb.mxu1 %vm463_vm5, %v1199_v11 }
 0xa6e   :  { %4902 = vmatpush.xpose.msk.msra.mxu0 %vm463_vm5, %v1303_v6 }
 0xa6f   :  { %4896 = vmatpush.xpose.msk.msrb.mxu1 %vm463_vm5, %v1197_v7 }
 0xa71   :  { %v1299_v21 = vpop.permute.xlu1 %1298 }
 0xa72   :  { %v1417_v13 = vpop.permute.xlu0 %1416  ;;  %4897 = vmatmul.msk.f32.vlgmr.msrb.gmra.mxu1 %vm463_vm5, %v6543_v4  ;;  %4903 = vmatmul.msk.f32.vlgmr.msra.gmra.mxu0 %vm463_vm5, %v1299_v21 }
 0xa73   :  { %4907 = vmatpush.xpose.msk.msra.mxu1 %vm463_vm5, %v1419_v12 }
 0xa77   :  { %4908 = vmatpush.xpose.msk.msra.mxu1 %vm463_vm5, %v1417_v13 }
 0xa79   :  { %v1533_v14 = vpop.permute.xlu1 %1532 }
 0xa7a   :  { %v1301_v15 = vpop.permute.xlu0 %1300  ;;  %4898 = vmatmul.msk.f32.gmra.mxu1 %vm463_vm5, %v6550_v5  ;;  %4913 = vmatpush.xpose.msk.msrb.mxu0 %vm463_vm5, %v1533_v14 }
 0xa7b   :  { %4904 = vmatmul.msk.f32.gmra.mxu0 %vm463_vm5, %v1301_v15 }
 0xa7e   :  { %4914 = vmatpush.xpose.msk.msrb.mxu0 %vm463_vm5, %v1531_v16 }
 0xa81   :  { %v1413_v17 = vpop.permute.xlu1 %1412 }
 0xa82   :  { %v1527_v19 = vpop.permute.xlu0 %1526  ;;  %4909 = vmatmul.msk.f32.vlgmr.msra.gmra.mxu1 %vm463_vm5, %v1413_v17 }
 0xa83   :  { %4915 = vmatmul.msk.f32.vlgmr.msrb.gmra.mxu0 %vm463_vm5, %v1527_v19 }
 0xa89   :  { %v1529_v23 = vpop.permute.xlu1 %1528 }
 0xa8a   :  { %4910 = vmatmul.msk.f32.gmra.mxu1 %vm463_vm5, %v1415_v22 }
 0xa8b   :  { %4916 = vmatmul.msk.f32.gmra.mxu0 %vm463_vm5, %v1529_v23 }
 0xaef   :  { %v1225_v24 = vpop.f32.mrf.mxu1  ;;  %v1331_v26 = vpop.f32.mrf.mxu0 }
 0xaf0   :  { %v1231_v25 = vmul.f32 0.35355338, %v1225_v24  ;;  %v1337_v27 = vmul.f32 0.35355338, %v1331_v26 }
 0xaf2   :  { %v1233_v28 = vadd.f32 %v1231_v25, %v6400_v44  ;;  %v1339_v29 = vadd.f32 %v1337_v27, %v6400_v44 }
 0xaf4   :  { %v1235_v30 = vsel %vm379_vm0, %v1233_v28, -inf  ;;  %v1341_v31 = vsel %vm379_vm0, %v1339_v29, -inf }
 0xaf5   :  { %1236 = vmax.xlane.f32.xlu0 %v1235_v30  ;;  %1342 = vmax.xlane.f32.xlu2 %v1341_v31  ;;  %v1932_v31 = vld [vmem:[%s7473_s11 + $0x8] sm:$0xff] }
 0xaf7   :  { %v1228_v20 = vpop.f32.mrf.mxu1 }
 0xaf8   :  { %v1232_v32 = vmul.f32 0.35355338, %v1228_v20  ;;  %v1334_v33 = vpop.f32.mrf.mxu0 }
 0xaf9   :  { %v1338_v34 = vmul.f32 0.35355338, %v1334_v33 }
 0xafa   :  { %v1234_v35 = vadd.f32 %v1232_v32, %v6407_v55 }
 0xafb   :  { %v1340_v36 = vadd.f32 %v1338_v34, %v6407_v55 }
 0xafc   :  { %v1238_v37 = vsel %vm379_vm0, %v1234_v35, -inf }
 0xafd   :  { %1239 = vmax.xlane.f32.xlu1 %v1238_v37  ;;  %v1344_v38 = vsel %vm379_vm0, %v1340_v36, -inf }
 0xafe   :  { %1345 = vmax.xlane.f32.xlu2 %v1344_v38 }
 0xaff   :  { %v1445_v39 = vpop.f32.mrf.mxu1 }
 0xb00   :  { %v1451_v40 = vmul.f32 0.35355338, %v1445_v39  ;;  %v1559_v41 = vpop.f32.mrf.mxu0 }
 0xb01   :  { %v1565_v42 = vmul.f32 0.35355338, %v1559_v41  ;;  %v1931_v41 = vld [vmem:[%s7473_s11] sm:$0xff] }
 0xb02   :  { %v1453_v43 = vadd.f32 %v1451_v40, %v6400_v44 }
 0xb03   :  { %v6604_v45 = vadd.f32 %v1565_v42, %v6400_v44 }
 0xb04   :  { %v1455_v46 = vsel %vm379_vm0, %v1453_v43, -inf }
 0xb05   :  { %1456 = vmax.xlane.f32.xlu0 %v1455_v46  ;;  %v1569_v47 = vsel %vm379_vm0, %v6604_v45, -inf }
 0xb06   :  { %1570 = vmax.xlane.f32.xlu1 %v1569_v47 }
 0xb07   :  { %v1448_v48 = vpop.f32.mrf.mxu1 }
 0xb08   :  { %v1452_v49 = vmul.f32 0.35355338, %v1448_v48  ;;  %v1562_v50 = vpop.f32.mrf.mxu0 }
 0xb09   :  { %v1566_v51 = vmul.f32 0.35355338, %v1562_v50 }
 0xb0a   :  { %v1454_v52 = vadd.f32 %v1452_v49, %v6407_v55 }
 0xb0b   :  { %v1568_v53 = vadd.f32 %v1566_v51, %v6407_v55 }
 0xb0c   :  { %v1458_v54 = vsel %vm379_vm0, %v1454_v52, -inf }
 0xb0d   :  { %v1572_v44 = vsel %vm379_vm0, %v1568_v53, -inf  ;;  %1459 = vmax.xlane.f32.xlu2 %v1458_v54 }
 0xb0e   :  { %1573 = vmax.xlane.f32.xlu0 %v1572_v44 }
 0xb22   :  { %5197 = vrot.lane.b32.xlu0 %v6615_v56, %s6002_s23 }
 0xb68   :  { %v1237_v58 = vpop.xlane.xlu0 %1236  ;;  %v1343_v59 = vpop.xlane.xlu2 %1342 }
 0xb69   :  { %v1241_v60 = vsub.f32 %v1233_v28, %v1237_v58  ;;  %v1347_v61 = vsub.f32 %v1339_v29, %v1343_v59 }
 0xb6b   :  { %v1243_v63 = vmul.f32 1.442695, %v1241_v60  ;;  %v1349_v0 = vmul.f32 1.442695, %v1347_v61 }
 0xb6d   :  { %5386 = vpow2.f32 %v1243_v63 }
 0xb6e   :  { %5388 = vpow2.f32 %v1349_v0 }
 0xb70   :  { %v1240_v55 = vpop.xlane.xlu1 %1239 }
 0xb71   :  { %v1242_v2 = vsub.f32 %v1234_v35, %v1240_v55  ;;  %v1346_v3 = vpop.xlane.xlu2 %1345 }
 0xb72   :  { %v1348_v7 = vsub.f32 %v1340_v36, %v1346_v3 }
 0xb73   :  { %v5387_v1 = vpop.eup %5386  ;;  %v1245_v6 = vmul.f32 1.442695, %v1242_v2 }
 0xb74   :  { %v6619_v9 = vpop.eup %5388  ;;  %v1247_v4 = vsel %vm379_vm0, %v5387_v1, 0.0  ;;  %v1351_v11 = vmul.f32 1.442695, %v1348_v7 }
 0xb75   :  { %5390 = vpow2.f32 %v1245_v6  ;;  %1248 = vadd.xlane.f32.xlu1 %v1247_v4  ;;  %v1353_v5 = vsel %vm379_vm0, %v6619_v9, 0.0 }
 0xb76   :  { %1354 = vadd.xlane.f32.xlu2 %v1353_v5  ;;  %5392 = vpow2.f32 %v1351_v11 }
 0xb78   :  { %v1457_v12 = vpop.xlane.xlu0 %1456 }
 0xb79   :  { %v1461_v21 = vsub.f32 %v1453_v43, %v1457_v12  ;;  %v1571_v35 = vpop.xlane.xlu1 %1570 }
 0xb7a   :  { %v1575_v36 = vsub.f32 %v6604_v45, %v1571_v35  ;;  %v4891_v35 = vld [vmem:[%s7469_s0 + $0x20] sm:$0xff] }
 0xb7b   :  { %v6624_v13 = vpop.eup %5390  ;;  %v1463_v14 = vmul.f32 1.442695, %v1461_v21  ;;  %v1946_v21 = vld [vmem:[%s6030_s13 + $0x8] sm:$0xff] }
 0xb7c   :  { %v1250_v15 = vsel %vm379_vm0, %v6624_v13, 0.0  ;;  %v5393_v16 = vpop.eup %5392  ;;  %v1577_v38 = vmul.f32 1.442695, %v1575_v36 }
 0xb7d   :  { %5394 = vpow2.f32 %v1463_v14  ;;  %1251 = vadd.xlane.f32.xlu1 %v1250_v15  ;;  %v1356_v24 = vsel %vm379_vm0, %v5393_v16, 0.0 }
 0xb80   :  { %v1460_v20 = vpop.xlane.xlu2 %1459 }
 0xb81   :  { %v1574_v17 = vpop.xlane.xlu0 %1573  ;;  %v1462_v32 = vsub.f32 %v1454_v52, %v1460_v20 }
 0xb82   :  { %v1576_v19 = vsub.f32 %v1568_v53, %v1574_v17 }
 0xb83   :  { %v6628_v22 = vpop.eup %5394  ;;  %v1465_v33 = vmul.f32 1.442695, %v1462_v32  ;;  %v4894_v32 = vld [vmem:[%s7469_s0 + $0x38] sm:$0xff] }
 0xb84   :  { %v1579_v23 = vmul.f32 1.442695, %v1576_v19  ;;  %v1467_v26 = vsel %vm379_vm0, %v6628_v22, 0.0  ;;  %1659 = vmatpush.msrb.mxu1 %v4894_v32 }
 0xb85   :  { %1357 = vadd.xlane.f32.xlu1 %v1356_v24  ;;  %1468 = vadd.xlane.f32.xlu0 %v1467_v26 }
 0xb86   :  { %5396 = vpow2.f32 %v1579_v23 }
 0xb87   :  { %5398 = vpow2.f32 %v1465_v33  ;;  %v4893_v33 = vld [vmem:[%s7469_s0 + $0x30] sm:$0xff] }
 0xb88   :  { %5400 = vpow2.f32 %v1577_v38  ;;  %1660 = vmatpush.msrb.mxu1 %v4893_v33 }
 0xb8c   :  { %v6633_v25 = vpop.eup %5396 }
 0xb8d   :  { %v1584_v27 = vsel %vm379_vm0, %v6633_v25, 0.0  ;;  %v5399_v34 = vpop.eup %5398 }
 0xb8e   :  { %1585 = vadd.xlane.f32.xlu0 %v1584_v27  ;;  %5202 = vrot.lane.b32.xlu2 %v6615_v56, %s6004_s2  ;;  %v1470_v37 = vsel %vm379_vm0, %v5399_v34, 0.0  ;;  %v5401_v39 = vpop.eup %5400 }
 0xb8f   :  { %v1581_v40 = vsel %vm379_vm0, %v5401_v39, 0.0 }
 0xb94   :  { %v5198_v28 = vpop.permute.xlu0 %5197 }
 0xb95   :  { %v5199_v29 = vunpack.i.l.bf16 %v5198_v28  ;;  %v5200_v30 = vunpack.i.h.bf16 %v5198_v28 }
 0xb97   :  { %1283 = vmatpush.msrb.mxu2 %v5199_v29 }
 0xb99   :  { %1284 = vmatpush.msrb.mxu2 %v5200_v30 }
 0xb9e   :  { %5207 = vrot.lane.b32.xlu1 %v6615_v56, %s6003_s27 }
 0xba2   :  { %1937 = vperm.xlu0 %5175, %v1932_v31  }
 0xbb7   :  { %1471 = vadd.xlane.f32.xlu2 %v1470_v37 }
 0xbc8   :  { %1582 = vadd.xlane.f32.xlu1 %v1581_v40 }
 0xbe1   :  { %5212 = vrot.lane.b32.xlu1 %v6615_v56, %s6005_s12 }
 0xbe8   :  { %v1249_v42 = vpop.xlane.xlu1 %1248 }
 0xbe9   :  { %5402 = vrcp.f32 %v1249_v42  ;;  %v1355_v43 = vpop.xlane.xlu2 %1354  ;;  %1934 = vperm.xlu1 %5216, %v1931_v41  }
 0xbea   :  { %5404 = vrcp.f32 %v1355_v43 }
 0xbef   :  { %v5403_v46 = vpop.eup %5402 }
 0xbf0   :  { %v1255_v45 = vmul.f32 %v5403_v46, %v5387_v1  ;;  %v1252_v47 = vpop.xlane.xlu1 %1251  ;;  %v5405_v49 = vpop.eup %5404  ;;  %v1947_v46 = vld [vmem:[%s7475_s20] sm:$0xff] }
 0xbf1   :  { %5406 = vrcp.f32 %v1252_v47  ;;  %v5203_v48 = vpop.permute.xlu2 %5202  ;;  %v1361_v52 = vmul.f32 %v5405_v49, %v6619_v9 }
 0xbf2   :  { %v5204_v50 = vunpack.i.l.bf16 %v5203_v48  ;;  %4899 = vmatmul.msk.f32.vlgmr.msrb.gmra.mxu2 %vm379_vm0, %v1255_v45  ;;  %v5205_v51 = vunpack.i.h.bf16 %v5203_v48  ;;  %v1948_v48 = vld [vmem:[%s7475_s20 + $0x8] sm:$0xff] }
 0xbf4   :  { %1389 = vmatpush.msrb.mxu3 %v5204_v50 }
 0xbf6   :  { %1390 = vmatpush.msrb.mxu3 %v5205_v51  ;;  %v5306_v51 = vld [vmem:[#allocation4 + $0x1] ss:$0 sm:$0xff] }
 0xbf7   :  { %v5407_v53 = vpop.eup %5406  ;;  %4905 = vmatmul.msk.f32.vlgmr.msrb.gmra.mxu3 %vm379_vm0, %v1361_v52 }
 0xbf8   :  { %v1358_v54 = vpop.xlane.xlu1 %1357  ;;  %v1256_v44 = vmul.f32 %v5407_v53, %v6624_v13  ;;  %v1469_v59 = vpop.xlane.xlu0 %1468  ;;  %v1945_v13 = vld [vmem:[%s6030_s13] sm:$0xff]  ;;  %s7474_s13 = sld [smem:[#allocation46_spill]] }
 0xbf9   :  { %5408 = vrcp.f32 %v1358_v54 }
 0xbfa   :  { %4900 = vmatmul.msk.f32.gmra.mxu2 %vm379_vm0, %v1256_v44  ;;  %5410 = vrcp.f32 %v1469_v59 }
 0xbfe   :  { %v1981_v36 = vld [vmem:[%s7474_s13 + $0x18] sm:$0xff]  ;;  %v1980_v37 = vld [vmem:[%s7474_s13 + $0x10] sm:$0xff]  ;;  %v1979_v38 = vld [vmem:[%s7474_s13 + $0x8] sm:$0xff] }
 0xbff   :  { %v5409_v56 = vpop.eup %5408 }
 0xc00   :  { %v1362_v58 = vmul.f32 %v5409_v56, %v5393_v16  ;;  %v5411_v61 = vpop.eup %5410 }
 0xc01   :  { %v1475_v55 = vmul.f32 %v5411_v61, %v6628_v22  ;;  %v1586_v7 = vpop.xlane.xlu0 %1585  ;;  %v5307_v61 = vld [vmem:[#allocation12] ss:$0 sm:$0xff] }
 0xc02   :  { %4906 = vmatmul.msk.f32.gmra.mxu3 %vm379_vm0, %v1362_v58 }
 0xc10   :  { %v5208_v60 = vpop.permute.xlu1 %5207 }
 0xc11   :  { %v5209_v63 = vunpack.i.l.bf16 %v5208_v60  ;;  %v5210_v0 = vunpack.i.h.bf16 %v5208_v60 }
 0xc13   :  { %1503 = vmatpush.msra.mxu2 %v5209_v63 }
 0xc14   :  { %v1938_v19 = vpop.permute.xlu0 %1937 }
 0xc15   :  { %1504 = vmatpush.msra.mxu2 %v5210_v0  ;;  %vm1940_vm15 = vcmp.eq.s32.totalorder %v1938_v19, %v6326_v8 }
 0xc16   :  { %4911 = vmatmul.msk.f32.vlgmr.msra.gmra.mxu2 %vm379_vm0, %v1475_v55  ;;  %v4942_v22 = vsel %vm1940_vm15, 1.0, %v5994_v10 }
 0xc2a   :  { %v1472_v2 = vpop.xlane.xlu2 %1471 }
 0xc2b   :  { %5412 = vrcp.f32 %v1472_v2 }
 0xc31   :  { %v5413_v3 = vpop.eup %5412 }
 0xc32   :  { %v1476_v1 = vmul.f32 %v5413_v3, %v5399_v34  ;;  %v4892_v34 = vld [vmem:[%s7469_s0 + $0x28] sm:$0xff]  ;;  %v4926_v3 = vld [vmem:[%s7470_s28 + $0x38] sm:$0xff]  ;;  %s7482_s0 = sld [smem:[#allocation51_spill]] }
 0xc33   :  { %1661 = vmatpush.msrb.mxu1 %v4892_v34  ;;  %1758 = vmatpush.msrb.mxu2 %v4926_v3 }
 0xc34   :  { %4912 = vmatmul.msk.f32.gmra.mxu2 %vm379_vm0, %v1476_v1  ;;  %v4925_v1 = vld [vmem:[%s7470_s28 + $0x30] sm:$0xff] }
 0xc35   :  { %1662 = vmatpush.msrb.mxu1 %v4891_v35  ;;  %1759 = vmatpush.msrb.mxu2 %v4925_v1 }
 0xc37   :  { %2004 = vmatpush.msra.mxu1 %v1981_v36 }
 0xc39   :  { %2005 = vmatpush.msra.mxu1 %v1980_v37  ;;  %v5308_v37 = vld [vmem:[%s7472_s4 + $0x4] ss:$0 sm:$0xff] }
 0xc3b   :  { %v1583_v6 = vpop.xlane.xlu1 %1582  ;;  %2006 = vmatpush.msra.mxu1 %v1979_v38 }
 0xc3c   :  { %5414 = vrcp.f32 %v1583_v6  ;;  %v4924_v6 = vld [vmem:[%s7470_s28 + $0x28] sm:$0xff] }
 0xc3d   :  { %5416 = vrcp.f32 %v1586_v7  ;;  %v4923_v7 = vld [vmem:[%s7470_s28 + $0x20] sm:$0xff]  ;;  %1760 = vmatpush.msrb.mxu2 %v4924_v6  ;;  %v4936_v6 = vld [vmem:[%s7471_s30 + $0x78] sm:$0xff]  ;;  %s7483_s28 = sld [smem:[#allocation52_spill]] }
 0xc3e   :  { %1799 = vmatpush.msra.mxu0 %v4936_v6 }
 0xc3f   :  { %1761 = vmatpush.msrb.mxu2 %v4923_v7  ;;  %v4935_v7 = vld [vmem:[%s7471_s30 + $0x70] sm:$0xff] }
 0xc40   :  { %1800 = vmatpush.msra.mxu0 %v4935_v7 }
 0xc42   :  { %v5415_v4 = vpop.eup %5414 }
 0xc43   :  { %v1589_v12 = vmul.f32 %v5415_v4, %v5401_v39  ;;  %v5417_v14 = vpop.eup %5416  ;;  %v1978_v39 = vld [vmem:[%s7474_s13] sm:$0xff] }
 0xc44   :  { %v1590_v15 = vmul.f32 %v5417_v14, %v6633_v25  ;;  %2007 = vmatpush.msra.mxu1 %v1978_v39 }
 0xc53   :  { %v5213_v9 = vpop.permute.xlu1 %5212 }
 0xc54   :  { %v5214_v5 = vunpack.i.l.bf16 %v5213_v9  ;;  %v5215_v11 = vunpack.i.h.bf16 %v5213_v9 }
 0xc56   :  { %1617 = vmatpush.msra.mxu3 %v5214_v5 }
 0xc58   :  { %1618 = vmatpush.msra.mxu3 %v5215_v11 }
 0xc59   :  { %4917 = vmatmul.msk.f32.vlgmr.msra.gmra.mxu3 %vm379_vm0, %v1589_v12 }
 0xc5a   :  { %1969 = vmatpush.msrb.mxu3 %v1946_v21 }
 0xc5b   :  { %v1935_v16 = vpop.permute.xlu1 %1934 }
 0xc5c   :  { %1970 = vmatpush.msrb.mxu3 %v1945_v13  ;;  %vm1939_vm14 = vcmp.eq.s32.totalorder %v1935_v16, %v6326_v8 }
 0xc5d   :  { %v4941_v17 = vsel %vm1939_vm14, 1.0, %v5994_v10 }
 0xc61   :  { %4918 = vmatmul.msk.f32.gmra.mxu3 %vm379_vm0, %v1590_v15 }
 0xc69   :  { %4943 = vmatmul.msk.f32.vlgmr.msrb.gmra.mxu3 %vm379_vm0, %v4941_v17 }
 0xc71   :  { %4944 = vmatmul.msk.f32.gmra.mxu3 %vm379_vm0, %v4942_v22 }
 0xc75   :  { %v1286_v23 = vpop.f32.mrf.mxu2 }
 0xc76   :  { %1292 = vst.msk [vmem:[#allocation3] sm:$0xff] %vm463_vm5, %v1286_v23 }
 0xc7a   :  { %v1392_v24 = vpop.f32.mrf.mxu3 }
 0xc7b   :  { %1400 = vrot.lane.b32.xlu1 %v1392_v24, %s6006_s24 }
 0xc7d   :  { %v1289_v26 = vpop.f32.mrf.mxu2 }
 0xc7e   :  { %1293 = vst.msk [vmem:[#allocation3 + $0x8] sm:$0xff] %vm463_vm5, %v1289_v26 }
 0xc85   :  { %v1395_v25 = vpop.f32.mrf.mxu3 }
 0xc86   :  { %1402 = vrot.lane.b32.xlu1 %v1395_v25, %s6006_s24 }
 0xc99   :  { %v1506_v27 = vpop.f32.mrf.mxu2 }
 0xc9a   :  { %1514 = vrot.lane.b32.xlu2 %v1506_v27, %s5979_s15 }
 0xcb7   :  { %v1509_v8 = vpop.f32.mrf.mxu2 }
 0xcb8   :  { %1516 = vrot.lane.b32.xlu0 %v1509_v8, %s5979_s15 }
 0xcdc   :  { %v1620_v10 = vpop.f32.mrf.mxu3 }
 0xcdd   :  { %1628 = vrot.lane.b32.xlu1 %v1620_v10, %s6007_s10 }
 0xce4   :  { %v1623_v28 = vpop.f32.mrf.mxu3 }
 0xce5   :  { %1630 = vrot.lane.b32.xlu1 %v1623_v28, %s6007_s10 }
 0xcec   :  { %v1972_v45 = vpop.f32.mrf.mxu3 }
 0xced   :  { %v1401_v29 = vpop.permute.xlu1 %1400  ;;  %v6693_v47 = vadd.f32 %v1972_v45, %v1947_v46 }
 0xcee   :  { %1406 = vst.msk [vmem:[#allocation3] sm:$0xff] %vm670_vm6, %v1401_v29 }
 0xcf4   :  { %v1515_v30 = vpop.permute.xlu2 %1514  ;;  %v1975_v49 = vpop.f32.mrf.mxu3 }
 0xcf5   :  { %1520 = vst.msk [vmem:[#allocation3] sm:$0xff] %vm785_vm7, %v1515_v30  ;;  %v6698_v50 = vadd.f32 %v1975_v49, %v1948_v48 }
 0xcf8   :  { %v1403_v31 = vpop.permute.xlu1 %1402 }
 0xcf9   :  { %1407 = vst.msk [vmem:[#allocation3 + $0x8] sm:$0xff] %vm670_vm6, %v1403_v31 }
 0xd2a   :  { %v1517_v20 = vpop.permute.xlu0 %1516 }
 0xd2b   :  { %1521 = vst.msk [vmem:[#allocation3 + $0x8] sm:$0xff] %vm785_vm7, %v1517_v20 }
 0xd4f   :  { %v1629_v40 = vpop.permute.xlu1 %1628 }
 0xd50   :  { %1634 = vst.msk [vmem:[#allocation3] sm:$0xff] %vm900_vm8, %v1629_v40 }
 0xd57   :  { %v1631_v41 = vpop.permute.xlu1 %1630  ;;  %v1636_v42 = vld [vmem:[#allocation3] sm:$0xff] }
 0xd58   :  { %1635 = vst.msk [vmem:[#allocation3 + $0x8] sm:$0xff] %vm900_vm8, %v1631_v41  ;;  %4919 = vmatmul.msk.f32.vlgmr.msrb.gmra.mxu1 %vm417_vm3, %v1636_v42  ;;  %v5309_v41 = vld [vmem:[%s7472_s4 + $0x5] ss:$0 sm:$0xff] }
 0xd5f   :  { %v1637_v43 = vld [vmem:[#allocation3 + $0x8] sm:$0xff] }
 0xd60   :  { %4920 = vmatmul.msk.f32.gmra.mxu1 %vm417_vm3, %v1637_v43 }
 0xd68   :  { %4945 = vmatmul.msk.f32.vlgmr.msra.gmra.mxu1 %vm417_vm3, %v6693_v47 }
 0xd70   :  { %4946 = vmatmul.msk.f32.gmra.mxu1 %vm417_vm3, %v6698_v50 }
 0xdd5   :  { %v1664_v52 = vpop.f32.mrf.mxu1 }
 0xdd6   :  { %v1665_v53 = vadd.f32 %v5306_v51, %v1664_v52 }
 0xdd8   :  { %v1670_v54 = vadd.f32 %v1665_v53, %v6533_v57 }
 0xdda   :  { %v1676_v44 = vsel %vm417_vm3, %v1670_v54, 0.0 }
 0xddb   :  { %1677 = vadd.xlane.f32.xlu2 %v1676_v44 }
 0xddd   :  { %v1667_v56 = vpop.f32.mrf.mxu1 }
 0xdde   :  { %v1668_v58 = vadd.f32 %v5306_v51, %v1667_v56 }
 0xde0   :  { %v1671_v59 = vadd.f32 %v1668_v58, %v6537_v62 }
 0xde2   :  { %v1679_v60 = vsel %vm417_vm3, %v1671_v59, 0.0 }
 0xde3   :  { %1680 = vadd.xlane.f32.xlu0 %v1679_v60 }
 0xde5   :  { %v2009_v63 = vpop.f32.mrf.mxu1 }
 0xde6   :  { %v2010_v0 = vadd.f32 %v5307_v61, %v2009_v63 }
 0xde8   :  { %2015 = vst.msk [vmem:[#allocation2] sm:$0xff] %vm447_vm4, %v2010_v0  ;;  %v6777_v0 = vld [vmem:[%s7476_s19] sm:$0xff] }
 0xded   :  { %v2012_v55 = vpop.f32.mrf.mxu1 }
 0xdee   :  { %v2013_v57 = vadd.f32 %v5307_v61, %v2012_v55 }
 0xdef   :  { %v6714_v62 = vld [vmem:[#allocation2] sm:$0xff] }
 0xdf0   :  { %2016 = vst.msk [vmem:[#allocation2 + $0x8] sm:$0xff] %vm447_vm4, %v2013_v57 }
 0xdf7   :  { %v6708_v2 = vld [vmem:[#allocation2 + $0x8] sm:$0xff] }
 0xdf8   :  { %2134 = vrot.lane.b32.xlu2 %v6708_v2, %s5997_s9  ;;  %2028 = vrot.lane.b32.xlu0 %v6708_v2, %s5998_s29 }
 0xe00   :  { %2132 = vrot.lane.b32.xlu0 %v6714_v62, %s5997_s9 }
 0xe08   :  { %2128 = vrot.lane.b32.xlu0 %v6714_v62, %s5995_s18 }
 0xe10   :  { %2362 = vrot.lane.b32.xlu0 %v6708_v2, %s5996_s22 }
 0xe18   :  { %2242 = vrot.lane.b32.xlu0 %v6714_v62, %s5999_s6 }
 0xe20   :  { %2358 = vrot.lane.b32.xlu0 %v6708_v2, %s6000_s21 }
 0xe4e   :  { %v1678_v9 = vpop.xlane.xlu2 %1677 }
 0xe4f   :  { %v1682_v4 = vmul.f32 %v1678_v9, %v6493_v18  ;;  %v4934_v9 = vld [vmem:[%s7471_s30 + $0x68] sm:$0xff] }
 0xe50   :  { %1801 = vmatpush.msra.mxu0 %v4934_v9 }
 0xe51   :  { %v1684_v5 = vsub.f32 %v1670_v54, %v1682_v4  ;;  %v4933_v4 = vld [vmem:[%s7471_s30 + $0x60] sm:$0xff] }
 0xe52   :  { %1802 = vmatpush.msra.mxu0 %v4933_v4 }
 0xe53   :  { %v1686_v11 = vmul.f32 %v1684_v5, %v1684_v5 }
 0xe55   :  { %v1688_v12 = vsel %vm417_vm3, %v1686_v11, 0.0  ;;  %v4931_v11 = vld [vmem:[%s7471_s30 + $0x50] sm:$0xff] }
 0xe56   :  { %1689 = vadd.xlane.f32.xlu1 %v1688_v12  ;;  %v1681_v21 = vpop.xlane.xlu0 %1680  ;;  %v2135_v13 = vpop.permute.xlu2 %2134  ;;  %v4930_v12 = vld [vmem:[%s7471_s30 + $0x48] sm:$0xff] }
 0xe57   :  { %v1683_v14 = vmul.f32 %v1681_v21, %v6493_v18  ;;  %4953 = vmatpush.xpose.msk.msra.mxu3 %vm463_vm5, %v2135_v13  ;;  %v4929_v21 = vld [vmem:[%s7471_s30 + $0x40] sm:$0xff] }
 0xe59   :  { %v1685_v15 = vsub.f32 %v1671_v59, %v1683_v14  ;;  %v356_v14 = vld [vmem:[%s7476_s19 + $0x8] sm:$0xff] }
 0xe5b   :  { %v1687_v16 = vmul.f32 %v1685_v15, %v1685_v15 }
 0xe5d   :  { %v1691_v17 = vsel %vm417_vm3, %v1687_v16, 0.0 }
 0xe5e   :  { %1692 = vadd.xlane.f32.xlu2 %v1691_v17 }
 0xe6a   :  { %v2029_v19 = vpop.permute.xlu0 %2028 }
 0xe6b   :  { %4947 = vmatpush.xpose.msk.msra.mxu2 %vm463_vm5, %v2029_v19  ;;  %v5310_v19 = vld [vmem:[#allocation7 + $0x1] ss:$0 sm:$0xff] }
 0xe6f   :  { %2026 = vrot.lane.b32.xlu1 %v6714_v62, %s5998_s29 }
 0xe72   :  { %v2133_v22 = vpop.permute.xlu0 %2132 }
 0xe73   :  { %4954 = vmatpush.xpose.msk.msra.mxu3 %vm463_vm5, %v2133_v22 }
 0xe76   :  { %2130 = vrot.lane.b32.xlu2 %v6708_v2, %s5995_s18 }
 0xe77   :  { %2248 = vrot.lane.b32.xlu1 %v6708_v2, %s6001_s26 }
 0xe7a   :  { %v2129_v23 = vpop.permute.xlu0 %2128 }
 0xe7b   :  { %4955 = vmatmul.msk.f32.vlgmr.msra.gmra.mxu3 %vm463_vm5, %v2129_v23 }
 0xe7e   :  { %2246 = vrot.lane.b32.xlu2 %v6714_v62, %s6001_s26 }
 0xe7f   :  { %2360 = vrot.lane.b32.xlu1 %v6714_v62, %s5996_s22 }
 0xe82   :  { %v2363_v24 = vpop.permute.xlu0 %2362 }
 0xe83   :  { %4965 = vmatpush.xpose.msk.msrb.mxu3 %vm463_vm5, %v2363_v24 }
 0xe86   :  { %2356 = vrot.lane.b32.xlu2 %v6714_v62, %s6000_s21 }
 0xe87   :  { %2244 = vrot.lane.b32.xlu1 %v6708_v2, %s5999_s6 }
 0xe8a   :  { %v2243_v59 = vpop.permute.xlu0 %2242 }
 0xe92   :  { %v2359_v61 = vpop.permute.xlu0 %2358 }
 0xec9   :  { %v1690_v26 = vpop.xlane.xlu1 %1689 }
 0xeca   :  { %v1694_v25 = vmul.f32 %v1690_v26, %v6493_v18 }
 0xecc   :  { %v1696_v27 = vadd.f32 1e-05, %v1694_v25 }
 0xece   :  { %5418 = vrsqrt.f32 %v1696_v27  ;;  %vm1704_vm9 = vweird.f32 %v1696_v27 }
 0xed1   :  { %v1693_v8 = vpop.xlane.xlu2 %1692 }
 0xed2   :  { %v1695_v10 = vmul.f32 %v1693_v8, %v6493_v18 }
 0xed4   :  { %v5419_v28 = vpop.eup %5418  ;;  %v1697_v29 = vadd.f32 1e-05, %v1695_v10 }
 0xed5   :  { %v1699_v30 = vmul.f32 %v5419_v28, %v1696_v27  ;;  %vm1705_vm2 = vweird.f32 %v5419_v28 }
 0xed6   :  { %5420 = vrsqrt.f32 %v1697_v29  ;;  %vm1706_vm10 = vmor %vm1704_vm9, %vm1705_vm2  ;;  %vm1714_vm12 = vweird.f32 %v1697_v29 }
 0xed7   :  { %v1700_v31 = vmul.f32 %v5419_v28, %v1699_v30 }
 0xed9   :  { %v1701_v20 = vmul.f32 0.5, %v1700_v31  ;;  %v2131_v32 = vpop.permute.xlu2 %2130 }
 0xeda   :  { %4956 = vmatmul.msk.f32.gmra.mxu3 %vm463_vm5, %v2131_v32 }
 0xedb   :  { %v1702_v33 = vsub.f32 1.5, %v1701_v20 }
 0xedc   :  { %v5421_v34 = vpop.eup %5420 }
 0xedd   :  { %v1703_v35 = vmul.f32 %v5419_v28, %v1702_v33  ;;  %v1709_v36 = vmul.f32 %v5421_v34, %v1697_v29  ;;  %vm1715_vm11 = vweird.f32 %v5421_v34 }
 0xede   :  { %vm1716_vm13 = vmor %vm1714_vm12, %vm1715_vm11 }
 0xedf   :  { %v1707_v38 = vsel %vm1706_vm10, %v5419_v28, %v1703_v35  ;;  %v1710_v39 = vmul.f32 %v5421_v34, %v1709_v36 }
 0xee0   :  { %v1718_v40 = vmul.f32 %v1707_v38, %v1684_v5  ;;  %v4932_v5 = vld [vmem:[%s7471_s30 + $0x58] sm:$0xff] }
 0xee1   :  { %v1711_v42 = vmul.f32 0.5, %v1710_v39  ;;  %v2027_v43 = vpop.permute.xlu1 %2026  ;;  %v2247_v54 = vpop.permute.xlu2 %2246  ;;  %1803 = vmatpush.msra.mxu0 %v4932_v5 }
 0xee2   :  { %v1723_v46 = vmul.f32 %v5308_v37, %v1718_v40  ;;  %4948 = vmatpush.xpose.msk.msra.mxu2 %vm463_vm5, %v2027_v43 }
 0xee3   :  { %v1712_v45 = vsub.f32 1.5, %v1711_v42  ;;  %1804 = vmatpush.msra.mxu0 %v4931_v11 }
 0xee4   :  { %v6759_v48 = vadd.f32 %v5309_v41, %v1723_v46 }
 0xee5   :  { %v1713_v49 = vmul.f32 %v5421_v34, %v1712_v45  ;;  %1805 = vmatpush.msra.mxu0 %v4930_v12 }
 0xee6   :  { %4927 = vmatmul.msk.f32.vlgmr.msrb.gmra.mxu2 %vm417_vm3, %v6759_v48 }
 0xee7   :  { %v1717_v51 = vsel %vm1716_vm13, %v5421_v34, %v1713_v49  ;;  %1806 = vmatpush.msra.mxu0 %v4929_v21 }
 0xee8   :  { %v1719_v52 = vmul.f32 %v1717_v51, %v1685_v15 }
 0xee9   :  { %v2249_v53 = vpop.permute.xlu1 %2248  ;;  %v2357_v60 = vpop.permute.xlu2 %2356 }
 0xeea   :  { %4959 = vmatpush.xpose.msk.msrb.mxu2 %vm463_vm5, %v2249_v53  ;;  %v1724_v44 = vmul.f32 %v5308_v37, %v1719_v52 }
 0xeec   :  { %v6764_v56 = vadd.f32 %v5309_v41, %v1724_v44 }
 0xeee   :  { %4928 = vmatmul.msk.f32.gmra.mxu2 %vm417_vm3, %v6764_v56 }
 0xeef   :  { %4960 = vmatpush.xpose.msk.msrb.mxu2 %vm463_vm5, %v2247_v54 }
 0xef1   :  { %v2361_v58 = vpop.permute.xlu1 %2360 }
 0xef2   :  { %4966 = vmatpush.xpose.msk.msrb.mxu3 %vm463_vm5, %v2361_v58 }
 0xef5   :  { %4967 = vmatmul.msk.f32.vlgmr.msrb.gmra.mxu3 %vm463_vm5, %v2357_v60  ;;  %v5217_v60 = vpack.i.bf16 %v6714_v62, %v6708_v2 }
 0xef6   :  { %4949 = vmatmul.msk.f32.vlgmr.msra.gmra.mxu2 %vm463_vm5, %v6714_v62 }
 0xef9   :  { %v2245_v1 = vpop.permute.xlu1 %2244 }
 0xefd   :  { %4968 = vmatmul.msk.f32.gmra.mxu3 %vm463_vm5, %v2359_v61 }
 0xefe   :  { %4950 = vmatmul.msk.f32.gmra.mxu2 %vm463_vm5, %v6708_v2  ;;  %v2161_v63 = vpop.f32.mrf.mxu3 }
 0xeff   :  { %v2167_v55 = vmul.f32 0.35355338, %v2161_v63 }
 0xf01   :  { %v2169_v57 = vadd.f32 %v2167_v55, %v6777_v0 }
 0xf03   :  { %v2171_v3 = vsel %vm379_vm0, %v2169_v57, -inf }
 0xf04   :  { %2172 = vmax.xlane.f32.xlu1 %v2171_v3 }
 0xf06   :  { %4961 = vmatmul.msk.f32.vlgmr.msrb.gmra.mxu2 %vm463_vm5, %v2243_v59 }
 0xf0e   :  { %4962 = vmatmul.msk.f32.gmra.mxu2 %vm463_vm5, %v2245_v1 }
 0xf5d   :  { %v2164_v13 = vpop.f32.mrf.mxu3 }
 0xf5e   :  { %v2168_v15 = vmul.f32 0.35355338, %v2164_v13 }
 0xf60   :  { %v2170_v16 = vadd.f32 %v2168_v15, %v356_v14 }
 0xf62   :  { %v2174_v17 = vsel %vm379_vm0, %v2170_v16, -inf }
 0xf63   :  { %2175 = vmax.xlane.f32.xlu2 %v2174_v17 }
 0xf69   :  { %v1763_v22 = vpop.f32.mrf.mxu2 }
 0xf6a   :  { %v1764_v23 = vadd.f32 %v5310_v19, %v1763_v22 }
 0xf6c   :  { %v1769_v24 = vmax.f32 %v1764_v23, 0.0 }
 0xf6e   :  { %4937 = vmatmul.msk.f32.vlgmr.msra.gmra.mxu0 %vm1054_vm1, %v1769_v24 }
 0xf71   :  { %v1766_v26 = vpop.f32.mrf.mxu2 }
 0xf72   :  { %v1767_v25 = vadd.f32 %v5310_v19, %v1766_v26 }
 0xf74   :  { %v1770_v27 = vmax.f32 %v1767_v25, 0.0 }
 0xf76   :  { %4938 = vmatmul.msk.f32.gmra.mxu0 %vm1054_vm1, %v1770_v27 }
 0xf77   :  { %v2173_v8 = vpop.xlane.xlu1 %2172 }
 0xf78   :  { %v2177_v10 = vsub.f32 %v2169_v57, %v2173_v8  ;;  %v2389_v28 = vpop.f32.mrf.mxu3 }
 0xf79   :  { %v2395_v29 = vmul.f32 0.35355338, %v2389_v28  ;;  %v2055_v30 = vpop.f32.mrf.mxu2 }
 0xf7a   :  { %v2179_v31 = vmul.f32 1.442695, %v2177_v10  ;;  %v2061_v20 = vmul.f32 0.35355338, %v2055_v30 }
 0xf7b   :  { %v2397_v32 = vadd.f32 %v2395_v29, %v6777_v0 }
 0xf7c   :  { %v2063_v33 = vadd.f32 %v2061_v20, %v6777_v0  ;;  %5422 = vpow2.f32 %v2179_v31 }
 0xf7d   :  { %v2399_v34 = vsel %vm379_vm0, %v2397_v32, -inf }
 0xf7e   :  { %2400 = vmax.xlane.f32.xlu0 %v2399_v34  ;;  %v2065_v35 = vsel %vm379_vm0, %v2063_v33, -inf }
 0xf7f   :  { %2066 = vmax.xlane.f32.xlu2 %v2065_v35 }
 0xf80   :  { %v2392_v36 = vpop.f32.mrf.mxu3 }
 0xf81   :  { %v2396_v37 = vmul.f32 0.35355338, %v2392_v36  ;;  %v2058_v38 = vpop.f32.mrf.mxu2 }
 0xf82   :  { %v2062_v39 = vmul.f32 0.35355338, %v2058_v38  ;;  %v5423_v40 = vpop.eup %5422 }
 0xf83   :  { %v6799_v41 = vadd.f32 %v2396_v37, %v356_v14  ;;  %v2183_v45 = vsel %vm379_vm0, %v5423_v40, 0.0 }
 0xf84   :  { %v2064_v42 = vadd.f32 %v2062_v39, %v356_v14 }
 0xf85   :  { %v2402_v43 = vsel %vm379_vm0, %v6799_v41, -inf }
 0xf86   :  { %2403 = vmax.xlane.f32.xlu1 %v2402_v43  ;;  %v2068_v46 = vsel %vm379_vm0, %v2064_v42, -inf }
 0xf87   :  { %2069 = vmax.xlane.f32.xlu0 %v2068_v46  ;;  %2184 = vadd.xlane.f32.xlu2 %v2183_v45 }
 0xf89   :  { %v2275_v49 = vpop.f32.mrf.mxu2 }
 0xf8a   :  { %v2281_v51 = vmul.f32 0.35355338, %v2275_v49 }
 0xf8c   :  { %v2283_v52 = vadd.f32 %v2281_v51, %v6777_v0 }
 0xf8e   :  { %v2285_v53 = vsel %vm379_vm0, %v2283_v52, -inf }
 0xf8f   :  { %2286 = vmax.xlane.f32.xlu1 %v2285_v53 }
 0xf91   :  { %v2278_v54 = vpop.f32.mrf.mxu2 }
 0xf92   :  { %v2282_v44 = vmul.f32 0.35355338, %v2278_v54 }
 0xf94   :  { %v2284_v58 = vadd.f32 %v2282_v44, %v356_v14 }
 0xf96   :  { %v2288_v59 = vsel %vm379_vm0, %v2284_v58, -inf }
 0xf97   :  { %2289 = vmax.xlane.f32.xlu2 %v2288_v59 }
 0xfa8   :  { %5218 = vrot.lane.b32.xlu1 %v5217_v60, %s6002_s23 }
 0xfaf   :  { %5223 = vrot.lane.b32.xlu2 %v5217_v60, %s6004_s2 }
 0xfd6   :  { %v2176_v61 = vpop.xlane.xlu2 %2175 }
 0xfd7   :  { %v2178_v63 = vsub.f32 %v2170_v16, %v2176_v61 }
 0xfd9   :  { %v2181_v55 = vmul.f32 1.442695, %v2178_v63 }
 0xfdb   :  { %5424 = vpow2.f32 %v2181_v55 }
 0xfe1   :  { %v5425_v0 = vpop.eup %5424 }
 0xfe2   :  { %v2186_v57 = vsel %vm379_vm0, %v5425_v0, 0.0 }
 0xfe3   :  { %2187 = vadd.xlane.f32.xlu0 %v2186_v57 }
 0xff1   :  { %v2401_v3 = vpop.xlane.xlu0 %2400 }
 0xff2   :  { %v2405_v1 = vsub.f32 %v2397_v32, %v2401_v3  ;;  %v2067_v7 = vpop.xlane.xlu2 %2066 }
 0xff3   :  { %v2071_v21 = vsub.f32 %v2063_v33, %v2067_v7 }
 0xff4   :  { %v2407_v6 = vmul.f32 1.442695, %v2405_v1 }
 0xff5   :  { %v2073_v16 = vmul.f32 1.442695, %v2071_v21 }
 0xff6   :  { %5426 = vpow2.f32 %v2407_v6 }
 0xff7   :  { %5228 = vrot.lane.b32.xlu0 %v5217_v60, %s6003_s27 }
 0xff9   :  { %v2404_v4 = vpop.xlane.xlu1 %2403 }
 0xffa   :  { %v2185_v9 = vpop.xlane.xlu2 %2184  ;;  %v2070_v19 = vpop.xlane.xlu0 %2069  ;;  %v2406_v38 = vsub.f32 %v6799_v41, %v2404_v4 }
 0xffb   :  { %5428 = vrcp.f32 %v2185_v9  ;;  %v2072_v25 = vsub.f32 %v2064_v42, %v2070_v19  ;;  %v5311_v19 = vld [vmem:[#allocation9 + $0x1] ss:$0 sm:$0xff] }
 0xffc   :  { %v6814_v2 = vpop.eup %5426 }
 0xffd   :  { %v2411_v62 = vsel %vm379_vm0, %v6814_v2, 0.0  ;;  %v2075_v8 = vmul.f32 1.442695, %v2072_v25 }
 0xffe   :  { %2412 = vadd.xlane.f32.xlu1 %v2411_v62 }
0x1001   :  { %v5429_v15 = vpop.eup %5428 }
0x1002   :  { %v2287_v13 = vpop.xlane.xlu1 %2286  ;;  %v2191_v24 = vmul.f32 %v5429_v15, %v5423_v40  ;;  %v2409_v40 = vmul.f32 1.442695, %v2406_v38 }
0x1003   :  { %v2291_v30 = vsub.f32 %v2283_v52, %v2287_v13 }
0x1005   :  { %v2293_v20 = vmul.f32 1.442695, %v2291_v30  ;;  %v2017_v30 = vld [vmem:[%s7477_s7] sm:$0xff] }
0x100a   :  { %v2290_v5 = vpop.xlane.xlu2 %2289 }
0x100b   :  { %v2292_v11 = vsub.f32 %v2284_v58, %v2290_v5 }
0x100d   :  { %v2295_v12 = vmul.f32 1.442695, %v2292_v11  ;;  %v1808_v11 = vpop.f32.mrf.mxu0 }
0x100f   :  { %5430 = vpow2.f32 %v2295_v12 }
0x1010   :  { %5432 = vpow2.f32 %v2073_v16 }
0x1011   :  { %5434 = vpow2.f32 %v2075_v8 }
0x1012   :  { %v5224_v14 = vpop.permute.xlu2 %5223  ;;  %5436 = vpow2.f32 %v2293_v20 }
0x1013   :  { %v5225_v17 = vunpack.i.l.bf16 %v5224_v14  ;;  %v5226_v23 = vunpack.i.h.bf16 %v5224_v14 }
0x1015   :  { %v6818_v22 = vpop.eup %5430  ;;  %2219 = vmatpush.msrb.mxu1 %v5225_v17  ;;  %v1811_v12 = vpop.f32.mrf.mxu0 }
0x1016   :  { %v2300_v26 = vsel %vm379_vm0, %v6818_v22, 0.0  ;;  %v5433_v28 = vpop.eup %5432 }
0x1017   :  { %2301 = vadd.xlane.f32.xlu2 %v2300_v26  ;;  %2220 = vmatpush.msrb.mxu1 %v5226_v23  ;;  %v2077_v31 = vsel %vm379_vm0, %v5433_v28, 0.0  ;;  %v5435_v32 = vpop.eup %5434 }
0x1018   :  { %4957 = vmatmul.msk.f32.vlgmr.msrb.gmra.mxu1 %vm379_vm0, %v2191_v24  ;;  %v2080_v33 = vsel %vm379_vm0, %v5435_v32, 0.0  ;;  %v5437_v34 = vpop.eup %5436 }
0x1019   :  { %v2297_v35 = vsel %vm379_vm0, %v5437_v34, 0.0 }
0x101a   :  { %v5219_v27 = vpop.permute.xlu1 %5218 }
0x101b   :  { %v5220_v10 = vunpack.i.l.bf16 %v5219_v27  ;;  %v5221_v29 = vunpack.i.h.bf16 %v5219_v27  ;;  %v1812_v27 = vadd.f32 %v5311_v19, %v1811_v12 }
0x101d   :  { %2113 = vmatpush.msrb.mxu0 %v5220_v10  ;;  %v2020_v10 = vld [vmem:[%s7477_s7 + $0x18] sm:$0xff] }
0x101e   :  { %2489 = vmatpush.msra.mxu2 %v2020_v10 }
0x101f   :  { %2114 = vmatpush.msrb.mxu0 %v5221_v29  ;;  %v1815_v29 = vadd.f32 %v1812_v27, %v6764_v56 }
0x1021   :  { %2078 = vadd.xlane.f32.xlu0 %v2077_v31  ;;  %v1823_v31 = vsel %vm417_vm3, %v1815_v29, 0.0 }
0x1029   :  { %2081 = vadd.xlane.f32.xlu0 %v2080_v33 }
0x1031   :  { %2298 = vadd.xlane.f32.xlu0 %v2297_v35 }
0x1045   :  { %5233 = vrot.lane.b32.xlu0 %v5217_v60, %s6005_s12 }
0x1056   :  { %v2188_v36 = vpop.xlane.xlu0 %2187 }
0x1057   :  { %5438 = vrcp.f32 %v2188_v36 }
0x1058   :  { %5440 = vpow2.f32 %v2409_v40 }
0x105d   :  { %v5439_v37 = vpop.eup %5438 }
0x105e   :  { %v2192_v39 = vmul.f32 %v5439_v37, %v5425_v0  ;;  %v5441_v46 = vpop.eup %5440 }
0x105f   :  { %v2414_v49 = vsel %vm379_vm0, %v5441_v46, 0.0 }
0x1060   :  { %4958 = vmatmul.msk.f32.gmra.mxu1 %vm379_vm0, %v2192_v39 }
0x1069   :  { %v5229_v42 = vpop.permute.xlu0 %5228 }
0x106a   :  { %v5230_v43 = vunpack.i.l.bf16 %v5229_v42  ;;  %v5231_v45 = vunpack.i.h.bf16 %v5229_v42 }
0x106c   :  { %2333 = vmatpush.msra.mxu0 %v5230_v43 }
0x106e   :  { %2334 = vmatpush.msra.mxu0 %v5231_v45 }
0x106f   :  { %2415 = vadd.xlane.f32.xlu0 %v2414_v49 }
0x1071   :  { %v2413_v55 = vpop.xlane.xlu1 %2412 }
0x108a   :  { %v2302_v60 = vpop.xlane.xlu2 %2301 }
0x1094   :  { %v2079_v51 = vpop.xlane.xlu0 %2078 }
0x1095   :  { %5442 = vrcp.f32 %v2079_v51  ;;  %v2222_v52 = vpop.f32.mrf.mxu1 }
0x1096   :  { %2230 = vrot.lane.b32.xlu1 %v2222_v52, %s6006_s24 }
0x109b   :  { %v5443_v41 = vpop.eup %5442 }
0x109c   :  { %v2085_v53 = vmul.f32 %v5443_v41, %v5433_v28  ;;  %v2082_v54 = vpop.xlane.xlu0 %2081  ;;  %v2019_v28 = vld [vmem:[%s7477_s7 + $0x10] sm:$0xff] }
0x109d   :  { %5444 = vrcp.f32 %v2082_v54  ;;  %2490 = vmatpush.msra.mxu2 %v2019_v28 }
0x109e   :  { %4951 = vmatmul.msk.f32.vlgmr.msrb.gmra.mxu0 %vm379_vm0, %v2085_v53 }
0x10a3   :  { %v5445_v44 = vpop.eup %5444 }
0x10a4   :  { %v2299_v58 = vpop.xlane.xlu0 %2298  ;;  %v2086_v59 = vmul.f32 %v5445_v44, %v5435_v32 }
0x10a5   :  { %5446 = vrcp.f32 %v2299_v58 }
0x10a6   :  { %4952 = vmatmul.msk.f32.gmra.mxu0 %vm379_vm0, %v2086_v59  ;;  %5448 = vrcp.f32 %v2302_v60 }
0x10a7   :  { %5450 = vrcp.f32 %v2413_v55 }
0x10ab   :  { %v5447_v61 = vpop.eup %5446 }
0x10ac   :  { %v2305_v63 = vmul.f32 %v5447_v61, %v5437_v34  ;;  %v5449_v0 = vpop.eup %5448  ;;  %v5313_v61 = vld [vmem:[%s7472_s4 + $0x6] ss:$0 sm:$0xff] }
0x10ad   :  { %v2306_v57 = vmul.f32 %v5449_v0, %v6818_v22  ;;  %v5451_v1 = vpop.eup %5450  ;;  %v1809_v22 = vadd.f32 %v5311_v19, %v1808_v11  ;;  %v5314_v0 = vld [vmem:[%s7472_s4 + $0x7] ss:$0 sm:$0xff] }
0x10ae   :  { %4963 = vmatmul.msk.f32.vlgmr.msra.gmra.mxu0 %vm379_vm0, %v2305_v63  ;;  %v2419_v62 = vmul.f32 %v5451_v1, %v6814_v2 }
0x10af   :  { %v1814_v23 = vadd.f32 %v1809_v22, %v6759_v48  ;;  %v2018_v48 = vld [vmem:[%s7477_s7 + $0x8] sm:$0xff] }
0x10b0   :  { %2491 = vmatpush.msra.mxu2 %v2018_v48 }
0x10b1   :  { %v1820_v24 = vsel %vm417_vm3, %v1814_v23, 0.0 }
0x10b2   :  { %2492 = vmatpush.msra.mxu2 %v2017_v30 }
0x10b6   :  { %4964 = vmatmul.msk.f32.gmra.mxu0 %vm379_vm0, %v2306_v57  ;;  %v5312_v57 = vld [vmem:[#allocation13] ss:$0 sm:$0xff] }
0x10b7   :  { %v5234_v3 = vpop.permute.xlu0 %5233 }
0x10b8   :  { %v5235_v6 = vunpack.i.l.bf16 %v5234_v3  ;;  %v5236_v7 = vunpack.i.h.bf16 %v5234_v3 }
0x10ba   :  { %2447 = vmatpush.msra.mxu1 %v5235_v6 }
0x10bc   :  { %2448 = vmatpush.msra.mxu1 %v5236_v7 }
0x10bd   :  { %4969 = vmatmul.msk.f32.vlgmr.msra.gmra.mxu1 %vm379_vm0, %v2419_v62 }
0x10dd   :  { %v2225_v15 = vpop.f32.mrf.mxu1 }
0x10e2   :  { %v2416_v9 = vpop.xlane.xlu0 %2415 }
0x10e3   :  { %5452 = vrcp.f32 %v2416_v9 }
0x10e9   :  { %v5453_v4 = vpop.eup %5452 }
0x10ea   :  { %v2420_v5 = vmul.f32 %v5453_v4, %v5441_v46 }
0x10ec   :  { %4970 = vmatmul.msk.f32.gmra.mxu1 %vm379_vm0, %v2420_v5 }
0x1108   :  { %v2231_v13 = vpop.permute.xlu1 %2230 }
0x111b   :  { %v2116_v21 = vpop.f32.mrf.mxu0 }
0x111c   :  { %2122 = vst.msk [vmem:[#allocation3] sm:$0xff] %vm463_vm5, %v2116_v21 }
0x111d   :  { %2236 = vst.msk [vmem:[#allocation3] sm:$0xff] %vm670_vm6, %v2231_v13 }
0x1123   :  { %v2119_v14 = vpop.f32.mrf.mxu0 }
0x1124   :  { %2123 = vst.msk [vmem:[#allocation3 + $0x8] sm:$0xff] %vm463_vm5, %v2119_v14 }
0x112b   :  { %v2336_v2 = vpop.f32.mrf.mxu0 }
0x112c   :  { %2344 = vrot.lane.b32.xlu2 %v2336_v2, %s5979_s15 }
0x1133   :  { %v2339_v16 = vpop.f32.mrf.mxu0 }
0x1134   :  { %2232 = vrot.lane.b32.xlu2 %v2225_v15, %s6006_s24  ;;  %2346 = vrot.lane.b32.xlu0 %v2339_v16, %s5979_s15 }
0x113a   :  { %v2450_v17 = vpop.f32.mrf.mxu1 }
0x113b   :  { %2458 = vrot.lane.b32.xlu1 %v2450_v17, %s6007_s10 }
0x115d   :  { %1821 = vadd.xlane.f32.xlu2 %v1820_v24 }
0x1169   :  { %v2453_v26 = vpop.f32.mrf.mxu1 }
0x116a   :  { %2460 = vrot.lane.b32.xlu1 %v2453_v26, %s6007_s10 }
0x1186   :  { %v2345_v25 = vpop.permute.xlu2 %2344 }
0x1187   :  { %2350 = vst.msk [vmem:[#allocation3] sm:$0xff] %vm785_vm7, %v2345_v25 }
0x118e   :  { %v2233_v8 = vpop.permute.xlu2 %2232 }
0x118f   :  { %2237 = vst.msk [vmem:[#allocation3 + $0x8] sm:$0xff] %vm670_vm6, %v2233_v8 }
0x1194   :  { %1824 = vadd.xlane.f32.xlu1 %v1823_v31 }
0x11a6   :  { %v2347_v20 = vpop.permute.xlu0 %2346 }
0x11a7   :  { %2351 = vst.msk [vmem:[#allocation3 + $0x8] sm:$0xff] %vm785_vm7, %v2347_v20 }
0x11ad   :  { %v2459_v32 = vpop.permute.xlu1 %2458 }
0x11ae   :  { %2464 = vst.msk [vmem:[#allocation3] sm:$0xff] %vm900_vm8, %v2459_v32 }
0x11b5   :  { %v2466_v33 = vld [vmem:[#allocation3] sm:$0xff] }
0x11b6   :  { %4971 = vmatmul.msk.f32.vlgmr.msra.gmra.mxu2 %vm417_vm3, %v2466_v33 }
0x11d0   :  { %v1822_v34 = vpop.xlane.xlu2 %1821 }
0x11d1   :  { %v1826_v56 = vmul.f32 %v1822_v34, %v6493_v18 }
0x11d3   :  { %v1828_v35 = vsub.f32 %v1814_v23, %v1826_v56 }
0x11d5   :  { %v1830_v36 = vmul.f32 %v1828_v35, %v1828_v35 }
0x11d7   :  { %v1832_v37 = vsel %vm417_vm3, %v1830_v36, 0.0 }
0x11d8   :  { %1833 = vadd.xlane.f32.xlu0 %v1832_v37 }
0x11dc   :  { %v2461_v38 = vpop.permute.xlu1 %2460 }
0x11dd   :  { %2465 = vst.msk [vmem:[#allocation3 + $0x8] sm:$0xff] %vm900_vm8, %v2461_v38 }
0x11e4   :  { %v2467_v39 = vld [vmem:[#allocation3 + $0x8] sm:$0xff] }
0x11e5   :  { %4972 = vmatmul.msk.f32.gmra.mxu2 %vm417_vm3, %v2467_v39 }
0x1207   :  { %v1825_v40 = vpop.xlane.xlu1 %1824 }
0x1208   :  { %v1827_v42 = vmul.f32 %v1825_v40, %v6493_v18 }
0x120a   :  { %v1829_v43 = vsub.f32 %v1815_v29, %v1827_v42  ;;  %v2601_v42 = vld [vmem:[%s7478_s25 + $0x18] sm:$0xff] }
0x120b   :  { %2624 = vmatpush.msra.mxu3 %v2601_v42 }
0x120c   :  { %v1831_v46 = vmul.f32 %v1829_v43, %v1829_v43 }
0x120e   :  { %v1835_v45 = vsel %vm417_vm3, %v1831_v46, 0.0  ;;  %v2599_v46 = vld [vmem:[%s7478_s25 + $0x8] sm:$0xff] }
0x120f   :  { %1836 = vadd.xlane.f32.xlu2 %v1835_v45  ;;  %v2598_v45 = vld [vmem:[%s7478_s25] sm:$0xff] }
0x1239   :  { %v2494_v60 = vpop.f32.mrf.mxu2 }
0x123a   :  { %v2495_v6 = vadd.f32 %v5312_v57, %v2494_v60 }
0x123c   :  { %v2500_v5 = vadd.f32 %v2495_v6, %v6693_v47 }
0x123e   :  { %v2505_v12 = vsel %vm417_vm3, %v2500_v5, 0.0 }
0x124b   :  { %v1834_v49 = vpop.xlane.xlu0 %1833 }
0x124c   :  { %v1838_v51 = vmul.f32 %v1834_v49, %v6493_v18  ;;  %v2562_v49 = vld [vmem:[%s7479_s14 + $0x18] sm:$0xff] }
0x124d   :  { %2585 = vmatpush.msrb.mxu0 %v2562_v49 }
0x124e   :  { %v1840_v52 = vadd.f32 1e-05, %v1838_v51 }
0x1250   :  { %5454 = vrsqrt.f32 %v1840_v52  ;;  %vm1848_vm15 = vweird.f32 %v1840_v52 }
0x1256   :  { %v5455_v41 = vpop.eup %5454 }
0x1257   :  { %v1843_v53 = vmul.f32 %v5455_v41, %v1840_v52  ;;  %vm1849_vm14 = vweird.f32 %v5455_v41  ;;  %v2561_v52 = vld [vmem:[%s7479_s14 + $0x10] sm:$0xff] }
0x1258   :  { %vm1850_vm2 = vmor %vm1848_vm15, %vm1849_vm14  ;;  %2586 = vmatpush.msrb.mxu0 %v2561_v52 }
0x1259   :  { %v1844_v54 = vmul.f32 %v5455_v41, %v1843_v53  ;;  %v2560_v53 = vld [vmem:[%s7479_s14 + $0x8] sm:$0xff] }
0x125a   :  { %2587 = vmatpush.msrb.mxu0 %v2560_v53 }
0x125b   :  { %v1845_v44 = vmul.f32 0.5, %v1844_v54  ;;  %v2559_v54 = vld [vmem:[%s7479_s14] sm:$0xff] }
0x125c   :  { %2588 = vmatpush.msrb.mxu0 %v2559_v54 }
0x125d   :  { %v1846_v58 = vsub.f32 1.5, %v1845_v44 }
0x125f   :  { %v1847_v59 = vmul.f32 %v5455_v41, %v1846_v58 }
0x1261   :  { %v1851_v63 = vsel %vm1850_vm2, %v5455_v41, %v1847_v59 }
0x1262   :  { %v1862_v55 = vmul.f32 %v1851_v63, %v1828_v35 }
0x1264   :  { %v1867_v3 = vmul.f32 %v5313_v61, %v1862_v55 }
0x1266   :  { %v1872_v1 = vadd.f32 %v5314_v0, %v1867_v3 }
0x1268   :  { %v2497_v7 = vpop.f32.mrf.mxu2  ;;  %v1877_v62 = vsel %vm417_vm3, %v1872_v1, 0.0 }
0x1269   :  { %v2498_v9 = vadd.f32 %v5312_v57, %v2497_v7  ;;  %1878 = vadd.xlane.f32.xlu1 %v1877_v62 }
0x126b   :  { %v2501_v4 = vadd.f32 %v2498_v9, %v6698_v50 }
0x126d   :  { %v2508_v11 = vsel %vm417_vm3, %v2501_v4, 0.0 }
0x126e   :  { %2509 = vadd.xlane.f32.xlu0 %v2508_v11 }
0x1271   :  { %2506 = vadd.xlane.f32.xlu1 %v2505_v12  ;;  %v5315_v12 = vld [vmem:[#allocation10] ss:$0 sm:$0xff] }
0x1282   :  { %v1837_v21 = vpop.xlane.xlu2 %1836 }
0x1283   :  { %v1839_v13 = vmul.f32 %v1837_v21, %v6493_v18 }
0x1285   :  { %v1841_v14 = vadd.f32 1e-05, %v1839_v13 }
0x1287   :  { %5456 = vrsqrt.f32 %v1841_v14  ;;  %vm1858_vm10 = vweird.f32 %v1841_v14 }
0x128d   :  { %v5457_v2 = vpop.eup %5456 }
0x128e   :  { %v1853_v15 = vmul.f32 %v5457_v2, %v1841_v14  ;;  %vm1859_vm9 = vweird.f32 %v5457_v2 }
0x128f   :  { %vm1860_vm11 = vmor %vm1858_vm10, %vm1859_vm9 }
0x1290   :  { %v1854_v16 = vmul.f32 %v5457_v2, %v1853_v15  ;;  %v5317_v15 = vld [vmem:[#allocation10 + $0x1] ss:$0 sm:$0xff] }
0x1292   :  { %v1855_v17 = vmul.f32 0.5, %v1854_v16 }
0x1294   :  { %v1856_v19 = vsub.f32 1.5, %v1855_v17 }
0x1296   :  { %v1857_v50 = vmul.f32 %v5457_v2, %v1856_v19 }
0x1298   :  { %v1861_v47 = vsel %vm1860_vm11, %v5457_v2, %v1857_v50 }
0x1299   :  { %v1863_v22 = vmul.f32 %v1861_v47, %v1829_v43  ;;  %v2600_v43 = vld [vmem:[%s7478_s25 + $0x10] sm:$0xff] }
0x129a   :  { %2625 = vmatpush.msra.mxu3 %v2600_v43 }
0x129b   :  { %v1868_v23 = vmul.f32 %v5313_v61, %v1863_v22 }
0x129c   :  { %2626 = vmatpush.msra.mxu3 %v2599_v46  ;;  %v5319_v46 = vld [vmem:[#allocation16] ss:$0 sm:$0xff] }
0x129d   :  { %v1873_v24 = vadd.f32 %v5314_v0, %v1868_v23 }
0x129e   :  { %2627 = vmatpush.msra.mxu3 %v2598_v45  ;;  %v5320_v45 = vld [vmem:[#allocation15] ss:$0 sm:$0xff] }
0x129f   :  { %v1880_v26 = vsel %vm417_vm3, %v1873_v24, 0.0 }
0x12a0   :  { %1881 = vadd.xlane.f32.xlu2 %v1880_v26  ;;  %v5316_v26 = vld [vmem:[#allocation22] ss:$0 sm:$0xff] }
0x12dc   :  { %v1879_v25 = vpop.xlane.xlu1 %1878 }
0x12dd   :  { %v1883_v27 = vmul.f32 %v1879_v25, %v6493_v18 }
0x12df   :  { %v6877_v8 = vsub.f32 %v1872_v1, %v1883_v27 }
0x12e1   :  { %v2510_v10 = vpop.xlane.xlu0 %2509  ;;  %v1887_v28 = vmul.f32 %v6877_v8, %v6877_v8 }
0x12e2   :  { %v2512_v29 = vmul.f32 %v2510_v10, %v6493_v18  ;;  %v5318_v10 = vld [vmem:[#allocation22 + $0x1] ss:$0 sm:$0xff] }
0x12e3   :  { %v1889_v48 = vsel %vm417_vm3, %v1887_v28, 0.0 }
0x12e4   :  { %v6883_v30 = vsub.f32 %v2501_v4, %v2512_v29  ;;  %1890 = vadd.xlane.f32.xlu2 %v1889_v48  ;;  %v2507_v31 = vpop.xlane.xlu1 %2506 }
0x12e5   :  { %v2511_v20 = vmul.f32 %v2507_v31, %v6493_v18 }
0x12e6   :  { %v2516_v32 = vmul.f32 %v6883_v30, %v6883_v30 }
0x12e7   :  { %v6888_v33 = vsub.f32 %v2500_v5, %v2511_v20 }
0x12e8   :  { %v2520_v34 = vsel %vm417_vm3, %v2516_v32, 0.0 }
0x12e9   :  { %2521 = vadd.xlane.f32.xlu0 %v2520_v34  ;;  %v2515_v56 = vmul.f32 %v6888_v33, %v6888_v33 }
0x12eb   :  { %v2517_v35 = vsel %vm417_vm3, %v2515_v56, 0.0 }
0x12ec   :  { %2518 = vadd.xlane.f32.xlu2 %v2517_v35 }
0x1313   :  { %v1882_v36 = vpop.xlane.xlu2 %1881 }
0x1314   :  { %v1884_v37 = vmul.f32 %v1882_v36, %v6493_v18 }
0x1316   :  { %v6895_v38 = vsub.f32 %v1873_v24, %v1884_v37 }
0x1318   :  { %v1888_v39 = vmul.f32 %v6895_v38, %v6895_v38 }
0x131a   :  { %v1892_v40 = vsel %vm417_vm3, %v1888_v39, 0.0 }
0x131b   :  { %1893 = vadd.xlane.f32.xlu1 %v1892_v40 }
0x1357   :  { %v1891_v51 = vpop.xlane.xlu2 %1890 }
0x1358   :  { %v1895_v41 = vmul.f32 %v1891_v51, %v6493_v18 }
0x135a   :  { %v1897_v44 = vadd.f32 1e-05, %v1895_v41 }
0x135c   :  { %5458 = vrsqrt.f32 %v1897_v44  ;;  %v2522_v58 = vpop.xlane.xlu0 %2521  ;;  %vm1905_vm13 = vweird.f32 %v1897_v44 }
0x135d   :  { %v2524_v59 = vmul.f32 %v2522_v58, %v6493_v18 }
0x135f   :  { %v2526_v60 = vadd.f32 1e-05, %v2524_v59  ;;  %v2519_v61 = vpop.xlane.xlu2 %2518 }
0x1360   :  { %v2523_v63 = vmul.f32 %v2519_v61, %v6493_v18 }
0x1361   :  { %5460 = vrsqrt.f32 %v2526_v60  ;;  %vm2543_vm11 = vweird.f32 %v2526_v60 }
0x1362   :  { %v5459_v55 = vpop.eup %5458  ;;  %v2525_v0 = vadd.f32 1e-05, %v2523_v63 }
0x1363   :  { %v1900_v57 = vmul.f32 %v5459_v55, %v1897_v44  ;;  %vm1906_vm12 = vweird.f32 %v5459_v55 }
0x1364   :  { %5462 = vrsqrt.f32 %v2525_v0  ;;  %vm1907_vm14 = vmor %vm1905_vm13, %vm1906_vm12  ;;  %vm2533_vm9 = vweird.f32 %v2525_v0 }
0x1365   :  { %v1901_v3 = vmul.f32 %v5459_v55, %v1900_v57 }
0x1367   :  { %v5461_v1 = vpop.eup %5460  ;;  %v1902_v6 = vmul.f32 0.5, %v1901_v3 }
0x1368   :  { %v2538_v7 = vmul.f32 %v5461_v1, %v2526_v60  ;;  %vm2544_vm2 = vweird.f32 %v5461_v1 }
0x1369   :  { %v1903_v62 = vsub.f32 1.5, %v1902_v6  ;;  %vm2545_vm12 = vmor %vm2543_vm11, %vm2544_vm2  ;;  %vm2643_vm2 = vcmask 785664  }
0x136a   :  { %v5463_v9 = vpop.eup %5462  ;;  %v2539_v4 = vmul.f32 %v5461_v1, %v2538_v7 }
0x136b   :  { %v1904_v5 = vmul.f32 %v5459_v55, %v1903_v62  ;;  %v2528_v11 = vmul.f32 %v5463_v9, %v2525_v0  ;;  %vm2534_vm15 = vweird.f32 %v5463_v9 }
0x136c   :  { %v2540_v21 = vmul.f32 0.5, %v2539_v4  ;;  %vm2535_vm10 = vmor %vm2533_vm9, %vm2534_vm15 }
0x136d   :  { %v1908_v13 = vsel %vm1907_vm14, %v5459_v55, %v1904_v5  ;;  %v2529_v14 = vmul.f32 %v5463_v9, %v2528_v11 }
0x136e   :  { %v1919_v2 = vmul.f32 %v1908_v13, %v6877_v8  ;;  %v2541_v16 = vsub.f32 1.5, %v2540_v21  ;;  %v357_v21 = vld [vmem:[%s7480_s5] sm:$0xff] }
0x136f   :  { %v2530_v17 = vmul.f32 0.5, %v2529_v14 }
0x1370   :  { %v1924_v19 = vmul.f32 %v5315_v12, %v1919_v2  ;;  %v2542_v22 = vmul.f32 %v5461_v1, %v2541_v16  ;;  %v358_v16 = vld [vmem:[%s7480_s5 + $0x8] sm:$0xff] }
0x1371   :  { %v2531_v50 = vsub.f32 1.5, %v2530_v17 }
0x1372   :  { %v6912_v47 = vadd.f32 %v5317_v15, %v1924_v19  ;;  %v2546_v27 = vsel %vm2545_vm12, %v5461_v1, %v2542_v22 }
0x1373   :  { %v2532_v23 = vmul.f32 %v5463_v9, %v2531_v50  ;;  %v2548_v29 = vmul.f32 %v2546_v27, %v6883_v30 }
0x1374   :  { %4975 = vmatmul.msk.f32.vlgmr.msra.gmra.mxu3 %vm417_vm3, %v6912_v47 }
0x1375   :  { %v2536_v24 = vsel %vm2535_vm10, %v5463_v9, %v2532_v23  ;;  %v2553_v48 = vmul.f32 %v5316_v26, %v2548_v29 }
0x1376   :  { %v2547_v25 = vmul.f32 %v2536_v24, %v6888_v33 }
0x1377   :  { %v6922_v31 = vadd.f32 %v5318_v10, %v2553_v48 }
0x1378   :  { %v2552_v8 = vmul.f32 %v5316_v26, %v2547_v25 }
0x137a   :  { %v6917_v28 = vadd.f32 %v5318_v10, %v2552_v8 }
0x137c   :  { %4973 = vmatmul.msk.f32.vlgmr.msrb.gmra.mxu0 %vm417_vm3, %v6917_v28 }
0x1384   :  { %4974 = vmatmul.msk.f32.gmra.mxu0 %vm417_vm3, %v6922_v31 }
0x138e   :  { %v1894_v20 = vpop.xlane.xlu1 %1893 }
0x138f   :  { %v1896_v32 = vmul.f32 %v1894_v20, %v6493_v18 }
0x1391   :  { %v1898_v33 = vadd.f32 1e-05, %v1896_v32 }
0x1393   :  { %5464 = vrsqrt.f32 %v1898_v33  ;;  %vm1915_vm14 = vweird.f32 %v1898_v33 }
0x1399   :  { %v5465_v34 = vpop.eup %5464 }
0x139a   :  { %v1910_v56 = vmul.f32 %v5465_v34, %v1898_v33  ;;  %vm1916_vm13 = vweird.f32 %v5465_v34 }
0x139b   :  { %vm1917_vm15 = vmor %vm1915_vm14, %vm1916_vm13 }
0x139c   :  { %v1911_v35 = vmul.f32 %v5465_v34, %v1910_v56 }
0x139e   :  { %v1912_v36 = vmul.f32 0.5, %v1911_v35 }
0x13a0   :  { %v1913_v37 = vsub.f32 1.5, %v1912_v36 }
0x13a2   :  { %v1914_v30 = vmul.f32 %v5465_v34, %v1913_v37 }
0x13a4   :  { %v1918_v39 = vsel %vm1917_vm15, %v5465_v34, %v1914_v30 }
0x13a5   :  { %v1920_v40 = vmul.f32 %v1918_v39, %v6895_v38 }
0x13a7   :  { %v1925_v42 = vmul.f32 %v5315_v12, %v1920_v40 }
0x13a9   :  { %v6928_v43 = vadd.f32 %v5317_v15, %v1925_v42 }
0x13ab   :  { %4976 = vmatmul.msk.f32.gmra.mxu3 %vm417_vm3, %v6928_v43 }
0x13f7   :  { %v2629_v49 = vpop.f32.mrf.mxu3 }
0x13f8   :  { %v2630_v51 = vadd.f32 %v5319_v46, %v2629_v49 }
0x13f9   :  { %v2590_v52 = vpop.f32.mrf.mxu0 }
0x13fa   :  { %v2591_v41 = vadd.f32 %v5320_v45, %v2590_v52  ;;  %2637 = vrot.lane.b32.xlu2 %v2630_v51, %s6009_s16 }
0x13fc   :  { %2596 = vst.msk [vmem:[#allocation2] sm:$0xff] %vm417_vm3, %v2591_v41 }
0x1401   :  { %v2593_v53 = vpop.f32.mrf.mxu0 }
0x1402   :  { %v2594_v54 = vadd.f32 %v5320_v45, %v2593_v53 }
0x1404   :  { %2597 = vst.msk [vmem:[#allocation2 + $0x8] sm:$0xff] %vm417_vm3, %v2594_v54 }
0x142e   :  { %v2632_v38 = vpop.f32.mrf.mxu3 }
0x142f   :  { %v2633_v44 = vadd.f32 %v5319_v46, %v2632_v38 }
0x1431   :  { %2639 = vrot.lane.b32.xlu1 %v2633_v44, %s6009_s16 }
0x1454   :  { %v2638_v58 = vpop.permute.xlu2 %2637 }
0x1455   :  { %2644 = vst.msk [vmem:[#allocation2] sm:$0xff] %vm2643_vm2, %v2638_v58 }
0x145c   :  { %v6937_v59 = vld [vmem:[#allocation2] sm:$0xff] }
0x145d   :  { %2761 = vrot.lane.b32.xlu2 %v6937_v59, %s5997_s9  ;;  %2655 = vrot.lane.b32.xlu1 %v6937_v59, %s5998_s29 }
0x1465   :  { %2875 = vrot.lane.b32.xlu1 %v6937_v59, %s6001_s26 }
0x14a3   :  { %v2640_v60 = vpop.permute.xlu1 %2639 }
0x14a4   :  { %2645 = vst.msk [vmem:[#allocation2 + $0x8] sm:$0xff] %vm2643_vm2, %v2640_v60 }
0x14ab   :  { %v6946_v61 = vld [vmem:[#allocation2 + $0x8] sm:$0xff] }
0x14ac   :  { %2877 = vrot.lane.b32.xlu2 %v6946_v61, %s6001_s26  ;;  %2759 = vrot.lane.b32.xlu1 %v6946_v61, %s5995_s18  ;;  %v5237_v51 = vpack.i.bf16 %v6937_v59, %v6946_v61 }
0x14ad   :  { %2657 = vrot.lane.b32.xlu0 %v6946_v61, %s5998_s29 }
0x14b4   :  { %2989 = vrot.lane.b32.xlu2 %v6937_v59, %s5996_s22  ;;  %2985 = vrot.lane.b32.xlu1 %v6937_v59, %s6000_s21 }
0x14b5   :  { %2763 = vrot.lane.b32.xlu0 %v6946_v61, %s5997_s9 }
0x14b7   :  { %v2762_v63 = vpop.permute.xlu2 %2761 }
0x14bc   :  { %2873 = vrot.lane.b32.xlu2 %v6946_v61, %s5999_s6 }
0x14bd   :  { %2757 = vrot.lane.b32.xlu0 %v6937_v59, %s5995_s18 }
0x14c5   :  { %2991 = vrot.lane.b32.xlu0 %v6946_v61, %s5996_s22 }
0x14cd   :  { %2871 = vrot.lane.b32.xlu0 %v6937_v59, %s5999_s6 }
0x14cf   :  { %v2656_v55 = vpop.permute.xlu1 %2655 }
0x14d5   :  { %2987 = vrot.lane.b32.xlu0 %v6946_v61, %s6000_s21 }
0x14d7   :  { %v2876_v1 = vpop.permute.xlu1 %2875 }
0x1506   :  { %v2878_v57 = vpop.permute.xlu2 %2877 }
0x150e   :  { %v2990_v9 = vpop.permute.xlu2 %2989 }
0x1516   :  { %v2874_v11 = vpop.permute.xlu2 %2873 }
0x151e   :  { %v2760_v7 = vpop.permute.xlu1 %2759 }
0x151f   :  { %v2658_v0 = vpop.permute.xlu0 %2657 }
0x1520   :  { %4977 = vmatpush.xpose.msk.msrb.mxu1 %vm463_vm5, %v2658_v0 }
0x1524   :  { %4978 = vmatpush.xpose.msk.msrb.mxu1 %vm463_vm5, %v2656_v55 }
0x1526   :  { %v2986_v4 = vpop.permute.xlu1 %2985 }
0x1527   :  { %4979 = vmatmul.msk.f32.vlgmr.msrb.gmra.mxu1 %vm463_vm5, %v6937_v59  ;;  %v2764_v3 = vpop.permute.xlu0 %2763 }
0x1528   :  { %4989 = vmatpush.xpose.msk.msra.mxu1 %vm463_vm5, %v2878_v57  ;;  %4983 = vmatpush.xpose.msk.msra.mxu0 %vm463_vm5, %v2764_v3 }
0x152c   :  { %4990 = vmatpush.xpose.msk.msra.mxu1 %vm463_vm5, %v2876_v1  ;;  %4984 = vmatpush.xpose.msk.msra.mxu0 %vm463_vm5, %v2762_v63 }
0x152f   :  { %4980 = vmatmul.msk.f32.gmra.mxu1 %vm463_vm5, %v6946_v61  ;;  %v2758_v6 = vpop.permute.xlu0 %2757 }
0x1530   :  { %4985 = vmatmul.msk.f32.vlgmr.msra.gmra.mxu0 %vm463_vm5, %v2758_v6 }
0x1537   :  { %v2992_v62 = vpop.permute.xlu0 %2991 }
0x1538   :  { %4986 = vmatmul.msk.f32.gmra.mxu0 %vm463_vm5, %v2760_v7 }
0x1539   :  { %4995 = vmatpush.xpose.msk.msrb.mxu0 %vm463_vm5, %v2992_v62 }
0x153d   :  { %4996 = vmatpush.xpose.msk.msrb.mxu0 %vm463_vm5, %v2990_v9 }
0x153f   :  { %v2872_v5 = vpop.permute.xlu0 %2871 }
0x1540   :  { %4991 = vmatmul.msk.f32.vlgmr.msra.gmra.mxu1 %vm463_vm5, %v2872_v5  ;;  %4997 = vmatmul.msk.f32.vlgmr.msrb.gmra.mxu0 %vm463_vm5, %v2986_v4 }
0x1547   :  { %v2988_v12 = vpop.permute.xlu0 %2987 }
0x1548   :  { %4992 = vmatmul.msk.f32.gmra.mxu1 %vm463_vm5, %v2874_v11  ;;  %4998 = vmatmul.msk.f32.gmra.mxu0 %vm463_vm5, %v2988_v12 }
0x15a4   :  { %v2684_v13 = vpop.f32.mrf.mxu1 }
0x15a5   :  { %v2690_v14 = vmul.f32 0.35355338, %v2684_v13 }
0x15a7   :  { %v2692_v2 = vadd.f32 %v2690_v14, %v357_v21 }
0x15a9   :  { %v2694_v15 = vsel %vm379_vm0, %v2692_v2, -inf }
0x15aa   :  { %2695 = vmax.xlane.f32.xlu1 %v2694_v15 }
0x15ac   :  { %v2687_v17 = vpop.f32.mrf.mxu1 }
0x15ad   :  { %v2691_v19 = vmul.f32 0.35355338, %v2687_v17  ;;  %v2790_v50 = vpop.f32.mrf.mxu0 }
0x15ae   :  { %v2796_v22 = vmul.f32 0.35355338, %v2790_v50 }
0x15af   :  { %v2693_v23 = vadd.f32 %v2691_v19, %v358_v16 }
0x15b0   :  { %v2798_v24 = vadd.f32 %v2796_v22, %v357_v21 }
0x15b1   :  { %v2697_v26 = vsel %vm379_vm0, %v2693_v23, -inf }
0x15b2   :  { %2698 = vmax.xlane.f32.xlu0 %v2697_v26  ;;  %v2800_v25 = vsel %vm379_vm0, %v2798_v24, -inf }
0x15b3   :  { %2801 = vmax.xlane.f32.xlu2 %v2800_v25 }
0x15b5   :  { %v2793_v27 = vpop.f32.mrf.mxu0 }
0x15b6   :  { %v2797_v8 = vmul.f32 0.35355338, %v2793_v27 }
0x15b8   :  { %v2799_v10 = vadd.f32 %v2797_v8, %v358_v16 }
0x15ba   :  { %v2803_v29 = vsel %vm379_vm0, %v2799_v10, -inf }
0x15bb   :  { %2804 = vmax.xlane.f32.xlu2 %v2803_v29 }
0x15bd   :  { %v2904_v48 = vpop.f32.mrf.mxu1  ;;  %v3018_v20 = vpop.f32.mrf.mxu0 }
0x15be   :  { %v2910_v32 = vmul.f32 0.35355338, %v2904_v48  ;;  %v3024_v33 = vmul.f32 0.35355338, %v3018_v20 }
0x15c0   :  { %v2912_v34 = vadd.f32 %v2910_v32, %v357_v21  ;;  %v3026_v56 = vadd.f32 %v3024_v33, %v357_v21 }
0x15c2   :  { %v3028_v35 = vsel %vm379_vm0, %v3026_v56, -inf  ;;  %v2914_v36 = vsel %vm379_vm0, %v2912_v34, -inf }
0x15c3   :  { %3029 = vmax.xlane.f32.xlu0 %v3028_v35  ;;  %2915 = vmax.xlane.f32.xlu1 %v2914_v36 }
0x15c5   :  { %v2907_v37 = vpop.f32.mrf.mxu1  ;;  %v3021_v30 = vpop.f32.mrf.mxu0 }
0x15c6   :  { %v2911_v39 = vmul.f32 0.35355338, %v2907_v37  ;;  %v3025_v40 = vmul.f32 0.35355338, %v3021_v30 }
0x15c8   :  { %v2913_v42 = vadd.f32 %v2911_v39, %v358_v16  ;;  %v6996_v46 = vadd.f32 %v3025_v40, %v358_v16 }
0x15ca   :  { %v2917_v45 = vsel %vm379_vm0, %v2913_v42, -inf  ;;  %v3031_v49 = vsel %vm379_vm0, %v6996_v46, -inf }
0x15cb   :  { %2918 = vmax.xlane.f32.xlu2 %v2917_v45  ;;  %3032 = vmax.xlane.f32.xlu1 %v3031_v49 }
0x15e4   :  { %5238 = vrot.lane.b32.xlu1 %v5237_v51, %s6002_s23 }
0x161d   :  { %v2696_v52 = vpop.xlane.xlu1 %2695 }
0x161e   :  { %v2700_v41 = vsub.f32 %v2692_v2, %v2696_v52 }
0x1620   :  { %v2702_v53 = vmul.f32 1.442695, %v2700_v41 }
0x1622   :  { %5466 = vpow2.f32 %v2702_v53 }
0x1625   :  { %v2699_v54 = vpop.xlane.xlu0 %2698 }
0x1626   :  { %v2701_v38 = vsub.f32 %v2693_v23, %v2699_v54  ;;  %v2802_v44 = vpop.xlane.xlu2 %2801 }
0x1627   :  { %v2806_v58 = vsub.f32 %v2798_v24, %v2802_v44 }
0x1628   :  { %v5467_v60 = vpop.eup %5466  ;;  %v2704_v63 = vmul.f32 1.442695, %v2701_v38 }
0x1629   :  { %v2808_v55 = vmul.f32 1.442695, %v2806_v58  ;;  %v2706_v0 = vsel %vm379_vm0, %v5467_v60, 0.0 }
0x162a   :  { %5468 = vpow2.f32 %v2704_v63  ;;  %2707 = vadd.xlane.f32.xlu0 %v2706_v0 }
0x162b   :  { %5470 = vpow2.f32 %v2808_v55 }
0x162e   :  { %v2805_v57 = vpop.xlane.xlu2 %2804 }
0x162f   :  { %v2807_v59 = vsub.f32 %v2799_v10, %v2805_v57 }
0x1630   :  { %v5469_v61 = vpop.eup %5468 }
0x1631   :  { %v7005_v3 = vpop.eup %5470  ;;  %v2810_v1 = vmul.f32 1.442695, %v2807_v59  ;;  %v2709_v6 = vsel %vm379_vm0, %v5469_v61, 0.0 }
0x1632   :  { %2710 = vadd.xlane.f32.xlu0 %v2709_v6  ;;  %v2812_v7 = vsel %vm379_vm0, %v7005_v3, 0.0 }
0x1633   :  { %5472 = vpow2.f32 %v2810_v1  ;;  %2813 = vadd.xlane.f32.xlu2 %v2812_v7 }
0x1636   :  { %v2916_v62 = vpop.xlane.xlu1 %2915  ;;  %v3030_v9 = vpop.xlane.xlu0 %3029 }
0x1637   :  { %v2920_v4 = vsub.f32 %v2912_v34, %v2916_v62  ;;  %v3034_v5 = vsub.f32 %v3026_v56, %v3030_v9 }
0x1639   :  { %v5473_v11 = vpop.eup %5472  ;;  %v2922_v12 = vmul.f32 1.442695, %v2920_v4  ;;  %v3036_v21 = vmul.f32 1.442695, %v3034_v5 }
0x163a   :  { %v2815_v13 = vsel %vm379_vm0, %v5473_v11, 0.0 }
0x163b   :  { %5474 = vpow2.f32 %v2922_v12  ;;  %2816 = vadd.xlane.f32.xlu0 %v2815_v13 }
0x163c   :  { %5476 = vpow2.f32 %v3036_v21 }
0x163e   :  { %v3033_v17 = vpop.xlane.xlu1 %3032  ;;  %v2919_v23 = vpop.xlane.xlu2 %2918 }
0x163f   :  { %v2921_v24 = vsub.f32 %v2913_v42, %v2919_v23  ;;  %v3035_v8 = vsub.f32 %v6996_v46, %v3033_v17  ;;  %v2646_v17 = vld [vmem:[%s7481_s1] sm:$0xff] }
0x1641   :  { %v5475_v14 = vpop.eup %5474  ;;  %v2924_v26 = vmul.f32 1.442695, %v2921_v24  ;;  %v3038_v10 = vmul.f32 1.442695, %v3035_v8 }
0x1642   :  { %v7011_v2 = vpop.eup %5476  ;;  %v2926_v15 = vsel %vm379_vm0, %v5475_v14, 0.0 }
0x1643   :  { %2927 = vadd.xlane.f32.xlu0 %v2926_v15  ;;  %v3040_v16 = vsel %vm379_vm0, %v7011_v2, 0.0  ;;  %5478 = vpow2.f32 %v2924_v26  ;;  %v2648_v15 = vld [vmem:[%s7481_s1 + $0x10] sm:$0xff] }
0x1644   :  { %3041 = vadd.xlane.f32.xlu1 %v3040_v16  ;;  %5480 = vpow2.f32 %v3038_v10  ;;  %v2647_v16 = vld [vmem:[%s7481_s1 + $0x8] sm:$0xff] }
0x1649   :  { %v5479_v25 = vpop.eup %5478 }
0x164a   :  { %v2929_v27 = vsel %vm379_vm0, %v5479_v25, 0.0  ;;  %v5481_v29 = vpop.eup %5480 }
0x164b   :  { %5243 = vrot.lane.b32.xlu2 %v5237_v51, %s6004_s2  ;;  %v3043_v48 = vsel %vm379_vm0, %v5481_v29, 0.0 }
0x1656   :  { %v5239_v19 = vpop.permute.xlu1 %5238 }
0x1657   :  { %v5240_v50 = vunpack.i.l.bf16 %v5239_v19  ;;  %5248 = vrot.lane.b32.xlu0 %v5237_v51, %s6003_s27  ;;  %v5241_v22 = vunpack.i.h.bf16 %v5239_v19 }
0x1659   :  { %2742 = vmatpush.msrb.mxu2 %v5240_v50 }
0x165b   :  { %2743 = vmatpush.msrb.mxu2 %v5241_v22 }
0x165f   :  { %5253 = vrot.lane.b32.xlu0 %v5237_v51, %s6005_s12 }
0x1674   :  { %2930 = vadd.xlane.f32.xlu2 %v2929_v27 }
0x1689   :  { %3044 = vadd.xlane.f32.xlu0 %v3043_v48 }
0x169d   :  { %v2708_v20 = vpop.xlane.xlu0 %2707 }
0x169e   :  { %5482 = vrcp.f32 %v2708_v20 }
0x16a4   :  { %v5483_v32 = vpop.eup %5482 }
0x16a5   :  { %v2714_v33 = vmul.f32 %v5483_v32, %v5467_v60  ;;  %v2711_v34 = vpop.xlane.xlu0 %2710 }
0x16a6   :  { %5484 = vrcp.f32 %v2711_v34  ;;  %v2814_v56 = vpop.xlane.xlu2 %2813 }
0x16a7   :  { %4981 = vmatmul.msk.f32.vlgmr.msrb.gmra.mxu2 %vm379_vm0, %v2714_v33  ;;  %5486 = vrcp.f32 %v2814_v56 }
0x16ac   :  { %v5485_v35 = vpop.eup %5484 }
0x16ad   :  { %v2715_v36 = vmul.f32 %v5485_v35, %v5469_v61  ;;  %v5487_v39 = vpop.eup %5486 }
0x16ae   :  { %v5244_v37 = vpop.permute.xlu2 %5243  ;;  %v2817_v30 = vpop.xlane.xlu0 %2816  ;;  %v2820_v46 = vmul.f32 %v5487_v39, %v7005_v3 }
0x16af   :  { %v5245_v40 = vunpack.i.l.bf16 %v5244_v37  ;;  %4982 = vmatmul.msk.f32.gmra.mxu2 %vm379_vm0, %v2715_v36  ;;  %v5246_v42 = vunpack.i.h.bf16 %v5244_v37  ;;  %5488 = vrcp.f32 %v2817_v30 }
0x16b1   :  { %2848 = vmatpush.msrb.mxu3 %v5245_v40 }
0x16b3   :  { %2849 = vmatpush.msrb.mxu3 %v5246_v42  ;;  %v3192_v42 = vld [vmem:[%s7482_s0 + $0x18] sm:$0xff] }
0x16b4   :  { %4987 = vmatmul.msk.f32.vlgmr.msrb.gmra.mxu3 %vm379_vm0, %v2820_v46  ;;  %v3191_v46 = vld [vmem:[%s7482_s0 + $0x10] sm:$0xff] }
0x16b5   :  { %v5489_v45 = vpop.eup %5488 }
0x16b6   :  { %v2821_v49 = vmul.f32 %v5489_v45, %v5473_v11  ;;  %v2928_v51 = vpop.xlane.xlu0 %2927  ;;  %v3190_v45 = vld [vmem:[%s7482_s0 + $0x8] sm:$0xff] }
0x16b7   :  { %5490 = vrcp.f32 %v2928_v51  ;;  %v3042_v52 = vpop.xlane.xlu1 %3041 }
0x16b8   :  { %5492 = vrcp.f32 %v3042_v52 }
0x16bc   :  { %4988 = vmatmul.msk.f32.gmra.mxu3 %vm379_vm0, %v2821_v49  ;;  %v3189_v49 = vld [vmem:[%s7482_s0] sm:$0xff] }
0x16bd   :  { %v5491_v53 = vpop.eup %5490 }
0x16be   :  { %v2934_v44 = vmul.f32 %v5491_v53, %v5475_v14  ;;  %v5493_v60 = vpop.eup %5492 }
0x16bf   :  { %v3048_v0 = vmul.f32 %v5493_v60, %v7011_v2  ;;  %v2649_v2 = vld [vmem:[%s7481_s1 + $0x18] sm:$0xff] }
0x16c0   :  { %3118 = vmatpush.msrb.mxu1 %v2649_v2 }
0x16c2   :  { %3119 = vmatpush.msrb.mxu1 %v2648_v15 }
0x16c4   :  { %3120 = vmatpush.msrb.mxu1 %v2647_v16 }
0x16c6   :  { %3121 = vmatpush.msrb.mxu1 %v2646_v17 }
0x16c9   :  { %v5249_v41 = vpop.permute.xlu0 %5248 }
0x16ca   :  { %v5250_v54 = vunpack.i.l.bf16 %v5249_v41  ;;  %v5251_v38 = vunpack.i.h.bf16 %v5249_v41 }
0x16cc   :  { %2962 = vmatpush.msra.mxu2 %v5250_v54 }
0x16ce   :  { %2963 = vmatpush.msra.mxu2 %v5251_v38 }
0x16cf   :  { %4993 = vmatmul.msk.f32.vlgmr.msra.gmra.mxu2 %vm379_vm0, %v2934_v44 }
0x16d0   :  { %3215 = vmatpush.msrb.mxu2 %v3192_v42 }
0x16d1   :  { %v5254_v58 = vpop.permute.xlu0 %5253 }
0x16d2   :  { %v5255_v63 = vunpack.i.l.bf16 %v5254_v58  ;;  %v5256_v55 = vunpack.i.h.bf16 %v5254_v58  ;;  %3216 = vmatpush.msrb.mxu2 %v3191_v46 }
0x16d4   :  { %3076 = vmatpush.msra.mxu3 %v5255_v63  ;;  %3217 = vmatpush.msrb.mxu2 %v3190_v45  ;;  %v5322_v63 = vld [vmem:[#allocation22 + $0x2] ss:$0 sm:$0xff] }
0x16d6   :  { %3077 = vmatpush.msra.mxu3 %v5256_v55  ;;  %3218 = vmatpush.msrb.mxu2 %v3189_v49 }
0x16d7   :  { %4999 = vmatmul.msk.f32.vlgmr.msra.gmra.mxu3 %vm379_vm0, %v3048_v0 }
0x16e7   :  { %v2931_v57 = vpop.xlane.xlu2 %2930 }
0x16e8   :  { %5494 = vrcp.f32 %v2931_v57  ;;  %v5323_v57 = vld [vmem:[#allocation22 + $0x3] ss:$0 sm:$0xff] }
0x16ee   :  { %v5495_v59 = vpop.eup %5494 }
0x16ef   :  { %v2935_v61 = vmul.f32 %v5495_v59, %v5479_v25  ;;  %v5321_v25 = vld [vmem:[#allocation18] ss:$0 sm:$0xff] }
0x16f1   :  { %4994 = vmatmul.msk.f32.gmra.mxu2 %vm379_vm0, %v2935_v61 }
0x16fc   :  { %v3045_v3 = vpop.xlane.xlu0 %3044 }
0x16fd   :  { %5496 = vrcp.f32 %v3045_v3  ;;  %v3235_v3 = vld [vmem:[%s7483_s28 + $0x38] sm:$0xff] }
0x16fe   :  { %3254 = vmatpush.msra.mxu0 %v3235_v3 }
0x1703   :  { %v5497_v1 = vpop.eup %5496 }
0x1704   :  { %v3049_v6 = vmul.f32 %v5497_v1, %v5481_v29  ;;  %v3234_v1 = vld [vmem:[%s7483_s28 + $0x30] sm:$0xff] }
0x1705   :  { %3255 = vmatpush.msra.mxu0 %v3234_v1  ;;  %v5327_v1 = vld [vmem:[#allocation22 + $0x5] ss:$0 sm:$0xff] }
0x1706   :  { %5000 = vmatmul.msk.f32.gmra.mxu3 %vm379_vm0, %v3049_v6  ;;  %v3233_v6 = vld [vmem:[%s7483_s28 + $0x28] sm:$0xff] }
0x1707   :  { %3256 = vmatpush.msra.mxu0 %v3233_v6 }
0x172a   :  { %v2745_v7 = vpop.f32.mrf.mxu2 }
0x172b   :  { %2751 = vst.msk [vmem:[#allocation3] sm:$0xff] %vm463_vm5, %v2745_v7 }
0x1732   :  { %v2748_v62 = vpop.f32.mrf.mxu2 }
0x1733   :  { %2752 = vst.msk [vmem:[#allocation3 + $0x8] sm:$0xff] %vm463_vm5, %v2748_v62 }
0x1737   :  { %v2851_v9 = vpop.f32.mrf.mxu3 }
0x1738   :  { %2859 = vrot.lane.b32.xlu1 %v2851_v9, %s6006_s24  ;;  %v3232_v9 = vld [vmem:[%s7483_s28 + $0x20] sm:$0xff] }
0x1739   :  { %3257 = vmatpush.msra.mxu0 %v3232_v9 }
0x173f   :  { %v2854_v4 = vpop.f32.mrf.mxu3 }
0x1752   :  { %v2965_v5 = vpop.f32.mrf.mxu2 }
0x1753   :  { %2973 = vrot.lane.b32.xlu2 %v2965_v5, %s5979_s15  ;;  %v3231_v5 = vld [vmem:[%s7483_s28 + $0x18] sm:$0xff] }
0x1754   :  { %3258 = vmatpush.msra.mxu0 %v3231_v5 }
0x175a   :  { %v3079_v11 = vpop.f32.mrf.mxu3 }
0x175b   :  { %3087 = vrot.lane.b32.xlu1 %v3079_v11, %s6007_s10  ;;  %2861 = vrot.lane.b32.xlu2 %v2854_v4, %s6006_s24 }
0x1774   :  { %v2968_v12 = vpop.f32.mrf.mxu2 }
0x1775   :  { %2975 = vrot.lane.b32.xlu0 %v2968_v12, %s5979_s15 }
0x1789   :  { %v3082_v21 = vpop.f32.mrf.mxu3 }
0x178a   :  { %3089 = vrot.lane.b32.xlu1 %v3082_v21, %s6007_s10 }
0x17aa   :  { %v2860_v13 = vpop.permute.xlu1 %2859 }
0x17ab   :  { %2865 = vst.msk [vmem:[#allocation3] sm:$0xff] %vm670_vm6, %v2860_v13 }
0x17ad   :  { %v2974_v14 = vpop.permute.xlu2 %2973 }
0x17ae   :  { %2979 = vst.msk [vmem:[#allocation3] sm:$0xff] %vm785_vm7, %v2974_v14 }
0x17b5   :  { %v2862_v19 = vpop.permute.xlu2 %2861 }
0x17b6   :  { %2866 = vst.msk [vmem:[#allocation3 + $0x8] sm:$0xff] %vm670_vm6, %v2862_v19 }
0x17cd   :  { %v3088_v50 = vpop.permute.xlu1 %3087 }
0x17ce   :  { %3093 = vst.msk [vmem:[#allocation3] sm:$0xff] %vm900_vm8, %v3088_v50  ;;  %v3230_v50 = vld [vmem:[%s7483_s28 + $0x10] sm:$0xff] }
0x17cf   :  { %3259 = vmatpush.msra.mxu0 %v3230_v50  ;;  %v5328_v50 = vld [vmem:[#allocation12 + $0x1] ss:$0 sm:$0xff] }
0x17d5   :  { %v3095_v22 = vld [vmem:[#allocation3] sm:$0xff] }
0x17d6   :  { %5001 = vmatmul.msk.f32.vlgmr.msrb.gmra.mxu1 %vm417_vm3, %v3095_v22  ;;  %v3229_v22 = vld [vmem:[%s7483_s28 + $0x8] sm:$0xff] }
0x17d7   :  { %3260 = vmatpush.msra.mxu0 %v3229_v22 }
0x17e7   :  { %v2976_v23 = vpop.permute.xlu0 %2975 }
0x17e8   :  { %2980 = vst.msk [vmem:[#allocation3 + $0x8] sm:$0xff] %vm785_vm7, %v2976_v23  ;;  %v3228_v23 = vld [vmem:[%s7483_s28] sm:$0xff] }
0x17e9   :  { %3261 = vmatpush.msra.mxu0 %v3228_v23 }
0x17fc   :  { %v3090_v24 = vpop.permute.xlu1 %3089 }
0x17fd   :  { %3094 = vst.msk [vmem:[#allocation3 + $0x8] sm:$0xff] %vm900_vm8, %v3090_v24  ;;  %v5324_v24 = vld [vmem:[#allocation19] ss:$0 sm:$0xff] }
0x1804   :  { %v3096_v26 = vld [vmem:[#allocation3 + $0x8] sm:$0xff] }
0x1805   :  { %5002 = vmatmul.msk.f32.gmra.mxu1 %vm417_vm3, %v3096_v26 }
0x1853   :  { %v3123_v27 = vpop.f32.mrf.mxu1 }
0x1854   :  { %v3124_v8 = vadd.f32 %v5321_v25, %v3123_v27 }
0x1856   :  { %v3129_v10 = vadd.f32 %v3124_v8, %v6917_v28 }
0x1858   :  { %v3135_v29 = vsel %vm417_vm3, %v3129_v10, 0.0 }
0x1859   :  { %3136 = vadd.xlane.f32.xlu2 %v3135_v29 }
0x1882   :  { %v3126_v48 = vpop.f32.mrf.mxu1 }
0x1883   :  { %v3127_v20 = vadd.f32 %v5321_v25, %v3126_v48  ;;  %v5325_v48 = vld [vmem:[#allocation21] ss:$0 sm:$0xff] }
0x1885   :  { %v3130_v32 = vadd.f32 %v3127_v20, %v6922_v31 }
0x1887   :  { %v3138_v33 = vsel %vm417_vm3, %v3130_v32, 0.0 }
0x1888   :  { %3139 = vadd.xlane.f32.xlu1 %v3138_v33 }
0x18cc   :  { %v3137_v34 = vpop.xlane.xlu2 %3136 }
0x18cd   :  { %v3141_v56 = vmul.f32 %v3137_v34, %v6493_v18 }
0x18cf   :  { %v3143_v35 = vsub.f32 %v3129_v10, %v3141_v56 }
0x18d1   :  { %v3145_v36 = vmul.f32 %v3143_v35, %v3143_v35 }
0x18d3   :  { %v3147_v28 = vsel %vm417_vm3, %v3145_v36, 0.0 }
0x18d4   :  { %3148 = vadd.xlane.f32.xlu0 %v3147_v28 }
0x18fb   :  { %v3140_v37 = vpop.xlane.xlu1 %3139 }
0x18fc   :  { %v3142_v30 = vmul.f32 %v3140_v37, %v6493_v18 }
0x18fe   :  { %v3144_v39 = vsub.f32 %v3130_v32, %v3142_v30 }
0x1900   :  { %v3146_v40 = vmul.f32 %v3144_v39, %v3144_v39 }
0x1902   :  { %v3150_v31 = vsel %vm417_vm3, %v3146_v40, 0.0 }
0x1903   :  { %3151 = vadd.xlane.f32.xlu2 %v3150_v31 }
0x1947   :  { %v3149_v51 = vpop.xlane.xlu0 %3148 }
0x1948   :  { %v3153_v52 = vmul.f32 %v3149_v51, %v6493_v18 }
0x194a   :  { %v3155_v41 = vadd.f32 1e-05, %v3153_v52  ;;  %v5010_v52 = vld [vmem:[%s7474_s13 + $0x38] sm:$0xff] }
0x194b   :  { %3357 = vmatpush.msrb.mxu3 %v5010_v52  ;;  %v5586_v52 = vld [vmem:[%s7476_s19] sm:$0xff] }
0x194c   :  { %5498 = vrsqrt.f32 %v3155_v41  ;;  %vm3163_vm10 = vweird.f32 %v3155_v41 }
0x1952   :  { %v5499_v53 = vpop.eup %5498 }
0x1953   :  { %v3158_v54 = vmul.f32 %v5499_v53, %v3155_v41  ;;  %vm3164_vm9 = vweird.f32 %v5499_v53  ;;  %v5009_v41 = vld [vmem:[%s7474_s13 + $0x30] sm:$0xff] }
0x1954   :  { %vm3165_vm11 = vmor %vm3163_vm10, %vm3164_vm9  ;;  %3358 = vmatpush.msrb.mxu3 %v5009_v41 }
0x1955   :  { %v3159_v38 = vmul.f32 %v5499_v53, %v3158_v54  ;;  %v5007_v54 = vld [vmem:[%s7474_s13 + $0x20] sm:$0xff] }
0x1957   :  { %v3160_v44 = vmul.f32 0.5, %v3159_v38 }
0x1959   :  { %v3161_v58 = vsub.f32 1.5, %v3160_v44 }
0x195b   :  { %v3162_v60 = vmul.f32 %v5499_v53, %v3161_v58 }
0x195d   :  { %v3166_v55 = vsel %vm3165_vm11, %v5499_v53, %v3162_v60  ;;  %v5008_v53 = vld [vmem:[%s7474_s13 + $0x28] sm:$0xff] }
0x195e   :  { %v3177_v0 = vmul.f32 %v3166_v55, %v3143_v35  ;;  %3359 = vmatpush.msrb.mxu3 %v5008_v53 }
0x1960   :  { %v3182_v59 = vmul.f32 %v5322_v63, %v3177_v0  ;;  %3360 = vmatpush.msrb.mxu3 %v5007_v54 }
0x1962   :  { %v3187_v61 = vadd.f32 %v5323_v57, %v3182_v59 }
0x1964   :  { %5003 = vmatmul.msk.f32.vlgmr.msrb.gmra.mxu2 %vm417_vm3, %v3187_v61 }
0x1976   :  { %v3152_v7 = vpop.xlane.xlu2 %3151 }
0x1977   :  { %v3154_v62 = vmul.f32 %v3152_v7, %v6493_v18 }
0x1979   :  { %v3156_v4 = vadd.f32 1e-05, %v3154_v62 }
0x197b   :  { %5500 = vrsqrt.f32 %v3156_v4  ;;  %vm3173_vm13 = vweird.f32 %v3156_v4 }
0x1981   :  { %v5501_v11 = vpop.eup %5500 }
0x1982   :  { %v3168_v12 = vmul.f32 %v5501_v11, %v3156_v4  ;;  %vm3174_vm12 = vweird.f32 %v5501_v11 }
0x1983   :  { %vm3175_vm14 = vmor %vm3173_vm13, %vm3174_vm12 }
0x1984   :  { %v3169_v21 = vmul.f32 %v5501_v11, %v3168_v12 }
0x1986   :  { %v3170_v13 = vmul.f32 0.5, %v3169_v21 }
0x1988   :  { %v3171_v14 = vsub.f32 1.5, %v3170_v13 }
0x198a   :  { %v3172_v2 = vmul.f32 %v5501_v11, %v3171_v14 }
0x198c   :  { %v3176_v15 = vsel %vm3175_vm14, %v5501_v11, %v3172_v2 }
0x198d   :  { %v3178_v16 = vmul.f32 %v3176_v15, %v3144_v39 }
0x198f   :  { %v3183_v17 = vmul.f32 %v5322_v63, %v3178_v16 }
0x1991   :  { %v3188_v19 = vadd.f32 %v5323_v57, %v3183_v17 }
0x1993   :  { %5004 = vmatmul.msk.f32.gmra.mxu2 %vm417_vm3, %v3188_v19 }
0x19e7   :  { %v3220_v26 = vpop.f32.mrf.mxu2 }
0x19e8   :  { %v3221_v25 = vadd.f32 %v5324_v24, %v3220_v26 }
0x19ea   :  { %v3226_v27 = vmax.f32 %v3221_v25, 0.0 }
0x19ec   :  { %5005 = vmatmul.msk.f32.vlgmr.msra.gmra.mxu0 %vm1054_vm1, %v3226_v27 }
0x1a16   :  { %v3223_v8 = vpop.f32.mrf.mxu2 }
0x1a17   :  { %v3224_v10 = vadd.f32 %v5324_v24, %v3223_v8 }
0x1a19   :  { %v3227_v29 = vmax.f32 %v3224_v10, 0.0 }
0x1a1b   :  { %5006 = vmatmul.msk.f32.gmra.mxu0 %vm1054_vm1, %v3227_v29 }
0x1a69   :  { %v3263_v20 = vpop.f32.mrf.mxu0 }
0x1a6a   :  { %v3264_v32 = vadd.f32 %v5325_v48, %v3263_v20 }
0x1a6c   :  { %v3269_v33 = vadd.f32 %v3264_v32, %v3187_v61  ;;  %v5326_v61 = vld [vmem:[#allocation22 + $0x4] ss:$0 sm:$0xff] }
0x1a6e   :  { %v3275_v34 = vsel %vm417_vm3, %v3269_v33, 0.0 }
0x1a6f   :  { %3276 = vadd.xlane.f32.xlu1 %v3275_v34 }
0x1a98   :  { %v3266_v56 = vpop.f32.mrf.mxu0 }
0x1a99   :  { %v3267_v35 = vadd.f32 %v5325_v48, %v3266_v56 }
0x1a9b   :  { %v3270_v36 = vadd.f32 %v3267_v35, %v3188_v19  ;;  %v5052_v35 = vld [vmem:[%s7478_s25 + $0x38] sm:$0xff] }
0x1a9d   :  { %v3278_v28 = vsel %vm417_vm3, %v3270_v36, 0.0 }
0x1a9e   :  { %3279 = vadd.xlane.f32.xlu2 %v3278_v28  ;;  %v5051_v28 = vld [vmem:[%s7478_s25 + $0x30] sm:$0xff] }
0x1ae2   :  { %v3277_v37 = vpop.xlane.xlu1 %3276 }
0x1ae3   :  { %v3281_v30 = vmul.f32 %v3277_v37, %v6493_v18 }
0x1ae5   :  { %v3283_v39 = vsub.f32 %v3269_v33, %v3281_v30 }
0x1ae7   :  { %v3285_v40 = vmul.f32 %v3283_v39, %v3283_v39 }
0x1ae9   :  { %v3287_v31 = vsel %vm417_vm3, %v3285_v40, 0.0  ;;  %v5049_v40 = vld [vmem:[%s7478_s25 + $0x20] sm:$0xff] }
0x1aea   :  { %3288 = vadd.xlane.f32.xlu1 %v3287_v31 }
0x1b11   :  { %v3280_v42 = vpop.xlane.xlu2 %3279 }
0x1b12   :  { %v3282_v46 = vmul.f32 %v3280_v42, %v6493_v18 }
0x1b14   :  { %v3284_v45 = vsub.f32 %v3270_v36, %v3282_v46 }
0x1b16   :  { %v3286_v49 = vmul.f32 %v3284_v45, %v3284_v45 }
0x1b18   :  { %v3290_v51 = vsel %vm417_vm3, %v3286_v49, 0.0 }
0x1b19   :  { %3291 = vadd.xlane.f32.xlu2 %v3290_v51 }
0x1b5d   :  { %v3289_v38 = vpop.xlane.xlu1 %3288 }
0x1b5e   :  { %v3293_v44 = vmul.f32 %v3289_v38, %v6493_v18 }
0x1b60   :  { %v3295_v58 = vadd.f32 1e-05, %v3293_v44 }
0x1b62   :  { %5502 = vrsqrt.f32 %v3295_v58  ;;  %vm3303_vm9 = vweird.f32 %v3295_v58 }
0x1b68   :  { %v5503_v60 = vpop.eup %5502 }
0x1b69   :  { %v3298_v63 = vmul.f32 %v5503_v60, %v3295_v58  ;;  %vm3304_vm15 = vweird.f32 %v5503_v60 }
0x1b6a   :  { %vm3305_vm10 = vmor %vm3303_vm9, %vm3304_vm15 }
0x1b6b   :  { %v3299_v55 = vmul.f32 %v5503_v60, %v3298_v63  ;;  %v5587_v63 = vld [vmem:[%s7476_s19 + $0x8] sm:$0xff] }
0x1b6d   :  { %v3300_v0 = vmul.f32 0.5, %v3299_v55 }
0x1b6f   :  { %v3301_v57 = vsub.f32 1.5, %v3300_v0 }
0x1b71   :  { %v3302_v59 = vmul.f32 %v5503_v60, %v3301_v57 }
0x1b73   :  { %v3306_v3 = vsel %vm3305_vm10, %v5503_v60, %v3302_v59 }
0x1b74   :  { %v3317_v6 = vmul.f32 %v3306_v3, %v3283_v39  ;;  %v5050_v39 = vld [vmem:[%s7478_s25 + $0x28] sm:$0xff] }
0x1b76   :  { %v3322_v7 = vmul.f32 %v5326_v61, %v3317_v6 }
0x1b78   :  { %v7089_v62 = vadd.f32 %v5327_v1, %v3322_v7 }
0x1b7a   :  { %5011 = vmatmul.msk.f32.vlgmr.msrb.gmra.mxu3 %vm417_vm3, %v7089_v62 }
0x1b8c   :  { %v3292_v9 = vpop.xlane.xlu2 %3291 }
0x1b8d   :  { %v3294_v4 = vmul.f32 %v3292_v9, %v6493_v18 }
0x1b8f   :  { %v3296_v5 = vadd.f32 1e-05, %v3294_v4 }
0x1b91   :  { %5504 = vrsqrt.f32 %v3296_v5  ;;  %vm3313_vm12 = vweird.f32 %v3296_v5 }
0x1b97   :  { %v5505_v11 = vpop.eup %5504 }
0x1b98   :  { %v3308_v12 = vmul.f32 %v5505_v11, %v3296_v5  ;;  %vm3314_vm11 = vweird.f32 %v5505_v11 }
0x1b99   :  { %vm3315_vm13 = vmor %vm3313_vm12, %vm3314_vm11 }
0x1b9a   :  { %v3309_v21 = vmul.f32 %v5505_v11, %v3308_v12 }
0x1b9c   :  { %v3310_v13 = vmul.f32 0.5, %v3309_v21 }
0x1b9e   :  { %v3311_v14 = vsub.f32 1.5, %v3310_v13 }
0x1ba0   :  { %v3312_v2 = vmul.f32 %v5505_v11, %v3311_v14 }
0x1ba2   :  { %v3316_v15 = vsel %vm3315_vm13, %v5505_v11, %v3312_v2 }
0x1ba3   :  { %v3318_v16 = vmul.f32 %v3316_v15, %v3284_v45 }
0x1ba5   :  { %v3323_v17 = vmul.f32 %v5326_v61, %v3318_v16  ;;  %v7174_v16 = vld [vmem:[#allocation16 + $0x1] ss:$0 sm:$0xff] }
0x1ba7   :  { %v7094_v19 = vadd.f32 %v5327_v1, %v3323_v17 }
0x1ba9   :  { %5012 = vmatmul.msk.f32.gmra.mxu3 %vm417_vm3, %v7094_v19 }
0x1bfd   :  { %v3362_v22 = vpop.f32.mrf.mxu3 }
0x1bfe   :  { %v3363_v23 = vadd.f32 %v5328_v50, %v3362_v22 }
0x1c00   :  { %3368 = vst.msk [vmem:[#allocation2] sm:$0xff] %vm447_vm4, %v3363_v23 }
0x1c07   :  { %v7099_v24 = vld [vmem:[#allocation2] sm:$0xff] }
0x1c08   :  { %3487 = vrot.lane.b32.xlu0 %v7099_v24, %s5997_s9  ;;  %3381 = vrot.lane.b32.xlu2 %v7099_v24, %s5998_s29 }
0x1c2c   :  { %v3365_v26 = vpop.f32.mrf.mxu3 }
0x1c2d   :  { %v3366_v25 = vadd.f32 %v5328_v50, %v3365_v26 }
0x1c2f   :  { %3369 = vst.msk [vmem:[#allocation2 + $0x8] sm:$0xff] %vm447_vm4, %v3366_v25 }
0x1c36   :  { %v7106_v27 = vld [vmem:[#allocation2 + $0x8] sm:$0xff] }
0x1c37   :  { %3489 = vrot.lane.b32.xlu1 %v7106_v27, %s5997_s9  ;;  %3383 = vrot.lane.b32.xlu0 %v7106_v27, %s5998_s29  ;;  %v5257_v22 = vpack.i.bf16 %v7099_v24, %v7106_v27 }
0x1c38   :  { %3603 = vrot.lane.b32.xlu2 %v7106_v27, %s6001_s26 }
0x1c3f   :  { %3601 = vrot.lane.b32.xlu1 %v7099_v24, %s6001_s26  ;;  %3483 = vrot.lane.b32.xlu0 %v7099_v24, %s5995_s18 }
0x1c40   :  { %3715 = vrot.lane.b32.xlu2 %v7099_v24, %s5996_s22 }
0x1c47   :  { %3485 = vrot.lane.b32.xlu1 %v7106_v27, %s5995_s18  ;;  %3717 = vrot.lane.b32.xlu0 %v7106_v27, %s5996_s22 }
0x1c48   :  { %3599 = vrot.lane.b32.xlu2 %v7106_v27, %s5999_s6 }
0x1c4f   :  { %3711 = vrot.lane.b32.xlu1 %v7099_v24, %s6000_s21  ;;  %3597 = vrot.lane.b32.xlu0 %v7099_v24, %s5999_s6 }
0x1c57   :  { %3713 = vrot.lane.b32.xlu0 %v7106_v27, %s6000_s21 }
0x1c62   :  { %v3382_v10 = vpop.permute.xlu2 %3381 }
0x1c7a   :  { %v3488_v8 = vpop.permute.xlu0 %3487 }
0x1c92   :  { %v3604_v20 = vpop.permute.xlu2 %3603 }
0x1c9a   :  { %v3716_v36 = vpop.permute.xlu2 %3715 }
0x1ca2   :  { %v3600_v31 = vpop.permute.xlu2 %3599 }
0x1ca9   :  { %v3490_v29 = vpop.permute.xlu1 %3489  ;;  %v3384_v48 = vpop.permute.xlu0 %3383 }
0x1caa   :  { %5017 = vmatpush.xpose.msk.msra.mxu1 %vm463_vm5, %v3384_v48  ;;  %5023 = vmatpush.xpose.msk.msrb.mxu0 %vm463_vm5, %v3490_v29 }
0x1cae   :  { %5018 = vmatpush.xpose.msk.msra.mxu1 %vm463_vm5, %v3382_v10  ;;  %5024 = vmatpush.xpose.msk.msrb.mxu0 %vm463_vm5, %v3488_v8 }
0x1cb1   :  { %v3602_v32 = vpop.permute.xlu1 %3601  ;;  %v3484_v33 = vpop.permute.xlu0 %3483  ;;  %5019 = vmatmul.msk.f32.vlgmr.msra.gmra.mxu1 %vm463_vm5, %v7099_v24 }
0x1cb2   :  { %5029 = vmatpush.xpose.msk.msrb.mxu1 %vm463_vm5, %v3604_v20  ;;  %5025 = vmatmul.msk.f32.vlgmr.msrb.gmra.mxu0 %vm463_vm5, %v3484_v33 }
0x1cb6   :  { %5030 = vmatpush.xpose.msk.msrb.mxu1 %vm463_vm5, %v3602_v32 }
0x1cb9   :  { %v3486_v34 = vpop.permute.xlu1 %3485  ;;  %v3718_v56 = vpop.permute.xlu0 %3717  ;;  %5020 = vmatmul.msk.f32.gmra.mxu1 %vm463_vm5, %v7106_v27 }
0x1cba   :  { %5026 = vmatmul.msk.f32.gmra.mxu0 %vm463_vm5, %v3486_v34 }
0x1cbb   :  { %5035 = vmatpush.xpose.msk.msra.mxu0 %vm463_vm5, %v3718_v56 }
0x1cbf   :  { %5036 = vmatpush.xpose.msk.msra.mxu0 %vm463_vm5, %v3716_v36 }
0x1cc1   :  { %v3712_v37 = vpop.permute.xlu1 %3711  ;;  %v3598_v30 = vpop.permute.xlu0 %3597 }
0x1cc2   :  { %5031 = vmatmul.msk.f32.vlgmr.msrb.gmra.mxu1 %vm463_vm5, %v3598_v30  ;;  %5037 = vmatmul.msk.f32.vlgmr.msra.gmra.mxu0 %vm463_vm5, %v3712_v37 }
0x1cc3   :  { %3978 = vmatpush.msrb.mxu0 %v5052_v35 }
0x1cc5   :  { %3979 = vmatpush.msrb.mxu0 %v5051_v28 }
0x1cc7   :  { %3980 = vmatpush.msrb.mxu0 %v5050_v39 }
0x1cc9   :  { %3981 = vmatpush.msrb.mxu0 %v5049_v40  ;;  %v3714_v42 = vpop.permute.xlu0 %3713 }
0x1cca   :  { %5032 = vmatmul.msk.f32.gmra.mxu1 %vm463_vm5, %v3600_v31  ;;  %5038 = vmatmul.msk.f32.gmra.mxu0 %vm463_vm5, %v3714_v42 }
0x1cd2   :  { %5053 = vmatmul.msk.f32.vlgmr.msrb.gmra.mxu0 %vm417_vm3, %v6912_v47 }
0x1cda   :  { %5054 = vmatmul.msk.f32.gmra.mxu0 %vm417_vm3, %v6928_v43 }
0x1d2e   :  { %v3410_v46 = vpop.f32.mrf.mxu1 }
0x1d2f   :  { %v3416_v45 = vmul.f32 0.35355338, %v3410_v46  ;;  %v3516_v49 = vpop.f32.mrf.mxu0 }
0x1d30   :  { %v3522_v51 = vmul.f32 0.35355338, %v3516_v49 }
0x1d31   :  { %v3418_v41 = vadd.f32 %v5586_v52, %v3416_v45 }
0x1d32   :  { %v3524_v53 = vadd.f32 %v5586_v52, %v3522_v51 }
0x1d33   :  { %v3420_v54 = vsel %vm379_vm0, %v3418_v41, -inf }
0x1d34   :  { %3421 = vmax.xlane.f32.xlu1 %v3420_v54  ;;  %v3526_v38 = vsel %vm379_vm0, %v3524_v53, -inf }
0x1d35   :  { %3527 = vmax.xlane.f32.xlu2 %v3526_v38 }
0x1d36   :  { %v3413_v44 = vpop.f32.mrf.mxu1 }
0x1d37   :  { %v3417_v58 = vmul.f32 0.35355338, %v3413_v44  ;;  %v3519_v47 = vpop.f32.mrf.mxu0 }
0x1d38   :  { %v3523_v60 = vmul.f32 0.35355338, %v3519_v47 }
0x1d39   :  { %v3419_v43 = vadd.f32 %v5587_v63, %v3417_v58 }
0x1d3a   :  { %v3525_v55 = vadd.f32 %v5587_v63, %v3523_v60 }
0x1d3b   :  { %v3423_v0 = vsel %vm379_vm0, %v3419_v43, -inf }
0x1d3c   :  { %3424 = vmax.xlane.f32.xlu0 %v3423_v0  ;;  %v3529_v57 = vsel %vm379_vm0, %v3525_v55, -inf }
0x1d3d   :  { %3530 = vmax.xlane.f32.xlu1 %v3529_v57 }
0x1d3f   :  { %v3630_v59 = vpop.f32.mrf.mxu1  ;;  %v3744_v61 = vpop.f32.mrf.mxu0 }
0x1d40   :  { %v3636_v3 = vmul.f32 0.35355338, %v3630_v59  ;;  %v3750_v1 = vmul.f32 0.35355338, %v3744_v61 }
0x1d42   :  { %v3638_v6 = vadd.f32 %v5586_v52, %v3636_v3  ;;  %v3752_v7 = vadd.f32 %v5586_v52, %v3750_v1 }
0x1d44   :  { %v3640_v9 = vsel %vm379_vm0, %v3638_v6, -inf  ;;  %v3754_v4 = vsel %vm379_vm0, %v3752_v7, -inf }
0x1d45   :  { %3641 = vmax.xlane.f32.xlu2 %v3640_v9  ;;  %3755 = vmax.xlane.f32.xlu0 %v3754_v4 }
0x1d47   :  { %v3633_v5 = vpop.f32.mrf.mxu1  ;;  %v3747_v11 = vpop.f32.mrf.mxu0 }
0x1d48   :  { %v3637_v12 = vmul.f32 0.35355338, %v3633_v5  ;;  %v3751_v21 = vmul.f32 0.35355338, %v3747_v11 }
0x1d4a   :  { %v7166_v13 = vadd.f32 %v5587_v63, %v3637_v12  ;;  %v7168_v14 = vadd.f32 %v5587_v63, %v3751_v21 }
0x1d4c   :  { %v3757_v2 = vsel %vm379_vm0, %v7168_v14, -inf  ;;  %v3643_v15 = vsel %vm379_vm0, %v7166_v13, -inf }
0x1d4d   :  { %3758 = vmax.xlane.f32.xlu2 %v3757_v2  ;;  %3644 = vmax.xlane.f32.xlu1 %v3643_v15 }
0x1d4f   :  { %v3983_v17 = vpop.f32.mrf.mxu0 }
0x1d50   :  { %v7177_v50 = vadd.f32 %v7174_v16, %v3983_v17 }
0x1d65   :  { %5258 = vrot.lane.b32.xlu2 %v5257_v22, %s6002_s23 }
0x1da7   :  { %v3422_v23 = vpop.xlane.xlu1 %3421 }
0x1da8   :  { %v3426_v26 = vsub.f32 %v3418_v41, %v3422_v23  ;;  %v3528_v25 = vpop.xlane.xlu2 %3527 }
0x1da9   :  { %v3532_v8 = vsub.f32 %v3524_v53, %v3528_v25 }
0x1daa   :  { %v3428_v10 = vmul.f32 1.442695, %v3426_v26 }
0x1dab   :  { %v3534_v29 = vmul.f32 1.442695, %v3532_v8 }
0x1dac   :  { %5506 = vpow2.f32 %v3428_v10 }
0x1dad   :  { %5508 = vpow2.f32 %v3534_v29 }
0x1daf   :  { %v3425_v48 = vpop.xlane.xlu0 %3424 }
0x1db0   :  { %v3427_v20 = vsub.f32 %v3419_v43, %v3425_v48  ;;  %v3531_v32 = vpop.xlane.xlu1 %3530 }
0x1db1   :  { %v3533_v56 = vsub.f32 %v3525_v55, %v3531_v32 }
0x1db2   :  { %v5507_v33 = vpop.eup %5506  ;;  %v3430_v34 = vmul.f32 1.442695, %v3427_v20 }
0x1db3   :  { %v7182_v35 = vpop.eup %5508  ;;  %v3432_v24 = vsel %vm379_vm0, %v5507_v33, 0.0  ;;  %v3536_v36 = vmul.f32 1.442695, %v3533_v56 }
0x1db4   :  { %5510 = vpow2.f32 %v3430_v34  ;;  %3433 = vadd.xlane.f32.xlu0 %v3432_v24  ;;  %v3538_v27 = vsel %vm379_vm0, %v7182_v35, 0.0 }
0x1db5   :  { %3539 = vadd.xlane.f32.xlu1 %v3538_v27  ;;  %5512 = vpow2.f32 %v3536_v36 }
0x1db8   :  { %v3756_v28 = vpop.xlane.xlu0 %3755  ;;  %v3642_v37 = vpop.xlane.xlu2 %3641 }
0x1db9   :  { %v3760_v30 = vsub.f32 %v3752_v7, %v3756_v28  ;;  %v3646_v40 = vsub.f32 %v3638_v6, %v3642_v37 }
0x1dba   :  { %v5511_v39 = vpop.eup %5510 }
0x1dbb   :  { %v3762_v31 = vmul.f32 1.442695, %v3760_v30  ;;  %v3435_v42 = vsel %vm379_vm0, %v5511_v39, 0.0  ;;  %v3648_v46 = vmul.f32 1.442695, %v3646_v40  ;;  %v5513_v45 = vpop.eup %5512 }
0x1dbc   :  { %3436 = vadd.xlane.f32.xlu0 %v3435_v42  ;;  %v3541_v52 = vsel %vm379_vm0, %v5513_v45, 0.0 }
0x1dbd   :  { %5514 = vpow2.f32 %v3762_v31 }
0x1dbe   :  { %5516 = vpow2.f32 %v3648_v46 }
0x1dc0   :  { %v3759_v49 = vpop.xlane.xlu2 %3758  ;;  %v3645_v47 = vpop.xlane.xlu1 %3644 }
0x1dc1   :  { %v3647_v60 = vsub.f32 %v7166_v13, %v3645_v47  ;;  %v3761_v0 = vsub.f32 %v7168_v14, %v3759_v49 }
0x1dc3   :  { %v7188_v51 = vpop.eup %5514  ;;  %v3650_v63 = vmul.f32 1.442695, %v3647_v60  ;;  %v3764_v57 = vmul.f32 1.442695, %v3761_v0 }
0x1dc4   :  { %3542 = vadd.xlane.f32.xlu0 %v3541_v52  ;;  %v3766_v41 = vsel %vm379_vm0, %v7188_v51, 0.0  ;;  %v5517_v53 = vpop.eup %5516  ;;  %v5015_v52 = vld [vmem:[%s7477_s7 + $0x30] sm:$0xff] }
0x1dc5   :  { %3767 = vadd.xlane.f32.xlu2 %v3766_v41  ;;  %v3652_v58 = vsel %vm379_vm0, %v5517_v53, 0.0  ;;  %5518 = vpow2.f32 %v3650_v63  ;;  %v5014_v41 = vld [vmem:[%s7477_s7 + $0x28] sm:$0xff] }
0x1dc6   :  { %5520 = vpow2.f32 %v3764_v57 }
0x1dc8   :  { %v5259_v54 = vpop.permute.xlu2 %5258 }
0x1dc9   :  { %v5260_v38 = vunpack.i.l.bf16 %v5259_v54  ;;  %v5261_v44 = vunpack.i.h.bf16 %v5259_v54 }
0x1dcb   :  { %3468 = vmatpush.msra.mxu2 %v5260_v38  ;;  %v5519_v43 = vpop.eup %5518 }
0x1dcc   :  { %3653 = vadd.xlane.f32.xlu0 %v3652_v58  ;;  %v3655_v55 = vsel %vm379_vm0, %v5519_v43, 0.0  ;;  %v5521_v59 = vpop.eup %5520 }
0x1dcd   :  { %3469 = vmatpush.msra.mxu2 %v5261_v44  ;;  %v3769_v61 = vsel %vm379_vm0, %v5521_v59, 0.0 }
0x1dce   :  { %5263 = vrot.lane.b32.xlu1 %v5257_v22, %s6004_s2 }
0x1de0   :  { %5268 = vrot.lane.b32.xlu0 %v5257_v22, %s6003_s27 }
0x1de8   :  { %5273 = vrot.lane.b32.xlu0 %v5257_v22, %s6005_s12 }
0x1df8   :  { %3656 = vadd.xlane.f32.xlu1 %v3655_v55 }
0x1e12   :  { %3770 = vadd.xlane.f32.xlu0 %v3769_v61 }
0x1e27   :  { %v3434_v3 = vpop.xlane.xlu0 %3433 }
0x1e28   :  { %5522 = vrcp.f32 %v3434_v3  ;;  %v3540_v5 = vpop.xlane.xlu1 %3539 }
0x1e2e   :  { %v5523_v1 = vpop.eup %5522 }
0x1e2f   :  { %v3440_v6 = vmul.f32 %v5523_v1, %v5507_v33  ;;  %v3437_v7 = vpop.xlane.xlu0 %3436 }
0x1e30   :  { %5524 = vrcp.f32 %v3437_v7  ;;  %v3986_v7 = vpop.f32.mrf.mxu0 }
0x1e31   :  { %5021 = vmatmul.msk.f32.vlgmr.msra.gmra.mxu2 %vm379_vm0, %v3440_v6  ;;  %5526 = vrcp.f32 %v3540_v5 }
0x1e36   :  { %v5525_v9 = vpop.eup %5524 }
0x1e37   :  { %v3441_v4 = vmul.f32 %v5525_v9, %v5511_v39  ;;  %v3543_v11 = vpop.xlane.xlu0 %3542  ;;  %v5527_v21 = vpop.eup %5526  ;;  %v3987_v9 = vadd.f32 %v7174_v16, %v3986_v7 }
0x1e38   :  { %5528 = vrcp.f32 %v3543_v11  ;;  %v3546_v2 = vmul.f32 %v5527_v21, %v7182_v35  ;;  %v3768_v23 = vpop.xlane.xlu2 %3767 }
0x1e39   :  { %5022 = vmatmul.msk.f32.gmra.mxu2 %vm379_vm0, %v3441_v4 }
0x1e3e   :  { %v5529_v15 = vpop.eup %5528 }
0x1e3f   :  { %v3654_v17 = vpop.xlane.xlu0 %3653  ;;  %v3547_v22 = vmul.f32 %v5529_v15, %v5513_v45  ;;  %v5045_v15 = vld [vmem:[%s7479_s14 + $0x30] sm:$0xff] }
0x1e40   :  { %v5264_v12 = vpop.permute.xlu1 %5263  ;;  %5530 = vrcp.f32 %v3654_v17  ;;  %v5044_v17 = vld [vmem:[%s7479_s14 + $0x28] sm:$0xff] }
0x1e41   :  { %v5265_v13 = vunpack.i.l.bf16 %v5264_v12  ;;  %v5266_v14 = vunpack.i.h.bf16 %v5264_v12  ;;  %5532 = vrcp.f32 %v3768_v23 }
0x1e43   :  { %3574 = vmatpush.msra.mxu3 %v5265_v13 }
0x1e45   :  { %3575 = vmatpush.msra.mxu3 %v5266_v14 }
0x1e46   :  { %5027 = vmatmul.msk.f32.vlgmr.msra.gmra.mxu3 %vm379_vm0, %v3546_v2  ;;  %v5531_v25 = vpop.eup %5530  ;;  %v5046_v2 = vld [vmem:[%s7479_s14 + $0x38] sm:$0xff] }
0x1e47   :  { %v3660_v29 = vmul.f32 %v5531_v25, %v5517_v53  ;;  %v5533_v20 = vpop.eup %5532  ;;  %v5013_v53 = vld [vmem:[%s7477_s7 + $0x20] sm:$0xff] }
0x1e48   :  { %v3774_v34 = vmul.f32 %v5533_v20, %v7188_v51  ;;  %v5016_v51 = vld [vmem:[%s7477_s7 + $0x38] sm:$0xff] }
0x1e49   :  { %3844 = vmatpush.msra.mxu1 %v5016_v51 }
0x1e4b   :  { %3845 = vmatpush.msra.mxu1 %v5015_v52  ;;  %v5333_v52 = vld [vmem:[#allocation15 + $0x1] ss:$0 sm:$0xff] }
0x1e4d   :  { %3846 = vmatpush.msra.mxu1 %v5014_v41 }
0x1e4e   :  { %5028 = vmatmul.msk.f32.gmra.mxu3 %vm379_vm0, %v3547_v22  ;;  %v5043_v22 = vld [vmem:[%s7479_s14 + $0x20] sm:$0xff] }
0x1e4f   :  { %3847 = vmatpush.msra.mxu1 %v5013_v53 }
0x1e52   :  { %v5269_v26 = vpop.permute.xlu0 %5268 }
0x1e53   :  { %v5270_v8 = vunpack.i.l.bf16 %v5269_v26  ;;  %v5271_v10 = vunpack.i.h.bf16 %v5269_v26 }
0x1e55   :  { %3688 = vmatpush.msrb.mxu2 %v5270_v8 }
0x1e57   :  { %3689 = vmatpush.msrb.mxu2 %v5271_v10 }
0x1e58   :  { %5033 = vmatmul.msk.f32.vlgmr.msrb.gmra.mxu2 %vm379_vm0, %v3660_v29 }
0x1e59   :  { %3943 = vmatpush.msra.mxu2 %v5046_v2 }
0x1e5a   :  { %v5274_v48 = vpop.permute.xlu0 %5273 }
0x1e5b   :  { %v5275_v32 = vunpack.i.l.bf16 %v5274_v48  ;;  %v5276_v33 = vunpack.i.h.bf16 %v5274_v48  ;;  %3944 = vmatpush.msra.mxu2 %v5045_v15 }
0x1e5d   :  { %3802 = vmatpush.msrb.mxu3 %v5275_v32  ;;  %3945 = vmatpush.msra.mxu2 %v5044_v17  ;;  %v5331_v32 = vld [vmem:[#allocation22 + $0x6] ss:$0 sm:$0xff] }
0x1e5f   :  { %3803 = vmatpush.msrb.mxu3 %v5276_v33  ;;  %3946 = vmatpush.msra.mxu2 %v5043_v22  ;;  %v5589_v22 = vld [vmem:[%s7480_s5 + $0x8] sm:$0xff] }
0x1e60   :  { %5039 = vmatmul.msk.f32.vlgmr.msrb.gmra.mxu3 %vm379_vm0, %v3774_v34  ;;  %v5332_v34 = vld [vmem:[#allocation22 + $0x7] ss:$0 sm:$0xff] }
0x1e6b   :  { %v3657_v56 = vpop.xlane.xlu1 %3656 }
0x1e6c   :  { %5534 = vrcp.f32 %v3657_v56 }
0x1e72   :  { %v5535_v35 = vpop.eup %5534 }
0x1e73   :  { %v3661_v24 = vmul.f32 %v5535_v35, %v5519_v43  ;;  %v5330_v43 = vld [vmem:[#allocation13 + $0x1] ss:$0 sm:$0xff] }
0x1e75   :  { %5034 = vmatmul.msk.f32.gmra.mxu2 %vm379_vm0, %v3661_v24 }
0x1e85   :  { %v3771_v27 = vpop.xlane.xlu0 %3770 }
0x1e86   :  { %5536 = vrcp.f32 %v3771_v27 }
0x1e8c   :  { %v5537_v36 = vpop.eup %5536 }
0x1e8d   :  { %v3775_v28 = vmul.f32 %v5537_v36, %v5521_v59 }
0x1e8f   :  { %5040 = vmatmul.msk.f32.gmra.mxu3 %vm379_vm0, %v3775_v28 }
0x1eb4   :  { %v3471_v37 = vpop.f32.mrf.mxu2 }
0x1eb5   :  { %3477 = vst.msk [vmem:[#allocation3] sm:$0xff] %vm463_vm5, %v3471_v37 }
0x1ebc   :  { %v3474_v30 = vpop.f32.mrf.mxu2 }
0x1ebd   :  { %3478 = vst.msk [vmem:[#allocation3 + $0x8] sm:$0xff] %vm463_vm5, %v3474_v30 }
0x1ec9   :  { %v3577_v39 = vpop.f32.mrf.mxu3 }
0x1eca   :  { %3585 = vrot.lane.b32.xlu2 %v3577_v39, %s6006_s24 }
0x1ed1   :  { %v3580_v40 = vpop.f32.mrf.mxu3 }
0x1edb   :  { %v3691_v31 = vpop.f32.mrf.mxu2 }
0x1edc   :  { %3699 = vrot.lane.b32.xlu1 %v3691_v31, %s5979_s15 }
0x1ee3   :  { %v3805_v42 = vpop.f32.mrf.mxu3 }
0x1ee4   :  { %3813 = vrot.lane.b32.xlu2 %v3805_v42, %s6007_s10 }
0x1eec   :  { %3587 = vrot.lane.b32.xlu2 %v3580_v40, %s6006_s24 }
0x1ef8   :  { %v3694_v46 = vpop.f32.mrf.mxu2 }
0x1ef9   :  { %3701 = vrot.lane.b32.xlu1 %v3694_v46, %s5979_s15 }
0x1f12   :  { %v3808_v45 = vpop.f32.mrf.mxu3 }
0x1f13   :  { %3815 = vrot.lane.b32.xlu0 %v3808_v45, %s6007_s10 }
0x1f24   :  { %v3586_v49 = vpop.permute.xlu2 %3585 }
0x1f25   :  { %3591 = vst.msk [vmem:[#allocation3] sm:$0xff] %vm670_vm6, %v3586_v49 }
0x1f3e   :  { %v3814_v54 = vpop.permute.xlu2 %3813 }
0x1f46   :  { %v3588_v38 = vpop.permute.xlu2 %3587 }
0x1f47   :  { %3592 = vst.msk [vmem:[#allocation3 + $0x8] sm:$0xff] %vm670_vm6, %v3588_v38 }
0x1f4e   :  { %v3700_v44 = vpop.permute.xlu1 %3699 }
0x1f4f   :  { %3705 = vst.msk [vmem:[#allocation3] sm:$0xff] %vm785_vm7, %v3700_v44 }
0x1f50   :  { %3819 = vst.msk [vmem:[#allocation3] sm:$0xff] %vm900_vm8, %v3814_v54 }
0x1f57   :  { %v3821_v58 = vld [vmem:[#allocation3] sm:$0xff] }
0x1f58   :  { %5041 = vmatmul.msk.f32.vlgmr.msra.gmra.mxu1 %vm417_vm3, %v3821_v58 }
0x1f6b   :  { %v3702_v47 = vpop.permute.xlu1 %3701 }
0x1f6c   :  { %3706 = vst.msk [vmem:[#allocation3 + $0x8] sm:$0xff] %vm785_vm7, %v3702_v47 }
0x1f85   :  { %v3816_v60 = vpop.permute.xlu0 %3815 }
0x1f86   :  { %3820 = vst.msk [vmem:[#allocation3 + $0x8] sm:$0xff] %vm900_vm8, %v3816_v60 }
0x1f8d   :  { %v3822_v63 = vld [vmem:[#allocation3 + $0x8] sm:$0xff] }
0x1f8e   :  { %5042 = vmatmul.msk.f32.gmra.mxu1 %vm417_vm3, %v3822_v63 }
0x1fd5   :  { %v3849_v55 = vpop.f32.mrf.mxu1 }
0x1fd6   :  { %v3850_v0 = vadd.f32 %v5330_v43, %v3849_v55 }
0x1fd8   :  { %v3855_v57 = vadd.f32 %v3850_v0, %v7089_v62 }
0x1fda   :  { %v3861_v59 = vsel %vm417_vm3, %v3855_v57, 0.0 }
0x1fdb   :  { %3862 = vadd.xlane.f32.xlu2 %v3861_v59 }
0x200b   :  { %v3852_v61 = vpop.f32.mrf.mxu1 }
0x200c   :  { %v3853_v3 = vadd.f32 %v5330_v43, %v3852_v61 }
0x200e   :  { %v3856_v1 = vadd.f32 %v3853_v3, %v7094_v19 }
0x2010   :  { %v3864_v6 = vsel %vm417_vm3, %v3856_v1, 0.0 }
0x2011   :  { %3865 = vadd.xlane.f32.xlu1 %v3864_v6 }
0x202a   :  { %3993 = vrot.lane.b32.xlu1 %v3987_v9, %s6009_s16 }
0x204e   :  { %v3863_v4 = vpop.xlane.xlu2 %3862 }
0x204f   :  { %v3867_v62 = vmul.f32 %v3863_v4, %v6493_v18 }
0x2051   :  { %v3869_v5 = vsub.f32 %v3855_v57, %v3867_v62 }
0x2053   :  { %v3871_v11 = vmul.f32 %v3869_v5, %v3869_v5 }
0x2055   :  { %v3873_v12 = vsel %vm417_vm3, %v3871_v11, 0.0 }
0x2056   :  { %3874 = vadd.xlane.f32.xlu0 %v3873_v12  ;;  %v5588_v12 = vld [vmem:[%s7480_s5] sm:$0xff] }
0x2084   :  { %v3866_v19 = vpop.xlane.xlu1 %3865 }
0x2085   :  { %v3868_v21 = vmul.f32 %v3866_v19, %v6493_v18 }
0x2087   :  { %v3870_v13 = vsub.f32 %v3856_v1, %v3868_v21 }
0x2089   :  { %v3872_v14 = vmul.f32 %v3870_v13, %v3870_v13 }
0x208b   :  { %v3876_v16 = vsel %vm417_vm3, %v3872_v14, 0.0 }
0x208c   :  { %3877 = vadd.xlane.f32.xlu2 %v3876_v16 }
0x209c   :  { %v3994_v47 = vpop.permute.xlu1 %3993 }
0x20a4   :  { %3991 = vrot.lane.b32.xlu2 %v7177_v50, %s6009_s16 }
0x20c9   :  { %v3875_v23 = vpop.xlane.xlu0 %3874 }
0x20ca   :  { %v3879_v26 = vmul.f32 %v3875_v23, %v6493_v18 }
0x20cc   :  { %v3881_v25 = vadd.f32 1e-05, %v3879_v26 }
0x20ce   :  { %5538 = vrsqrt.f32 %v3881_v25  ;;  %vm3889_vm14 = vweird.f32 %v3881_v25 }
0x20d4   :  { %v5539_v8 = vpop.eup %5538 }
0x20d5   :  { %v3884_v10 = vmul.f32 %v5539_v8, %v3881_v25  ;;  %vm3890_vm4 = vweird.f32 %v5539_v8 }
0x20d6   :  { %vm3891_vm15 = vmor %vm3889_vm14, %vm3890_vm4 }
0x20d7   :  { %v3885_v29 = vmul.f32 %v5539_v8, %v3884_v10 }
0x20d9   :  { %v3886_v48 = vmul.f32 0.5, %v3885_v29 }
0x20db   :  { %v3887_v20 = vsub.f32 1.5, %v3886_v48 }
0x20dd   :  { %v3888_v50 = vmul.f32 %v5539_v8, %v3887_v20 }
0x20df   :  { %v3892_v33 = vsel %vm3891_vm15, %v5539_v8, %v3888_v50 }
0x20e0   :  { %v3903_v56 = vmul.f32 %v3892_v33, %v3869_v5 }
0x20e2   :  { %v3908_v35 = vmul.f32 %v5331_v32, %v3903_v56 }
0x20e4   :  { %v7248_v24 = vadd.f32 %v5332_v34, %v3908_v35 }
0x20e6   :  { %5047 = vmatmul.msk.f32.vlgmr.msra.gmra.mxu2 %vm417_vm3, %v7248_v24 }
0x20ff   :  { %v3878_v27 = vpop.xlane.xlu2 %3877 }
0x2100   :  { %v3880_v36 = vmul.f32 %v3878_v27, %v6493_v18 }
0x2102   :  { %v3882_v28 = vadd.f32 1e-05, %v3880_v36 }
0x2104   :  { %5540 = vrsqrt.f32 %v3882_v28  ;;  %vm3899_vm10 = vweird.f32 %v3882_v28 }
0x2107   :  { %v3992_v54 = vpop.permute.xlu2 %3991 }
0x210a   :  { %v5541_v37 = vpop.eup %5540 }
0x210b   :  { %v3894_v30 = vmul.f32 %v5541_v37, %v3882_v28  ;;  %vm3900_vm9 = vweird.f32 %v5541_v37 }
0x210c   :  { %vm3901_vm11 = vmor %vm3899_vm10, %vm3900_vm9 }
0x210d   :  { %v3895_v39 = vmul.f32 %v5541_v37, %v3894_v30 }
0x210f   :  { %v3896_v40 = vmul.f32 0.5, %v3895_v39 }
0x2111   :  { %v3897_v31 = vsub.f32 1.5, %v3896_v40 }
0x2113   :  { %v3898_v42 = vmul.f32 %v5541_v37, %v3897_v31 }
0x2115   :  { %v3902_v46 = vsel %vm3901_vm11, %v5541_v37, %v3898_v42 }
0x2116   :  { %v3904_v45 = vmul.f32 %v3902_v46, %v3870_v13 }
0x2118   :  { %v3909_v49 = vmul.f32 %v5331_v32, %v3904_v45 }
0x211a   :  { %v7253_v51 = vadd.f32 %v5332_v34, %v3909_v49 }
0x211c   :  { %5048 = vmatmul.msk.f32.gmra.mxu2 %vm417_vm3, %v7253_v51 }
0x2169   :  { %v3948_v41 = vpop.f32.mrf.mxu2 }
0x216a   :  { %v3949_v53 = vadd.f32 %v5333_v52, %v3948_v41 }
0x216c   :  { %3954 = vst.msk [vmem:[#allocation2] sm:$0xff] %vm417_vm3, %v3949_v53 }
0x216d   :  { %3997 = vst.msk [vmem:[#allocation2] sm:$0xff] %vm2643_vm2, %v3992_v54 }
0x2174   :  { %v7259_v38 = vld [vmem:[#allocation2] sm:$0xff] }
0x2175   :  { %4010 = vrot.lane.b32.xlu2 %v7259_v38, %s5998_s29 }
0x217d   :  { %4230 = vrot.lane.b32.xlu2 %v7259_v38, %s6001_s26 }
0x219f   :  { %v3951_v44 = vpop.f32.mrf.mxu2 }
0x21a0   :  { %v3952_v58 = vadd.f32 %v5333_v52, %v3951_v44 }
0x21a2   :  { %3955 = vst.msk [vmem:[#allocation2 + $0x8] sm:$0xff] %vm417_vm3, %v3952_v58 }
0x21a3   :  { %3998 = vst.msk [vmem:[#allocation2 + $0x8] sm:$0xff] %vm2643_vm2, %v3994_v47 }
0x21aa   :  { %v7267_v60 = vld [vmem:[#allocation2 + $0x8] sm:$0xff] }
0x21ab   :  { %4114 = vrot.lane.b32.xlu2 %v7267_v60, %s5995_s18  ;;  %4118 = vrot.lane.b32.xlu1 %v7267_v60, %s5997_s9  ;;  %v5277_v42 = vpack.i.bf16 %v7259_v38, %v7267_v60 }
0x21ac   :  { %4012 = vrot.lane.b32.xlu0 %v7267_v60, %s5998_s29 }
0x21b3   :  { %4340 = vrot.lane.b32.xlu2 %v7259_v38, %s6000_s21  ;;  %4112 = vrot.lane.b32.xlu1 %v7259_v38, %s5995_s18  ;;  %s4790_s18 = sshll.u32 %s6200_s8, 4  ;;  %s4791_s18 = int_to_ptr.hbm [resolvable:$true] %s4790_s18 }
0x21b4   :  { %4116 = vrot.lane.b32.xlu0 %v7259_v38, %s5997_s9 }
0x21bb   :  { %4346 = vrot.lane.b32.xlu1 %v7267_v60, %s5996_s22 }
0x21bc   :  { %4232 = vrot.lane.b32.xlu0 %v7267_v60, %s6001_s26 }
0x21c3   :  { %4226 = vrot.lane.b32.xlu1 %v7259_v38, %s5999_s6 }
0x21c4   :  { %4344 = vrot.lane.b32.xlu0 %v7259_v38, %s5996_s22  ;;  %s5914_s22 = sshra.s32 %s4791_s18, 4  ;;  %s5915_s22 = int_to_ptr.hbm [resolvable:$true] %s5914_s22 }
0x21c5   :  { %s5916_s9 = scalar_lea.hbm %s5915_s22, 16  ;;  %p5919_p10 = scmp.lt.s32.totalorder %s5915_s22, %s6200_s8 }
0x21c6   :  { %p5917_p9 = scmp.ne.s32.totalorder %s5915_s22, %s5916_s9 }
0x21cb   :  { %4342 = vrot.lane.b32.xlu1 %v7267_v60, %s6000_s21 }
0x21cc   :  { %4228 = vrot.lane.b32.xlu0 %v7267_v60, %s5999_s6 }
0x21cf   :  { %v4011_v63 = vpop.permute.xlu2 %4010 }
0x21d7   :  { %v4231_v59 = vpop.permute.xlu2 %4230 }
0x2205   :  { %v4115_v1 = vpop.permute.xlu2 %4114 }
0x220d   :  { %v4341_v9 = vpop.permute.xlu2 %4340 }
0x221d   :  { %v4119_v43 = vpop.permute.xlu1 %4118 }
0x221e   :  { %v4013_v55 = vpop.permute.xlu0 %4012  ;;  %5065 = vmatpush.xpose.msk.msrb.mxu2 %vm463_vm5, %v4119_v43 }
0x221f   :  { %5059 = vmatpush.xpose.msk.msra.mxu3 %vm463_vm5, %v4013_v55 }
0x2223   :  { %5060 = vmatpush.xpose.msk.msra.mxu3 %vm463_vm5, %v4011_v63 }
0x2225   :  { %v4113_v0 = vpop.permute.xlu1 %4112 }
0x2226   :  { %5061 = vmatmul.msk.f32.vlgmr.msra.gmra.mxu3 %vm463_vm5, %v7259_v38  ;;  %v4117_v57 = vpop.permute.xlu0 %4116 }
0x2227   :  { %5066 = vmatpush.xpose.msk.msrb.mxu2 %vm463_vm5, %v4117_v57 }
0x222a   :  { %5067 = vmatmul.msk.f32.vlgmr.msrb.gmra.mxu2 %vm463_vm5, %v4113_v0 }
0x222d   :  { %v4347_v61 = vpop.permute.xlu1 %4346 }
0x222e   :  { %5062 = vmatmul.msk.f32.gmra.mxu3 %vm463_vm5, %v7267_v60  ;;  %v4233_v3 = vpop.permute.xlu0 %4232  ;;  %5077 = vmatpush.xpose.msk.msra.mxu2 %vm463_vm5, %v4347_v61 }
0x222f   :  { %5071 = vmatpush.xpose.msk.msrb.mxu3 %vm463_vm5, %v4233_v3 }
0x2232   :  { %5068 = vmatmul.msk.f32.gmra.mxu2 %vm463_vm5, %v4115_v1 }
0x2233   :  { %5072 = vmatpush.xpose.msk.msrb.mxu3 %vm463_vm5, %v4231_v59 }
0x2235   :  { %v4227_v6 = vpop.permute.xlu1 %4226 }
0x2236   :  { %v4345_v7 = vpop.permute.xlu0 %4344  ;;  %5073 = vmatmul.msk.f32.vlgmr.msrb.gmra.mxu3 %vm463_vm5, %v4227_v6 }
0x2237   :  { %5078 = vmatpush.xpose.msk.msra.mxu2 %vm463_vm5, %v4345_v7 }
0x223a   :  { %5079 = vmatmul.msk.f32.vlgmr.msra.gmra.mxu2 %vm463_vm5, %v4341_v9 }
0x223d   :  { %v4343_v62 = vpop.permute.xlu1 %4342 }
0x223e   :  { %v4229_v4 = vpop.permute.xlu0 %4228 }
0x223f   :  { %5074 = vmatmul.msk.f32.gmra.mxu3 %vm463_vm5, %v4229_v4 }
0x2242   :  { %5080 = vmatmul.msk.f32.gmra.mxu2 %vm463_vm5, %v4343_v62 }
0x22a9   :  { %v4039_v5 = vpop.f32.mrf.mxu3 }
0x22aa   :  { %v4045_v11 = vmul.f32 0.35355338, %v4039_v5 }
0x22ac   :  { %v4047_v19 = vadd.f32 %v5588_v12, %v4045_v11 }
0x22ad   :  { %v4145_v21 = vpop.f32.mrf.mxu2 }
0x22ae   :  { %v4151_v13 = vmul.f32 0.35355338, %v4145_v21  ;;  %v4049_v14 = vsel %vm379_vm0, %v4047_v19, -inf }
0x22af   :  { %4050 = vmax.xlane.f32.xlu2 %v4049_v14 }
0x22b0   :  { %v4153_v16 = vadd.f32 %v5588_v12, %v4151_v13 }
0x22b1   :  { %v4042_v2 = vpop.f32.mrf.mxu3 }
0x22b2   :  { %v4046_v15 = vmul.f32 0.35355338, %v4042_v2  ;;  %v4155_v17 = vsel %vm379_vm0, %v4153_v16, -inf }
0x22b3   :  { %4156 = vmax.xlane.f32.xlu0 %v4155_v17 }
0x22b4   :  { %v4048_v23 = vadd.f32 %v5589_v22, %v4046_v15 }
0x22b5   :  { %v4148_v26 = vpop.f32.mrf.mxu2 }
0x22b6   :  { %v4152_v25 = vmul.f32 0.35355338, %v4148_v26  ;;  %v4052_v8 = vsel %vm379_vm0, %v4048_v23, -inf }
0x22b7   :  { %4053 = vmax.xlane.f32.xlu1 %v4052_v8 }
0x22b8   :  { %v4154_v10 = vadd.f32 %v5589_v22, %v4152_v25 }
0x22b9   :  { %v4259_v29 = vpop.f32.mrf.mxu3 }
0x22ba   :  { %v4265_v48 = vmul.f32 0.35355338, %v4259_v29  ;;  %v4158_v20 = vsel %vm379_vm0, %v4154_v10, -inf }
0x22bb   :  { %4159 = vmax.xlane.f32.xlu2 %v4158_v20 }
0x22bc   :  { %v4267_v50 = vadd.f32 %v5588_v12, %v4265_v48 }
0x22bd   :  { %v4373_v32 = vpop.f32.mrf.mxu2 }
0x22be   :  { %v4379_v33 = vmul.f32 0.35355338, %v4373_v32  ;;  %v4269_v34 = vsel %vm379_vm0, %v4267_v50, -inf }
0x22bf   :  { %4270 = vmax.xlane.f32.xlu0 %v4269_v34 }
0x22c0   :  { %v4381_v56 = vadd.f32 %v5588_v12, %v4379_v33 }
0x22c2   :  { %v4262_v35 = vpop.f32.mrf.mxu3  ;;  %v4383_v27 = vsel %vm379_vm0, %v4381_v56, -inf }
0x22c3   :  { %v4266_v36 = vmul.f32 0.35355338, %v4262_v35  ;;  %4384 = vmax.xlane.f32.xlu1 %v4383_v27 }
0x22c5   :  { %v4268_v28 = vadd.f32 %v5589_v22, %v4266_v36  ;;  %v4376_v37 = vpop.f32.mrf.mxu2 }
0x22c6   :  { %v4380_v30 = vmul.f32 0.35355338, %v4376_v37 }
0x22c7   :  { %v4272_v39 = vsel %vm379_vm0, %v4268_v28, -inf }
0x22c8   :  { %v7320_v40 = vadd.f32 %v5589_v22, %v4380_v30  ;;  %4273 = vmax.xlane.f32.xlu2 %v4272_v39 }
0x22ca   :  { %v4386_v31 = vsel %vm379_vm0, %v7320_v40, -inf }
0x22cb   :  { %4387 = vmax.xlane.f32.xlu0 %v4386_v31 }
0x22df   :  { %5278 = vrot.lane.b32.xlu0 %v5277_v42, %s6002_s23 }
0x2322   :  { %v4051_v46 = vpop.xlane.xlu2 %4050 }
0x2323   :  { %v4055_v45 = vsub.f32 %v4047_v19, %v4051_v46 }
0x2325   :  { %v4057_v49 = vmul.f32 1.442695, %v4055_v45 }
0x2326   :  { %v4157_v52 = vpop.xlane.xlu0 %4156 }
0x2327   :  { %5542 = vpow2.f32 %v4057_v49  ;;  %v4161_v41 = vsub.f32 %v4153_v16, %v4157_v52 }
0x2329   :  { %v4163_v53 = vmul.f32 1.442695, %v4161_v41 }
0x232a   :  { %v4054_v54 = vpop.xlane.xlu1 %4053 }
0x232b   :  { %5544 = vpow2.f32 %v4163_v53  ;;  %v4056_v44 = vsub.f32 %v4048_v23, %v4054_v54 }
0x232d   :  { %v5543_v58 = vpop.eup %5542  ;;  %v4059_v47 = vmul.f32 1.442695, %v4056_v44 }
0x232e   :  { %v4160_v63 = vpop.xlane.xlu2 %4159  ;;  %v4061_v43 = vsel %vm379_vm0, %v5543_v58, 0.0 }
0x232f   :  { %5546 = vpow2.f32 %v4059_v47  ;;  %v4162_v55 = vsub.f32 %v4154_v10, %v4160_v63  ;;  %4062 = vadd.xlane.f32.xlu1 %v4061_v43 }
0x2331   :  { %v5545_v38 = vpop.eup %5544  ;;  %v4165_v60 = vmul.f32 1.442695, %v4162_v55 }
0x2332   :  { %v4167_v0 = vsel %vm379_vm0, %v5545_v38, 0.0  ;;  %v4271_v57 = vpop.xlane.xlu0 %4270 }
0x2333   :  { %4168 = vadd.xlane.f32.xlu2 %v4167_v0  ;;  %5548 = vpow2.f32 %v4165_v60  ;;  %v4275_v61 = vsub.f32 %v4267_v50, %v4271_v57 }
0x2335   :  { %v5547_v59 = vpop.eup %5546  ;;  %v4277_v7 = vmul.f32 1.442695, %v4275_v61 }
0x2336   :  { %v4385_v3 = vpop.xlane.xlu1 %4384  ;;  %v4064_v1 = vsel %vm379_vm0, %v5547_v59, 0.0 }
0x2337   :  { %v4389_v6 = vsub.f32 %v4381_v56, %v4385_v3  ;;  %4065 = vadd.xlane.f32.xlu1 %v4064_v1 }
0x2339   :  { %v4391_v9 = vmul.f32 1.442695, %v4389_v6  ;;  %v5549_v4 = vpop.eup %5548 }
0x233a   :  { %v4170_v62 = vsel %vm379_vm0, %v5549_v4, 0.0 }
0x233b   :  { %5550 = vpow2.f32 %v4391_v9  ;;  %v4274_v2 = vpop.xlane.xlu2 %4273 }
0x233c   :  { %5552 = vpow2.f32 %v4277_v7  ;;  %v4276_v15 = vsub.f32 %v4268_v28, %v4274_v2 }
0x233e   :  { %v4388_v21 = vpop.xlane.xlu0 %4387  ;;  %v4279_v17 = vmul.f32 1.442695, %v4276_v15  ;;  %v5334_v15 = vld [vmem:[#allocation18 + $0x1] ss:$0 sm:$0xff] }
0x233f   :  { %4171 = vadd.xlane.f32.xlu1 %v4170_v62  ;;  %v4390_v26 = vsub.f32 %v7320_v40, %v4388_v21 }
0x2340   :  { %5554 = vpow2.f32 %v4279_v17 }
0x2341   :  { %v7331_v5 = vpop.eup %5550  ;;  %v4393_v25 = vmul.f32 1.442695, %v4390_v26 }
0x2342   :  { %v4395_v11 = vsel %vm379_vm0, %v7331_v5, 0.0  ;;  %v5553_v12 = vpop.eup %5552 }
0x2343   :  { %4396 = vadd.xlane.f32.xlu0 %v4395_v11  ;;  %v4281_v19 = vsel %vm379_vm0, %v5553_v12, 0.0  ;;  %5556 = vpow2.f32 %v4393_v25  ;;  %v5057_v11 = vld [vmem:[%s7481_s1 + $0x30] sm:$0xff] }
0x2346   :  { %v5555_v22 = vpop.eup %5554 }
0x2347   :  { %4282 = vadd.xlane.f32.xlu1 %v4281_v19  ;;  %v4284_v23 = vsel %vm379_vm0, %v5555_v22, 0.0  ;;  %v5055_v19 = vld [vmem:[%s7481_s1 + $0x20] sm:$0xff] }
0x2349   :  { %v5557_v8 = vpop.eup %5556 }
0x234a   :  { %v4398_v10 = vsel %vm379_vm0, %v5557_v8, 0.0 }
0x234b   :  { %5283 = vrot.lane.b32.xlu2 %v5277_v42, %s6004_s2 }
0x2351   :  { %v5279_v13 = vpop.permute.xlu0 %5278 }
0x2352   :  { %v5280_v14 = vunpack.i.l.bf16 %v5279_v13  ;;  %v5281_v16 = vunpack.i.h.bf16 %v5279_v13 }
0x2354   :  { %4097 = vmatpush.msrb.mxu1 %v5280_v14 }
0x2356   :  { %4098 = vmatpush.msrb.mxu1 %v5281_v16 }
0x2360   :  { %5288 = vrot.lane.b32.xlu1 %v5277_v42, %s6003_s27 }
0x2368   :  { %5293 = vrot.lane.b32.xlu1 %v5277_v42, %s6005_s12 }
0x2374   :  { %4285 = vadd.xlane.f32.xlu2 %v4284_v23 }
0x2392   :  { %4399 = vadd.xlane.f32.xlu1 %v4398_v10 }
0x23a2   :  { %v4063_v29 = vpop.xlane.xlu1 %4062 }
0x23a3   :  { %5558 = vrcp.f32 %v4063_v29 }
0x23a6   :  { %v4169_v48 = vpop.xlane.xlu2 %4168 }
0x23a7   :  { %5560 = vrcp.f32 %v4169_v48 }
0x23a9   :  { %v5559_v20 = vpop.eup %5558 }
0x23aa   :  { %v4069_v50 = vmul.f32 %v5559_v20, %v5543_v58  ;;  %v4066_v32 = vpop.xlane.xlu1 %4065 }
0x23ab   :  { %5562 = vrcp.f32 %v4066_v32 }
0x23ac   :  { %5063 = vmatmul.msk.f32.vlgmr.msrb.gmra.mxu1 %vm379_vm0, %v4069_v50 }
0x23ad   :  { %v5561_v34 = vpop.eup %5560 }
0x23ae   :  { %v5284_v33 = vpop.permute.xlu2 %5283  ;;  %v4175_v36 = vmul.f32 %v5561_v34, %v5545_v38 }
0x23af   :  { %v5285_v56 = vunpack.i.l.bf16 %v5284_v33  ;;  %v5286_v27 = vunpack.i.h.bf16 %v5284_v33 }
0x23b1   :  { %v5563_v35 = vpop.eup %5562  ;;  %4203 = vmatpush.msra.mxu0 %v5285_v56 }
0x23b2   :  { %v4172_v28 = vpop.xlane.xlu1 %4171  ;;  %v4070_v37 = vmul.f32 %v5563_v35, %v5547_v59 }
0x23b3   :  { %5564 = vrcp.f32 %v4172_v28  ;;  %4204 = vmatpush.msra.mxu0 %v5286_v27  ;;  %v5088_v27 = vld [vmem:[%s7482_s0 + $0x38] sm:$0xff]  ;;  %v5086_v28 = vld [vmem:[%s7482_s0 + $0x28] sm:$0xff] }
0x23b4   :  { %5064 = vmatmul.msk.f32.gmra.mxu1 %vm379_vm0, %v4070_v37  ;;  %5069 = vmatmul.msk.f32.vlgmr.msra.gmra.mxu0 %vm379_vm0, %v4175_v36  ;;  %v5087_v36 = vld [vmem:[%s7482_s0 + $0x30] sm:$0xff]  ;;  %v5085_v37 = vld [vmem:[%s7482_s0 + $0x20] sm:$0xff] }
0x23b6   :  { %v4397_v31 = vpop.xlane.xlu0 %4396 }
0x23b9   :  { %v5565_v30 = vpop.eup %5564 }
0x23ba   :  { %v4176_v39 = vmul.f32 %v5565_v30, %v5549_v4  ;;  %v4283_v40 = vpop.xlane.xlu1 %4282 }
0x23bb   :  { %5566 = vrcp.f32 %v4283_v40 }
0x23bc   :  { %5070 = vmatmul.msk.f32.gmra.mxu0 %vm379_vm0, %v4176_v39  ;;  %5568 = vrcp.f32 %v4397_v31 }
0x23c1   :  { %v5567_v46 = vpop.eup %5566 }
0x23c2   :  { %v4289_v52 = vmul.f32 %v5567_v46, %v5553_v12  ;;  %v5569_v53 = vpop.eup %5568  ;;  %v5056_v12 = vld [vmem:[%s7481_s1 + $0x28] sm:$0xff] }
0x23c3   :  { %v4403_v58 = vmul.f32 %v5569_v53, %v7331_v5  ;;  %v5058_v5 = vld [vmem:[%s7481_s1 + $0x38] sm:$0xff] }
0x23c4   :  { %4473 = vmatpush.msra.mxu3 %v5058_v5 }
0x23c6   :  { %4474 = vmatpush.msra.mxu3 %v5057_v11 }
0x23c8   :  { %4475 = vmatpush.msra.mxu3 %v5056_v12  ;;  %v5093_v12 = vld [vmem:[%s7483_s28 + $0x50] sm:$0xff] }
0x23ca   :  { %4476 = vmatpush.msra.mxu3 %v5055_v19  ;;  %v5092_v19 = vld [vmem:[%s7483_s28 + $0x48] sm:$0xff] }
0x23d2   :  { %v5289_v42 = vpop.permute.xlu1 %5288 }
0x23d3   :  { %v5290_v45 = vunpack.i.l.bf16 %v5289_v42  ;;  %v5291_v49 = vunpack.i.h.bf16 %v5289_v42 }
0x23d5   :  { %4317 = vmatpush.msra.mxu1 %v5290_v45 }
0x23d7   :  { %4318 = vmatpush.msra.mxu1 %v5291_v49 }
0x23d8   :  { %5075 = vmatmul.msk.f32.vlgmr.msra.gmra.mxu1 %vm379_vm0, %v4289_v52 }
0x23d9   :  { %4572 = vmatpush.msrb.mxu1 %v5088_v27 }
0x23da   :  { %v5294_v41 = vpop.permute.xlu1 %5293 }
0x23db   :  { %v5295_v54 = vunpack.i.l.bf16 %v5294_v41  ;;  %v5296_v44 = vunpack.i.h.bf16 %v5294_v41  ;;  %4573 = vmatpush.msrb.mxu1 %v5087_v36  ;;  %v5335_v41 = vld [vmem:[#allocation22 + $0x8] ss:$0 sm:$0xff] }
0x23dd   :  { %4431 = vmatpush.msrb.mxu0 %v5295_v54  ;;  %4574 = vmatpush.msrb.mxu1 %v5086_v28  ;;  %v5336_v54 = vld [vmem:[#allocation22 + $0x9] ss:$0 sm:$0xff] }
0x23df   :  { %4432 = vmatpush.msrb.mxu0 %v5296_v44  ;;  %4575 = vmatpush.msrb.mxu1 %v5085_v37 }
0x23e0   :  { %5081 = vmatmul.msk.f32.vlgmr.msrb.gmra.mxu0 %vm379_vm0, %v4403_v58 }
0x23e7   :  { %v4286_v47 = vpop.xlane.xlu2 %4285 }
0x23e8   :  { %5570 = vrcp.f32 %v4286_v47 }
0x23ee   :  { %v5571_v63 = vpop.eup %5570 }
0x23ef   :  { %v4290_v43 = vmul.f32 %v5571_v63, %v5555_v22  ;;  %v5098_v63 = vld [vmem:[%s7483_s28 + $0x78] sm:$0xff] }
0x23f0   :  { %4613 = vmatpush.msrb.mxu2 %v5098_v63 }
0x23f1   :  { %5076 = vmatmul.msk.f32.gmra.mxu1 %vm379_vm0, %v4290_v43  ;;  %v5097_v43 = vld [vmem:[%s7483_s28 + $0x70] sm:$0xff] }
0x23f2   :  { %4614 = vmatpush.msrb.mxu2 %v5097_v43 }
0x2405   :  { %v4400_v55 = vpop.xlane.xlu1 %4399 }
0x2406   :  { %5572 = vrcp.f32 %v4400_v55  ;;  %v5096_v55 = vld [vmem:[%s7483_s28 + $0x68] sm:$0xff] }
0x2407   :  { %4615 = vmatpush.msrb.mxu2 %v5096_v55 }
0x240c   :  { %v5573_v38 = vpop.eup %5572 }
0x240d   :  { %v4404_v60 = vmul.f32 %v5573_v38, %v5557_v8 }
0x240f   :  { %5082 = vmatmul.msk.f32.gmra.mxu0 %vm379_vm0, %v4404_v60 }
0x2429   :  { %v4100_v0 = vpop.f32.mrf.mxu1 }
0x242a   :  { %4106 = vst.msk [vmem:[#allocation3] sm:$0xff] %vm463_vm5, %v4100_v0  ;;  %v5095_v0 = vld [vmem:[%s7483_s28 + $0x60] sm:$0xff] }
0x242b   :  { %4616 = vmatpush.msrb.mxu2 %v5095_v0 }
0x2431   :  { %v4103_v57 = vpop.f32.mrf.mxu1  ;;  %v4206_v59 = vpop.f32.mrf.mxu0 }
0x2432   :  { %4107 = vst.msk [vmem:[#allocation3 + $0x8] sm:$0xff] %vm463_vm5, %v4103_v57  ;;  %4214 = vrot.lane.b32.xlu0 %v4206_v59, %s6006_s24  ;;  %v5094_v59 = vld [vmem:[%s7483_s28 + $0x58] sm:$0xff] }
0x2433   :  { %4617 = vmatpush.msrb.mxu2 %v5094_v59 }
0x2435   :  { %4618 = vmatpush.msrb.mxu2 %v5093_v12 }
0x2437   :  { %4619 = vmatpush.msrb.mxu2 %v5092_v19 }
0x2439   :  { %v4209_v61 = vpop.f32.mrf.mxu0 }
0x243a   :  { %4216 = vrot.lane.b32.xlu0 %v4209_v61, %s6006_s24 }
0x2455   :  { %v4320_v3 = vpop.f32.mrf.mxu1 }
0x2456   :  { %4328 = vrot.lane.b32.xlu2 %v4320_v3, %s5979_s15 }
0x245d   :  { %v4434_v1 = vpop.f32.mrf.mxu0 }
0x245e   :  { %4442 = vrot.lane.b32.xlu0 %v4434_v1, %s6007_s10 }
0x246e   :  { %v4323_v6 = vpop.f32.mrf.mxu1 }
0x246f   :  { %4330 = vrot.lane.b32.xlu2 %v4323_v6, %s5979_s15 }
0x248c   :  { %v4437_v7 = vpop.f32.mrf.mxu0 }
0x248d   :  { %4444 = vrot.lane.b32.xlu0 %v4437_v7, %s6007_s10 }
0x24a4   :  { %v4215_v9 = vpop.permute.xlu0 %4214 }
0x24a5   :  { %4220 = vst.msk [vmem:[#allocation3] sm:$0xff] %vm670_vm6, %v4215_v9 }
0x24ac   :  { %v4217_v4 = vpop.permute.xlu0 %4216 }
0x24ad   :  { %4221 = vst.msk [vmem:[#allocation3 + $0x8] sm:$0xff] %vm670_vm6, %v4217_v4 }
0x24b0   :  { %v4329_v62 = vpop.permute.xlu2 %4328 }
0x24b1   :  { %4334 = vst.msk [vmem:[#allocation3] sm:$0xff] %vm785_vm7, %v4329_v62 }
0x24c9   :  { %v4331_v21 = vpop.permute.xlu2 %4330 }
0x24ca   :  { %4335 = vst.msk [vmem:[#allocation3 + $0x8] sm:$0xff] %vm785_vm7, %v4331_v21  ;;  %v5091_v21 = vld [vmem:[%s7483_s28 + $0x40] sm:$0xff] }
0x24cb   :  { %4620 = vmatpush.msrb.mxu2 %v5091_v21 }
0x24d0   :  { %v4443_v13 = vpop.permute.xlu0 %4442 }
0x24d1   :  { %4448 = vst.msk [vmem:[#allocation3] sm:$0xff] %vm900_vm8, %v4443_v13  ;;  %v5337_v13 = vld [vmem:[#allocation19 + $0x1] ss:$0 sm:$0xff] }
0x24d8   :  { %v4450_v14 = vld [vmem:[#allocation3] sm:$0xff] }
0x24d9   :  { %5083 = vmatmul.msk.f32.vlgmr.msra.gmra.mxu3 %vm417_vm3, %v4450_v14 }
0x24ff   :  { %v4445_v16 = vpop.permute.xlu0 %4444 }
0x2500   :  { %4449 = vst.msk [vmem:[#allocation3 + $0x8] sm:$0xff] %vm900_vm8, %v4445_v16 }
0x2507   :  { %v4451_v2 = vld [vmem:[#allocation3 + $0x8] sm:$0xff] }
0x2508   :  { %5084 = vmatmul.msk.f32.gmra.mxu3 %vm417_vm3, %v4451_v2 }
0x255c   :  { %v4478_v17 = vpop.f32.mrf.mxu3 }
0x255d   :  { %v4479_v22 = vadd.f32 %v5334_v15, %v4478_v17 }
0x255f   :  { %v4484_v23 = vadd.f32 %v4479_v22, %v7248_v24 }
0x2561   :  { %v4490_v26 = vsel %vm417_vm3, %v4484_v23, 0.0 }
0x2562   :  { %4491 = vadd.xlane.f32.xlu1 %v4490_v26 }
0x258b   :  { %v4481_v25 = vpop.f32.mrf.mxu3 }
0x258c   :  { %v4482_v8 = vadd.f32 %v5334_v15, %v4481_v25 }
0x258e   :  { %v4485_v10 = vadd.f32 %v4482_v8, %v7253_v51 }
0x2590   :  { %v4493_v29 = vsel %vm417_vm3, %v4485_v10, 0.0 }
0x2591   :  { %4494 = vadd.xlane.f32.xlu2 %v4493_v29 }
0x25d5   :  { %v4492_v48 = vpop.xlane.xlu1 %4491 }
0x25d6   :  { %v4496_v20 = vmul.f32 %v4492_v48, %v6493_v18 }
0x25d8   :  { %v4498_v50 = vsub.f32 %v4484_v23, %v4496_v20  ;;  %v5338_v23 = vld [vmem:[#allocation21 + $0x1] ss:$0 sm:$0xff] }
0x25da   :  { %v4500_v32 = vmul.f32 %v4498_v50, %v4498_v50 }
0x25dc   :  { %v4502_v24 = vsel %vm417_vm3, %v4500_v32, 0.0 }
0x25dd   :  { %4503 = vadd.xlane.f32.xlu0 %v4502_v24 }
0x2604   :  { %v4495_v33 = vpop.xlane.xlu2 %4494 }
0x2605   :  { %v4497_v34 = vmul.f32 %v4495_v33, %v6493_v18 }
0x2607   :  { %v4499_v56 = vsub.f32 %v4485_v10, %v4497_v34 }
0x2609   :  { %v4501_v35 = vmul.f32 %v4499_v56, %v4499_v56 }
0x260b   :  { %v4505_v51 = vsel %vm417_vm3, %v4501_v35, 0.0 }
0x260c   :  { %4506 = vadd.xlane.f32.xlu1 %v4505_v51 }
0x2650   :  { %v4504_v30 = vpop.xlane.xlu0 %4503 }
0x2651   :  { %v4508_v39 = vmul.f32 %v4504_v30, %v6493_v18 }
0x2653   :  { %v4510_v40 = vadd.f32 1e-05, %v4508_v39 }
0x2655   :  { %5574 = vrsqrt.f32 %v4510_v40  ;;  %vm4518_vm6 = vweird.f32 %v4510_v40 }
0x265b   :  { %v5575_v31 = vpop.eup %5574 }
0x265c   :  { %v4513_v42 = vmul.f32 %v5575_v31, %v4510_v40  ;;  %vm4519_vm5 = vweird.f32 %v5575_v31 }
0x265d   :  { %vm4520_vm7 = vmor %vm4518_vm6, %vm4519_vm5 }
0x265e   :  { %v4514_v46 = vmul.f32 %v5575_v31, %v4513_v42 }
0x2660   :  { %v4515_v45 = vmul.f32 0.5, %v4514_v46 }
0x2662   :  { %v4516_v49 = vsub.f32 1.5, %v4515_v45 }
0x2664   :  { %v4517_v52 = vmul.f32 %v5575_v31, %v4516_v49 }
0x2666   :  { %v4521_v53 = vsel %vm4520_vm7, %v5575_v31, %v4517_v52  ;;  %v5339_v52 = vld [vmem:[#allocation22 + $0xa] ss:$0 sm:$0xff] }
0x2667   :  { %v4532_v44 = vmul.f32 %v4521_v53, %v4498_v50 }
0x2669   :  { %v4537_v58 = vmul.f32 %v5335_v41, %v4532_v44 }
0x266b   :  { %v4542_v47 = vadd.f32 %v5336_v54, %v4537_v58 }
0x266d   :  { %5089 = vmatmul.msk.f32.vlgmr.msrb.gmra.mxu1 %vm417_vm3, %v4542_v47 }
0x267f   :  { %v4507_v38 = vpop.xlane.xlu1 %4506 }
0x2680   :  { %v4509_v60 = vmul.f32 %v4507_v38, %v6493_v18 }
0x2682   :  { %v4511_v57 = vadd.f32 1e-05, %v4509_v60 }
0x2684   :  { %5576 = vrsqrt.f32 %v4511_v57  ;;  %vm4528_vm2 = vweird.f32 %v4511_v57 }
0x268a   :  { %v5577_v61 = vpop.eup %5576 }
0x268b   :  { %v4523_v3 = vmul.f32 %v5577_v61, %v4511_v57  ;;  %vm4529_vm8 = vweird.f32 %v5577_v61 }
0x268c   :  { %vm4530_vm12 = vmor %vm4528_vm2, %vm4529_vm8 }
0x268d   :  { %v4524_v1 = vmul.f32 %v5577_v61, %v4523_v3 }
0x268f   :  { %v4525_v6 = vmul.f32 0.5, %v4524_v1 }
0x2691   :  { %v4526_v7 = vsub.f32 1.5, %v4525_v6 }
0x2693   :  { %v4527_v9 = vmul.f32 %v5577_v61, %v4526_v7 }
0x2695   :  { %v4531_v4 = vsel %vm4530_vm12, %v5577_v61, %v4527_v9 }
0x2696   :  { %v4533_v62 = vmul.f32 %v4531_v4, %v4499_v56 }
0x2698   :  { %v4538_v5 = vmul.f32 %v5335_v41, %v4533_v62 }
0x269a   :  { %v4543_v11 = vadd.f32 %v5336_v54, %v4538_v5  ;;  %v5340_v54 = vld [vmem:[#allocation22 + $0xb] ss:$0 sm:$0xff] }
0x269c   :  { %5090 = vmatmul.msk.f32.gmra.mxu1 %vm417_vm3, %v4543_v11 }
0x26ea   :  { %v4577_v14 = vpop.f32.mrf.mxu1 }
0x26eb   :  { %v4578_v16 = vadd.f32 %v5337_v13, %v4577_v14 }
0x26ed   :  { %v4583_v2 = vmax.f32 %v4578_v16, 0.0 }
0x26ef   :  { %5099 = vmatmul.msk.f32.vlgmr.msrb.gmra.mxu2 %vm1054_vm1, %v4583_v2  ;;  %v4748_v2 = vld [vmem:[%s6190_s3 + $0x18] sm:$0xff] }
0x26f0   :  { %4771 = vmatpush.msra.mxu0 %v4748_v2 }
0x2719   :  { %v4580_v15 = vpop.f32.mrf.mxu1 }
0x271a   :  { %v4581_v17 = vadd.f32 %v5337_v13, %v4580_v15  ;;  %v4747_v15 = vld [vmem:[%s6190_s3 + $0x10] sm:$0xff] }
0x271b   :  { %4772 = vmatpush.msra.mxu0 %v4747_v15 }
0x271c   :  { %v4584_v22 = vmax.f32 %v4581_v17, 0.0  ;;  %v4746_v17 = vld [vmem:[%s6190_s3 + $0x8] sm:$0xff] }
0x271d   :  { %4773 = vmatpush.msra.mxu0 %v4746_v17 }
0x271e   :  { %5100 = vmatmul.msk.f32.gmra.mxu2 %vm1054_vm1, %v4584_v22  ;;  %v4745_v22 = vld [vmem:[%s6190_s3] sm:$0xff]  ;;  %s6010_s3 = smov [#allocation25]  }
0x271f   :  { %4774 = vmatpush.msra.mxu0 %v4745_v22  ;;  %s4788_s15 = sshll.u32 %s6010_s3, 4  ;;  %s4789_s15 = int_to_ptr.vmem [resolvable:$true] %s4788_s15 }
0x2772   :  { %v4622_v26 = vpop.f32.mrf.mxu2 }
0x2773   :  { %v4623_v25 = vadd.f32 %v5338_v23, %v4622_v26 }
0x2775   :  { %v4628_v8 = vadd.f32 %v4623_v25, %v4542_v47 }
0x2777   :  { %v4634_v10 = vsel %vm417_vm3, %v4628_v8, 0.0 }
0x2778   :  { %4635 = vadd.xlane.f32.xlu1 %v4634_v10 }
0x27a1   :  { %v4625_v29 = vpop.f32.mrf.mxu2 }
0x27a2   :  { %v4626_v48 = vadd.f32 %v5338_v23, %v4625_v29 }
0x27a4   :  { %v4629_v20 = vadd.f32 %v4626_v48, %v4543_v11 }
0x27a6   :  { %v4637_v50 = vsel %vm417_vm3, %v4629_v20, 0.0 }
0x27a7   :  { %4638 = vadd.xlane.f32.xlu1 %v4637_v50 }
0x27eb   :  { %v4636_v32 = vpop.xlane.xlu1 %4635 }
0x27ec   :  { %v4640_v24 = vmul.f32 %v4636_v32, %v6493_v18  ;;  %v5341_v32 = vld [vmem:[#allocation24] ss:$0 sm:$0xff] }
0x27ee   :  { %v4642_v33 = vsub.f32 %v4628_v8, %v4640_v24 }
0x27f0   :  { %v4644_v34 = vmul.f32 %v4642_v33, %v4642_v33 }
0x27f2   :  { %v4646_v56 = vsel %vm417_vm3, %v4644_v34, 0.0 }
0x27f3   :  { %4647 = vadd.xlane.f32.xlu1 %v4646_v56 }
0x281a   :  { %v4639_v35 = vpop.xlane.xlu1 %4638 }
0x281b   :  { %v4641_v51 = vmul.f32 %v4639_v35, %v6493_v18 }
0x281d   :  { %v4643_v27 = vsub.f32 %v4629_v20, %v4641_v51 }
0x281f   :  { %v4645_v36 = vmul.f32 %v4643_v27, %v4643_v27 }
0x2821   :  { %v4649_v28 = vsel %vm417_vm3, %v4645_v36, 0.0 }
0x2822   :  { %4650 = vadd.xlane.f32.xlu1 %v4649_v28 }
0x2866   :  { %v4648_v37 = vpop.xlane.xlu1 %4647 }
0x2867   :  { %v4652_v30 = vmul.f32 %v4648_v37, %v6493_v18 }
0x2869   :  { %v4654_v39 = vadd.f32 1e-05, %v4652_v30 }
0x286b   :  { %5578 = vrsqrt.f32 %v4654_v39  ;;  %vm4662_vm13 = vweird.f32 %v4654_v39 }
0x2871   :  { %v5579_v40 = vpop.eup %5578 }
0x2872   :  { %v4657_v31 = vmul.f32 %v5579_v40, %v4654_v39  ;;  %vm4663_vm1 = vweird.f32 %v5579_v40 }
0x2873   :  { %vm4664_vm4 = vmor %vm4662_vm13, %vm4663_vm1 }
0x2874   :  { %v4658_v42 = vmul.f32 %v5579_v40, %v4657_v31 }
0x2876   :  { %v4659_v46 = vmul.f32 0.5, %v4658_v42 }
0x2878   :  { %v4660_v45 = vsub.f32 1.5, %v4659_v46 }
0x287a   :  { %v4661_v49 = vmul.f32 %v5579_v40, %v4660_v45 }
0x287c   :  { %v4665_v41 = vsel %vm4664_vm4, %v5579_v40, %v4661_v49 }
0x287d   :  { %v4676_v53 = vmul.f32 %v4665_v41, %v4642_v33  ;;  %v5342_v33 = vld [vmem:[#allocation24 + $0x1] ss:$0 sm:$0xff] }
0x287f   :  { %v4681_v44 = vmul.f32 %v5339_v52, %v4676_v53 }
0x2881   :  { %v4686_v58 = vadd.f32 %v5340_v54, %v4681_v44 }
0x2883   :  { %v4691_v47 = vsel %vm417_vm3, %v4686_v58, 0.0 }
0x2884   :  { %4692 = vadd.xlane.f32.xlu2 %v4691_v47 }
0x2895   :  { %v4651_v63 = vpop.xlane.xlu1 %4650 }
0x2896   :  { %v4653_v43 = vmul.f32 %v4651_v63, %v6493_v18 }
0x2898   :  { %v4655_v55 = vadd.f32 1e-05, %v4653_v43 }
0x289a   :  { %5580 = vrsqrt.f32 %v4655_v55  ;;  %vm4672_vm15 = vweird.f32 %v4655_v55 }
0x28a0   :  { %v5581_v38 = vpop.eup %5580 }
0x28a1   :  { %v4667_v60 = vmul.f32 %v5581_v38, %v4655_v55  ;;  %vm4673_vm14 = vweird.f32 %v5581_v38 }
0x28a2   :  { %vm4674_vm9 = vmor %vm4672_vm15, %vm4673_vm14 }
0x28a3   :  { %v4668_v0 = vmul.f32 %v5581_v38, %v4667_v60 }
0x28a5   :  { %v4669_v57 = vmul.f32 0.5, %v4668_v0 }
0x28a7   :  { %v4670_v59 = vsub.f32 1.5, %v4669_v57 }
0x28a9   :  { %v4671_v61 = vmul.f32 %v5581_v38, %v4670_v59 }
0x28ab   :  { %v4675_v3 = vsel %vm4674_vm9, %v5581_v38, %v4671_v61 }
0x28ac   :  { %v4677_v1 = vmul.f32 %v4675_v3, %v4643_v27 }
0x28ae   :  { %v4682_v6 = vmul.f32 %v5339_v52, %v4677_v1 }
0x28b0   :  { %v4687_v7 = vadd.f32 %v5340_v54, %v4682_v6 }
0x28b2   :  { %v4694_v9 = vsel %vm417_vm3, %v4687_v7, 0.0 }
0x28b3   :  { %4695 = vadd.xlane.f32.xlu1 %v4694_v9 }
0x28f7   :  { %v4693_v4 = vpop.xlane.xlu2 %4692 }
0x28f8   :  { %v4697_v62 = vmul.f32 %v4693_v4, %v6493_v18 }
0x28fa   :  { %v4699_v5 = vsub.f32 %v4686_v58, %v4697_v62 }
0x28fc   :  { %v4701_v11 = vmul.f32 %v4699_v5, %v4699_v5 }
0x28fe   :  { %v4703_v12 = vsel %vm417_vm3, %v4701_v11, 0.0 }
0x28ff   :  { %4704 = vadd.xlane.f32.xlu0 %v4703_v12 }
0x2926   :  { %v4696_v19 = vpop.xlane.xlu1 %4695 }
0x2927   :  { %v4698_v21 = vmul.f32 %v4696_v19, %v6493_v18 }
0x2929   :  { %v4700_v13 = vsub.f32 %v4687_v7, %v4698_v21 }
0x292b   :  { %v4702_v14 = vmul.f32 %v4700_v13, %v4700_v13 }
0x292d   :  { %v4706_v16 = vsel %vm417_vm3, %v4702_v14, 0.0 }
0x292e   :  { %4707 = vadd.xlane.f32.xlu2 %v4706_v16 }
0x2972   :  { %v4705_v23 = vpop.xlane.xlu0 %4704 }
0x2973   :  { %v4709_v26 = vmul.f32 %v4705_v23, %v6493_v18 }
0x2975   :  { %v4711_v25 = vadd.f32 1e-05, %v4709_v26 }
0x2977   :  { %5582 = vrsqrt.f32 %v4711_v25  ;;  %vm4719_vm11 = vweird.f32 %v4711_v25 }
0x297d   :  { %v5583_v8 = vpop.eup %5582 }
0x297e   :  { %v4714_v10 = vmul.f32 %v5583_v8, %v4711_v25  ;;  %vm4720_vm10 = vweird.f32 %v5583_v8 }
0x297f   :  { %vm4721_vm5 = vmor %vm4719_vm11, %vm4720_vm10 }
0x2980   :  { %v4715_v29 = vmul.f32 %v5583_v8, %v4714_v10 }
0x2982   :  { %v4716_v48 = vmul.f32 0.5, %v4715_v29 }
0x2984   :  { %v4717_v20 = vsub.f32 1.5, %v4716_v48 }
0x2986   :  { %v4718_v50 = vmul.f32 %v5583_v8, %v4717_v20 }
0x2988   :  { %v4722_v24 = vsel %vm4721_vm5, %v5583_v8, %v4718_v50 }
0x2989   :  { %v4733_v34 = vmul.f32 %v4722_v24, %v4699_v5 }
0x298b   :  { %v4738_v56 = vmul.f32 %v5341_v32, %v4733_v34 }
0x298d   :  { %v4743_v35 = vadd.f32 %v5342_v33, %v4738_v56 }
0x298f   :  { %5101 = vmatmul.msk.f32.vlgmr.msra.gmra.mxu0 %vm417_vm3, %v4743_v35 }
0x29a1   :  { %v4708_v51 = vpop.xlane.xlu2 %4707 }
0x29a2   :  { %v4710_v27 = vmul.f32 %v4708_v51, %v6493_v18  ;;  %v5343_v18 = vld [vmem:[%s6195_s17] ss:$0 sm:$0xff]  ;;  %s5918_s17 = scalar_lea.hbm %s6200_s8, 16 }
0x29a3   :  { %p5920_p11 = scmp.lt.s32.totalorder %s5918_s17, %s5916_s9 }
0x29a4   :  { %v4712_v36 = vadd.f32 1e-05, %v4710_v27 }
0x29a5   :  { %p5921_p12 = por %p5920_p11, %p5919_p10 }
0x29a6   :  { %5584 = vrsqrt.f32 %v4712_v36  ;;  %vm4729_vm7 = vweird.f32 %v4712_v36 }
0x29a7   :  { %p5922_p13 = pnand %p5921_p12, %p5917_p9 }
0x29ac   :  { %v5585_v28 = vpop.eup %5584 }
0x29ad   :  { %v4724_v37 = vmul.f32 %v5585_v28, %v4712_v36  ;;  %vm4730_vm6 = vweird.f32 %v5585_v28 }
0x29ae   :  { %vm4731_vm8 = vmor %vm4729_vm7, %vm4730_vm6 }
0x29af   :  { %v4725_v30 = vmul.f32 %v5585_v28, %v4724_v37 }
0x29b1   :  { %v4726_v39 = vmul.f32 0.5, %v4725_v30 }
0x29b3   :  { %v4727_v40 = vsub.f32 1.5, %v4726_v39 }
0x29b5   :  { %v4728_v31 = vmul.f32 %v5585_v28, %v4727_v40 }
0x29b7   :  { %v4732_v42 = vsel %vm4731_vm8, %v5585_v28, %v4728_v31 }
0x29b8   :  { %v4734_v46 = vmul.f32 %v4732_v42, %v4700_v13 }
0x29ba   :  { %v4739_v45 = vmul.f32 %v5341_v32, %v4734_v46 }
0x29bc   :  { %v4744_v49 = vadd.f32 %v5342_v33, %v4739_v45 }
0x29be   :  { %5102 = vmatmul.msk.f32.gmra.mxu0 %vm417_vm3, %v4744_v49 }
0x2a0c   :  { %v4776_v52 = vpop.f32.mrf.mxu0 }
0x2a0d   :  { %v4777_v41 = vadd.f32 %v5343_v18, %v4776_v52 }
0x2a0f   :  { %4782 = vst.msk [vmem:[#allocation25] sm:$0xff] %vm379_vm0, %v4777_v41 }
0x2a3b   :  { %v4779_v53 = vpop.f32.mrf.mxu0 }
0x2a3c   :  { %v4780_v54 = vadd.f32 %v5343_v18, %v4779_v53 }
0x2a3e   :  { %4783 = vst.msk [vmem:[#allocation25 + $0x8] sm:$0xff] %vm379_vm0, %v4780_v54 }
0x2a3f   :  { %5925 = shalt.err (!%p5922_p13)
}
0x2a40   :  { %s6011_s29 = smov 128  }
0x2a41   :  { %4796 = dma.vmem_to_hbm [thread:$0]  %s4789_s15, 256, %s4791_s18, [#allocation6], %s6011_s29, %s6011_s29, %s6006_s24  }
0x2a42   :  { %5940 = dma.done.wait [#allocation6], 256  }
0x2a43   :  { %5941 = vsyncadd [#allocation6], 4294967040 }
0x2a44   :  { %4801 = vsyncpa [#allocation5], 1 }
0x2a45   :  { %4802 = vsyncpa [#allocation8], 1 }
0x2a46   :  { %4803 = vsyncpa [#allocation11], 1 }
0x2a47   :  { %4804 = vsyncpa [#allocation14], 1 }
0x2a48   :  { %4805 = vsyncpa [#allocation17], 1 }
0x2a49   :  { %4806 = vsyncpa [#allocation20], 1 }
0x2a4a   :  { %4807 = vsyncpa [#allocation23], 1 }
0x2a4b   :  { %4808 = vsyncpa [#allocation6], 1 }

</bundles_post_ra>
